<compile_context>
chip_gen: v6e
topology: v6e:2x2x1
jax: 0.10.0
libtpu: 0.0.40
codegen_flags: <defaults>
</compile_context>

<pallas_src>
import functools

import numpy as np
import jax
import jax.numpy as jnp
from jax.experimental import pallas as pl
from jax.experimental.pallas import tpu as pltpu

EPS = 1e-5


def _bottleneck_kernel(x_ref, w1_ref, g1_ref, b1_ref, w2_ref, g2_ref, b2_ref,
                       w3_ref, g3_ref, b3_ref, *outs_and_scratch, emit_preact):
    if emit_preact:
        out_ref, pre_ref, hp_ref = outs_and_scratch
    else:
        out_ref, hp_ref = outs_and_scratch
        pre_ref = None

    N, H, W, Cin = x_ref.shape
    P = N * H * W
    inv_p = 1.0 / P
    x = x_ref[...].reshape(P, Cin)            # collapse leading dims only

    def bn(h, gamma_ref, beta_ref, relu):
        # Fused training-mode BatchNorm: one reduction pass (sum + sum-sq),
        # folded into a single per-channel scale/bias FMA; rsqrt -> EUP.
        s1 = jnp.sum(h, axis=0, keepdims=True)
        s2 = jnp.sum(h * h, axis=0, keepdims=True)
        mean = s1 * inv_p
        var = jnp.maximum(s2 * inv_p - mean * mean, 0.0)
        scale = gamma_ref[...] * jax.lax.rsqrt(var + EPS)
        bias = beta_ref[...] - mean * scale
        y = h * scale + bias
        return jnp.maximum(y, 0.0) if relu else y

    # conv1: grouped 1x1 conv embedded as dense block-diagonal matmul.  The
    # channel shuffle is already folded into the weight columns / bn1 params.
    h = jnp.dot(x, w1_ref[...], preferred_element_type=jnp.float32)
    h = bn(h, g1_ref, b1_ref, relu=True)
    Cm = h.shape[1]                            # lane-dense padded mid width

    # conv2: 3x3 depthwise, stride=1, pad=1 via a zero-initialised padded VMEM
    # scratch + 9 shift-and-accumulate VPU FMAs (no concatenate copies).
    hp_ref[...] = jnp.zeros(hp_ref.shape, hp_ref.dtype)
    hp_ref[:, 1:H + 1, 1:W + 1, :] = h.reshape(N, H, W, Cm)
    w2 = w2_ref[...]                           # (9, Cm): [kh*3+kw, c] -- hoisted
    acc = w2[0] * hp_ref[:, 0:H, 0:W, :]       # tap (0,0) initialises acc
    for kh in range(3):
        for kw in range(3):
            if kh == 0 and kw == 0:
                continue
            acc = acc + w2[kh * 3 + kw] * hp_ref[:, kh:kh + H, kw:kw + W, :]
    h = bn(acc.reshape(P, Cm), g2_ref, b2_ref, relu=True)

    # conv3: grouped 1x1 conv as dense block-diagonal matmul, then bn3.
    h = jnp.dot(h, w3_ref[...], preferred_element_type=jnp.float32)
    h = bn(h, g3_ref, b3_ref, relu=False)

    # shortcut: identity for stride=1, residual add, relu (Cout == Cin here).
    pre = h + x
    Cout = h.shape[1]
    out_ref[...] = jnp.maximum(pre, 0.0).reshape(N, H, W, Cout)
    if emit_preact:
        pre_ref[...] = pre.reshape(N, H, W, Cout)


def _round_up(v, m):
    return -(-v // m) * m


def _vmem_bytes(shape, itemsize=4):
    s = list(shape)
    if len(s) == 1:
        s = [1, s[0]]
    n = itemsize
    for d in s[:-2]:
        n *= d
    return n * _round_up(s[-2], 8) * _round_up(s[-1], 128)


def prepare_bottleneck_params(raw_params, *, in_planes, out_planes, groups):
    """Host-side weight prep: block-diagonal embedding of the grouped 1x1 convs,
    channel shuffle folded into conv1/bn1, mid channels padded lane-dense."""
    (w1g, gamma1, beta1, w2, gamma2, beta2, w3g, gamma3, beta3) = raw_params
    mid = out_planes // 4
    g1 = 1 if in_planes == 24 else groups
    mid_pad = _round_up(mid, 128)              # padded channels stay exactly zero

    def block_diag(wg, n_out, n_in, g):
        wd = np.zeros((n_out, n_in), np.float32)
        opg, ipg = n_out // g, n_in // g
        wg = np.asarray(wg, np.float32).reshape(n_out, ipg)
        for gi in range(g):
            wd[gi * opg:(gi + 1) * opg, gi * ipg:(gi + 1) * ipg] = \
                wg[gi * opg:(gi + 1) * opg]
        return wd

    # Channel shuffle: shuffled channel j reads conv1-output channel perm[j].
    # Fold it by permuting conv1's output channels and bn1's params (exact:
    # BN stats are per-channel and commute with a channel permutation).
    cpg = mid // g1
    perm = np.array([(j % g1) * cpg + (j // g1) for j in range(mid)])

    w1d = np.zeros((in_planes, mid_pad), np.float32)
    w1d[:, :mid] = block_diag(w1g, mid, in_planes, g1)[perm, :].T
    g1v = np.zeros((1, mid_pad), np.float32)
    g1v[0, :mid] = np.asarray(gamma1, np.float32)[perm]
    b1v = np.zeros((1, mid_pad), np.float32)
    b1v[0, :mid] = np.asarray(beta1, np.float32)[perm]

    w2f = np.zeros((9, mid_pad), np.float32)
    w2f[:, :mid] = np.asarray(w2, np.float32).reshape(mid, 9).T
    g2v = np.zeros((1, mid_pad), np.float32)
    g2v[0, :mid] = np.asarray(gamma2, np.float32)
    b2v = np.zeros((1, mid_pad), np.float32)
    b2v[0, :mid] = np.asarray(beta2, np.float32)

    w3d = np.zeros((mid_pad, out_planes), np.float32)
    w3d[:mid, :] = block_diag(w3g, out_planes, mid, groups).T
    g3v = np.asarray(gamma3, np.float32).reshape(1, out_planes)
    b3v = np.asarray(beta3, np.float32).reshape(1, out_planes)

    prepared = tuple(jnp.asarray(a) for a in
                     (w1d, g1v, b1v, w2f, g2v, b2v, w3d, g3v, b3v))
    return prepared, mid_pad


def bottleneck_forward_nhwc(x_nhwc, prepared, mid_pad, *, is_last):
    """NHWC core entry point (use inside an NHWC model: no per-block transposes)."""
    N, H, W, _ = x_nhwc.shape
    out_planes = prepared[6].shape[1]
    args = (x_nhwc,) + tuple(prepared)

    out_sd = jax.ShapeDtypeStruct((N, H, W, out_planes), jnp.float32)
    vmem_spec = pl.BlockSpec(memory_space=pltpu.MemorySpace.VMEM)
    if is_last:
        out_shape, out_specs = (out_sd, out_sd), (vmem_spec, vmem_spec)
    else:
        out_shape, out_specs = out_sd, vmem_spec

    # Size the scoped VMEM limit from the actual working set (v5e default is
    # only 16 MiB); keep it below v7x's 64 MiB physical VMEM.
    P = N * H * W
    working = (sum(_vmem_bytes(a.shape) for a in args)
               + 2 * _vmem_bytes((N, H, W, out_planes))
               + _vmem_bytes((N, H + 2, W + 2, mid_pad))
               + 3 * _vmem_bytes((P, mid_pad)))
    vmem_limit = int(min(64 * 2 ** 20, max(16 * 2 ** 20, 4 * working)))

    kernel = functools.partial(_bottleneck_kernel, emit_preact=is_last)
    return pl.pallas_call(
        kernel,
        out_shape=out_shape,
        in_specs=[vmem_spec] * len(args),
        out_specs=out_specs,
        scratch_shapes=[pltpu.VMEM((N, H + 2, W + 2, mid_pad), jnp.float32)],
        compiler_params=pltpu.CompilerParams(vmem_limit_bytes=vmem_limit),
    )(*args)


def bottleneck_forward(x_nchw, raw_params, *, stride, groups, in_planes,
                       out_planes, is_last):
    """NCHW wrapper matching the PyTorch interface (stride=1 variant)."""
    # TODO(synk): stride=2 path (AvgPool2d shortcut + torch.cat) not implemented.
    assert stride == 1, "only the stride=1 BottleNeck variant is implemented"
    prepared, mid_pad = prepare_bottleneck_params(
        raw_params, in_planes=in_planes, out_planes=out_planes, groups=groups)
    x_nhwc = jnp.transpose(x_nchw, (0, 2, 3, 1))
    res = bottleneck_forward_nhwc(x_nhwc, prepared, mid_pad, is_last=is_last)
    if is_last:
        out_nhwc, pre_nhwc = res
        return (jnp.transpose(out_nhwc, (0, 3, 1, 2)),
                jnp.transpose(pre_nhwc, (0, 3, 1, 2)))
    return jnp.transpose(res, (0, 3, 1, 2))


def reference_forward(x_nchw, raw_params, *, stride, groups, g1, is_last):
    """Pure-JAX reference identical to the PyTorch forward (training-mode BN)."""
    (w1, gamma1, beta1, w2, gamma2, beta2, w3, gamma3, beta3) = raw_params
    HIGH = jax.lax.Precision.HIGHEST
    dn = ('NCHW', 'OIHW', 'NCHW')

    def bn(h, gamma, beta):
        mean = jnp.mean(h, axis=(0, 2, 3), keepdims=True)
        var = jnp.mean((h - mean) ** 2, axis=(0, 2, 3), keepdims=True)
        return ((h - mean) * jax.lax.rsqrt(var + EPS) * gamma.reshape(1, -1, 1, 1)
                + beta.reshape(1, -1, 1, 1))

    h = jax.lax.conv_general_dilated(x_nchw, w1, (1, 1), 'VALID',
                                     dimension_numbers=dn,
                                     feature_group_count=g1, precision=HIGH)
    h = jax.nn.relu(bn(h, gamma1, beta1))
    N, C, H, W = h.shape
    h = h.reshape(N, g1, C // g1, H, W).transpose(0, 2, 1, 3, 4).reshape(N, C, H, W)
    h = jax.lax.conv_general_dilated(h, w2, (stride, stride), ((1, 1), (1, 1)),
                                     dimension_numbers=dn,
                                     feature_group_count=C, precision=HIGH)
    h = jax.nn.relu(bn(h, gamma2, beta2))
    h = jax.lax.conv_general_dilated(h, w3, (1, 1), 'VALID',
                                     dimension_numbers=dn,
                                     feature_group_count=groups, precision=HIGH)
    h = bn(h, gamma3, beta3)
    pre = h + x_nchw
    out = jax.nn.relu(pre)
    return (out, pre) if is_last else out


if __name__ == "__main__":
    key = jax.random.PRNGKey(0)
    N, in_planes, H, W = 2, 16, 16, 16
    out_planes, stride, groups = 16, 1, 2
    mid = out_planes // 4
    g1 = 1 if in_planes == 24 else groups

    kx, k1, k2, k3, kg = jax.random.split(key, 5)
    x = jax.random.normal(kx, (N, in_planes, H, W), jnp.float32)

    # Deterministic synthetic parameters (shapes from the module's __init__).
    w1g = 0.2 * jax.random.normal(k1, (mid, in_planes // g1, 1, 1), jnp.float32)
    w2 = 0.2 * jax.random.normal(k2, (mid, 1, 3, 3), jnp.float32)
    w3g = 0.2 * jax.random.normal(k3, (out_planes, mid // groups, 1, 1), jnp.float32)
    bk = jax.random.split(kg, 6)
    gamma1 = 1.0 + 0.1 * jax.random.normal(bk[0], (mid,), jnp.float32)
    beta1 = 0.1 * jax.random.normal(bk[1], (mid,), jnp.float32)
    gamma2 = 1.0 + 0.1 * jax.random.normal(bk[2], (mid,), jnp.float32)
    beta2 = 0.1 * jax.random.normal(bk[3], (mid,), jnp.float32)
    gamma3 = 1.0 + 0.1 * jax.random.normal(bk[4], (out_planes,), jnp.float32)
    beta3 = 0.1 * jax.random.normal(bk[5], (out_planes,), jnp.float32)
    raw = (w1g, gamma1, beta1, w2, gamma2, beta2, w3g, gamma3, beta3)

    # is_last=True path: both out and preact are produced.
    out, pre = bottleneck_forward(x, raw, stride=stride, groups=groups,
                                  in_planes=in_planes, out_planes=out_planes,
                                  is_last=True)
    jax.block_until_ready(out)
    jax.block_until_ready(pre)

    # is_last=False path: single output, no preact HBM writeback.
    out_only = bottleneck_forward(x, raw, stride=stride, groups=groups,
                                  in_planes=in_planes, out_planes=out_planes,
                                  is_last=False)
    jax.block_until_ready(out_only)

    ref_out, ref_pre = reference_forward(x, raw, stride=stride, groups=groups,
                                         g1=g1, is_last=True)

    # Kernel matmuls run at default MXU precision while the reference runs at
    # Precision.HIGHEST, so tolerances reflect bf16 operand rounding (~2^-9
    # relative), not a structural mismatch.
    TOL = dict(rtol=3e-2, atol=3e-2)
    np.testing.assert_allclose(np.asarray(out), np.asarray(ref_out), **TOL)
    np.testing.assert_allclose(np.asarray(pre), np.asarray(ref_pre), **TOL)
    np.testing.assert_allclose(np.asarray(out_only), np.asarray(ref_out), **TOL)
    print("KERNEL_OK")
</pallas_src>

<mosaic_0001>
module attributes {stable_mosaic.version = 11 : i64} {
  func.func @_bottleneck_kernel(%arg0: memref<2x16x16x16xf32, #tpu.memory_space<vmem>>, %arg1: memref<16x128xf32, #tpu.memory_space<vmem>>, %arg2: memref<1x128xf32, #tpu.memory_space<vmem>>, %arg3: memref<1x128xf32, #tpu.memory_space<vmem>>, %arg4: memref<9x128xf32, #tpu.memory_space<vmem>>, %arg5: memref<1x128xf32, #tpu.memory_space<vmem>>, %arg6: memref<1x128xf32, #tpu.memory_space<vmem>>, %arg7: memref<128x16xf32, #tpu.memory_space<vmem>>, %arg8: memref<1x16xf32, #tpu.memory_space<vmem>>, %arg9: memref<1x16xf32, #tpu.memory_space<vmem>>, %arg10: memref<2x16x16x16xf32, #tpu.memory_space<vmem>>, %arg11: memref<2x16x16x16xf32, #tpu.memory_space<vmem>>, %arg12: memref<2x18x18x128xf32, #tpu.memory_space<vmem>>) attributes {dimension_semantics = [], scalar_prefetch = 0 : i64, scratch_operands = 1 : i64, tpu.core_type = #tpu.core_type<tc>} {
    %c0 = arith.constant 0 : index
    %c0_0 = arith.constant 0 : index
    %c0_1 = arith.constant 0 : index
    %c0_2 = arith.constant 0 : index
    %0 = vector.load %arg0[%c0, %c0_0, %c0_1, %c0_2] : memref<2x16x16x16xf32, #tpu.memory_space<vmem>>, vector<2x16x16x16xf32>
    %1 = vector.shape_cast %0 : vector<2x16x16x16xf32> to vector<512x16xf32>
    %c0_3 = arith.constant 0 : index
    %c0_4 = arith.constant 0 : index
    %2 = vector.load %arg1[%c0_3, %c0_4] : memref<16x128xf32, #tpu.memory_space<vmem>>, vector<16x128xf32>
    %cst = arith.constant dense<0.000000e+00> : vector<512x128xf32>
    %3 = tpu.matmul %1, %2, %cst {dimension_numbers = #tpu.dot_dimension_numbers<[1], [0], [0], [1], [0, 0, 1, 1], [], []>} : vector<512x16xf32>, vector<16x128xf32>, vector<512x128xf32> -> vector<512x128xf32>
    %cst_5 = arith.constant dense<0.000000e+00> : vector<128xf32>
    %4 = vector.multi_reduction <add>, %3, %cst_5 [0] : vector<512x128xf32> to vector<128xf32>
    %5 = vector.shape_cast %4 : vector<128xf32> to vector<1x128xf32>
    %6 = arith.mulf %3, %3 : vector<512x128xf32>
    %cst_6 = arith.constant dense<0.000000e+00> : vector<128xf32>
    %7 = vector.multi_reduction <add>, %6, %cst_6 [0] : vector<512x128xf32> to vector<128xf32>
    %8 = vector.shape_cast %7 : vector<128xf32> to vector<1x128xf32>
    %cst_7 = arith.constant 0.001953125 : f32
    %9 = vector.broadcast %cst_7 : f32 to vector<1x128xf32>
    %10 = arith.mulf %5, %9 : vector<1x128xf32>
    %cst_8 = arith.constant 0.001953125 : f32
    %11 = vector.broadcast %cst_8 : f32 to vector<1x128xf32>
    %12 = arith.mulf %8, %11 : vector<1x128xf32>
    %13 = arith.mulf %10, %10 : vector<1x128xf32>
    %14 = arith.subf %12, %13 : vector<1x128xf32>
    %cst_9 = arith.constant 0.000000e+00 : f32
    %15 = vector.broadcast %cst_9 : f32 to vector<1x128xf32>
    %16 = arith.maximumf %14, %15 : vector<1x128xf32>
    %c0_10 = arith.constant 0 : index
    %c0_11 = arith.constant 0 : index
    %17 = vector.load %arg2[%c0_10, %c0_11] : memref<1x128xf32, #tpu.memory_space<vmem>>, vector<1x128xf32>
    %cst_12 = arith.constant 9.99999974E-6 : f32
    %18 = vector.broadcast %cst_12 : f32 to vector<1x128xf32>
    %19 = arith.addf %16, %18 : vector<1x128xf32>
    %20 = math.rsqrt %19 : vector<1x128xf32>
    %21 = arith.mulf %17, %20 : vector<1x128xf32>
    %c0_13 = arith.constant 0 : index
    %c0_14 = arith.constant 0 : index
    %22 = vector.load %arg3[%c0_13, %c0_14] : memref<1x128xf32, #tpu.memory_space<vmem>>, vector<1x128xf32>
    %23 = arith.mulf %10, %21 : vector<1x128xf32>
    %24 = arith.subf %22, %23 : vector<1x128xf32>
    %25 = vector.broadcast %21 : vector<1x128xf32> to vector<512x128xf32>
    %26 = arith.mulf %3, %25 : vector<512x128xf32>
    %27 = vector.broadcast %24 : vector<1x128xf32> to vector<512x128xf32>
    %28 = arith.addf %26, %27 : vector<512x128xf32>
    %cst_15 = arith.constant 0.000000e+00 : f32
    %29 = vector.broadcast %cst_15 : f32 to vector<512x128xf32>
    %30 = arith.maximumf %28, %29 : vector<512x128xf32>
    %cst_16 = arith.constant 0.000000e+00 : f32
    %31 = vector.broadcast %cst_16 : f32 to vector<2x18x18x128xf32>
    %c0_17 = arith.constant 0 : index
    %c0_18 = arith.constant 0 : index
    %c0_19 = arith.constant 0 : index
    %c0_20 = arith.constant 0 : index
    %32 = vector.load %arg12[%c0_17, %c0_18, %c0_19, %c0_20] : memref<2x18x18x128xf32, #tpu.memory_space<vmem>>, vector<2x18x18x128xf32>
    tpu.vector_store %arg12[%c0_17, %c0_18, %c0_19, %c0_20], %31 {strides = array<i32>} : memref<2x18x18x128xf32, #tpu.memory_space<vmem>>, vector<2x18x18x128xf32>,
    %33 = vector.shape_cast %30 : vector<512x128xf32> to vector<2x16x16x128xf32>
    %c0_21 = arith.constant 0 : index
    %c1 = arith.constant 1 : index
    %c1_22 = arith.constant 1 : index
    %c0_23 = arith.constant 0 : index
    %34 = vector.load %arg12[%c0_21, %c1, %c1_22, %c0_23] : memref<2x18x18x128xf32, #tpu.memory_space<vmem>>, vector<2x16x16x128xf32>
    tpu.vector_store %arg12[%c0_21, %c1, %c1_22, %c0_23], %33 {strides = array<i32>} : memref<2x18x18x128xf32, #tpu.memory_space<vmem>>, vector<2x16x16x128xf32>,
    %c0_24 = arith.constant 0 : index
    %c0_25 = arith.constant 0 : index
    %35 = vector.load %arg4[%c0_24, %c0_25] : memref<9x128xf32, #tpu.memory_space<vmem>>, vector<9x128xf32>
    %36 = vector.extract_strided_slice %35 {offsets = [0, 0], sizes = [1, 128], strides = [1, 1]} : vector<9x128xf32> to vector<1x128xf32>
    %37 = vector.shape_cast %36 : vector<1x128xf32> to vector<128xf32>
    %c0_26 = arith.constant 0 : index
    %c0_27 = arith.constant 0 : index
    %c0_28 = arith.constant 0 : index
    %c0_29 = arith.constant 0 : index
    %38 = vector.load %arg12[%c0_26, %c0_27, %c0_28, %c0_29] : memref<2x18x18x128xf32, #tpu.memory_space<vmem>>, vector<2x16x16x128xf32>
    %39 = vector.shape_cast %37 : vector<128xf32> to vector<1x1x1x128xf32>
    %40 = vector.broadcast %39 : vector<1x1x1x128xf32> to vector<2x16x16x128xf32>
    %41 = arith.mulf %40, %38 : vector<2x16x16x128xf32>
    %42 = vector.extract_strided_slice %35 {offsets = [1, 0], sizes = [1, 128], strides = [1, 1]} : vector<9x128xf32> to vector<1x128xf32>
    %43 = vector.shape_cast %42 : vector<1x128xf32> to vector<128xf32>
    %c0_30 = arith.constant 0 : index
    %c0_31 = arith.constant 0 : index
    %c1_32 = arith.constant 1 : index
    %c0_33 = arith.constant 0 : index
    %44 = vector.load %arg12[%c0_30, %c0_31, %c1_32, %c0_33] : memref<2x18x18x128xf32, #tpu.memory_space<vmem>>, vector<2x16x16x128xf32>
    %45 = vector.shape_cast %43 : vector<128xf32> to vector<1x1x1x128xf32>
    %46 = vector.broadcast %45 : vector<1x1x1x128xf32> to vector<2x16x16x128xf32>
    %47 = arith.mulf %46, %44 : vector<2x16x16x128xf32>
    %48 = arith.addf %41, %47 : vector<2x16x16x128xf32>
    %49 = vector.extract_strided_slice %35 {offsets = [2, 0], sizes = [1, 128], strides = [1, 1]} : vector<9x128xf32> to vector<1x128xf32>
    %50 = vector.shape_cast %49 : vector<1x128xf32> to vector<128xf32>
    %c0_34 = arith.constant 0 : index
    %c0_35 = arith.constant 0 : index
    %c2 = arith.constant 2 : index
    %c0_36 = arith.constant 0 : index
    %51 = vector.load %arg12[%c0_34, %c0_35, %c2, %c0_36] : memref<2x18x18x128xf32, #tpu.memory_space<vmem>>, vector<2x16x16x128xf32>
    %52 = vector.shape_cast %50 : vector<128xf32> to vector<1x1x1x128xf32>
    %53 = vector.broadcast %52 : vector<1x1x1x128xf32> to vector<2x16x16x128xf32>
    %54 = arith.mulf %53, %51 : vector<2x16x16x128xf32>
    %55 = arith.addf %48, %54 : vector<2x16x16x128xf32>
    %56 = vector.extract_strided_slice %35 {offsets = [3, 0], sizes = [1, 128], strides = [1, 1]} : vector<9x128xf32> to vector<1x128xf32>
    %57 = vector.shape_cast %56 : vector<1x128xf32> to vector<128xf32>
    %c0_37 = arith.constant 0 : index
    %c1_38 = arith.constant 1 : index
    %c0_39 = arith.constant 0 : index
    %c0_40 = arith.constant 0 : index
    %58 = vector.load %arg12[%c0_37, %c1_38, %c0_39, %c0_40] : memref<2x18x18x128xf32, #tpu.memory_space<vmem>>, vector<2x16x16x128xf32>
    %59 = vector.shape_cast %57 : vector<128xf32> to vector<1x1x1x128xf32>
    %60 = vector.broadcast %59 : vector<1x1x1x128xf32> to vector<2x16x16x128xf32>
    %61 = arith.mulf %60, %58 : vector<2x16x16x128xf32>
    %62 = arith.addf %55, %61 : vector<2x16x16x128xf32>
    %63 = vector.extract_strided_slice %35 {offsets = [4, 0], sizes = [1, 128], strides = [1, 1]} : vector<9x128xf32> to vector<1x128xf32>
    %64 = vector.shape_cast %63 : vector<1x128xf32> to vector<128xf32>
    %c0_41 = arith.constant 0 : index
    %c1_42 = arith.constant 1 : index
    %c1_43 = arith.constant 1 : index
    %c0_44 = arith.constant 0 : index
    %65 = vector.load %arg12[%c0_41, %c1_42, %c1_43, %c0_44] : memref<2x18x18x128xf32, #tpu.memory_space<vmem>>, vector<2x16x16x128xf32>
    %66 = vector.shape_cast %64 : vector<128xf32> to vector<1x1x1x128xf32>
    %67 = vector.broadcast %66 : vector<1x1x1x128xf32> to vector<2x16x16x128xf32>
    %68 = arith.mulf %67, %65 : vector<2x16x16x128xf32>
    %69 = arith.addf %62, %68 : vector<2x16x16x128xf32>
    %70 = vector.extract_strided_slice %35 {offsets = [5, 0], sizes = [1, 128], strides = [1, 1]} : vector<9x128xf32> to vector<1x128xf32>
    %71 = vector.shape_cast %70 : vector<1x128xf32> to vector<128xf32>
    %c0_45 = arith.constant 0 : index
    %c1_46 = arith.constant 1 : index
    %c2_47 = arith.constant 2 : index
    %c0_48 = arith.constant 0 : index
    %72 = vector.load %arg12[%c0_45, %c1_46, %c2_47, %c0_48] : memref<2x18x18x128xf32, #tpu.memory_space<vmem>>, vector<2x16x16x128xf32>
    %73 = vector.shape_cast %71 : vector<128xf32> to vector<1x1x1x128xf32>
    %74 = vector.broadcast %73 : vector<1x1x1x128xf32> to vector<2x16x16x128xf32>
    %75 = arith.mulf %74, %72 : vector<2x16x16x128xf32>
    %76 = arith.addf %69, %75 : vector<2x16x16x128xf32>
    %77 = vector.extract_strided_slice %35 {offsets = [6, 0], sizes = [1, 128], strides = [1, 1]} : vector<9x128xf32> to vector<1x128xf32>
    %78 = vector.shape_cast %77 : vector<1x128xf32> to vector<128xf32>
    %c0_49 = arith.constant 0 : index
    %c2_50 = arith.constant 2 : index
    %c0_51 = arith.constant 0 : index
    %c0_52 = arith.constant 0 : index
    %79 = vector.load %arg12[%c0_49, %c2_50, %c0_51, %c0_52] : memref<2x18x18x128xf32, #tpu.memory_space<vmem>>, vector<2x16x16x128xf32>
    %80 = vector.shape_cast %78 : vector<128xf32> to vector<1x1x1x128xf32>
    %81 = vector.broadcast %80 : vector<1x1x1x128xf32> to vector<2x16x16x128xf32>
    %82 = arith.mulf %81, %79 : vector<2x16x16x128xf32>
    %83 = arith.addf %76, %82 : vector<2x16x16x128xf32>
    %84 = vector.extract_strided_slice %35 {offsets = [7, 0], sizes = [1, 128], strides = [1, 1]} : vector<9x128xf32> to vector<1x128xf32>
    %85 = vector.shape_cast %84 : vector<1x128xf32> to vector<128xf32>
    %c0_53 = arith.constant 0 : index
    %c2_54 = arith.constant 2 : index
    %c1_55 = arith.constant 1 : index
    %c0_56 = arith.constant 0 : index
    %86 = vector.load %arg12[%c0_53, %c2_54, %c1_55, %c0_56] : memref<2x18x18x128xf32, #tpu.memory_space<vmem>>, vector<2x16x16x128xf32>
    %87 = vector.shape_cast %85 : vector<128xf32> to vector<1x1x1x128xf32>
    %88 = vector.broadcast %87 : vector<1x1x1x128xf32> to vector<2x16x16x128xf32>
    %89 = arith.mulf %88, %86 : vector<2x16x16x128xf32>
    %90 = arith.addf %83, %89 : vector<2x16x16x128xf32>
    %91 = vector.extract_strided_slice %35 {offsets = [8, 0], sizes = [1, 128], strides = [1, 1]} : vector<9x128xf32> to vector<1x128xf32>
    %92 = vector.shape_cast %91 : vector<1x128xf32> to vector<128xf32>
    %c0_57 = arith.constant 0 : index
    %c2_58 = arith.constant 2 : index
    %c2_59 = arith.constant 2 : index
    %c0_60 = arith.constant 0 : index
    %93 = vector.load %arg12[%c0_57, %c2_58, %c2_59, %c0_60] : memref<2x18x18x128xf32, #tpu.memory_space<vmem>>, vector<2x16x16x128xf32>
    %94 = vector.shape_cast %92 : vector<128xf32> to vector<1x1x1x128xf32>
    %95 = vector.broadcast %94 : vector<1x1x1x128xf32> to vector<2x16x16x128xf32>
    %96 = arith.mulf %95, %93 : vector<2x16x16x128xf32>
    %97 = arith.addf %90, %96 : vector<2x16x16x128xf32>
    %98 = vector.shape_cast %97 : vector<2x16x16x128xf32> to vector<512x128xf32>
    %cst_61 = arith.constant dense<0.000000e+00> : vector<128xf32>
    %99 = vector.multi_reduction <add>, %98, %cst_61 [0] : vector<512x128xf32> to vector<128xf32>
    %100 = vector.shape_cast %99 : vector<128xf32> to vector<1x128xf32>
    %101 = arith.mulf %98, %98 : vector<512x128xf32>
    %cst_62 = arith.constant dense<0.000000e+00> : vector<128xf32>
    %102 = vector.multi_reduction <add>, %101, %cst_62 [0] : vector<512x128xf32> to vector<128xf32>
    %103 = vector.shape_cast %102 : vector<128xf32> to vector<1x128xf32>
    %cst_63 = arith.constant 0.001953125 : f32
    %104 = vector.broadcast %cst_63 : f32 to vector<1x128xf32>
    %105 = arith.mulf %100, %104 : vector<1x128xf32>
    %cst_64 = arith.constant 0.001953125 : f32
    %106 = vector.broadcast %cst_64 : f32 to vector<1x128xf32>
    %107 = arith.mulf %103, %106 : vector<1x128xf32>
    %108 = arith.mulf %105, %105 : vector<1x128xf32>
    %109 = arith.subf %107, %108 : vector<1x128xf32>
    %cst_65 = arith.constant 0.000000e+00 : f32
    %110 = vector.broadcast %cst_65 : f32 to vector<1x128xf32>
    %111 = arith.maximumf %109, %110 : vector<1x128xf32>
    %c0_66 = arith.constant 0 : index
    %c0_67 = arith.constant 0 : index
    %112 = vector.load %arg5[%c0_66, %c0_67] : memref<1x128xf32, #tpu.memory_space<vmem>>, vector<1x128xf32>
    %cst_68 = arith.constant 9.99999974E-6 : f32
    %113 = vector.broadcast %cst_68 : f32 to vector<1x128xf32>
    %114 = arith.addf %111, %113 : vector<1x128xf32>
    %115 = math.rsqrt %114 : vector<1x128xf32>
    %116 = arith.mulf %112, %115 : vector<1x128xf32>
    %c0_69 = arith.constant 0 : index
    %c0_70 = arith.constant 0 : index
    %117 = vector.load %arg6[%c0_69, %c0_70] : memref<1x128xf32, #tpu.memory_space<vmem>>, vector<1x128xf32>
    %118 = arith.mulf %105, %116 : vector<1x128xf32>
    %119 = arith.subf %117, %118 : vector<1x128xf32>
    %120 = vector.broadcast %116 : vector<1x128xf32> to vector<512x128xf32>
    %121 = arith.mulf %98, %120 : vector<512x128xf32>
    %122 = vector.broadcast %119 : vector<1x128xf32> to vector<512x128xf32>
    %123 = arith.addf %121, %122 : vector<512x128xf32>
    %cst_71 = arith.constant 0.000000e+00 : f32
    %124 = vector.broadcast %cst_71 : f32 to vector<512x128xf32>
    %125 = arith.maximumf %123, %124 : vector<512x128xf32>
    %c0_72 = arith.constant 0 : index
    %c0_73 = arith.constant 0 : index
    %126 = vector.load %arg7[%c0_72, %c0_73] : memref<128x16xf32, #tpu.memory_space<vmem>>, vector<128x16xf32>
    %cst_74 = arith.constant dense<0.000000e+00> : vector<512x16xf32>
    %127 = tpu.matmul %125, %126, %cst_74 {dimension_numbers = #tpu.dot_dimension_numbers<[1], [0], [0], [1], [0, 0, 1, 1], [], []>} : vector<512x128xf32>, vector<128x16xf32>, vector<512x16xf32> -> vector<512x16xf32>
    %cst_75 = arith.constant dense<0.000000e+00> : vector<16xf32>
    %128 = vector.multi_reduction <add>, %127, %cst_75 [0] : vector<512x16xf32> to vector<16xf32>
    %129 = vector.shape_cast %128 : vector<16xf32> to vector<1x16xf32>
    %130 = arith.mulf %127, %127 : vector<512x16xf32>
    %cst_76 = arith.constant dense<0.000000e+00> : vector<16xf32>
    %131 = vector.multi_reduction <add>, %130, %cst_76 [0] : vector<512x16xf32> to vector<16xf32>
    %132 = vector.shape_cast %131 : vector<16xf32> to vector<1x16xf32>
    %cst_77 = arith.constant 0.001953125 : f32
    %133 = vector.broadcast %cst_77 : f32 to vector<1x16xf32>
    %134 = arith.mulf %129, %133 : vector<1x16xf32>
    %cst_78 = arith.constant 0.001953125 : f32
    %135 = vector.broadcast %cst_78 : f32 to vector<1x16xf32>
    %136 = arith.mulf %132, %135 : vector<1x16xf32>
    %137 = arith.mulf %134, %134 : vector<1x16xf32>
    %138 = arith.subf %136, %137 : vector<1x16xf32>
    %cst_79 = arith.constant 0.000000e+00 : f32
    %139 = vector.broadcast %cst_79 : f32 to vector<1x16xf32>
    %140 = arith.maximumf %138, %139 : vector<1x16xf32>
    %c0_80 = arith.constant 0 : index
    %c0_81 = arith.constant 0 : index
    %141 = vector.load %arg8[%c0_80, %c0_81] : memref<1x16xf32, #tpu.memory_space<vmem>>, vector<1x16xf32>
    %cst_82 = arith.constant 9.99999974E-6 : f32
    %142 = vector.broadcast %cst_82 : f32 to vector<1x16xf32>
    %143 = arith.addf %140, %142 : vector<1x16xf32>
    %144 = math.rsqrt %143 : vector<1x16xf32>
    %145 = arith.mulf %141, %144 : vector<1x16xf32>
    %c0_83 = arith.constant 0 : index
    %c0_84 = arith.constant 0 : index
    %146 = vector.load %arg9[%c0_83, %c0_84] : memref<1x16xf32, #tpu.memory_space<vmem>>, vector<1x16xf32>
    %147 = arith.mulf %134, %145 : vector<1x16xf32>
    %148 = arith.subf %146, %147 : vector<1x16xf32>
    %149 = vector.broadcast %145 : vector<1x16xf32> to vector<512x16xf32>
    %150 = arith.mulf %127, %149 : vector<512x16xf32>
    %151 = vector.broadcast %148 : vector<1x16xf32> to vector<512x16xf32>
    %152 = arith.addf %150, %151 : vector<512x16xf32>
    %153 = arith.addf %152, %1 : vector<512x16xf32>
    %cst_85 = arith.constant 0.000000e+00 : f32
    %154 = vector.broadcast %cst_85 : f32 to vector<512x16xf32>
    %155 = arith.maximumf %153, %154 : vector<512x16xf32>
    %156 = vector.shape_cast %155 : vector<512x16xf32> to vector<2x16x16x16xf32>
    %c0_86 = arith.constant 0 : index
    %c0_87 = arith.constant 0 : index
    %c0_88 = arith.constant 0 : index
    %c0_89 = arith.constant 0 : index
    %157 = vector.load %arg10[%c0_86, %c0_87, %c0_88, %c0_89] : memref<2x16x16x16xf32, #tpu.memory_space<vmem>>, vector<2x16x16x16xf32>
    tpu.vector_store %arg10[%c0_86, %c0_87, %c0_88, %c0_89], %156 {strides = array<i32>} : memref<2x16x16x16xf32, #tpu.memory_space<vmem>>, vector<2x16x16x16xf32>,
    %158 = vector.shape_cast %153 : vector<512x16xf32> to vector<2x16x16x16xf32>
    %c0_90 = arith.constant 0 : index
    %c0_91 = arith.constant 0 : index
    %c0_92 = arith.constant 0 : index
    %c0_93 = arith.constant 0 : index
    %159 = vector.load %arg11[%c0_90, %c0_91, %c0_92, %c0_93] : memref<2x16x16x16xf32, #tpu.memory_space<vmem>>, vector<2x16x16x16xf32>
    tpu.vector_store %arg11[%c0_90, %c0_91, %c0_92, %c0_93], %158 {strides = array<i32>} : memref<2x16x16x16xf32, #tpu.memory_space<vmem>>, vector<2x16x16x16xf32>,
    return
  }
}

</mosaic_0001>

<bundles_post_ra>
// kernel: tpu_custom_call.1
= control target key start
LH: loop header
LB: loop body
LE: loop exit
PB: predicated region body
PF: predicated region fallthrough
CT: control target
= control target key end

     0   :  { %17 = vsyncpa [#allocation4], 0  ;;  %s11103_s0 = inlined_call_operand.hbm [shape: f32[2,16,16,16], index: 0, kind: input, shape index: {}]   ;;  %s11104_s1 = inlined_call_operand.vmem [shape: f32[16,128], index: 1, kind: input, shape index: {}]   ;;  %s11105_s2 = inlined_call_operand.vmem [shape: f32[1,128], index: 2, kind: input, shape index: {}]   ;;  %s11106_s3 = inlined_call_operand.vmem [shape: f32[1,128], index: 3, kind: input, shape index: {}]   ;;  %s11107_s4 = inlined_call_operand.vmem [shape: f32[9,128], index: 4, kind: input, shape index: {}]   ;;  %s11108_s5 = inlined_call_operand.vmem [shape: f32[1,128], index: 5, kind: input, shape index: {}]   ;;  %s11109_s6 = inlined_call_operand.vmem [shape: f32[1,128], index: 6, kind: input, shape index: {}]   ;;  %s11110_s7 = inlined_call_operand.vmem [shape: f32[128,16], index: 7, kind: input, shape index: {}]   ;;  %s11111_s8 = inlined_call_operand.vmem [shape: f32[1,16], index: 8, kind: input, shape index: {}]   ;;  %s11112_s9 = inlined_call_operand.vmem [shape: f32[1,16], index: 9, kind: input, shape index: {}]   ;;  %s11113_s10 = inlined_call_operand.hbm [shape: f32[2,16,16,16], index: 10, kind: output, shape index: {0}]   ;;  %s11114_s11 = inlined_call_operand.hbm [shape: f32[2,16,16,16], index: 11, kind: output, shape index: {1}]  }
   0x1   :  { %18 = vsyncpa [#allocation5], 0 }
   0x2   :  { %19 = vsyncpa [#allocation8], 0  ;;  %s5265_s17 = smov [#allocation3]  }
   0x3   :  { %s25_s18 = sshll.u32 %s5265_s17, 4  ;;  %s26_s18 = int_to_ptr.vmem [resolvable:$true] %s25_s18 }
   0x4   :  { %s5207_s19 = scalar_lea.vmem %s26_s18, 8192  ;;  %p5212_p1 = scmp.lt.s32.totalorder %s26_s18, %s26_s18 }
   0x5   :  { %p5208_p0 = scmp.ne.s32.totalorder %s26_s18, %s5207_s19  ;;  %p5213_p2 = scmp.lt.s32.totalorder %s5207_s19, %s5207_s19 }
   0x7   :  { %p5214_p3 = por %p5213_p2, %p5212_p1 }
   0x9   :  { %p5215_p4 = pnand %p5214_p3, %p5208_p0 }
   0xb   :  { %5218 = shalt.err (!%p5215_p4)
}
   0xc   :  { %s5266_s20 = smov 128   ;;  %s5267_s21 = smov 8  }
   0xd   :  { %31 = dma.hbm_to_vmem [thread:$0]  %s11103_s0, 8192, %s26_s18, [#allocation4], %s5266_s20, %s5266_s20, %s5267_s21  }
   0xe   :  { %5259 = dma.done.wait [#allocation4], 8192  }
   0xf   :  { %5260 = vsyncadd [#allocation4], 4294959104  ;;  %vm119_vm0 = vcmask 130048   ;;  %v118_v0 = vld [vmem:[%s11104_s1 + $0x8] sm:$0xff]  ;;  %v117_v1 = vld [vmem:[%s11104_s1] sm:$0xff]  ;;  %v5268_v39 = vmov 0.0  }
  0x10   :  { %v53_v2 = vld [vmem:[#allocation3] sm:$0xff]  ;;  %4792 = vmatprep.subr.mxu0 %v118_v0  ;;  %v54_v3 = vld [vmem:[#allocation3 + $0x8] sm:$0xff]  ;;  %v55_v4 = vld [vmem:[#allocation3 + $0x10] sm:$0xff]  ;;  %1119 = vst [vmem:[#allocation2 + $0x20] sm:$0xff] %v5268_v39 }
  0x11   :  { %4796 = vmatprep.mubr.msk.f32.mxu0 %vm119_vm0, %v53_v2  ;;  %4793 = vmatpush3.msra.mxu0 %v118_v0  ;;  %v56_v5 = vld [vmem:[#allocation3 + $0x18] sm:$0xff]  ;;  %v57_v6 = vld [vmem:[#allocation3 + $0x20] sm:$0xff]  ;;  %v58_v7 = vld [vmem:[#allocation3 + $0x28] sm:$0xff]  ;;  %1120 = vst [vmem:[#allocation2 + $0x28] sm:$0x3] %v5268_v39 }
  0x12   :  { %4794 = vmatprep.subr.mxu0 %v117_v1  ;;  %v59_v8 = vld [vmem:[#allocation3 + $0x30] sm:$0xff]  ;;  %v60_v9 = vld [vmem:[#allocation3 + $0x38] sm:$0xff]  ;;  %v61_v10 = vld [vmem:[#allocation3 + $0x40] sm:$0xff]  ;;  %1115 = vst [vmem:[#allocation2] sm:$0xff] %v5268_v39 }
  0x13   :  { %4795 = vmatpush3.msra.mxu0 %v117_v1  ;;  %v62_v11 = vld [vmem:[#allocation3 + $0x48] sm:$0xff]  ;;  %v63_v12 = vld [vmem:[#allocation3 + $0x50] sm:$0xff]  ;;  %v64_v13 = vld [vmem:[#allocation3 + $0x58] sm:$0xff]  ;;  %1116 = vst [vmem:[#allocation2 + $0x8] sm:$0xff] %v5268_v39 }
  0x14   :  { %4797 = vmatmul.mubr.msk.f32.vlgmr.msra.gmra.mxu0 %vm119_vm0, %v54_v3  ;;  %v65_v14 = vld [vmem:[#allocation3 + $0x60] sm:$0xff]  ;;  %v66_v15 = vld [vmem:[#allocation3 + $0x68] sm:$0xff]  ;;  %v67_v16 = vld [vmem:[#allocation3 + $0x70] sm:$0xff]  ;;  %1117 = vst [vmem:[#allocation2 + $0x10] sm:$0x3] %v5268_v39 }
  0x15   :  { %4799 = vmatprep.mubr.msk.f32.mxu0 %vm119_vm0, %v55_v4  ;;  %v68_v17 = vld [vmem:[#allocation3 + $0x78] sm:$0xff]  ;;  %v69_v18 = vld [vmem:[#allocation3 + $0x80] sm:$0xff]  ;;  %v70_v19 = vld [vmem:[#allocation3 + $0x88] sm:$0xff]  ;;  %1118 = vst [vmem:[#allocation2 + $0x18] sm:$0xff] %v5268_v39 }
  0x16   :  { %v71_v20 = vld [vmem:[#allocation3 + $0x90] sm:$0xff]  ;;  %v72_v21 = vld [vmem:[#allocation3 + $0x98] sm:$0xff]  ;;  %v73_v22 = vld [vmem:[#allocation3 + $0xa0] sm:$0xff]  ;;  %1121 = vst [vmem:[#allocation2 + $0x30] sm:$0xff] %v5268_v39 }
  0x17   :  { %v74_v23 = vld [vmem:[#allocation3 + $0xa8] sm:$0xff]  ;;  %v75_v24 = vld [vmem:[#allocation3 + $0xb0] sm:$0xff]  ;;  %v76_v25 = vld [vmem:[#allocation3 + $0xb8] sm:$0xff]  ;;  %1122 = vst [vmem:[#allocation2 + $0x38] sm:$0xff] %v5268_v39 }
  0x18   :  { %4800 = vmatmul.mubr.msk.f32.gmra.mxu0 %vm119_vm0, %v56_v5  ;;  %v77_v26 = vld [vmem:[#allocation3 + $0xc0] sm:$0xff]  ;;  %v78_v27 = vld [vmem:[#allocation3 + $0xc8] sm:$0xff]  ;;  %v79_v28 = vld [vmem:[#allocation3 + $0xd0] sm:$0xff]  ;;  %1123 = vst [vmem:[#allocation2 + $0x40] sm:$0x3] %v5268_v39 }
  0x19   :  { %4802 = vmatprep.mubr.msk.f32.mxu0 %vm119_vm0, %v57_v6  ;;  %v80_v29 = vld [vmem:[#allocation3 + $0xd8] sm:$0xff]  ;;  %v81_v30 = vld [vmem:[#allocation3 + $0xe0] sm:$0xff]  ;;  %v82_v31 = vld [vmem:[#allocation3 + $0xe8] sm:$0xff]  ;;  %1124 = vst [vmem:[#allocation2 + $0x48] sm:$0xff] %v5268_v39 }
  0x1a   :  { %v83_v32 = vld [vmem:[#allocation3 + $0xf0] sm:$0xff]  ;;  %v84_v33 = vld [vmem:[#allocation3 + $0xf8] sm:$0xff]  ;;  %v85_v34 = vld [vmem:[#allocation3 + $0x100] sm:$0xff]  ;;  %1125 = vst [vmem:[#allocation2 + $0x50] sm:$0xff] %v5268_v39 }
  0x1b   :  { %v86_v35 = vld [vmem:[#allocation3 + $0x108] sm:$0xff]  ;;  %v87_v36 = vld [vmem:[#allocation3 + $0x110] sm:$0xff]  ;;  %v5378_v37 = vld [vmem:[#allocation3 + $0x118] sm:$0xff]  ;;  %1126 = vst [vmem:[#allocation2 + $0x58] sm:$0x3] %v5268_v39 }
  0x1c   :  { %4803 = vmatmul.mubr.msk.f32.gmra.mxu0 %vm119_vm0, %v58_v7  ;;  %v5380_v38 = vld [vmem:[#allocation3 + $0x120] sm:$0xff]  ;;  %1127 = vst [vmem:[#allocation2 + $0x60] sm:$0xff] %v5268_v39  ;;  %1128 = vst [vmem:[#allocation2 + $0x68] sm:$0xff] %v5268_v39  ;;  %v90_v40 = vld [vmem:[#allocation3 + $0x128] sm:$0xff] }
  0x1d   :  { %4805 = vmatprep.mubr.msk.f32.mxu0 %vm119_vm0, %v59_v8  ;;  %1129 = vst [vmem:[#allocation2 + $0x70] sm:$0x3] %v5268_v39  ;;  %1130 = vst [vmem:[#allocation2 + $0x78] sm:$0xff] %v5268_v39  ;;  %v91_v41 = vld [vmem:[#allocation3 + $0x130] sm:$0xff]  ;;  %v92_v42 = vld [vmem:[#allocation3 + $0x138] sm:$0xff] }
  0x1e   :  { %1131 = vst [vmem:[#allocation2 + $0x80] sm:$0xff] %v5268_v39  ;;  %1132 = vst [vmem:[#allocation2 + $0x88] sm:$0x3] %v5268_v39  ;;  %v93_v43 = vld [vmem:[#allocation3 + $0x140] sm:$0xff]  ;;  %v94_v44 = vld [vmem:[#allocation3 + $0x148] sm:$0xff] }
  0x1f   :  { %1133 = vst [vmem:[#allocation2 + $0x90] sm:$0xff] %v5268_v39  ;;  %1134 = vst [vmem:[#allocation2 + $0x98] sm:$0xff] %v5268_v39  ;;  %v95_v45 = vld [vmem:[#allocation3 + $0x150] sm:$0xff]  ;;  %v96_v46 = vld [vmem:[#allocation3 + $0x158] sm:$0xff] }
  0x20   :  { %4806 = vmatmul.mubr.msk.f32.gmra.mxu0 %vm119_vm0, %v60_v9  ;;  %1135 = vst [vmem:[#allocation2 + $0xa0] sm:$0x3] %v5268_v39  ;;  %1136 = vst [vmem:[#allocation2 + $0xa8] sm:$0xff] %v5268_v39  ;;  %v97_v47 = vld [vmem:[#allocation3 + $0x160] sm:$0xff]  ;;  %v98_v48 = vld [vmem:[#allocation3 + $0x168] sm:$0xff] }
  0x21   :  { %4808 = vmatprep.mubr.msk.f32.mxu0 %vm119_vm0, %v61_v10  ;;  %1137 = vst [vmem:[#allocation2 + $0xb0] sm:$0xff] %v5268_v39  ;;  %1138 = vst [vmem:[#allocation2 + $0xb8] sm:$0x3] %v5268_v39  ;;  %v99_v49 = vld [vmem:[#allocation3 + $0x170] sm:$0xff]  ;;  %v100_v50 = vld [vmem:[#allocation3 + $0x178] sm:$0xff] }
  0x22   :  { %1139 = vst [vmem:[#allocation2 + $0xc0] sm:$0xff] %v5268_v39  ;;  %1140 = vst [vmem:[#allocation2 + $0xc8] sm:$0xff] %v5268_v39  ;;  %v101_v51 = vld [vmem:[#allocation3 + $0x180] sm:$0xff]  ;;  %v102_v52 = vld [vmem:[#allocation3 + $0x188] sm:$0xff] }
  0x23   :  { %1141 = vst [vmem:[#allocation2 + $0xd0] sm:$0x3] %v5268_v39  ;;  %1142 = vst [vmem:[#allocation2 + $0xd8] sm:$0xff] %v5268_v39  ;;  %v103_v53 = vld [vmem:[#allocation3 + $0x190] sm:$0xff]  ;;  %v104_v54 = vld [vmem:[#allocation3 + $0x198] sm:$0xff] }
  0x24   :  { %4809 = vmatmul.mubr.msk.f32.gmra.mxu0 %vm119_vm0, %v62_v11  ;;  %1143 = vst [vmem:[#allocation2 + $0xe0] sm:$0xff] %v5268_v39  ;;  %1144 = vst [vmem:[#allocation2 + $0xe8] sm:$0x3] %v5268_v39  ;;  %v105_v55 = vld [vmem:[#allocation3 + $0x1a0] sm:$0xff]  ;;  %v106_v56 = vld [vmem:[#allocation3 + $0x1a8] sm:$0xff] }
  0x25   :  { %4811 = vmatprep.mubr.msk.f32.mxu0 %vm119_vm0, %v63_v12  ;;  %1145 = vst [vmem:[#allocation2 + $0xf0] sm:$0xff] %v5268_v39  ;;  %1146 = vst [vmem:[#allocation2 + $0xf8] sm:$0xff] %v5268_v39  ;;  %v107_v57 = vld [vmem:[#allocation3 + $0x1b0] sm:$0xff]  ;;  %v108_v58 = vld [vmem:[#allocation3 + $0x1b8] sm:$0xff] }
  0x26   :  { %1147 = vst [vmem:[#allocation2 + $0x100] sm:$0x3] %v5268_v39  ;;  %1148 = vst [vmem:[#allocation2 + $0x108] sm:$0xff] %v5268_v39  ;;  %v109_v59 = vld [vmem:[#allocation3 + $0x1c0] sm:$0xff]  ;;  %v110_v60 = vld [vmem:[#allocation3 + $0x1c8] sm:$0xff] }
  0x27   :  { %1149 = vst [vmem:[#allocation2 + $0x110] sm:$0xff] %v5268_v39  ;;  %1150 = vst [vmem:[#allocation2 + $0x118] sm:$0x3] %v5268_v39  ;;  %v111_v61 = vld [vmem:[#allocation3 + $0x1d0] sm:$0xff]  ;;  %v112_v62 = vld [vmem:[#allocation3 + $0x1d8] sm:$0xff] }
  0x28   :  { %4812 = vmatmul.mubr.msk.f32.gmra.mxu0 %vm119_vm0, %v64_v13  ;;  %1151 = vst [vmem:[#allocation2 + $0x120] sm:$0xff] %v5268_v39  ;;  %1152 = vst [vmem:[#allocation2 + $0x128] sm:$0xff] %v5268_v39  ;;  %v113_v63 = vld [vmem:[#allocation3 + $0x1e0] sm:$0xff]  ;;  %v114_v0 = vld [vmem:[#allocation3 + $0x1e8] sm:$0xff] }
  0x29   :  { %4814 = vmatprep.mubr.msk.f32.mxu0 %vm119_vm0, %v65_v14  ;;  %1153 = vst [vmem:[#allocation2 + $0x130] sm:$0x3] %v5268_v39  ;;  %1154 = vst [vmem:[#allocation2 + $0x138] sm:$0xff] %v5268_v39  ;;  %v115_v1 = vld [vmem:[#allocation3 + $0x1f0] sm:$0xff]  ;;  %v116_v2 = vld [vmem:[#allocation3 + $0x1f8] sm:$0xff] }
  0x2a   :  { %1155 = vst [vmem:[#allocation2 + $0x140] sm:$0xff] %v5268_v39  ;;  %1156 = vst [vmem:[#allocation2 + $0x148] sm:$0x3] %v5268_v39 }
  0x2b   :  { %1157 = vst [vmem:[#allocation2 + $0x150] sm:$0xff] %v5268_v39  ;;  %1158 = vst [vmem:[#allocation2 + $0x158] sm:$0xff] %v5268_v39 }
  0x2c   :  { %4815 = vmatmul.mubr.msk.f32.gmra.mxu0 %vm119_vm0, %v66_v15  ;;  %1159 = vst [vmem:[#allocation2 + $0x160] sm:$0x3] %v5268_v39  ;;  %1160 = vst [vmem:[#allocation2 + $0x168] sm:$0xff] %v5268_v39 }
  0x2d   :  { %4817 = vmatprep.mubr.msk.f32.mxu0 %vm119_vm0, %v67_v16  ;;  %1161 = vst [vmem:[#allocation2 + $0x170] sm:$0xff] %v5268_v39  ;;  %1162 = vst [vmem:[#allocation2 + $0x178] sm:$0x3] %v5268_v39 }
  0x2e   :  { %1163 = vst [vmem:[#allocation2 + $0x180] sm:$0xff] %v5268_v39  ;;  %1164 = vst [vmem:[#allocation2 + $0x188] sm:$0xff] %v5268_v39 }
  0x2f   :  { %1165 = vst [vmem:[#allocation2 + $0x190] sm:$0x3] %v5268_v39  ;;  %1166 = vst [vmem:[#allocation2 + $0x198] sm:$0xff] %v5268_v39 }
  0x30   :  { %4818 = vmatmul.mubr.msk.f32.gmra.mxu0 %vm119_vm0, %v68_v17  ;;  %1167 = vst [vmem:[#allocation2 + $0x1a0] sm:$0xff] %v5268_v39  ;;  %1168 = vst [vmem:[#allocation2 + $0x1a8] sm:$0x3] %v5268_v39 }
  0x31   :  { %4820 = vmatprep.mubr.msk.f32.mxu0 %vm119_vm0, %v69_v18  ;;  %1169 = vst [vmem:[#allocation2 + $0x1b0] sm:$0xff] %v5268_v39  ;;  %1170 = vst [vmem:[#allocation2 + $0x1b8] sm:$0xff] %v5268_v39 }
  0x32   :  { %1171 = vst [vmem:[#allocation2 + $0x1c0] sm:$0x3] %v5268_v39  ;;  %1172 = vst [vmem:[#allocation2 + $0x1c8] sm:$0xff] %v5268_v39 }
  0x33   :  { %1173 = vst [vmem:[#allocation2 + $0x1d0] sm:$0xff] %v5268_v39  ;;  %1174 = vst [vmem:[#allocation2 + $0x1d8] sm:$0x3] %v5268_v39 }
  0x34   :  { %4821 = vmatmul.mubr.msk.f32.gmra.mxu0 %vm119_vm0, %v70_v19  ;;  %1175 = vst [vmem:[#allocation2 + $0x1e0] sm:$0xff] %v5268_v39  ;;  %1176 = vst [vmem:[#allocation2 + $0x1e8] sm:$0xff] %v5268_v39 }
  0x35   :  { %4823 = vmatprep.mubr.msk.f32.mxu0 %vm119_vm0, %v71_v20  ;;  %1177 = vst [vmem:[#allocation2 + $0x1f0] sm:$0x3] %v5268_v39  ;;  %1178 = vst [vmem:[#allocation2 + $0x1f8] sm:$0xff] %v5268_v39 }
  0x36   :  { %1179 = vst [vmem:[#allocation2 + $0x200] sm:$0xff] %v5268_v39  ;;  %1180 = vst [vmem:[#allocation2 + $0x208] sm:$0x3] %v5268_v39 }
  0x37   :  { %1181 = vst [vmem:[#allocation2 + $0x210] sm:$0xff] %v5268_v39  ;;  %1182 = vst [vmem:[#allocation2 + $0x218] sm:$0xff] %v5268_v39 }
  0x38   :  { %4824 = vmatmul.mubr.msk.f32.gmra.mxu0 %vm119_vm0, %v72_v21  ;;  %1183 = vst [vmem:[#allocation2 + $0x220] sm:$0x3] %v5268_v39  ;;  %1184 = vst [vmem:[#allocation2 + $0x228] sm:$0xff] %v5268_v39 }
  0x39   :  { %4826 = vmatprep.mubr.msk.f32.mxu0 %vm119_vm0, %v73_v22  ;;  %1185 = vst [vmem:[#allocation2 + $0x230] sm:$0xff] %v5268_v39  ;;  %1186 = vst [vmem:[#allocation2 + $0x238] sm:$0x3] %v5268_v39 }
  0x3a   :  { %1187 = vst [vmem:[#allocation2 + $0x240] sm:$0xff] %v5268_v39  ;;  %1188 = vst [vmem:[#allocation2 + $0x248] sm:$0xff] %v5268_v39 }
  0x3b   :  { %1189 = vst [vmem:[#allocation2 + $0x250] sm:$0x3] %v5268_v39  ;;  %1190 = vst [vmem:[#allocation2 + $0x258] sm:$0xff] %v5268_v39 }
  0x3c   :  { %4827 = vmatmul.mubr.msk.f32.gmra.mxu0 %vm119_vm0, %v74_v23  ;;  %1191 = vst [vmem:[#allocation2 + $0x260] sm:$0xff] %v5268_v39  ;;  %1192 = vst [vmem:[#allocation2 + $0x268] sm:$0x3] %v5268_v39 }
  0x3d   :  { %4829 = vmatprep.mubr.msk.f32.mxu0 %vm119_vm0, %v75_v24  ;;  %1193 = vst [vmem:[#allocation2 + $0x270] sm:$0xff] %v5268_v39  ;;  %1194 = vst [vmem:[#allocation2 + $0x278] sm:$0xff] %v5268_v39 }
  0x3e   :  { %1195 = vst [vmem:[#allocation2 + $0x280] sm:$0x3] %v5268_v39  ;;  %1196 = vst [vmem:[#allocation2 + $0x288] sm:$0xff] %v5268_v39 }
  0x3f   :  { %1197 = vst [vmem:[#allocation2 + $0x290] sm:$0xff] %v5268_v39  ;;  %1198 = vst [vmem:[#allocation2 + $0x298] sm:$0x3] %v5268_v39 }
  0x40   :  { %4830 = vmatmul.mubr.msk.f32.gmra.mxu0 %vm119_vm0, %v76_v25  ;;  %1199 = vst [vmem:[#allocation2 + $0x2a0] sm:$0xff] %v5268_v39  ;;  %1200 = vst [vmem:[#allocation2 + $0x2a8] sm:$0xff] %v5268_v39 }
  0x41   :  { %4832 = vmatprep.mubr.msk.f32.mxu0 %vm119_vm0, %v77_v26  ;;  %1201 = vst [vmem:[#allocation2 + $0x2b0] sm:$0x3] %v5268_v39  ;;  %1202 = vst [vmem:[#allocation2 + $0x2b8] sm:$0xff] %v5268_v39 }
  0x42   :  { %1203 = vst [vmem:[#allocation2 + $0x2c0] sm:$0xff] %v5268_v39  ;;  %1204 = vst [vmem:[#allocation2 + $0x2c8] sm:$0x3] %v5268_v39 }
  0x43   :  { %1205 = vst [vmem:[#allocation2 + $0x2d0] sm:$0xff] %v5268_v39  ;;  %1206 = vst [vmem:[#allocation2 + $0x2d8] sm:$0xff] %v5268_v39 }
  0x44   :  { %4833 = vmatmul.mubr.msk.f32.gmra.mxu0 %vm119_vm0, %v78_v27  ;;  %1207 = vst [vmem:[#allocation2 + $0x2e0] sm:$0x3] %v5268_v39  ;;  %1208 = vst [vmem:[#allocation2 + $0x2e8] sm:$0xff] %v5268_v39 }
  0x45   :  { %4835 = vmatprep.mubr.msk.f32.mxu0 %vm119_vm0, %v79_v28  ;;  %1209 = vst [vmem:[#allocation2 + $0x2f0] sm:$0xff] %v5268_v39  ;;  %1210 = vst [vmem:[#allocation2 + $0x2f8] sm:$0x3] %v5268_v39 }
  0x46   :  { %1211 = vst [vmem:[#allocation2 + $0x300] sm:$0xff] %v5268_v39  ;;  %1212 = vst [vmem:[#allocation2 + $0x308] sm:$0xff] %v5268_v39 }
  0x47   :  { %1213 = vst [vmem:[#allocation2 + $0x310] sm:$0x3] %v5268_v39  ;;  %1214 = vst [vmem:[#allocation2 + $0x318] sm:$0xff] %v5268_v39 }
  0x48   :  { %4836 = vmatmul.mubr.msk.f32.gmra.mxu0 %vm119_vm0, %v80_v29  ;;  %1215 = vst [vmem:[#allocation2 + $0x320] sm:$0xff] %v5268_v39  ;;  %1216 = vst [vmem:[#allocation2 + $0x328] sm:$0x3] %v5268_v39 }
  0x49   :  { %4838 = vmatprep.mubr.msk.f32.mxu0 %vm119_vm0, %v81_v30  ;;  %1217 = vst [vmem:[#allocation2 + $0x330] sm:$0xff] %v5268_v39  ;;  %1218 = vst [vmem:[#allocation2 + $0x338] sm:$0xff] %v5268_v39 }
  0x4a   :  { %1219 = vst [vmem:[#allocation2 + $0x340] sm:$0x3] %v5268_v39  ;;  %1220 = vst [vmem:[#allocation2 + $0x348] sm:$0xff] %v5268_v39 }
  0x4b   :  { %1221 = vst [vmem:[#allocation2 + $0x350] sm:$0xff] %v5268_v39  ;;  %1222 = vst [vmem:[#allocation2 + $0x358] sm:$0x3] %v5268_v39 }
  0x4c   :  { %4839 = vmatmul.mubr.msk.f32.gmra.mxu0 %vm119_vm0, %v82_v31 }
  0x4d   :  { %4841 = vmatprep.mubr.msk.f32.mxu0 %vm119_vm0, %v83_v32 }
  0x50   :  { %4842 = vmatmul.mubr.msk.f32.gmra.mxu0 %vm119_vm0, %v84_v33 }
  0x51   :  { %4844 = vmatprep.mubr.msk.f32.mxu0 %vm119_vm0, %v85_v34 }
  0x54   :  { %4845 = vmatmul.mubr.msk.f32.gmra.mxu0 %vm119_vm0, %v86_v35 }
  0x55   :  { %4847 = vmatprep.mubr.msk.f32.mxu0 %vm119_vm0, %v87_v36 }
  0x58   :  { %4848 = vmatmul.mubr.msk.f32.gmra.mxu0 %vm119_vm0, %v5378_v37 }
  0x59   :  { %4850 = vmatprep.mubr.msk.f32.mxu0 %vm119_vm0, %v5380_v38 }
  0x5c   :  { %4851 = vmatmul.mubr.msk.f32.gmra.mxu0 %vm119_vm0, %v90_v40 }
  0x5d   :  { %4853 = vmatprep.mubr.msk.f32.mxu0 %vm119_vm0, %v91_v41 }
  0x60   :  { %4854 = vmatmul.mubr.msk.f32.gmra.mxu0 %vm119_vm0, %v92_v42 }
  0x61   :  { %4856 = vmatprep.mubr.msk.f32.mxu0 %vm119_vm0, %v93_v43 }
  0x64   :  { %4857 = vmatmul.mubr.msk.f32.gmra.mxu0 %vm119_vm0, %v94_v44 }
  0x65   :  { %4859 = vmatprep.mubr.msk.f32.mxu0 %vm119_vm0, %v95_v45 }
  0x68   :  { %4860 = vmatmul.mubr.msk.f32.gmra.mxu0 %vm119_vm0, %v96_v46 }
  0x69   :  { %4862 = vmatprep.mubr.msk.f32.mxu0 %vm119_vm0, %v97_v47 }
  0x6c   :  { %4863 = vmatmul.mubr.msk.f32.gmra.mxu0 %vm119_vm0, %v98_v48 }
  0x6d   :  { %4865 = vmatprep.mubr.msk.f32.mxu0 %vm119_vm0, %v99_v49 }
  0x70   :  { %4866 = vmatmul.mubr.msk.f32.gmra.mxu0 %vm119_vm0, %v100_v50 }
  0x71   :  { %4868 = vmatprep.mubr.msk.f32.mxu0 %vm119_vm0, %v101_v51 }
  0x74   :  { %4869 = vmatmul.mubr.msk.f32.gmra.mxu0 %vm119_vm0, %v102_v52 }
  0x75   :  { %4871 = vmatprep.mubr.msk.f32.mxu0 %vm119_vm0, %v103_v53 }
  0x78   :  { %4872 = vmatmul.mubr.msk.f32.gmra.mxu0 %vm119_vm0, %v104_v54 }
  0x79   :  { %4874 = vmatprep.mubr.msk.f32.mxu0 %vm119_vm0, %v105_v55 }
  0x7c   :  { %4875 = vmatmul.mubr.msk.f32.gmra.mxu0 %vm119_vm0, %v106_v56 }
  0x7d   :  { %4877 = vmatprep.mubr.msk.f32.mxu0 %vm119_vm0, %v107_v57 }
  0x80   :  { %4878 = vmatmul.mubr.msk.f32.gmra.mxu0 %vm119_vm0, %v108_v58 }
  0x81   :  { %4880 = vmatprep.mubr.msk.f32.mxu0 %vm119_vm0, %v109_v59 }
  0x84   :  { %4881 = vmatmul.mubr.msk.f32.gmra.mxu0 %vm119_vm0, %v110_v60 }
  0x85   :  { %4883 = vmatprep.mubr.msk.f32.mxu0 %vm119_vm0, %v111_v61 }
  0x88   :  { %4884 = vmatmul.mubr.msk.f32.gmra.mxu0 %vm119_vm0, %v112_v62 }
  0x89   :  { %4886 = vmatprep.mubr.msk.f32.mxu0 %vm119_vm0, %v113_v63 }
  0x8c   :  { %4887 = vmatmul.mubr.msk.f32.gmra.mxu0 %vm119_vm0, %v114_v0 }
  0x8d   :  { %4889 = vmatprep.mubr.msk.f32.mxu0 %vm119_vm0, %v115_v1 }
  0x90   :  { %4890 = vmatmul.mubr.msk.f32.gmra.mxu0 %vm119_vm0, %v116_v2 }
  0xd4   :  { %v5521_v3 = vpop.f32.mrf.mxu0 }
  0xd5   :  { %v767_v7 = vmul.f32 %v5521_v3, %v5521_v3 }
  0xd6   :  { %v5523_v4 = vpop.f32.mrf.mxu0 }
  0xd7   :  { %v766_v5 = vmul.f32 %v5523_v4, %v5523_v4  ;;  %v697_v8 = vadd.f32 %v5521_v3, %v5523_v4 }
  0xd8   :  { %v5527_v6 = vpop.f32.mrf.mxu0 }
  0xd9   :  { %v830_v10 = vadd.f32 %v767_v7, %v766_v5  ;;  %v769_v14 = vmul.f32 %v5527_v6, %v5527_v6 }
  0xda   :  { %v5533_v9 = vpop.f32.mrf.mxu0 }
  0xdb   :  { %v698_v11 = vadd.f32 %v697_v8, %v5533_v9  ;;  %v768_v12 = vmul.f32 %v5533_v9, %v5533_v9 }
  0xdc   :  { %v5538_v13 = vpop.f32.mrf.mxu0 }
  0xdd   :  { %v699_v15 = vadd.f32 %v5527_v6, %v698_v11  ;;  %v831_v16 = vadd.f32 %v830_v10, %v768_v12  ;;  %v771_v22 = vmul.f32 %v5538_v13, %v5538_v13 }
  0xde   :  { %v5543_v17 = vpop.f32.mrf.mxu0 }
  0xdf   :  { %v832_v18 = vadd.f32 %v831_v16, %v769_v14  ;;  %v700_v19 = vadd.f32 %v699_v15, %v5543_v17  ;;  %v770_v20 = vmul.f32 %v5543_v17, %v5543_v17 }
  0xe0   :  { %v5548_v21 = vpop.f32.mrf.mxu0 }
  0xe1   :  { %v833_v23 = vadd.f32 %v832_v18, %v770_v20  ;;  %v701_v24 = vadd.f32 %v5538_v13, %v700_v19  ;;  %v773_v30 = vmul.f32 %v5548_v21, %v5548_v21 }
  0xe2   :  { %v5553_v25 = vpop.f32.mrf.mxu0 }
  0xe3   :  { %v702_v26 = vadd.f32 %v701_v24, %v5553_v25  ;;  %v772_v27 = vmul.f32 %v5553_v25, %v5553_v25  ;;  %v834_v28 = vadd.f32 %v833_v23, %v771_v22 }
  0xe4   :  { %v5558_v29 = vpop.f32.mrf.mxu0 }
  0xe5   :  { %v835_v31 = vadd.f32 %v834_v28, %v772_v27  ;;  %v703_v32 = vadd.f32 %v5548_v21, %v702_v26  ;;  %v775_v38 = vmul.f32 %v5558_v29, %v5558_v29 }
  0xe6   :  { %v5563_v33 = vpop.f32.mrf.mxu0 }
  0xe7   :  { %v704_v34 = vadd.f32 %v703_v32, %v5563_v33  ;;  %v774_v35 = vmul.f32 %v5563_v33, %v5563_v33  ;;  %v836_v36 = vadd.f32 %v835_v31, %v773_v30 }
  0xe8   :  { %v5568_v37 = vpop.f32.mrf.mxu0 }
  0xe9   :  { %v837_v39 = vadd.f32 %v836_v36, %v774_v35  ;;  %v705_v40 = vadd.f32 %v5558_v29, %v704_v34  ;;  %v777_v46 = vmul.f32 %v5568_v37, %v5568_v37 }
  0xea   :  { %v5573_v41 = vpop.f32.mrf.mxu0 }
  0xeb   :  { %v706_v42 = vadd.f32 %v705_v40, %v5573_v41  ;;  %v776_v43 = vmul.f32 %v5573_v41, %v5573_v41  ;;  %v838_v44 = vadd.f32 %v837_v39, %v775_v38 }
  0xec   :  { %v5578_v45 = vpop.f32.mrf.mxu0 }
  0xed   :  { %v839_v47 = vadd.f32 %v838_v44, %v776_v43  ;;  %v707_v48 = vadd.f32 %v5568_v37, %v706_v42  ;;  %v779_v54 = vmul.f32 %v5578_v45, %v5578_v45 }
  0xee   :  { %v5583_v49 = vpop.f32.mrf.mxu0 }
  0xef   :  { %v708_v50 = vadd.f32 %v707_v48, %v5583_v49  ;;  %v778_v51 = vmul.f32 %v5583_v49, %v5583_v49  ;;  %v840_v52 = vadd.f32 %v839_v47, %v777_v46 }
  0xf0   :  { %v5588_v53 = vpop.f32.mrf.mxu0 }
  0xf1   :  { %v841_v55 = vadd.f32 %v840_v52, %v778_v51  ;;  %v709_v56 = vadd.f32 %v5578_v45, %v708_v50  ;;  %v781_v62 = vmul.f32 %v5588_v53, %v5588_v53 }
  0xf2   :  { %v5593_v57 = vpop.f32.mrf.mxu0 }
  0xf3   :  { %v710_v58 = vadd.f32 %v709_v56, %v5593_v57  ;;  %v780_v59 = vmul.f32 %v5593_v57, %v5593_v57  ;;  %v842_v60 = vadd.f32 %v841_v55, %v779_v54 }
  0xf4   :  { %v5598_v61 = vpop.f32.mrf.mxu0 }
  0xf5   :  { %v843_v63 = vadd.f32 %v842_v60, %v780_v59  ;;  %v711_v0 = vadd.f32 %v5588_v53, %v710_v58  ;;  %v783_v10 = vmul.f32 %v5598_v61, %v5598_v61 }
  0xf6   :  { %v5603_v1 = vpop.f32.mrf.mxu0 }
  0xf7   :  { %v712_v2 = vadd.f32 %v711_v0, %v5603_v1  ;;  %v782_v5 = vmul.f32 %v5603_v1, %v5603_v1  ;;  %v844_v7 = vadd.f32 %v843_v63, %v781_v62 }
  0xf8   :  { %v5608_v8 = vpop.f32.mrf.mxu0 }
  0xf9   :  { %v845_v11 = vadd.f32 %v844_v7, %v782_v5  ;;  %v713_v12 = vadd.f32 %v5598_v61, %v712_v2  ;;  %v785_v20 = vmul.f32 %v5608_v8, %v5608_v8 }
  0xfa   :  { %v5613_v14 = vpop.f32.mrf.mxu0 }
  0xfb   :  { %v714_v15 = vadd.f32 %v713_v12, %v5613_v14  ;;  %v784_v16 = vmul.f32 %v5613_v14, %v5613_v14  ;;  %v846_v18 = vadd.f32 %v845_v11, %v783_v10 }
  0xfc   :  { %v5618_v19 = vpop.f32.mrf.mxu0 }
  0xfd   :  { %v847_v22 = vadd.f32 %v846_v18, %v784_v16  ;;  %v715_v23 = vadd.f32 %v5608_v8, %v714_v15  ;;  %v787_v31 = vmul.f32 %v5618_v19, %v5618_v19 }
  0xfe   :  { %v5623_v24 = vpop.f32.mrf.mxu0 }
  0xff   :  { %v716_v26 = vadd.f32 %v715_v23, %v5623_v24  ;;  %v786_v27 = vmul.f32 %v5623_v24, %v5623_v24  ;;  %v848_v28 = vadd.f32 %v847_v22, %v785_v20 }
 0x100   :  { %v5628_v30 = vpop.f32.mrf.mxu0 }
 0x101   :  { %v849_v32 = vadd.f32 %v848_v28, %v786_v27  ;;  %v717_v34 = vadd.f32 %v5618_v19, %v716_v26  ;;  %v789_v42 = vmul.f32 %v5628_v30, %v5628_v30 }
 0x102   :  { %v5633_v35 = vpop.f32.mrf.mxu0 }
 0x103   :  { %v718_v36 = vadd.f32 %v717_v34, %v5633_v35  ;;  %v788_v38 = vmul.f32 %v5633_v35, %v5633_v35  ;;  %v850_v39 = vadd.f32 %v849_v32, %v787_v31 }
 0x104   :  { %v5638_v40 = vpop.f32.mrf.mxu0 }
 0x105   :  { %v851_v43 = vadd.f32 %v850_v39, %v788_v38  ;;  %v719_v44 = vadd.f32 %v5628_v30, %v718_v36  ;;  %v791_v52 = vmul.f32 %v5638_v40, %v5638_v40 }
 0x106   :  { %v5643_v46 = vpop.f32.mrf.mxu0 }
 0x107   :  { %v720_v47 = vadd.f32 %v719_v44, %v5643_v46  ;;  %v790_v48 = vmul.f32 %v5643_v46, %v5643_v46  ;;  %v852_v50 = vadd.f32 %v851_v43, %v789_v42 }
 0x108   :  { %v5648_v51 = vpop.f32.mrf.mxu0 }
 0x109   :  { %v853_v54 = vadd.f32 %v852_v50, %v790_v48  ;;  %v721_v55 = vadd.f32 %v5638_v40, %v720_v47  ;;  %v793_v63 = vmul.f32 %v5648_v51, %v5648_v51 }
 0x10a   :  { %v5653_v56 = vpop.f32.mrf.mxu0 }
 0x10b   :  { %v722_v58 = vadd.f32 %v721_v55, %v5653_v56  ;;  %v792_v59 = vmul.f32 %v5653_v56, %v5653_v56  ;;  %v854_v60 = vadd.f32 %v853_v54, %v791_v52 }
 0x10c   :  { %v5658_v62 = vpop.f32.mrf.mxu0 }
 0x10d   :  { %v855_v0 = vadd.f32 %v854_v60, %v792_v59  ;;  %v723_v2 = vadd.f32 %v5648_v51, %v722_v58  ;;  %v795_v15 = vmul.f32 %v5658_v62, %v5658_v62 }
 0x10e   :  { %v5663_v5 = vpop.f32.mrf.mxu0 }
 0x10f   :  { %v724_v7 = vadd.f32 %v723_v2, %v5663_v5  ;;  %v794_v10 = vmul.f32 %v5663_v5, %v5663_v5  ;;  %v856_v11 = vadd.f32 %v855_v0, %v793_v63 }
 0x110   :  { %v5668_v12 = vpop.f32.mrf.mxu0 }
 0x111   :  { %v857_v16 = vadd.f32 %v856_v11, %v794_v10  ;;  %v725_v18 = vadd.f32 %v5658_v62, %v724_v7  ;;  %v797_v28 = vmul.f32 %v5668_v12, %v5668_v12 }
 0x112   :  { %v5673_v20 = vpop.f32.mrf.mxu0 }
 0x113   :  { %v726_v22 = vadd.f32 %v725_v18, %v5673_v20  ;;  %v796_v23 = vmul.f32 %v5673_v20, %v5673_v20  ;;  %v858_v26 = vadd.f32 %v857_v16, %v795_v15 }
 0x114   :  { %v5678_v27 = vpop.f32.mrf.mxu0 }
 0x115   :  { %v859_v31 = vadd.f32 %v858_v26, %v796_v23  ;;  %v727_v32 = vadd.f32 %v5668_v12, %v726_v22  ;;  %v799_v43 = vmul.f32 %v5678_v27, %v5678_v27 }
 0x116   :  { %v5683_v34 = vpop.f32.mrf.mxu0 }
 0x117   :  { %v728_v36 = vadd.f32 %v727_v32, %v5683_v34  ;;  %v798_v38 = vmul.f32 %v5683_v34, %v5683_v34  ;;  %v860_v39 = vadd.f32 %v859_v31, %v797_v28 }
 0x118   :  { %v5688_v42 = vpop.f32.mrf.mxu0 }
 0x119   :  { %11439 = vst [vmem:[#allocation12_spill] sm:$0xff] %v5688_v42  ;;  %v861_v44 = vadd.f32 %v860_v39, %v798_v38  ;;  %v729_v47 = vadd.f32 %v5678_v27, %v728_v36  ;;  %v801_v58 = vmul.f32 %v5688_v42, %v5688_v42 }
 0x11a   :  { %v5693_v48 = vpop.f32.mrf.mxu0 }
 0x11b   :  { %11440 = vst [vmem:[#allocation13_spill] sm:$0xff] %v5693_v48  ;;  %v730_v50 = vadd.f32 %v729_v47, %v5693_v48  ;;  %v800_v52 = vmul.f32 %v5693_v48, %v5693_v48  ;;  %v862_v54 = vadd.f32 %v861_v44, %v799_v43 }
 0x11c   :  { %v5698_v55 = vpop.f32.mrf.mxu0 }
 0x11d   :  { %11441 = vst [vmem:[#allocation14_spill] sm:$0xff] %v5698_v55  ;;  %v863_v59 = vadd.f32 %v862_v54, %v800_v52  ;;  %v731_v60 = vadd.f32 %v5688_v42, %v730_v50  ;;  %v803_v11 = vmul.f32 %v5698_v55, %v5698_v55 }
 0x11e   :  { %v5703_v63 = vpop.f32.mrf.mxu0 }
 0x11f   :  { %11442 = vst [vmem:[#allocation15_spill] sm:$0xff] %v5703_v63  ;;  %v732_v0 = vadd.f32 %v731_v60, %v5703_v63  ;;  %v802_v2 = vmul.f32 %v5703_v63, %v5703_v63  ;;  %v864_v7 = vadd.f32 %v863_v59, %v801_v58 }
 0x120   :  { %v5708_v10 = vpop.f32.mrf.mxu0 }
 0x121   :  { %11443 = vst [vmem:[#allocation16_spill] sm:$0xff] %v5708_v10  ;;  %v865_v15 = vadd.f32 %v864_v7, %v802_v2  ;;  %v733_v16 = vadd.f32 %v5698_v55, %v732_v0  ;;  %v805_v31 = vmul.f32 %v5708_v10, %v5708_v10 }
 0x122   :  { %v5713_v18 = vpop.f32.mrf.mxu0 }
 0x123   :  { %11444 = vst [vmem:[#allocation17_spill] sm:$0xff] %v5713_v18  ;;  %v734_v22 = vadd.f32 %v733_v16, %v5713_v18  ;;  %v804_v23 = vmul.f32 %v5713_v18, %v5713_v18  ;;  %v866_v26 = vadd.f32 %v865_v15, %v803_v11 }
 0x124   :  { %v5718_v28 = vpop.f32.mrf.mxu0 }
 0x125   :  { %11445 = vst [vmem:[#allocation18_spill] sm:$0xff] %v5718_v28  ;;  %v867_v32 = vadd.f32 %v866_v26, %v804_v23  ;;  %v735_v36 = vadd.f32 %v5708_v10, %v734_v22  ;;  %v807_v50 = vmul.f32 %v5718_v28, %v5718_v28 }
 0x126   :  { %v5723_v38 = vpop.f32.mrf.mxu0 }
 0x127   :  { %11446 = vst [vmem:[#allocation19_spill] sm:$0xff] %v5723_v38  ;;  %v736_v39 = vadd.f32 %v735_v36, %v5723_v38  ;;  %v806_v43 = vmul.f32 %v5723_v38, %v5723_v38  ;;  %v868_v44 = vadd.f32 %v867_v32, %v805_v31 }
 0x128   :  { %v5728_v47 = vpop.f32.mrf.mxu0 }
 0x129   :  { %11447 = vst [vmem:[#allocation20_spill] sm:$0xff] %v5728_v47  ;;  %v869_v52 = vadd.f32 %v868_v44, %v806_v43  ;;  %v737_v54 = vadd.f32 %v5718_v28, %v736_v39  ;;  %v809_v7 = vmul.f32 %v5728_v47, %v5728_v47 }
 0x12a   :  { %v5733_v58 = vpop.f32.mrf.mxu0 }
 0x12b   :  { %11448 = vst [vmem:[#allocation21_spill] sm:$0xff] %v5733_v58  ;;  %v738_v59 = vadd.f32 %v737_v54, %v5733_v58  ;;  %v808_v60 = vmul.f32 %v5733_v58, %v5733_v58  ;;  %v870_v0 = vadd.f32 %v869_v52, %v807_v50 }
 0x12c   :  { %v5738_v2 = vpop.f32.mrf.mxu0 }
 0x12d   :  { %11449 = vst [vmem:[#allocation22_spill] sm:$0xff] %v5738_v2  ;;  %v871_v11 = vadd.f32 %v870_v0, %v808_v60  ;;  %v739_v15 = vadd.f32 %v5728_v47, %v738_v59  ;;  %v811_v32 = vmul.f32 %v5738_v2, %v5738_v2 }
 0x12e   :  { %v5743_v16 = vpop.f32.mrf.mxu0 }
 0x12f   :  { %11450 = vst [vmem:[#allocation23_spill] sm:$0xff] %v5743_v16  ;;  %v740_v22 = vadd.f32 %v739_v15, %v5743_v16  ;;  %v810_v23 = vmul.f32 %v5743_v16, %v5743_v16  ;;  %v872_v26 = vadd.f32 %v871_v11, %v809_v7 }
 0x130   :  { %v5748_v31 = vpop.f32.mrf.mxu0 }
 0x131   :  { %11451 = vst [vmem:[#allocation24_spill] sm:$0xff] %v5748_v31  ;;  %v873_v36 = vadd.f32 %v872_v26, %v810_v23  ;;  %v741_v39 = vadd.f32 %v5738_v2, %v740_v22  ;;  %v813_v59 = vmul.f32 %v5748_v31, %v5748_v31 }
 0x132   :  { %v5753_v43 = vpop.f32.mrf.mxu0 }
 0x133   :  { %11452 = vst [vmem:[#allocation25_spill] sm:$0xff] %v5753_v43  ;;  %v742_v44 = vadd.f32 %v741_v39, %v5753_v43  ;;  %v812_v50 = vmul.f32 %v5753_v43, %v5753_v43  ;;  %v874_v52 = vadd.f32 %v873_v36, %v811_v32 }
 0x134   :  { %v5758_v54 = vpop.f32.mrf.mxu0 }
 0x135   :  { %11453 = vst [vmem:[#allocation26_spill] sm:$0xff] %v5758_v54  ;;  %v875_v60 = vadd.f32 %v874_v52, %v812_v50  ;;  %v743_v0 = vadd.f32 %v5748_v31, %v742_v44  ;;  %v815_v26 = vmul.f32 %v5758_v54, %v5758_v54 }
 0x136   :  { %v5763_v7 = vpop.f32.mrf.mxu0 }
 0x137   :  { %11454 = vst [vmem:[#allocation27_spill] sm:$0xff] %v5763_v7  ;;  %v744_v11 = vadd.f32 %v743_v0, %v5763_v7  ;;  %v814_v15 = vmul.f32 %v5763_v7, %v5763_v7  ;;  %v876_v22 = vadd.f32 %v875_v60, %v813_v59 }
 0x138   :  { %v5768_v23 = vpop.f32.mrf.mxu0 }
 0x139   :  { %11455 = vst [vmem:[#allocation28_spill] sm:$0xff] %v5768_v23  ;;  %v877_v32 = vadd.f32 %v876_v22, %v814_v15  ;;  %v745_v36 = vadd.f32 %v5758_v54, %v744_v11  ;;  %v817_v59 = vmul.f32 %v5768_v23, %v5768_v23 }
 0x13a   :  { %v5773_v39 = vpop.f32.mrf.mxu0 }
 0x13b   :  { %11456 = vst [vmem:[#allocation29_spill] sm:$0xff] %v5773_v39  ;;  %v746_v44 = vadd.f32 %v745_v36, %v5773_v39  ;;  %v816_v50 = vmul.f32 %v5773_v39, %v5773_v39  ;;  %v878_v52 = vadd.f32 %v877_v32, %v815_v26 }
 0x13c   :  { %v5778_v0 = vpop.f32.mrf.mxu0 }
 0x13d   :  { %11457 = vst [vmem:[#allocation30_spill] sm:$0xff] %v5778_v0  ;;  %v879_v60 = vadd.f32 %v878_v52, %v816_v50  ;;  %v747_v7 = vadd.f32 %v5768_v23, %v746_v44  ;;  %v819_v26 = vmul.f32 %v5778_v0, %v5778_v0 }
 0x13e   :  { %v5783_v31 = vpop.f32.mrf.mxu0 }
 0x13f   :  { %11458 = vst [vmem:[#allocation31_spill] sm:$0xff] %v5783_v31  ;;  %v748_v11 = vadd.f32 %v747_v7, %v5783_v31  ;;  %v818_v15 = vmul.f32 %v5783_v31, %v5783_v31  ;;  %v880_v22 = vadd.f32 %v879_v60, %v817_v59 }
 0x140   :  { %v5788_v36 = vpop.f32.mrf.mxu0 }
 0x141   :  { %11459 = vst [vmem:[#allocation32_spill] sm:$0xff] %v5788_v36  ;;  %v881_v32 = vadd.f32 %v880_v22, %v818_v15  ;;  %v749_v39 = vadd.f32 %v5778_v0, %v748_v11  ;;  %v821_v59 = vmul.f32 %v5788_v36, %v5788_v36 }
 0x142   :  { %v5793_v54 = vpop.f32.mrf.mxu0 }
 0x143   :  { %11460 = vst [vmem:[#allocation33_spill] sm:$0xff] %v5793_v54  ;;  %v750_v44 = vadd.f32 %v749_v39, %v5793_v54  ;;  %v820_v50 = vmul.f32 %v5793_v54, %v5793_v54  ;;  %v882_v7 = vadd.f32 %v881_v32, %v819_v26 }
 0x144   :  { %v5798_v52 = vpop.f32.mrf.mxu0 }
 0x145   :  { %11461 = vst [vmem:[#allocation34_spill] sm:$0xff] %v5798_v52  ;;  %v883_v60 = vadd.f32 %v882_v7, %v820_v50  ;;  %v751_v31 = vadd.f32 %v5788_v36, %v750_v44  ;;  %v823_v26 = vmul.f32 %v5798_v52, %v5798_v52 }
 0x146   :  { %v5803_v23 = vpop.f32.mrf.mxu0 }
 0x147   :  { %11462 = vst [vmem:[#allocation35_spill] sm:$0xff] %v5803_v23  ;;  %v752_v11 = vadd.f32 %v751_v31, %v5803_v23  ;;  %v822_v15 = vmul.f32 %v5803_v23, %v5803_v23  ;;  %v884_v39 = vadd.f32 %v883_v60, %v821_v59 }
 0x148   :  { %v4885_v22 = vpop.f32.mrf.mxu0 }
 0x149   :  { %v885_v32 = vadd.f32 %v884_v39, %v822_v15  ;;  %v753_v54 = vadd.f32 %v5798_v52, %v752_v11  ;;  %v825_v36 = vmul.f32 %v4885_v22, %v4885_v22 }
 0x14a   :  { %v668_v0 = vpop.f32.mrf.mxu0 }
 0x14b   :  { %v754_v43 = vadd.f32 %v753_v54, %v668_v0  ;;  %v824_v50 = vmul.f32 %v668_v0, %v668_v0  ;;  %v886_v7 = vadd.f32 %v885_v32, %v823_v26 }
 0x14c   :  { %v4888_v44 = vpop.f32.mrf.mxu0 }
 0x14d   :  { %v887_v2 = vadd.f32 %v886_v7, %v824_v50  ;;  %v755_v16 = vadd.f32 %v4885_v22, %v754_v43  ;;  %v827_v60 = vmul.f32 %v4888_v44, %v4888_v44 }
 0x14e   :  { %v678_v31 = vpop.f32.mrf.mxu0 }
 0x14f   :  { %v756_v47 = vadd.f32 %v755_v16, %v678_v31  ;;  %v826_v58 = vmul.f32 %v678_v31, %v678_v31  ;;  %v888_v23 = vadd.f32 %v887_v2, %v825_v36 }
 0x150   :  { %v4891_v59 = vpop.f32.mrf.mxu0 }
 0x151   :  { %v889_v28 = vadd.f32 %v888_v23, %v826_v58  ;;  %v757_v38 = vadd.f32 %v4888_v44, %v756_v47  ;;  %v829_v52 = vmul.f32 %v4891_v59, %v4891_v59 }
 0x152   :  { %v688_v10 = vpop.f32.mrf.mxu0 }
 0x153   :  { %v758_v15 = vadd.f32 %v757_v38, %v688_v10  ;;  %v828_v39 = vmul.f32 %v688_v10, %v688_v10  ;;  %v890_v11 = vadd.f32 %v889_v28, %v827_v60 }
 0x155   :  { %v759_v54 = vadd.f32 %v4891_v59, %v758_v15  ;;  %v891_v18 = vadd.f32 %v890_v11, %v828_v39  ;;  %v912_v39 = vlaneseq }
 0x157   :  { %v760_v26 = vrot.slane %v759_v54, 4  ;;  %v892_v32 = vadd.f32 %v891_v18, %v829_v52  ;;  %v5811_v18 = vshrl.u32 %v912_v39, 7 }
 0x159   :  { %v761_v55 = vadd.f32 %v760_v26, %v759_v54  ;;  %v893_v50 = vrot.slane %v892_v32, 4  ;;  %11463 = vst [vmem:[#allocation36_spill] sm:$0xff] %v5811_v18  ;;  %v5817_v52 = vsub.s32 0, %v5811_v18  ;;  %v11492_v18 = vld [vmem:[#allocation33_spill] sm:$0xff] }
 0x15b   :  { %v762_v43 = vrot.slane %v761_v55, 2  ;;  %v894_v7 = vadd.f32 %v893_v50, %v892_v32  ;;  %11464 = vst [vmem:[#allocation37_spill] sm:$0xff] %v5817_v52 }
 0x15d   :  { %v763_v16 = vadd.f32 %v762_v43, %v761_v55  ;;  %v895_v63 = vrot.slane %v894_v7, 2  ;;  %v904_v55 = vld [vmem:[%s11105_s2] sm:$0x1] }
 0x15f   :  { %v764_v2 = vrot.slane %v763_v16, 1  ;;  %v896_v36 = vadd.f32 %v895_v63, %v894_v7 }
 0x161   :  { %v765_v42 = vadd.f32 %v764_v2, %v763_v16  ;;  %v897_v58 = vrot.slane %v896_v36, 1 }
 0x163   :  { %v898_v47 = vadd.f32 %v897_v58, %v896_v36  ;;  %v899_v23 = vmul.f32 0.001953125, %v765_v42  ;;  %v908_v42 = vld [vmem:[%s11106_s3] sm:$0x1] }
 0x165   :  { %v900_v38 = vmul.f32 0.001953125, %v898_v47  ;;  %v901_v48 = vmul.f32 %v899_v23, %v899_v23 }
 0x167   :  { %v902_v28 = vsub.f32 %v900_v38, %v901_v48 }
 0x169   :  { %v903_v60 = vmax.f32 %v902_v28, 0.0 }
 0x16b   :  { %v905_v15 = vadd.f32 1e-05, %v903_v60 }
 0x16d   :  { %5058 = vrsqrt.f32 %v905_v15 }
 0x17a   :  { %v5059_v63 = vpop.eup %5058 }
 0x17b   :  { %v907_v11 = vmul.f32 %v5059_v63, %v904_v55 }
 0x17d   :  { %v909_v48 = vmul.f32 %v907_v11, %v899_v23  ;;  %v5823_v54 = vrot.slane %v907_v11, %v5817_v52 }
 0x17f   :  { %v910_v26 = vsub.f32 %v908_v42, %v909_v48  ;;  %v975_v32 = vmul.f32 %v5823_v54, %v668_v0  ;;  %v976_v50 = vmul.f32 %v4885_v22, %v5823_v54  ;;  %v977_v43 = vmul.f32 %v5823_v54, %v678_v31 }
 0x180   :  { %v978_v7 = vmul.f32 %v4888_v44, %v5823_v54  ;;  %v979_v2 = vmul.f32 %v5823_v54, %v688_v10  ;;  %v980_v36 = vmul.f32 %v4891_v59, %v5823_v54  ;;  %v917_v15 = vmul.f32 %v5823_v54, %v5523_v4 }
 0x181   :  { %v5830_v16 = vrot.slane %v910_v26, %v5817_v52  ;;  %v918_v39 = vmul.f32 %v5521_v3, %v5823_v54  ;;  %v919_v55 = vmul.f32 %v5823_v54, %v5533_v9  ;;  %v920_v63 = vmul.f32 %v5527_v6, %v5823_v54  ;;  %v11472_v26 = vld [vmem:[#allocation13_spill] sm:$0xff] }
 0x182   :  { %v921_v11 = vmul.f32 %v5823_v54, %v5543_v17  ;;  %v922_v42 = vmul.f32 %v5538_v13, %v5823_v54  ;;  %v923_v48 = vmul.f32 %v5823_v54, %v5553_v25  ;;  %v924_v4 = vmul.f32 %v5548_v21, %v5823_v54 }
 0x183   :  { %11465 = vst [vmem:[#allocation38_spill] sm:$0xff] %v5830_v16  ;;  %v5835_v58 = vadd.f32 %v5830_v16, %v975_v32  ;;  %v5838_v47 = vadd.f32 %v5830_v16, %v976_v50  ;;  %v1047_v0 = vadd.f32 %v5830_v16, %v977_v43  ;;  %v1048_v22 = vadd.f32 %v5830_v16, %v978_v7  ;;  %v11474_v50 = vld [vmem:[#allocation15_spill] sm:$0xff]  ;;  %v11476_v7 = vld [vmem:[#allocation17_spill] sm:$0xff] }
 0x184   :  { %v1049_v31 = vadd.f32 %v5830_v16, %v979_v2  ;;  %v5844_v44 = vadd.f32 %v5830_v16, %v980_v36  ;;  %v925_v3 = vmul.f32 %v5823_v54, %v5563_v33  ;;  %v926_v9 = vmul.f32 %v5558_v29, %v5823_v54  ;;  %v11478_v36 = vld [vmem:[#allocation19_spill] sm:$0xff] }
 0x185   :  { %11466 = vst [vmem:[#allocation39_spill] sm:$0xff] %v5835_v58  ;;  %11467 = vst [vmem:[#allocation40_spill] sm:$0xff] %v5838_v47  ;;  %v11141_v23 = vmax.f32 %v5835_v58, 0.0  ;;  %v11140_v10 = vmax.f32 %v5838_v47, 0.0  ;;  %v5848_v59 = vmax.f32 %v1047_v0, 0.0  ;;  %v5850_v38 = vmax.f32 %v1048_v22, 0.0 }
 0x186   :  { %11468 = vst [vmem:[#allocation41_spill] sm:$0xff] %v5844_v44  ;;  %v5852_v28 = vmax.f32 %v1049_v31, 0.0  ;;  %v11139_v60 = vmax.f32 %v5844_v44, 0.0  ;;  %v927_v6 = vmul.f32 %v5823_v54, %v5573_v41  ;;  %v928_v17 = vmul.f32 %v5568_v37, %v5823_v54  ;;  %v11479_v0 = vld [vmem:[#allocation18_spill] sm:$0xff]  ;;  %v11480_v31 = vld [vmem:[#allocation21_spill] sm:$0xff]  ;;  %v11490_v58 = vld [vmem:[#allocation31_spill] sm:$0xff] }
 0x187   :  { %11469 = vst [vmem:[#allocation42_spill] sm:$0xff] %v5848_v59  ;;  %11470 = vst [vmem:[#allocation43_spill] sm:$0xff] %v5850_v38  ;;  %v929_v13 = vmul.f32 %v5823_v54, %v5583_v49  ;;  %v930_v25 = vmul.f32 %v5578_v45, %v5823_v54  ;;  %v931_v21 = vmul.f32 %v5823_v54, %v5593_v57 }
 0x188   :  { %11471 = vst [vmem:[#allocation44_spill] sm:$0xff] %v5852_v28  ;;  %1282 = vst [vmem:[#allocation2 + $0x301] sm:$0xff] %v11141_v23  ;;  %v932_v33 = vmul.f32 %v5588_v53, %v5823_v54  ;;  %v933_v29 = vmul.f32 %v5823_v54, %v5603_v1  ;;  %v934_v41 = vmul.f32 %v5598_v61, %v5823_v54  ;;  %v11484_v23 = vld [vmem:[#allocation25_spill] sm:$0xff] }
 0x189   :  { %1283 = vst [vmem:[#allocation2 + $0x309] sm:$0xff] %v11140_v10  ;;  %1284 = vst [vmem:[#allocation2 + $0x319] sm:$0xff] %v5848_v59  ;;  %v935_v37 = vmul.f32 %v5823_v54, %v5613_v14  ;;  %v936_v49 = vmul.f32 %v5608_v8, %v5823_v54  ;;  %v937_v45 = vmul.f32 %v5823_v54, %v5623_v24  ;;  %v11488_v59 = vld [vmem:[#allocation29_spill] sm:$0xff] }
 0x18a   :  { %1285 = vst [vmem:[#allocation2 + $0x321] sm:$0xff] %v5850_v38  ;;  %1286 = vst [vmem:[#allocation2 + $0x331] sm:$0xff] %v5852_v28  ;;  %v938_v57 = vmul.f32 %v5618_v19, %v5823_v54  ;;  %v939_v53 = vmul.f32 %v5823_v54, %v5633_v35  ;;  %v940_v1 = vmul.f32 %v5628_v30, %v5823_v54  ;;  %v11486_v28 = vld [vmem:[#allocation27_spill] sm:$0xff] }
 0x18b   :  { %1287 = vst [vmem:[#allocation2 + $0x339] sm:$0xff] %v11139_v60  ;;  %v941_v61 = vmul.f32 %v5823_v54, %v5643_v46  ;;  %v942_v14 = vmul.f32 %v5638_v40, %v5823_v54  ;;  %v943_v8 = vmul.f32 %v5823_v54, %v5653_v56  ;;  %v944_v24 = vmul.f32 %v5648_v51, %v5823_v54  ;;  %v11482_v60 = vld [vmem:[#allocation23_spill] sm:$0xff] }
 0x18c   :  { %v945_v19 = vmul.f32 %v5823_v54, %v5663_v5  ;;  %v946_v35 = vmul.f32 %v5658_v62, %v5823_v54  ;;  %v947_v30 = vmul.f32 %v5823_v54, %v5673_v20  ;;  %v948_v46 = vmul.f32 %v5668_v12, %v5823_v54  ;;  %v11473_v5 = vld [vmem:[#allocation12_spill] sm:$0xff]  ;;  %v11475_v20 = vld [vmem:[#allocation14_spill] sm:$0xff] }
 0x18d   :  { %v949_v40 = vmul.f32 %v5823_v54, %v5683_v34  ;;  %v950_v56 = vmul.f32 %v5678_v27, %v5823_v54  ;;  %v951_v51 = vmul.f32 %v5823_v54, %v11472_v26  ;;  %v952_v32 = vmul.f32 %v11473_v5, %v5823_v54  ;;  %v11477_v34 = vld [vmem:[#allocation16_spill] sm:$0xff] }
 0x18e   :  { %v953_v62 = vmul.f32 %v5823_v54, %v11474_v50  ;;  %v954_v43 = vmul.f32 %v11475_v20, %v5823_v54  ;;  %v955_v12 = vmul.f32 %v5823_v54, %v11476_v7  ;;  %v956_v2 = vmul.f32 %v11477_v34, %v5823_v54  ;;  %v11481_v5 = vld [vmem:[#allocation20_spill] sm:$0xff]  ;;  %v11483_v7 = vld [vmem:[#allocation22_spill] sm:$0xff] }
 0x18f   :  { %v957_v27 = vmul.f32 %v5823_v54, %v11478_v36  ;;  %v958_v22 = vmul.f32 %v11479_v0, %v5823_v54  ;;  %v959_v26 = vmul.f32 %v5823_v54, %v11480_v31  ;;  %v960_v50 = vmul.f32 %v11481_v5, %v5823_v54  ;;  %v11485_v36 = vld [vmem:[#allocation24_spill] sm:$0xff]  ;;  %v11487_v31 = vld [vmem:[#allocation26_spill] sm:$0xff] }
 0x190   :  { %v961_v20 = vmul.f32 %v5823_v54, %v11482_v60  ;;  %v962_v10 = vmul.f32 %v11483_v7, %v5823_v54  ;;  %v963_v34 = vmul.f32 %v5823_v54, %v11484_v23  ;;  %v964_v44 = vmul.f32 %v11485_v36, %v5823_v54  ;;  %v11489_v60 = vld [vmem:[#allocation28_spill] sm:$0xff]  ;;  %v11491_v23 = vld [vmem:[#allocation30_spill] sm:$0xff] }
 0x191   :  { %v965_v0 = vmul.f32 %v5823_v54, %v11486_v28  ;;  %v966_v38 = vmul.f32 %v11487_v31, %v5823_v54  ;;  %v967_v5 = vmul.f32 %v5823_v54, %v11488_v59  ;;  %v968_v47 = vmul.f32 %v11489_v60, %v5823_v54  ;;  %v11493_v28 = vld [vmem:[#allocation32_spill] sm:$0xff]  ;;  %v11494_v31 = vld [vmem:[#allocation35_spill] sm:$0xff]  ;;  %v11495_v60 = vld [vmem:[#allocation34_spill] sm:$0xff] }
 0x192   :  { %v969_v7 = vmul.f32 %v5823_v54, %v11490_v58  ;;  %v970_v52 = vmul.f32 %v11491_v23, %v5823_v54  ;;  %v971_v36 = vmul.f32 %v5823_v54, %v11492_v18  ;;  %v972_v16 = vmul.f32 %v11493_v28, %v5823_v54  ;;  %v11496_v23 = vld [vmem:[#allocation38_spill] sm:$0xff] }
 0x193   :  { %v973_v59 = vmul.f32 %v5823_v54, %v11494_v31  ;;  %v974_v58 = vmul.f32 %v11495_v60, %v5823_v54  ;;  %v5981_v18 = vadd.f32 %v11496_v23, %v917_v15  ;;  %v5984_v28 = vadd.f32 %v11496_v23, %v918_v39 }
 0x194   :  { %v5987_v31 = vadd.f32 %v11496_v23, %v919_v55  ;;  %v5990_v54 = vadd.f32 %v11496_v23, %v920_v63  ;;  %v5993_v60 = vadd.f32 %v11496_v23, %v921_v11  ;;  %v5996_v15 = vadd.f32 %v11496_v23, %v922_v42 }
 0x195   :  { %11497 = vst [vmem:[#allocation13_spill] sm:$0xff] %v5981_v18  ;;  %11498 = vst [vmem:[#allocation12_spill] sm:$0xff] %v5984_v28  ;;  %v5999_v18 = vadd.f32 %v11496_v23, %v923_v48  ;;  %v6002_v39 = vadd.f32 %v11496_v23, %v924_v4  ;;  %v6005_v28 = vadd.f32 %v11496_v23, %v925_v3 }
 0x196   :  { %v6008_v55 = vadd.f32 %v11496_v23, %v926_v9  ;;  %v6011_v63 = vadd.f32 %v11496_v23, %v927_v6  ;;  %v6014_v11 = vadd.f32 %v11496_v23, %v928_v17  ;;  %v6017_v42 = vadd.f32 %v11496_v23, %v929_v13 }
 0x197   :  { %v6020_v48 = vadd.f32 %v11496_v23, %v930_v25  ;;  %v6023_v4 = vadd.f32 %v11496_v23, %v931_v21  ;;  %v6026_v3 = vadd.f32 %v11496_v23, %v932_v33  ;;  %v6029_v9 = vadd.f32 %v11496_v23, %v933_v29 }
 0x198   :  { %v6032_v6 = vadd.f32 %v11496_v23, %v934_v41  ;;  %v6035_v17 = vadd.f32 %v11496_v23, %v935_v37  ;;  %v6038_v13 = vadd.f32 %v11496_v23, %v936_v49  ;;  %v6041_v25 = vadd.f32 %v11496_v23, %v937_v45 }
 0x199   :  { %v6044_v21 = vadd.f32 %v11496_v23, %v938_v57  ;;  %v6047_v33 = vadd.f32 %v11496_v23, %v939_v53  ;;  %v6050_v29 = vadd.f32 %v11496_v23, %v940_v1  ;;  %v6053_v41 = vadd.f32 %v11496_v23, %v941_v61 }
 0x19a   :  { %v6056_v37 = vadd.f32 %v11496_v23, %v942_v14  ;;  %v6059_v49 = vadd.f32 %v11496_v23, %v943_v8  ;;  %v6062_v45 = vadd.f32 %v11496_v23, %v944_v24  ;;  %v6065_v57 = vadd.f32 %v11496_v23, %v945_v19 }
 0x19b   :  { %v6068_v53 = vadd.f32 %v11496_v23, %v946_v35  ;;  %v6071_v1 = vadd.f32 %v11496_v23, %v947_v30  ;;  %v6074_v61 = vadd.f32 %v11496_v23, %v948_v46  ;;  %v6077_v14 = vadd.f32 %v11496_v23, %v949_v40 }
 0x19c   :  { %11499 = vst [vmem:[#allocation15_spill] sm:$0xff] %v6059_v49  ;;  %11500 = vst [vmem:[#allocation14_spill] sm:$0xff] %v6062_v45  ;;  %v6080_v8 = vadd.f32 %v11496_v23, %v950_v56  ;;  %v6083_v24 = vadd.f32 %v11496_v23, %v951_v51  ;;  %v6086_v19 = vadd.f32 %v11496_v23, %v952_v32 }
 0x19d   :  { %11501 = vst [vmem:[#allocation17_spill] sm:$0xff] %v6065_v57  ;;  %11502 = vst [vmem:[#allocation16_spill] sm:$0xff] %v6068_v53  ;;  %v6089_v35 = vadd.f32 %v11496_v23, %v953_v62  ;;  %v6092_v30 = vadd.f32 %v11496_v23, %v954_v43  ;;  %v6095_v46 = vadd.f32 %v11496_v23, %v955_v12 }
 0x19e   :  { %11503 = vst [vmem:[#allocation19_spill] sm:$0xff] %v6077_v14  ;;  %11504 = vst [vmem:[#allocation18_spill] sm:$0xff] %v6080_v8  ;;  %v6098_v40 = vadd.f32 %v11496_v23, %v956_v2  ;;  %v6101_v56 = vadd.f32 %v11496_v23, %v957_v27  ;;  %v6104_v51 = vadd.f32 %v11496_v23, %v958_v22 }
 0x19f   :  { %11505 = vst [vmem:[#allocation21_spill] sm:$0xff] %v6083_v24  ;;  %11506 = vst [vmem:[#allocation20_spill] sm:$0xff] %v6086_v19  ;;  %v6107_v32 = vadd.f32 %v11496_v23, %v959_v26  ;;  %v6110_v62 = vadd.f32 %v11496_v23, %v960_v50  ;;  %v6113_v43 = vadd.f32 %v11496_v23, %v961_v20 }
 0x1a0   :  { %11507 = vst [vmem:[#allocation23_spill] sm:$0xff] %v6089_v35  ;;  %11508 = vst [vmem:[#allocation22_spill] sm:$0xff] %v6092_v30  ;;  %v6116_v12 = vadd.f32 %v11496_v23, %v962_v10  ;;  %v6119_v2 = vadd.f32 %v11496_v23, %v963_v34  ;;  %v6122_v27 = vadd.f32 %v11496_v23, %v964_v44 }
 0x1a1   :  { %11509 = vst [vmem:[#allocation25_spill] sm:$0xff] %v6095_v46  ;;  %11510 = vst [vmem:[#allocation24_spill] sm:$0xff] %v6098_v40  ;;  %v6125_v22 = vadd.f32 %v11496_v23, %v965_v0  ;;  %v6128_v26 = vadd.f32 %v11496_v23, %v966_v38  ;;  %v6131_v50 = vadd.f32 %v11496_v23, %v967_v5 }
 0x1a2   :  { %11511 = vst [vmem:[#allocation27_spill] sm:$0xff] %v6101_v56  ;;  %11512 = vst [vmem:[#allocation26_spill] sm:$0xff] %v6104_v51  ;;  %v6134_v20 = vadd.f32 %v11496_v23, %v968_v47  ;;  %v6137_v10 = vadd.f32 %v11496_v23, %v969_v7  ;;  %v6140_v34 = vadd.f32 %v11496_v23, %v970_v52  ;;  %v11529_v47 = vld [vmem:[#allocation13_spill] sm:$0xff]  ;;  %v1054_v52 = vmax.f32 %v5990_v54, 0.0 }
 0x1a3   :  { %11513 = vst [vmem:[#allocation29_spill] sm:$0xff] %v6107_v32  ;;  %11514 = vst [vmem:[#allocation28_spill] sm:$0xff] %v6110_v62  ;;  %v6143_v44 = vadd.f32 %v11496_v23, %v971_v36  ;;  %v6146_v0 = vadd.f32 %v11496_v23, %v972_v16  ;;  %v6149_v38 = vadd.f32 %v11496_v23, %v973_v59  ;;  %v1055_v36 = vmax.f32 %v5993_v60, 0.0 }
 0x1a4   :  { %11515 = vst [vmem:[#allocation31_spill] sm:$0xff] %v6113_v43  ;;  %11516 = vst [vmem:[#allocation30_spill] sm:$0xff] %v6116_v12  ;;  %v6152_v5 = vadd.f32 %v11496_v23, %v974_v58  ;;  %v11166_v16 = vmax.f32 %v5999_v18, 0.0  ;;  %v11165_v59 = vmax.f32 %v6002_v39, 0.0  ;;  %v11163_v58 = vmax.f32 %v6008_v55, 0.0 }
 0x1a5   :  { %11517 = vst [vmem:[#allocation33_spill] sm:$0xff] %v6119_v2  ;;  %11518 = vst [vmem:[#allocation32_spill] sm:$0xff] %v6122_v27  ;;  %v11170_v23 = vmax.f32 %v6011_v63, 0.0  ;;  %v11168_v54 = vmax.f32 %v6017_v42, 0.0  ;;  %v11167_v60 = vmax.f32 %v6020_v48, 0.0 }
 0x1a6   :  { %11519 = vst [vmem:[#allocation35_spill] sm:$0xff] %v6125_v22  ;;  %11520 = vst [vmem:[#allocation34_spill] sm:$0xff] %v6128_v26 }
 0x1a7   :  { %11521 = vst [vmem:[#allocation38_spill] sm:$0xff] %v6131_v50  ;;  %11522 = vst [vmem:[#allocation45_spill] sm:$0xff] %v6134_v20  ;;  %v1051_v20 = vmax.f32 %v11529_v47, 0.0  ;;  %v11530_v50 = vld [vmem:[#allocation12_spill] sm:$0xff]  ;;  %v11173_v47 = vmax.f32 %v6026_v3, 0.0 }
 0x1a8   :  { %11523 = vst [vmem:[#allocation46_spill] sm:$0xff] %v6137_v10  ;;  %11524 = vst [vmem:[#allocation47_spill] sm:$0xff] %v6140_v34  ;;  %v1052_v7 = vmax.f32 %v11530_v50, 0.0  ;;  %v1053_v10 = vmax.f32 %v5987_v31, 0.0  ;;  %v11169_v31 = vmax.f32 %v6014_v11, 0.0  ;;  %v11174_v50 = vmax.f32 %v6023_v4, 0.0 }
 0x1a9   :  { %11525 = vst [vmem:[#allocation48_spill] sm:$0xff] %v6143_v44  ;;  %11526 = vst [vmem:[#allocation49_spill] sm:$0xff] %v6146_v0  ;;  %v11162_v44 = vmax.f32 %v5996_v15, 0.0 }
 0x1aa   :  { %11527 = vst [vmem:[#allocation50_spill] sm:$0xff] %v6149_v38  ;;  %11528 = vst [vmem:[#allocation51_spill] sm:$0xff] %v6152_v5  ;;  %v11164_v38 = vmax.f32 %v6005_v28, 0.0 }
 0x1ab   :  { %1224 = vst [vmem:[#allocation2 + $0x19] sm:$0xff] %v1051_v20  ;;  %1225 = vst [vmem:[#allocation2 + $0x21] sm:$0xff] %v1052_v7  ;;  %v11172_v20 = vmax.f32 %v6029_v9, 0.0  ;;  %v11171_v7 = vmax.f32 %v6032_v6, 0.0 }
 0x1ac   :  { %1226 = vst [vmem:[#allocation2 + $0x31] sm:$0xff] %v1053_v10  ;;  %1227 = vst [vmem:[#allocation2 + $0x39] sm:$0xff] %v1054_v52  ;;  %v11192_v10 = vmax.f32 %v6035_v17, 0.0  ;;  %v11191_v52 = vmax.f32 %v6038_v13, 0.0 }
 0x1ad   :  { %1228 = vst [vmem:[#allocation2 + $0x49] sm:$0xff] %v1055_v36  ;;  %1229 = vst [vmem:[#allocation2 + $0x51] sm:$0xff] %v11162_v44  ;;  %v11176_v36 = vmax.f32 %v6041_v25, 0.0  ;;  %v11175_v44 = vmax.f32 %v6044_v21, 0.0 }
 0x1ae   :  { %1230 = vst [vmem:[#allocation2 + $0x61] sm:$0xff] %v11166_v16  ;;  %1231 = vst [vmem:[#allocation2 + $0x69] sm:$0xff] %v11165_v59  ;;  %v11178_v59 = vmax.f32 %v6053_v41, 0.0  ;;  %v11177_v16 = vmax.f32 %v6056_v37, 0.0 }
 0x1af   :  { %1232 = vst [vmem:[#allocation2 + $0x79] sm:$0xff] %v11164_v38  ;;  %1233 = vst [vmem:[#allocation2 + $0x81] sm:$0xff] %v11163_v58  ;;  %v11180_v58 = vmax.f32 %v6047_v33, 0.0  ;;  %v11179_v38 = vmax.f32 %v6050_v29, 0.0 }
 0x1b0   :  { %1234 = vst [vmem:[#allocation2 + $0x91] sm:$0xff] %v11170_v23  ;;  %1235 = vst [vmem:[#allocation2 + $0x99] sm:$0xff] %v11169_v31  ;;  %v11181_v31 = vmax.f32 %v6065_v57, 0.0  ;;  %v11182_v23 = vmax.f32 %v6068_v53, 0.0  ;;  %v2825_v57 = vld [vmem:[#allocation2 + $0x19a] sm:$0xff] }
 0x1b1   :  { %1236 = vst [vmem:[#allocation2 + $0xa9] sm:$0xff] %v11168_v54  ;;  %1237 = vst [vmem:[#allocation2 + $0xb1] sm:$0xff] %v11167_v60  ;;  %v11184_v60 = vmax.f32 %v6059_v49, 0.0  ;;  %v11183_v54 = vmax.f32 %v6062_v45, 0.0 }
 0x1b2   :  { %1238 = vst [vmem:[#allocation2 + $0xc1] sm:$0xff] %v11174_v50  ;;  %1239 = vst [vmem:[#allocation2 + $0xc9] sm:$0xff] %v11173_v47  ;;  %v11186_v47 = vmax.f32 %v6077_v14, 0.0  ;;  %v11185_v50 = vmax.f32 %v6080_v8, 0.0 }
 0x1b3   :  { %1240 = vst [vmem:[#allocation2 + $0xd9] sm:$0xff] %v11172_v20  ;;  %1241 = vst [vmem:[#allocation2 + $0xe1] sm:$0xff] %v11171_v7  ;;  %v1081_v7 = vmax.f32 %v6071_v1, 0.0  ;;  %v1082_v20 = vmax.f32 %v6074_v61, 0.0  ;;  %v11190_v1 = vmax.f32 %v6083_v24, 0.0  ;;  %v11189_v61 = vmax.f32 %v6086_v19, 0.0 }
 0x1b4   :  { %1242 = vst [vmem:[#allocation2 + $0xf1] sm:$0xff] %v11192_v10  ;;  %1243 = vst [vmem:[#allocation2 + $0xf9] sm:$0xff] %v11191_v52  ;;  %v11533_v52 = vld [vmem:[#allocation46_spill] sm:$0xff] }
 0x1b5   :  { %1244 = vst [vmem:[#allocation2 + $0x109] sm:$0xff] %v11176_v36  ;;  %1245 = vst [vmem:[#allocation2 + $0x111] sm:$0xff] %v11175_v44  ;;  %v11188_v44 = vmax.f32 %v6089_v35, 0.0  ;;  %v11187_v36 = vmax.f32 %v6092_v30, 0.0  ;;  %v1650_v24 = vld [vmem:[#allocation2 + $0x1b2] sm:$0xff] }
 0x1b6   :  { %1246 = vst [vmem:[#allocation2 + $0x121] sm:$0xff] %v11180_v58  ;;  %1247 = vst [vmem:[#allocation2 + $0x129] sm:$0xff] %v11179_v38  ;;  %v11194_v38 = vmax.f32 %v6101_v56, 0.0  ;;  %v11193_v58 = vmax.f32 %v6104_v51, 0.0  ;;  %v1455_v51 = vld [vmem:[#allocation2 + $0x1b9] sm:$0xff]  ;;  %v6348_v56 = vld [vmem:[#allocation2 + $0x322] sm:$0xff] }
 0x1b7   :  { %1248 = vst [vmem:[#allocation2 + $0x139] sm:$0xff] %v11178_v59  ;;  %1249 = vst [vmem:[#allocation2 + $0x141] sm:$0xff] %v11177_v16  ;;  %v11196_v16 = vmax.f32 %v6095_v46, 0.0  ;;  %v11195_v59 = vmax.f32 %v6098_v40, 0.0  ;;  %v5064_v40 = vld [vmem:[#allocation2] sm:$0xff] }
 0x1b8   :  { %1250 = vst [vmem:[#allocation2 + $0x151] sm:$0xff] %v11184_v60  ;;  %1251 = vst [vmem:[#allocation2 + $0x159] sm:$0xff] %v11183_v54  ;;  %v11197_v54 = vmax.f32 %v6113_v43, 0.0  ;;  %v11198_v60 = vmax.f32 %v6116_v12, 0.0 }
 0x1b9   :  { %1252 = vst [vmem:[#allocation2 + $0x169] sm:$0xff] %v11181_v31  ;;  %1253 = vst [vmem:[#allocation2 + $0x171] sm:$0xff] %v11182_v23  ;;  %v11208_v31 = vmax.f32 %v6107_v32, 0.0  ;;  %v11206_v23 = vmax.f32 %v6110_v62, 0.0 }
 0x1ba   :  { %1254 = vst [vmem:[#allocation2 + $0x181] sm:$0xff] %v1081_v7  ;;  %1255 = vst [vmem:[#allocation2 + $0x189] sm:$0xff] %v1082_v20  ;;  %v11199_v20 = vmax.f32 %v6119_v2, 0.0  ;;  %v11204_v7 = vmax.f32 %v6122_v27, 0.0  ;;  %v1679_v27 = vld [vmem:[#allocation2 + $0x30a] sm:$0xff]  ;;  %v6339_v2 = vld [vmem:[#allocation2 + $0x31a] sm:$0xff] }
 0x1bb   :  { %1256 = vst [vmem:[#allocation2 + $0x1c9] sm:$0xff] %v11186_v47  ;;  %1257 = vst [vmem:[#allocation2 + $0x1d1] sm:$0xff] %v11185_v50  ;;  %v11202_v50 = vmax.f32 %v6125_v22, 0.0  ;;  %v11209_v47 = vmax.f32 %v6152_v5, 0.0 }
 0x1bc   :  { %1258 = vst [vmem:[#allocation2 + $0x1e1] sm:$0xff] %v11190_v1  ;;  %1259 = vst [vmem:[#allocation2 + $0x1e9] sm:$0xff] %v11189_v61  ;;  %v11532_v61 = vld [vmem:[#allocation45_spill] sm:$0xff] }
 0x1bd   :  { %1260 = vst [vmem:[#allocation2 + $0x1f9] sm:$0xff] %v11188_v44  ;;  %1261 = vst [vmem:[#allocation2 + $0x201] sm:$0xff] %v11187_v36  ;;  %v11531_v36 = vld [vmem:[#allocation38_spill] sm:$0xff]  ;;  %v11200_v1 = vmax.f32 %v11532_v61, 0.0 }
 0x1be   :  { %1262 = vst [vmem:[#allocation2 + $0x211] sm:$0xff] %v11196_v16  ;;  %1263 = vst [vmem:[#allocation2 + $0x219] sm:$0xff] %v11195_v59  ;;  %v11201_v44 = vmax.f32 %v11531_v36, 0.0  ;;  %v11205_v59 = vmax.f32 %v6146_v0, 0.0  ;;  %v11535_v16 = vld [vmem:[#allocation50_spill] sm:$0xff]  ;;  %v11543_v0 = vld [vmem:[#allocation39_spill] sm:$0xff] }
 0x1bf   :  { %1264 = vst [vmem:[#allocation2 + $0x229] sm:$0xff] %v11194_v38  ;;  %1265 = vst [vmem:[#allocation2 + $0x231] sm:$0xff] %v11193_v58  ;;  %v11534_v58 = vld [vmem:[#allocation48_spill] sm:$0xff]  ;;  %v11207_v10 = vmax.f32 %v11535_v16, 0.0  ;;  %v11547_v61 = vld [vmem:[#allocation42_spill] sm:$0xff] }
 0x1c0   :  { %1266 = vst [vmem:[#allocation2 + $0x241] sm:$0xff] %v11208_v31  ;;  %1267 = vst [vmem:[#allocation2 + $0x249] sm:$0xff] %v11206_v23  ;;  %v11203_v38 = vmax.f32 %v11534_v58, 0.0  ;;  %v1353_v31 = vld [vmem:[#allocation2 + $0x320] sm:$0xff]  ;;  %v11544_v58 = vmax.f32 %v11543_v0, 0.0 }
 0x1c1   :  { %1268 = vst [vmem:[#allocation2 + $0x259] sm:$0xff] %v11197_v54  ;;  %1269 = vst [vmem:[#allocation2 + $0x261] sm:$0xff] %v11198_v60  ;;  %v11536_v54 = vmax.f32 %v6128_v26, 0.0  ;;  %v11537_v60 = vmax.f32 %v11533_v52, 0.0  ;;  %v1678_v26 = vld [vmem:[#allocation2 + $0x302] sm:$0xff] }
 0x1c2   :  { %1270 = vst [vmem:[#allocation2 + $0x271] sm:$0xff] %v11199_v20  ;;  %1271 = vst [vmem:[#allocation2 + $0x279] sm:$0xff] %v11204_v7  ;;  %v11538_v20 = vmax.f32 %v6140_v34, 0.0  ;;  %v1351_v7 = vld [vmem:[#allocation2 + $0x308] sm:$0xff]  ;;  %v11545_v34 = vld [vmem:[#allocation40_spill] sm:$0xff] }
 0x1c3   :  { %1272 = vst [vmem:[#allocation2 + $0x289] sm:$0xff] %v11202_v50  ;;  %1273 = vst [vmem:[#allocation2 + $0x291] sm:$0xff] %v11536_v54  ;;  %v11539_v54 = vld [vmem:[#allocation36_spill] sm:$0xff]  ;;  %v11541_v50 = vld [vmem:[#allocation37_spill] sm:$0xff] }
 0x1c4   :  { %1274 = vst [vmem:[#allocation2 + $0x2a1] sm:$0xff] %v11201_v44  ;;  %1275 = vst [vmem:[#allocation2 + $0x2a9] sm:$0xff] %v11200_v1  ;;  %v1488_v1 = vsub.s32 1, %v11539_v54  ;;  %v1350_v44 = vld [vmem:[#allocation2 + $0x300] sm:$0xff]  ;;  %v1684_v23 = vsub.s32 2, %v11539_v54  ;;  %v1880_v16 = vsub.s32 3, %v11539_v54 }
 0x1c5   :  { %1276 = vst [vmem:[#allocation2 + $0x2b9] sm:$0xff] %v11537_v60  ;;  %1277 = vst [vmem:[#allocation2 + $0x2c1] sm:$0xff] %v11538_v20  ;;  %v1288_v60 = vld [vmem:[%s11107_s4] sm:$0xff] }
 0x1c6   :  { %1278 = vst [vmem:[#allocation2 + $0x2d1] sm:$0xff] %v11203_v38  ;;  %1279 = vst [vmem:[#allocation2 + $0x2d9] sm:$0xff] %v11205_v59  ;;  %v6318_v20 = vrot.slane %v1288_v60, %v1488_v1  ;;  %v6321_v38 = vrot.slane %v1288_v60, %v11541_v50  ;;  %v1352_v59 = vld [vmem:[#allocation2 + $0x318] sm:$0xff]  ;;  %v11546_v50 = vmax.f32 %v11545_v34, 0.0  ;;  %v6341_v43 = vrot.slane %v1288_v60, %v1880_v16 }
 0x1c7   :  { %1280 = vst [vmem:[#allocation2 + $0x2e9] sm:$0xff] %v11207_v10  ;;  %1281 = vst [vmem:[#allocation2 + $0x2f1] sm:$0xff] %v11209_v47  ;;  %v2076_v34 = vsub.s32 4, %v11539_v54  ;;  %v2665_v16 = vsub.s32 7, %v11539_v54 }
 0x1c8   :  { %11540 = vst [vmem:[#allocation13_spill] sm:$0xff] %v6318_v20  ;;  %11542 = vst [vmem:[#allocation12_spill] sm:$0xff] %v6321_v38  ;;  %v1418_v10 = vmul.f32 %v6321_v38, %v1350_v44  ;;  %v1419_v47 = vmul.f32 %v6321_v38, %v1351_v7  ;;  %v1420_v5 = vmul.f32 %v6321_v38, %v1352_v59 }
 0x1c9   :  { %v1550_v1 = vmul.f32 %v6318_v20, %v11544_v58  ;;  %v1551_v52 = vmul.f32 %v6318_v20, %v11546_v50  ;;  %v1552_v36 = vmul.f32 %v6318_v20, %v11547_v61  ;;  %v6336_v44 = vrot.slane %v1288_v60, %v1684_v23  ;;  %11549 = vst [vmem:[#allocation39_spill] sm:$0xff] %v6341_v43  ;;  %v1454_v58 = vld [vmem:[#allocation2 + $0x1b1] sm:$0xff] }
 0x1ca   :  { %v1421_v7 = vmul.f32 %v6321_v38, %v1353_v31  ;;  %v11550_v50 = vld [vmem:[#allocation43_spill] sm:$0xff]  ;;  %v2272_v23 = vsub.s32 5, %v11539_v54  ;;  %v1522_v46 = vmul.f32 %v6318_v20, %v1454_v58  ;;  %v6359_v19 = vrot.slane %v1288_v60, %v2076_v34 }
 0x1cb   :  { %11548 = vst [vmem:[#allocation36_spill] sm:$0xff] %v6336_v44  ;;  %v1614_v22 = vadd.f32 %v1550_v1, %v1418_v10  ;;  %v1615_v12 = vadd.f32 %v1551_v52, %v1419_v47  ;;  %v1616_v0 = vadd.f32 %v1552_v36, %v1420_v5  ;;  %v1553_v62 = vmul.f32 %v6318_v20, %v11550_v50  ;;  %v6355_v1 = vld [vmem:[#allocation2 + $0x330] sm:$0xff] }
 0x1cc   :  { %v1746_v32 = vmul.f32 %v6336_v44, %v1678_v26  ;;  %v1747_v10 = vmul.f32 %v6336_v44, %v1679_v27  ;;  %v1748_v5 = vmul.f32 %v6336_v44, %v6339_v2  ;;  %v2469_v47 = vsub.s32 6, %v11539_v54  ;;  %11551 = vst [vmem:[#allocation40_spill] sm:$0xff] %v6359_v19  ;;  %v1877_v54 = vld [vmem:[#allocation2 + $0x338] sm:$0xff] }
 0x1cd   :  { %v1617_v52 = vadd.f32 %v1553_v62, %v1421_v7  ;;  %v1390_v26 = vmul.f32 %v5064_v40, %v6321_v38  ;;  %v1523_v27 = vmul.f32 %v6318_v20, %v1455_v51  ;;  %v1749_v8 = vmul.f32 %v6336_v44, %v6348_v56 }
 0x1ce   :  { %v1810_v36 = vadd.f32 %v1746_v32, %v1614_v22  ;;  %v1811_v30 = vadd.f32 %v1747_v10, %v1615_v12  ;;  %v1812_v35 = vadd.f32 %v1748_v5, %v1616_v0  ;;  %v1942_v62 = vmul.f32 %v6341_v43, %v1352_v59  ;;  %v1651_v22 = vld [vmem:[#allocation2 + $0x1ba] sm:$0xff] }
 0x1cf   :  { %v6365_v32 = vrot.slane %v1288_v60, %v2272_v23  ;;  %v1943_v7 = vmul.f32 %v6341_v43, %v1353_v31  ;;  %v1944_v12 = vmul.f32 %v6341_v43, %v6355_v1  ;;  %v6370_v0 = vrot.slane %v1288_v60, %v2665_v16  ;;  %v2629_v10 = vld [vmem:[#allocation2 + $0x199] sm:$0xff]  ;;  %v2630_v5 = vld [vmem:[#allocation2 + $0x1a1] sm:$0xff] }
 0x1d0   :  { %v6372_v34 = vrot.slane %v1288_v60, %v2469_v47  ;;  %v1813_v51 = vadd.f32 %v1749_v8, %v1617_v52  ;;  %v2006_v58 = vadd.f32 %v1942_v62, %v1810_v36  ;;  %v1586_v14 = vadd.f32 %v1522_v46, %v1390_v26  ;;  %v4645_v8 = vld [vmem:[%s11107_s4 + $0x8] ss:$0 sm:$0xff]  ;;  %v2268_v46 = vld [vmem:[#allocation2 + $0x332] sm:$0xff]  ;;  %v2661_v47 = vld [vmem:[#allocation2 + $0x349] sm:$0xff] }
 0x1d1   :  { %11552 = vst [vmem:[#allocation42_spill] sm:$0xff] %v6365_v32  ;;  %11553 = vst [vmem:[#allocation43_spill] sm:$0xff] %v6370_v0  ;;  %v1718_v59 = vmul.f32 %v6336_v44, %v1650_v24  ;;  %v2007_v23 = vadd.f32 %v1943_v7, %v1811_v30  ;;  %v2008_v53 = vadd.f32 %v1944_v12, %v1812_v35  ;;  %v11556_v35 = vld [vmem:[#allocation44_spill] sm:$0xff]  ;;  %v1297_v62 = vld [vmem:[#allocation2 + $0x50] sm:$0xff] }
 0x1d2   :  { %11554 = vst [vmem:[#allocation52_spill] sm:$0xff] %v6372_v34  ;;  %v1587_v45 = vadd.f32 %v1523_v27, %v1390_v26  ;;  %v1719_v31 = vmul.f32 %v6336_v44, %v1651_v22  ;;  %v1945_v49 = vmul.f32 %v6341_v43, %v1877_v54  ;;  %v2138_v16 = vmul.f32 %v6359_v19, %v11547_v61  ;;  %v2269_v27 = vld [vmem:[#allocation2 + $0x33a] sm:$0xff] }
 0x1d3   :  { %v6383_v60 = vmul.f32 %v5064_v40, %v6372_v34  ;;  %v2139_v24 = vmul.f32 %v6359_v19, %v11550_v50  ;;  %v2140_v30 = vmul.f32 %v6359_v19, %v11556_v35  ;;  %v6390_v52 = vmul.f32 %v6370_v0, %v2629_v10  ;;  %v1298_v40 = vld [vmem:[#allocation2 + $0x60] sm:$0xff]  ;;  %v1300_v43 = vld [vmem:[#allocation2 + $0x78] sm:$0xff]  ;;  %v6401_v10 = vld [vmem:[#allocation2 + $0x90] sm:$0xff] }
 0x1d4   :  { %v6393_v61 = vmul.f32 %v6370_v0, %v2630_v5  ;;  %v2009_v36 = vadd.f32 %v1945_v49, %v1813_v51  ;;  %v2202_v26 = vadd.f32 %v2138_v16, %v2006_v58  ;;  %v6395_v22 = vmul.f32 %v4645_v8, %v2825_v57  ;;  %v6399_v44 = vld [vmem:[#allocation2 + $0x80] sm:$0xff]  ;;  %11562 = vst [vmem:[#allocation58_spill] sm:$0xff] %v6401_v10  ;;  %v11564_v5 = vld [vmem:[#allocation41_spill] sm:$0xff]  ;;  %v6413_v58 = vld [vmem:[#allocation2 + $0x98] sm:$0xff] }
 0x1d5   :  { %11555 = vst [vmem:[#allocation53_spill] sm:$0xff] %v6383_v60  ;;  %11557 = vst [vmem:[#allocation44_spill] sm:$0xff] %v6390_v52  ;;  %v6397_v7 = vadd.f32 %v1718_v59, %v1586_v14  ;;  %v2203_v50 = vadd.f32 %v2139_v24, %v2007_v23  ;;  %v2204_v12 = vadd.f32 %v2140_v30, %v2008_v53  ;;  %v1299_v60 = vld [vmem:[#allocation2 + $0x68] sm:$0xff]  ;;  %v11565_v49 = vmax.f32 %v11564_v5, 0.0  ;;  %v6417_v59 = vld [vmem:[#allocation2 + $0xb0] sm:$0xff] }
 0x1d6   :  { %11558 = vst [vmem:[#allocation54_spill] sm:$0xff] %v6393_v61  ;;  %11559 = vst [vmem:[#allocation55_spill] sm:$0xff] %v6395_v22  ;;  %v6403_v52 = vadd.f32 %v1719_v31, %v1587_v45  ;;  %v2334_v57 = vmul.f32 %v6365_v32, %v6339_v2  ;;  %v6411_v14 = vmul.f32 %v6370_v0, %v2661_v47  ;;  %v6415_v53 = vld [vmem:[#allocation2 + $0xa8] sm:$0xff]  ;;  %v6419_v23 = vld [vmem:[#allocation2 + $0xc0] sm:$0xff] }
 0x1d7   :  { %11560 = vst [vmem:[#allocation56_spill] sm:$0xff] %v6397_v7  ;;  %11561 = vst [vmem:[#allocation57_spill] sm:$0xff] %v6399_v44  ;;  %v2141_v51 = vmul.f32 %v6359_v19, %v11565_v49  ;;  %v2335_v45 = vmul.f32 %v6365_v32, %v6348_v56  ;;  %v2336_v31 = vmul.f32 %v6365_v32, %v2268_v46  ;;  %v6431_v8 = vld [vmem:[#allocation2 + $0xc8] sm:$0xff]  ;;  %v6433_v24 = vld [vmem:[#allocation2 + $0xd8] sm:$0xff] }
 0x1d8   :  { %11563 = vst [vmem:[#allocation59_spill] sm:$0xff] %v6403_v52  ;;  %11566 = vst [vmem:[#allocation41_spill] sm:$0xff] %v6411_v14  ;;  %v6425_v16 = vmul.f32 %v6365_v32, %v2269_v27  ;;  %v6429_v2 = vmul.f32 %v6370_v0, %v11556_v35  ;;  %v6435_v30 = vld [vmem:[#allocation2 + $0xe0] sm:$0xff]  ;;  %v6437_v47 = vld [vmem:[#allocation2 + $0xf0] sm:$0xff]  ;;  %v6441_v56 = vadd.f32 %v2334_v57, %v2202_v26 }
 0x1d9   :  { %11567 = vst [vmem:[#allocation60_spill] sm:$0xff] %v6413_v58  ;;  %11568 = vst [vmem:[#allocation61_spill] sm:$0xff] %v6415_v53  ;;  %v6439_v5 = vadd.f32 %v2141_v51, %v2009_v36  ;;  %v6445_v46 = vmul.f32 %v6372_v34, %v6355_v1  ;;  %v6448_v27 = vmul.f32 %v6372_v34, %v1877_v54  ;;  %v6450_v35 = vld [vmem:[#allocation2 + $0xf8] sm:$0xff]  ;;  %v6452_v49 = vld [vmem:[#allocation2 + $0x108] sm:$0xff] }
 0x1da   :  { %11569 = vst [vmem:[#allocation62_spill] sm:$0xff] %v6417_v59  ;;  %11570 = vst [vmem:[#allocation63_spill] sm:$0xff] %v6419_v23  ;;  %v6454_v14 = vld [vmem:[#allocation2 + $0x110] sm:$0xff]  ;;  %v6460_v36 = vadd.f32 %v2336_v31, %v2204_v12  ;;  %v6462_v26 = vld [vmem:[#allocation2 + $0x128] sm:$0xff]  ;;  %v6471_v57 = vmul.f32 %v6321_v38, %v1297_v62  ;;  %v6486_v31 = vmul.f32 %v6321_v38, %v1300_v43 }
 0x1db   :  { %11571 = vst [vmem:[#allocation64_spill] sm:$0xff] %v6425_v16  ;;  %11572 = vst [vmem:[#allocation65_spill] sm:$0xff] %v6429_v2  ;;  %v6456_v2 = vld [vmem:[#allocation2 + $0x120] sm:$0xff]  ;;  %v6458_v16 = vadd.f32 %v2335_v45, %v2203_v50  ;;  %v6464_v51 = vld [vmem:[#allocation2 + $0x138] sm:$0xff]  ;;  %v6483_v45 = vmul.f32 %v6321_v38, %v1299_v60  ;;  %v6494_v62 = vmul.f32 %v6321_v38, %v6401_v10 }
 0x1dc   :  { %11573 = vst [vmem:[#allocation66_spill] sm:$0xff] %v6431_v8  ;;  %11574 = vst [vmem:[#allocation67_spill] sm:$0xff] %v6433_v24  ;;  %v6466_v1 = vld [vmem:[#allocation2 + $0x140] sm:$0xff]  ;;  %v6468_v54 = vld [vmem:[#allocation2 + $0x150] sm:$0xff]  ;;  %v6504_v60 = vmul.f32 %v6321_v38, %v6413_v58  ;;  %v6508_v43 = vmul.f32 %v6321_v38, %v6415_v53  ;;  %v6516_v22 = vmul.f32 %v6321_v38, %v6419_v23 }
 0x1dd   :  { %11575 = vst [vmem:[#allocation68_spill] sm:$0xff] %v6435_v30  ;;  %11576 = vst [vmem:[#allocation69_spill] sm:$0xff] %v6437_v47  ;;  %v6478_v50 = vld [vmem:[#allocation2 + $0x168] sm:$0xff]  ;;  %v6480_v12 = vld [vmem:[#allocation2 + $0x170] sm:$0xff]  ;;  %v6530_v34 = vmul.f32 %v6321_v38, %v6433_v24  ;;  %v6534_v32 = vmul.f32 %v6321_v38, %v6435_v30  ;;  %v6538_v19 = vmul.f32 %v6321_v38, %v6437_v47 }
 0x1de   :  { %11577 = vst [vmem:[#allocation70_spill] sm:$0xff] %v6439_v5  ;;  %11578 = vst [vmem:[#allocation71_spill] sm:$0xff] %v6441_v56  ;;  %v6476_v5 = vld [vmem:[#allocation2 + $0x158] sm:$0xff]  ;;  %v6512_v56 = vmul.f32 %v6321_v38, %v6417_v59  ;;  %v6518_v61 = vld [vmem:[#allocation2 + $0x1e8] sm:$0xff]  ;;  %v6544_v7 = vmul.f32 %v6321_v38, %v6450_v35  ;;  %v6552_v24 = vmul.f32 %v6321_v38, %v6454_v14 }
 0x1df   :  { %11579 = vst [vmem:[#allocation72_spill] sm:$0xff] %v6445_v46  ;;  %11580 = vst [vmem:[#allocation73_spill] sm:$0xff] %v6448_v27  ;;  %v6474_v27 = vmul.f32 %v6321_v38, %v1298_v40  ;;  %v6496_v40 = vld [vmem:[#allocation2 + $0x1c8] sm:$0xff]  ;;  %v6500_v46 = vld [vmem:[#allocation2 + $0x1e0] sm:$0xff]  ;;  %v6556_v30 = vmul.f32 %v6321_v38, %v6456_v2  ;;  %v6580_v59 = vmul.f32 %v6321_v38, %v6464_v51 }
 0x1e0   :  { %11581 = vst [vmem:[#allocation74_spill] sm:$0xff] %v6450_v35  ;;  %11582 = vst [vmem:[#allocation75_spill] sm:$0xff] %v6452_v49  ;;  %v6520_v0 = vld [vmem:[#allocation2 + $0x1f8] sm:$0xff]  ;;  %v6540_v52 = vld [vmem:[#allocation2 + $0x210] sm:$0xff]  ;;  %v6584_v53 = vmul.f32 %v6321_v38, %v6466_v1  ;;  %v6588_v58 = vmul.f32 %v6321_v38, %v6468_v54 }
 0x1e1   :  { %11583 = vst [vmem:[#allocation76_spill] sm:$0xff] %v6454_v14  ;;  %11584 = vst [vmem:[#allocation77_spill] sm:$0xff] %v6456_v2  ;;  %v6561_v47 = vld [vmem:[%s11110_s7 + $0x78] sm:$0xff]  ;;  %v6566_v35 = vld [vmem:[%s11110_s7 + $0x70] sm:$0xff]  ;;  %v6576_v2 = vmul.f32 %v6321_v38, %v6462_v26 }
 0x1e2   :  { %11585 = vst [vmem:[#allocation78_spill] sm:$0xff] %v6458_v16  ;;  %11586 = vst [vmem:[#allocation79_spill] sm:$0xff] %v6460_v36  ;;  %v6490_v36 = vmul.f32 %v6321_v38, %v6399_v44  ;;  %v6498_v16 = vld [vmem:[#allocation2 + $0x1d0] sm:$0xff]  ;;  %v6570_v23 = vld [vmem:[#allocation2 + $0x228] sm:$0xff]  ;;  %4892 = vmatprep.subr.mxu0 %v6561_v47 }
 0x1e3   :  { %11587 = vst [vmem:[#allocation80_spill] sm:$0xff] %v6462_v26  ;;  %11588 = vst [vmem:[#allocation81_spill] sm:$0xff] %v6464_v51  ;;  %v6572_v14 = vld [vmem:[#allocation2 + $0x230] sm:$0xff]  ;;  %v6591_v10 = vld [vmem:[#allocation2 + $0x240] sm:$0xff]  ;;  %v6597_v26 = vmul.f32 %v6321_v38, %v6476_v5  ;;  %v6601_v51 = vmul.f32 %v6321_v38, %v6478_v50  ;;  %4893 = vmatpush3.msra.mxu0 %v6561_v47 }
 0x1e4   :  { %11589 = vst [vmem:[#allocation82_spill] sm:$0xff] %v6466_v1  ;;  %11590 = vst [vmem:[#allocation83_spill] sm:$0xff] %v6468_v54  ;;  %v6593_v44 = vld [vmem:[#allocation2 + $0x248] sm:$0xff]  ;;  %v6605_v1 = vmul.f32 %v6321_v38, %v6480_v12  ;;  %v6609_v54 = vmul.f32 %v6321_v38, %v6496_v40  ;;  %4894 = vmatprep.subr.mxu0 %v6566_v35 }
 0x1e5   :  { %11591 = vst [vmem:[#allocation84_spill] sm:$0xff] %v6471_v57  ;;  %11592 = vst [vmem:[#allocation85_spill] sm:$0xff] %v6474_v27  ;;  %v6522_v27 = vld [vmem:[#allocation2 + $0x200] sm:$0xff]  ;;  %v6526_v57 = vmul.f32 %v6321_v38, %v6431_v8  ;;  %v6548_v8 = vmul.f32 %v6321_v38, %v6452_v49  ;;  %v6568_v49 = vld [vmem:[#allocation2 + $0x218] sm:$0xff]  ;;  %4895 = vmatpush3.msra.mxu0 %v6566_v35 }
 0x1e6   :  { %11593 = vst [vmem:[#allocation86_spill] sm:$0xff] %v6476_v5  ;;  %11594 = vst [vmem:[#allocation87_spill] sm:$0xff] %v6478_v50  ;;  %v6617_v5 = vld [vmem:[#allocation2 + $0x258] sm:$0xff]  ;;  %v6621_v50 = vld [vmem:[#allocation2 + $0x270] sm:$0xff] }
 0x1e7   :  { %11595 = vst [vmem:[#allocation88_spill] sm:$0xff] %v6480_v12  ;;  %11596 = vst [vmem:[#allocation89_spill] sm:$0xff] %v6496_v40  ;;  %v6625_v12 = vmul.f32 %v6321_v38, %v6498_v16  ;;  %v6629_v40 = vmul.f32 %v6321_v38, %v6500_v46 }
 0x1e8   :  { %11597 = vst [vmem:[#allocation90_spill] sm:$0xff] %v6498_v16  ;;  %11598 = vst [vmem:[#allocation91_spill] sm:$0xff] %v6500_v46  ;;  %v6647_v16 = vmul.f32 %v6321_v38, %v6520_v0  ;;  %v6651_v46 = vmul.f32 %v6321_v38, %v6522_v27 }
 0x1e9   :  { %11599 = vst [vmem:[#allocation92_spill] sm:$0xff] %v6518_v61  ;;  %11600 = vst [vmem:[#allocation93_spill] sm:$0xff] %v6520_v0  ;;  %v6666_v0 = vld [vmem:[%s11110_s7 + $0x60] sm:$0xff] }
 0x1ea   :  { %11601 = vst [vmem:[#allocation94_spill] sm:$0xff] %v6522_v27  ;;  %11602 = vst [vmem:[#allocation95_spill] sm:$0xff] %v6540_v52  ;;  %v6670_v27 = vld [vmem:[#allocation2 + $0x2a0] sm:$0xff] }
 0x1eb   :  { %11603 = vst [vmem:[#allocation96_spill] sm:$0xff] %v6561_v47  ;;  %11604 = vst [vmem:[#allocation97_spill] sm:$0xff] %v6566_v35  ;;  %v6641_v47 = vld [vmem:[#allocation2 + $0x278] sm:$0xff] }
 0x1ec   :  { %11605 = vst [vmem:[#allocation98_spill] sm:$0xff] %v6568_v49  ;;  %11606 = vst [vmem:[#allocation99_spill] sm:$0xff] %v6570_v23 }
 0x1ed   :  { %11607 = vst [vmem:[#allocation100_spill] sm:$0xff] %v6572_v14  ;;  %11608 = vst [vmem:[#allocation101_spill] sm:$0xff] %v6584_v53  ;;  %v6643_v53 = vld [vmem:[#allocation2 + $0x288] sm:$0xff] }
 0x1ee   :  { %11609 = vst [vmem:[#allocation102_spill] sm:$0xff] %v6588_v58  ;;  %11610 = vst [vmem:[#allocation103_spill] sm:$0xff] %v6591_v10  ;;  %v6615_v58 = vld [vmem:[%s11110_s7 + $0x68] sm:$0xff] }
 0x1ef   :  { %11611 = vst [vmem:[#allocation104_spill] sm:$0xff] %v6593_v44  ;;  %11612 = vst [vmem:[#allocation105_spill] sm:$0xff] %v6597_v26  ;;  %v6619_v26 = vld [vmem:[#allocation2 + $0x260] sm:$0xff]  ;;  %4896 = vmatprep.subr.mxu0 %v6615_v58 }
 0x1f0   :  { %11613 = vst [vmem:[#allocation106_spill] sm:$0xff] %v6601_v51  ;;  %11614 = vst [vmem:[#allocation107_spill] sm:$0xff] %v6605_v1  ;;  %v11620_v1 = vmax.f32 %v5996_v15, 0.0  ;;  %v6655_v15 = vmul.f32 %v6321_v38, %v6540_v52  ;;  %v6676_v52 = vmul.f32 %v6321_v38, %v6568_v49  ;;  %v6698_v49 = vmul.f32 %v6321_v38, %v6591_v10  ;;  %v6717_v10 = vld [vmem:[%s11110_s7 + $0x58] sm:$0xff] }
 0x1f1   :  { %11615 = vst [vmem:[#allocation108_spill] sm:$0xff] %v6609_v54  ;;  %11616 = vst [vmem:[#allocation109_spill] sm:$0xff] %v6615_v58  ;;  %v6633_v54 = vmul.f32 %v6321_v38, %v6518_v61  ;;  %v6668_v61 = vld [vmem:[#allocation2 + $0x290] sm:$0xff]  ;;  %4897 = vmatpush3.msra.mxu0 %v6615_v58  ;;  %v11650_v58 = vmax.f32 %v6008_v55, 0.0  ;;  %v11655_v55 = vmax.f32 %v6011_v63, 0.0 }
 0x1f2   :  { %11617 = vst [vmem:[#allocation110_spill] sm:$0xff] %v6617_v5  ;;  %11618 = vst [vmem:[#allocation111_spill] sm:$0xff] %v6619_v26  ;;  %v6638_v51 = vmul.f32 %v6318_v20, %v11620_v1  ;;  %v11627_v1 = vmax.f32 %v5999_v18, 0.0  ;;  %v6680_v18 = vmul.f32 %v6321_v38, %v6570_v23  ;;  %v6702_v23 = vmul.f32 %v6321_v38, %v6593_v44  ;;  %v6721_v44 = vld [vmem:[#allocation2 + $0x2d8] sm:$0xff] }
 0x1f3   :  { %11619 = vst [vmem:[#allocation112_spill] sm:$0xff] %v6621_v50  ;;  %11622 = vst [vmem:[#allocation114_spill] sm:$0xff] %v6641_v47  ;;  %4898 = vmatprep.subr.mxu0 %v6666_v0 }
 0x1f4   :  { %11621 = vst [vmem:[#allocation113_spill] sm:$0xff] %v6638_v51  ;;  %11623 = vst [vmem:[#allocation115_spill] sm:$0xff] %v6643_v53  ;;  %v6660_v51 = vmul.f32 %v6318_v20, %v11627_v1  ;;  %v6684_v1 = vmul.f32 %v6321_v38, %v6572_v14  ;;  %4899 = vmatpush3.msra.mxu0 %v6666_v0 }
 0x1f5   :  { %11624 = vst [vmem:[#allocation116_spill] sm:$0xff] %v6647_v16  ;;  %11625 = vst [vmem:[#allocation117_spill] sm:$0xff] %v6651_v46  ;;  %v6672_v46 = vld [vmem:[#allocation2 + $0x2a8] sm:$0xff]  ;;  %v6694_v16 = vld [vmem:[#allocation2 + $0x2c0] sm:$0xff]  ;;  %4900 = vmatprep.subr.mxu0 %v6717_v10 }
 0x1f6   :  { %11626 = vst [vmem:[#allocation118_spill] sm:$0xff] %v6655_v15  ;;  %11628 = vst [vmem:[#allocation119_spill] sm:$0xff] %v6660_v51  ;;  %v11636_v51 = vmax.f32 %v6002_v39, 0.0  ;;  %v6692_v15 = vld [vmem:[#allocation2 + $0x2b8] sm:$0xff]  ;;  %v6706_v39 = vmul.f32 %v6321_v38, %v6617_v5  ;;  %v6727_v5 = vmul.f32 %v6321_v38, %v6619_v26  ;;  %v6747_v26 = vmul.f32 %v6321_v38, %v6643_v53  ;;  %v6766_v53 = vld [vmem:[%s11110_s7 + $0x50] sm:$0xff] }
 0x1f7   :  { %11629 = vst [vmem:[#allocation120_spill] sm:$0xff] %v6666_v0  ;;  %11630 = vst [vmem:[#allocation121_spill] sm:$0xff] %v6668_v61  ;;  %v6778_v63 = vmul.f32 %v6321_v38, %v6694_v16  ;;  %4901 = vmatpush3.msra.mxu0 %v6717_v10 }
 0x1f8   :  { %11631 = vst [vmem:[#allocation122_spill] sm:$0xff] %v6670_v27  ;;  %11632 = vst [vmem:[#allocation123_spill] sm:$0xff] %v6672_v46  ;;  %v6689_v35 = vmul.f32 %v6318_v20, %v11636_v51  ;;  %v11642_v51 = vmax.f32 %v6005_v28, 0.0  ;;  %v6731_v28 = vmul.f32 %v6321_v38, %v6621_v50  ;;  %v6751_v50 = vmul.f32 %v6321_v38, %v6668_v61 }
 0x1f9   :  { %11633 = vst [vmem:[#allocation124_spill] sm:$0xff] %v6676_v52  ;;  %11634 = vst [vmem:[#allocation125_spill] sm:$0xff] %v6680_v18  ;;  %v6770_v61 = vmul.f32 %v6321_v38, %v6672_v46  ;;  %v6792_v46 = vmul.f32 %v6321_v38, %v6721_v44  ;;  %4902 = vmatprep.subr.mxu0 %v6766_v53 }
 0x1fa   :  { %11635 = vst [vmem:[#allocation126_spill] sm:$0xff] %v6684_v1  ;;  %11637 = vst [vmem:[#allocation127_spill] sm:$0xff] %v6692_v15  ;;  %v6711_v14 = vmul.f32 %v6318_v20, %v11642_v51  ;;  %v6735_v51 = vmul.f32 %v6321_v38, %v6641_v47  ;;  %v6743_v1 = vld [vmem:[#allocation2 + $0x2f0] sm:$0xff]  ;;  %v6755_v47 = vmul.f32 %v6321_v38, %v6670_v27  ;;  %4903 = vmatpush3.msra.mxu0 %v6766_v53 }
 0x1fb   :  { %11638 = vst [vmem:[#allocation128_spill] sm:$0xff] %v6694_v16  ;;  %11639 = vst [vmem:[#allocation129_spill] sm:$0xff] %v6698_v49  ;;  %v6719_v49 = vld [vmem:[#allocation2 + $0x2d0] sm:$0xff]  ;;  %v6774_v27 = vmul.f32 %v6321_v38, %v6692_v15  ;;  %v11664_v16 = vmax.f32 %v6017_v42, 0.0  ;;  %v11668_v42 = vmax.f32 %v6023_v4, 0.0  ;;  %v11672_v4 = vmax.f32 %v6035_v17, 0.0 }
 0x1fc   :  { %11640 = vst [vmem:[#allocation130_spill] sm:$0xff] %v6702_v23  ;;  %11641 = vst [vmem:[#allocation131_spill] sm:$0xff] %v6706_v39  ;;  %v6723_v23 = vld [vmem:[#allocation2 + $0x2e8] sm:$0xff]  ;;  %v6740_v39 = vmul.f32 %v6318_v20, %v11650_v58  ;;  %v6760_v58 = vmul.f32 %v6318_v20, %v11655_v55  ;;  %v11660_v55 = vmax.f32 %v6014_v11, 0.0  ;;  %v11676_v17 = vmax.f32 %v6044_v21, 0.0 }
 0x1fd   :  { %11643 = vst [vmem:[#allocation132_spill] sm:$0xff] %v6717_v10  ;;  %11644 = vst [vmem:[#allocation133_spill] sm:$0xff] %v6719_v49  ;;  %v6796_v15 = vmul.f32 %v6321_v38, %v6723_v23  ;;  %v6801_v11 = vmul.f32 %v6318_v20, %v11664_v16  ;;  %v6821_v16 = vmul.f32 %v6318_v20, %v11668_v42  ;;  %v11669_v10 = vmax.f32 %v6026_v3, 0.0 }
 0x1fe   :  { %11645 = vst [vmem:[#allocation134_spill] sm:$0xff] %v6721_v44  ;;  %11646 = vst [vmem:[#allocation135_spill] sm:$0xff] %v6723_v23  ;;  %v6783_v0 = vmul.f32 %v6318_v20, %v11660_v55  ;;  %v6807_v55 = vld [vmem:[%s11110_s7 + $0x48] sm:$0xff]  ;;  %v6811_v44 = vmul.f32 %v6321_v38, %v6743_v1  ;;  %v6842_v42 = vmul.f32 %v6318_v20, %v11672_v4  ;;  %v11673_v3 = vmax.f32 %v6038_v13, 0.0 }
 0x1ff   :  { %11647 = vst [vmem:[#allocation136_spill] sm:$0xff] %v6727_v5  ;;  %11648 = vst [vmem:[#allocation137_spill] sm:$0xff] %v6731_v28  ;;  %v11677_v13 = vmax.f32 %v6047_v33, 0.0  ;;  %4904 = vmatprep.subr.mxu0 %v6807_v55  ;;  %v11680_v21 = vmax.f32 %v6056_v37, 0.0  ;;  %v11681_v33 = vld [vmem:[#allocation15_spill] sm:$0xff]  ;;  %v11686_v37 = vld [vmem:[#allocation17_spill] sm:$0xff] }
 0x200   :  { %11649 = vst [vmem:[#allocation138_spill] sm:$0xff] %v6735_v51  ;;  %11651 = vst [vmem:[#allocation139_spill] sm:$0xff] %v6743_v1  ;;  %4905 = vmatpush3.msra.mxu0 %v6807_v55 }
 0x201   :  { %11652 = vst [vmem:[#allocation140_spill] sm:$0xff] %v6747_v26  ;;  %11653 = vst [vmem:[#allocation141_spill] sm:$0xff] %v6751_v50  ;;  %v6868_v4 = vmul.f32 %v6318_v20, %v11677_v13  ;;  %v11682_v13 = vmax.f32 %v11681_v33, 0.0  ;;  %v11688_v33 = vld [vmem:[#allocation16_spill] sm:$0xff] }
 0x202   :  { %11654 = vst [vmem:[#allocation142_spill] sm:$0xff] %v6755_v47  ;;  %11656 = vst [vmem:[#allocation143_spill] sm:$0xff] %v6766_v53  ;;  %v6788_v47 = vmul.f32 %v6321_v38, %v6719_v49  ;;  %v11667_v49 = vmax.f32 %v6020_v48, 0.0  ;;  %v11670_v38 = vmax.f32 %v6029_v9, 0.0  ;;  %v11671_v48 = vmax.f32 %v6032_v6, 0.0  ;;  %v6853_v9 = vld [vmem:[%s11110_s7 + $0x40] sm:$0xff] }
 0x203   :  { %11657 = vst [vmem:[#allocation144_spill] sm:$0xff] %v6770_v61  ;;  %11658 = vst [vmem:[#allocation145_spill] sm:$0xff] %v6774_v27  ;;  %v11675_v6 = vmax.f32 %v6041_v25, 0.0  ;;  %v11679_v25 = vmax.f32 %v6053_v41, 0.0  ;;  %v6900_v41 = vld [vmem:[%s11110_s7 + $0x38] sm:$0xff]  ;;  %4906 = vmatprep.subr.mxu0 %v6853_v9 }
 0x204   :  { %11659 = vst [vmem:[#allocation146_spill] sm:$0xff] %v6778_v63  ;;  %11661 = vst [vmem:[#allocation147_spill] sm:$0xff] %v6788_v47  ;;  %v6816_v23 = vmul.f32 %v6318_v20, %v11667_v49  ;;  %v6832_v1 = vmul.f32 %v6318_v20, %v11670_v38  ;;  %v6837_v49 = vmul.f32 %v6318_v20, %v11671_v48  ;;  %4907 = vmatpush3.msra.mxu0 %v6853_v9 }
 0x205   :  { %11662 = vst [vmem:[#allocation148_spill] sm:$0xff] %v6792_v46  ;;  %11663 = vst [vmem:[#allocation149_spill] sm:$0xff] %v6796_v15  ;;  %v6826_v15 = vmul.f32 %v6318_v20, %v11669_v10  ;;  %v6847_v10 = vmul.f32 %v6318_v20, %v11673_v3  ;;  %v6858_v38 = vmul.f32 %v6318_v20, %v11675_v6  ;;  %v11678_v3 = vmax.f32 %v6050_v29, 0.0  ;;  %v11683_v29 = vld [vmem:[#allocation14_spill] sm:$0xff] }
 0x206   :  { %11665 = vst [vmem:[#allocation150_spill] sm:$0xff] %v6807_v55  ;;  %11666 = vst [vmem:[#allocation151_spill] sm:$0xff] %v6811_v44  ;;  %v6863_v48 = vmul.f32 %v6318_v20, %v11676_v17  ;;  %v6879_v6 = vmul.f32 %v6318_v20, %v11679_v25  ;;  %v6884_v17 = vmul.f32 %v6318_v20, %v11680_v21  ;;  %v11687_v25 = vmax.f32 %v11686_v37, 0.0  ;;  %v11692_v55 = vld [vmem:[#allocation18_spill] sm:$0xff]  ;;  %v11694_v37 = vld [vmem:[#allocation21_spill] sm:$0xff] }
 0x207   :  { %11674 = vst [vmem:[#allocation152_spill] sm:$0xff] %v6853_v9  ;;  %v6873_v53 = vmul.f32 %v6318_v20, %v11678_v3  ;;  %v6889_v44 = vmul.f32 %v6318_v20, %v11682_v13  ;;  %v11684_v3 = vmax.f32 %v11683_v29, 0.0  ;;  %11685 = vst [vmem:[#allocation15_spill] sm:$0xff] %v6900_v41  ;;  %v11689_v13 = vmax.f32 %v11688_v33, 0.0  ;;  %v11690_v29 = vld [vmem:[#allocation19_spill] sm:$0xff]  ;;  %v11696_v33 = vld [vmem:[#allocation20_spill] sm:$0xff]  ;;  %4908 = vmatprep.subr.mxu0 %v6900_v41 }
 0x208   :  { %v6905_v21 = vmul.f32 %v6318_v20, %v11687_v25  ;;  %v11693_v27 = vmax.f32 %v11692_v55, 0.0  ;;  %v11695_v25 = vmax.f32 %v11694_v37, 0.0  ;;  %v11700_v55 = vld [vmem:[#allocation22_spill] sm:$0xff]  ;;  %4909 = vmatpush3.msra.mxu0 %v6900_v41 }
 0x209   :  { %v6894_v46 = vmul.f32 %v6318_v20, %v11684_v3  ;;  %v6910_v47 = vmul.f32 %v6318_v20, %v11689_v13  ;;  %v11691_v3 = vmax.f32 %v11690_v29, 0.0  ;;  %v11697_v13 = vmax.f32 %v11696_v33, 0.0  ;;  %v11698_v29 = vld [vmem:[#allocation23_spill] sm:$0xff]  ;;  %v6947_v37 = vld [vmem:[%s11110_s7 + $0x30] sm:$0xff] }
 0x20a   :  { %v6920_v61 = vmul.f32 %v6318_v20, %v11693_v27  ;;  %v6926_v50 = vmul.f32 %v6318_v20, %v11695_v25  ;;  %v11701_v27 = vmax.f32 %v11700_v55, 0.0  ;;  %11703 = vst [vmem:[#allocation17_spill] sm:$0xff] %v6947_v37  ;;  %v11704_v25 = vld [vmem:[#allocation25_spill] sm:$0xff]  ;;  %v11710_v55 = vld [vmem:[#allocation27_spill] sm:$0xff]  ;;  %v11713_v9 = vld [vmem:[#allocation26_spill] sm:$0xff]  ;;  %4910 = vmatprep.subr.mxu0 %v6947_v37 }
 0x20b   :  { %v6915_v63 = vmul.f32 %v6318_v20, %v11691_v3  ;;  %v6931_v26 = vmul.f32 %v6318_v20, %v11697_v13  ;;  %v11699_v3 = vmax.f32 %v11698_v29, 0.0  ;;  %v11705_v33 = vmax.f32 %v11704_v25, 0.0  ;;  %v11707_v29 = vld [vmem:[#allocation24_spill] sm:$0xff]  ;;  %v11716_v25 = vld [vmem:[#allocation29_spill] sm:$0xff]  ;;  %v11738_v41 = vld [vmem:[#allocation34_spill] sm:$0xff]  ;;  %4911 = vmatpush3.msra.mxu0 %v6947_v37 }
 0x20c   :  { %v6941_v28 = vmul.f32 %v6318_v20, %v11701_v27  ;;  %v11711_v27 = vmax.f32 %v11710_v55, 0.0  ;;  %v11714_v52 = vmax.f32 %v11713_v9, 0.0  ;;  %v11722_v55 = vld [vmem:[#allocation31_spill] sm:$0xff]  ;;  %v11725_v9 = vld [vmem:[#allocation30_spill] sm:$0xff] }
 0x20d   :  { %v6936_v51 = vmul.f32 %v6318_v20, %v11699_v3  ;;  %v6952_v13 = vmul.f32 %v6318_v20, %v11705_v33  ;;  %v11708_v3 = vmax.f32 %v11707_v29, 0.0  ;;  %v11717_v33 = vmax.f32 %v11716_v25, 0.0  ;;  %v11719_v29 = vld [vmem:[#allocation28_spill] sm:$0xff]  ;;  %v6994_v25 = vld [vmem:[%s11110_s7 + $0x28] sm:$0xff]  ;;  %v11760_v37 = vld [vmem:[#allocation51_spill] sm:$0xff] }
 0x20e   :  { %11702 = vst [vmem:[#allocation14_spill] sm:$0xff] %v6941_v28  ;;  %v6962_v18 = vmul.f32 %v6318_v20, %v11711_v27  ;;  %v6967_v28 = vmul.f32 %v6318_v20, %v11714_v52  ;;  %v11723_v27 = vmax.f32 %v11722_v55, 0.0  ;;  %v11726_v52 = vmax.f32 %v11725_v9, 0.0  ;;  %11728 = vst [vmem:[#allocation24_spill] sm:$0xff] %v6994_v25  ;;  %v11732_v55 = vld [vmem:[#allocation32_spill] sm:$0xff]  ;;  %v11735_v9 = vld [vmem:[#allocation35_spill] sm:$0xff]  ;;  %4912 = vmatprep.subr.mxu0 %v6994_v25 }
 0x20f   :  { %11706 = vst [vmem:[#allocation16_spill] sm:$0xff] %v6952_v13  ;;  %v6957_v5 = vmul.f32 %v6318_v20, %v11708_v3  ;;  %v6973_v13 = vmul.f32 %v6318_v20, %v11717_v33  ;;  %v11720_v3 = vmax.f32 %v11719_v29, 0.0  ;;  %v11729_v33 = vld [vmem:[#allocation33_spill] sm:$0xff]  ;;  %4913 = vmatpush3.msra.mxu0 %v6994_v25  ;;  %v11884_v25 = vld [vmem:[#allocation143_spill] sm:$0xff] }
 0x210   :  { %11712 = vst [vmem:[#allocation18_spill] sm:$0xff] %v6962_v18  ;;  %11715 = vst [vmem:[#allocation21_spill] sm:$0xff] %v6967_v28  ;;  %v6983_v18 = vmul.f32 %v6318_v20, %v11723_v27  ;;  %v6988_v28 = vmul.f32 %v6318_v20, %v11726_v52  ;;  %v11730_v29 = vmax.f32 %v11729_v33, 0.0  ;;  %v11733_v27 = vmax.f32 %v11732_v55, 0.0  ;;  %v11741_v33 = vld [vmem:[#allocation38_spill] sm:$0xff]  ;;  %v11744_v55 = vld [vmem:[#allocation45_spill] sm:$0xff] }
 0x211   :  { %11709 = vst [vmem:[#allocation19_spill] sm:$0xff] %v6957_v5  ;;  %11718 = vst [vmem:[#allocation20_spill] sm:$0xff] %v6973_v13  ;;  %v6978_v5 = vmul.f32 %v6318_v20, %v11720_v3  ;;  %v11736_v52 = vmax.f32 %v11735_v9, 0.0  ;;  %v11747_v9 = vld [vmem:[#allocation46_spill] sm:$0xff] }
 0x212   :  { %11724 = vst [vmem:[#allocation22_spill] sm:$0xff] %v6983_v18  ;;  %11727 = vst [vmem:[#allocation25_spill] sm:$0xff] %v6988_v28  ;;  %v6999_v3 = vmul.f32 %v6318_v20, %v11730_v29  ;;  %v7004_v18 = vmul.f32 %v6318_v20, %v11733_v27  ;;  %v11742_v29 = vmax.f32 %v11741_v33, 0.0  ;;  %v11745_v27 = vmax.f32 %v11744_v55, 0.0  ;;  %v7041_v33 = vld [vmem:[%s11110_s7 + $0x20] sm:$0xff] }
 0x213   :  { %11721 = vst [vmem:[#allocation23_spill] sm:$0xff] %v6978_v5  ;;  %v7009_v28 = vmul.f32 %v6318_v20, %v11736_v52  ;;  %v11739_v5 = vmax.f32 %v11738_v41, 0.0  ;;  %v11748_v52 = vmax.f32 %v11747_v9, 0.0  ;;  %v11750_v41 = vld [vmem:[#allocation47_spill] sm:$0xff]  ;;  %11753 = vst [vmem:[#allocation35_spill] sm:$0xff] %v7041_v33  ;;  %v11756_v9 = vld [vmem:[#allocation49_spill] sm:$0xff]  ;;  %4914 = vmatprep.subr.mxu0 %v7041_v33 }
 0x214   :  { %11731 = vst [vmem:[#allocation27_spill] sm:$0xff] %v6999_v3  ;;  %11734 = vst [vmem:[#allocation26_spill] sm:$0xff] %v7004_v18  ;;  %v7020_v3 = vmul.f32 %v6318_v20, %v11742_v29  ;;  %v7025_v18 = vmul.f32 %v6318_v20, %v11745_v27  ;;  %v11754_v29 = vld [vmem:[#allocation48_spill] sm:$0xff]  ;;  %4915 = vmatpush3.msra.mxu0 %v7041_v33 }
 0x215   :  { %11737 = vst [vmem:[#allocation29_spill] sm:$0xff] %v7009_v28  ;;  %v7014_v13 = vmul.f32 %v6318_v20, %v11739_v5  ;;  %v7030_v28 = vmul.f32 %v6318_v20, %v11748_v52  ;;  %v11751_v5 = vmax.f32 %v11750_v41, 0.0  ;;  %v11755_v55 = vmax.f32 %v11754_v29, 0.0  ;;  %v11758_v41 = vld [vmem:[#allocation50_spill] sm:$0xff] }
 0x216   :  { %11743 = vst [vmem:[#allocation31_spill] sm:$0xff] %v7020_v3  ;;  %11746 = vst [vmem:[#allocation30_spill] sm:$0xff] %v7025_v18  ;;  %v11757_v52 = vmax.f32 %v11756_v9, 0.0  ;;  %v11761_v18 = vmax.f32 %v11760_v37, 0.0  ;;  %v7066_v29 = vadd.f32 %v6689_v35, %v6483_v45  ;;  %v7074_v9 = vadd.f32 %v6740_v39, %v6490_v36  ;;  %v11773_v39 = vld [vmem:[#allocation108_spill] sm:$0xff] }
 0x217   :  { %11740 = vst [vmem:[#allocation28_spill] sm:$0xff] %v7014_v13  ;;  %11749 = vst [vmem:[#allocation33_spill] sm:$0xff] %v7030_v28  ;;  %v7035_v13 = vmul.f32 %v6318_v20, %v11751_v5  ;;  %v7046_v27 = vmul.f32 %v6318_v20, %v11755_v55  ;;  %v11759_v5 = vmax.f32 %v11758_v41, 0.0  ;;  %v7070_v55 = vadd.f32 %v6711_v14, %v6486_v31 }
 0x218   :  { %v7051_v28 = vmul.f32 %v6318_v20, %v11757_v52  ;;  %v7061_v3 = vmul.f32 %v6318_v20, %v11761_v18  ;;  %11762 = vst [vmem:[#allocation34_spill] sm:$0xff] %v7066_v29  ;;  %v7078_v37 = vadd.f32 %v6760_v58, %v6494_v62  ;;  %v7084_v18 = vld [vmem:[%s11110_s7 + $0x18] sm:$0xff]  ;;  %v7088_v35 = vadd.f32 %v6783_v0, %v6504_v60  ;;  %v11794_v52 = vld [vmem:[#allocation21_spill] sm:$0xff] }
 0x219   :  { %11752 = vst [vmem:[#allocation32_spill] sm:$0xff] %v7035_v13  ;;  %v7056_v13 = vmul.f32 %v6318_v20, %v11759_v5  ;;  %11763 = vst [vmem:[#allocation38_spill] sm:$0xff] %v7084_v18  ;;  %v7092_v14 = vadd.f32 %v6801_v11, %v6508_v43  ;;  %v7096_v36 = vadd.f32 %v6816_v23, %v6512_v56  ;;  %4916 = vmatprep.subr.mxu0 %v7084_v18  ;;  %v11767_v43 = vld [vmem:[#allocation105_spill] sm:$0xff]  ;;  %v7242_v29 = vld [vmem:[#allocation2 + $0xb2] sm:$0xff] }
 0x21a   :  { %v7100_v45 = vadd.f32 %v6821_v16, %v6516_v22  ;;  %v7105_v31 = vadd.f32 %v6826_v15, %v6526_v57  ;;  %v7109_v0 = vadd.f32 %v6832_v1, %v6530_v34  ;;  %v7113_v62 = vadd.f32 %v6837_v49, %v6534_v32  ;;  %4917 = vmatpush3.msra.mxu0 %v7084_v18  ;;  %v11781_v49 = vld [vmem:[#allocation14_spill] sm:$0xff]  ;;  %v11796_v5 = vld [vmem:[#allocation129_spill] sm:$0xff] }
 0x21b   :  { %v7117_v23 = vadd.f32 %v6842_v42, %v6538_v19  ;;  %v7122_v22 = vadd.f32 %v6847_v10, %v6544_v7  ;;  %v7126_v56 = vadd.f32 %v6858_v38, %v6548_v8  ;;  %v7130_v34 = vadd.f32 %v6863_v48, %v6552_v24  ;;  %v11764_v8 = vld [vmem:[#allocation101_spill] sm:$0xff]  ;;  %v11765_v24 = vld [vmem:[#allocation102_spill] sm:$0xff] }
 0x21c   :  { %v7134_v32 = vadd.f32 %v6868_v4, %v6556_v30  ;;  %v7139_v19 = vadd.f32 %v6873_v53, %v6576_v2  ;;  %v7143_v7 = vadd.f32 %v6879_v6, %v6580_v59  ;;  %v7147_v57 = vadd.f32 %v6884_v17, %v11764_v8  ;;  %v11766_v30 = vld [vmem:[#allocation96_spill] sm:$0xff]  ;;  %v11769_v53 = vld [vmem:[#allocation106_spill] sm:$0xff]  ;;  %v11771_v59 = vld [vmem:[#allocation107_spill] sm:$0xff] }
 0x21d   :  { %v7151_v60 = vadd.f32 %v6889_v44, %v11765_v24  ;;  %5020 = vmatprep.subr.mxu1 %v11766_v30  ;;  %v7156_v15 = vadd.f32 %v6894_v46, %v11767_v43  ;;  %v7160_v2 = vadd.f32 %v6905_v21, %v11769_v53  ;;  %v7164_v1 = vadd.f32 %v6910_v47, %v11771_v59  ;;  %v11778_v47 = vld [vmem:[#allocation116_spill] sm:$0xff]  ;;  %v1627_v4 = vld [vmem:[#allocation2 + $0x6a] sm:$0xff]  ;;  %v11800_v43 = vld [vmem:[#allocation23_spill] sm:$0xff] }
 0x21e   :  { %v7168_v58 = vadd.f32 %v6915_v63, %v11773_v39  ;;  %v7173_v44 = vadd.f32 %v6920_v61, %v6625_v12  ;;  %v7177_v46 = vadd.f32 %v6926_v50, %v6629_v40  ;;  %v7181_v11 = vadd.f32 %v6931_v26, %v6633_v54  ;;  %5036 = vmatpush3.msra.mxu1 %v11766_v30  ;;  %v11780_v63 = vld [vmem:[#allocation117_spill] sm:$0xff]  ;;  %v11783_v61 = vld [vmem:[#allocation118_spill] sm:$0xff]  ;;  %v11784_v12 = vld [vmem:[#allocation16_spill] sm:$0xff] }
 0x21f   :  { %11768 = vst [vmem:[#allocation45_spill] sm:$0xff] %v7156_v15  ;;  %11770 = vst [vmem:[#allocation46_spill] sm:$0xff] %v7160_v2  ;;  %v7185_v16 = vadd.f32 %v6936_v51, %v11778_v47  ;;  %v7190_v42 = vadd.f32 %v11781_v49, %v11780_v63  ;;  %v7194_v10 = vadd.f32 %v11784_v12, %v11783_v61  ;;  %v11786_v50 = vld [vmem:[#allocation124_spill] sm:$0xff]  ;;  %v11787_v40 = vld [vmem:[#allocation19_spill] sm:$0xff] }
 0x220   :  { %11772 = vst [vmem:[#allocation47_spill] sm:$0xff] %v7164_v1  ;;  %11774 = vst [vmem:[#allocation48_spill] sm:$0xff] %v7168_v58  ;;  %v7198_v38 = vadd.f32 %v11787_v40, %v11786_v50  ;;  %v11789_v26 = vld [vmem:[#allocation125_spill] sm:$0xff]  ;;  %v11790_v54 = vld [vmem:[#allocation18_spill] sm:$0xff] }
 0x221   :  { %11775 = vst [vmem:[#allocation49_spill] sm:$0xff] %v7173_v44  ;;  %11776 = vst [vmem:[#allocation50_spill] sm:$0xff] %v7177_v46  ;;  %v7202_v48 = vadd.f32 %v11790_v54, %v11789_v26  ;;  %v1626_v51 = vld [vmem:[#allocation2 + $0x62] sm:$0xff]  ;;  %v1628_v6 = vld [vmem:[#allocation2 + $0x7a] sm:$0xff] }
 0x222   :  { %11777 = vst [vmem:[#allocation51_spill] sm:$0xff] %v7181_v11  ;;  %11779 = vst [vmem:[#allocation101_spill] sm:$0xff] %v7185_v16  ;;  %v11792_v17 = vld [vmem:[#allocation97_spill] sm:$0xff]  ;;  %v11793_v21 = vld [vmem:[#allocation126_spill] sm:$0xff] }
 0x223   :  { %11782 = vst [vmem:[#allocation102_spill] sm:$0xff] %v7190_v42  ;;  %11785 = vst [vmem:[#allocation96_spill] sm:$0xff] %v7194_v10  ;;  %5021 = vmatprep.subr.mxu1 %v11792_v17  ;;  %v7207_v41 = vadd.f32 %v11794_v52, %v11793_v21  ;;  %v11797_v8 = vld [vmem:[#allocation20_spill] sm:$0xff]  ;;  %v11799_v30 = vld [vmem:[#allocation130_spill] sm:$0xff] }
 0x224   :  { %11788 = vst [vmem:[#allocation105_spill] sm:$0xff] %v7198_v38  ;;  %11791 = vst [vmem:[#allocation106_spill] sm:$0xff] %v7202_v48  ;;  %v7211_v24 = vadd.f32 %v11797_v8, %v11796_v5  ;;  %v7215_v53 = vadd.f32 %v11800_v43, %v11799_v30  ;;  %v11802_v59 = vld [vmem:[#allocation131_spill] sm:$0xff]  ;;  %v11803_v39 = vld [vmem:[#allocation22_spill] sm:$0xff]  ;;  %5037 = vmatpush3.msra.mxu1 %v11792_v17 }
 0x225   :  { %11795 = vst [vmem:[#allocation107_spill] sm:$0xff] %v7207_v41  ;;  %v7219_v47 = vadd.f32 %v11803_v39, %v11802_v59  ;;  %v1629_v63 = vld [vmem:[#allocation2 + $0x82] sm:$0xff]  ;;  %v1630_v49 = vld [vmem:[#allocation2 + $0x92] sm:$0xff]  ;;  %v7221_v61 = vld [vmem:[#allocation2 + $0x9a] sm:$0xff] }
 0x226   :  { %11798 = vst [vmem:[#allocation108_spill] sm:$0xff] %v7211_v24  ;;  %11801 = vst [vmem:[#allocation116_spill] sm:$0xff] %v7215_v53  ;;  %v7223_v12 = vld [vmem:[#allocation2 + $0xaa] sm:$0xff]  ;;  %v11807_v50 = vld [vmem:[#allocation136_spill] sm:$0xff] }
 0x227   :  { %11804 = vst [vmem:[#allocation117_spill] sm:$0xff] %v7219_v47  ;;  %11805 = vst [vmem:[#allocation14_spill] sm:$0xff] %v7221_v61  ;;  %v11808_v40 = vld [vmem:[#allocation25_spill] sm:$0xff]  ;;  %v11811_v21 = vld [vmem:[#allocation27_spill] sm:$0xff] }
 0x228   :  { %11806 = vst [vmem:[#allocation118_spill] sm:$0xff] %v7223_v12  ;;  %v7228_v26 = vadd.f32 %v11808_v40, %v11807_v50  ;;  %v11810_v54 = vld [vmem:[#allocation137_spill] sm:$0xff]  ;;  %v11813_v5 = vld [vmem:[#allocation138_spill] sm:$0xff]  ;;  %v11816_v43 = vld [vmem:[#allocation140_spill] sm:$0xff] }
 0x229   :  { %v7232_v52 = vadd.f32 %v11811_v21, %v11810_v54  ;;  %v11814_v8 = vld [vmem:[#allocation26_spill] sm:$0xff]  ;;  %v11817_v59 = vld [vmem:[#allocation29_spill] sm:$0xff]  ;;  %11819 = vst [vmem:[#allocation18_spill] sm:$0xff] %v7242_v29  ;;  %v7248_v50 = vld [vmem:[#allocation2 + $0xda] sm:$0xff] }
 0x22a   :  { %11809 = vst [vmem:[#allocation16_spill] sm:$0xff] %v7228_v26  ;;  %v7236_v30 = vadd.f32 %v11814_v8, %v11813_v5  ;;  %v7240_v39 = vadd.f32 %v11817_v59, %v11816_v43  ;;  %v7244_v20 = vld [vmem:[#allocation2 + $0xc2] sm:$0xff]  ;;  %v7246_v17 = vld [vmem:[#allocation2 + $0xca] sm:$0xff]  ;;  %11822 = vst [vmem:[#allocation21_spill] sm:$0xff] %v7248_v50 }
 0x22b   :  { %11812 = vst [vmem:[#allocation124_spill] sm:$0xff] %v7232_v52  ;;  %11820 = vst [vmem:[#allocation97_spill] sm:$0xff] %v7244_v20  ;;  %v11823_v40 = vld [vmem:[#allocation109_spill] sm:$0xff]  ;;  %v11825_v21 = vld [vmem:[#allocation28_spill] sm:$0xff] }
 0x22c   :  { %11815 = vst [vmem:[#allocation19_spill] sm:$0xff] %v7236_v30  ;;  %11818 = vst [vmem:[#allocation125_spill] sm:$0xff] %v7240_v39  ;;  %5022 = vmatprep.subr.mxu1 %v11823_v40  ;;  %v11824_v54 = vld [vmem:[#allocation141_spill] sm:$0xff]  ;;  %v11827_v5 = vld [vmem:[#allocation142_spill] sm:$0xff] }
 0x22d   :  { %11821 = vst [vmem:[#allocation126_spill] sm:$0xff] %v7246_v17  ;;  %v7253_v18 = vadd.f32 %v11825_v21, %v11824_v54  ;;  %v11828_v8 = vld [vmem:[#allocation31_spill] sm:$0xff]  ;;  %v11830_v43 = vld [vmem:[#allocation144_spill] sm:$0xff]  ;;  %v11831_v59 = vld [vmem:[#allocation30_spill] sm:$0xff]  ;;  %5038 = vmatpush3.msra.mxu1 %v11823_v40 }
 0x22e   :  { %v7257_v30 = vadd.f32 %v11828_v8, %v11827_v5  ;;  %v7261_v39 = vadd.f32 %v11831_v59, %v11830_v43  ;;  %v11833_v52 = vld [vmem:[#allocation145_spill] sm:$0xff]  ;;  %v7269_v24 = vld [vmem:[#allocation2 + $0xf2] sm:$0xff]  ;;  %v7271_v41 = vld [vmem:[#allocation2 + $0xfa] sm:$0xff] }
 0x22f   :  { %11826 = vst [vmem:[#allocation129_spill] sm:$0xff] %v7253_v18  ;;  %v11834_v26 = vld [vmem:[#allocation33_spill] sm:$0xff]  ;;  %11837 = vst [vmem:[#allocation22_spill] sm:$0xff] %v7269_v24  ;;  %v7279_v21 = vld [vmem:[%s11110_s7 + $0x10] sm:$0xff] }
 0x230   :  { %11829 = vst [vmem:[#allocation20_spill] sm:$0xff] %v7257_v30  ;;  %11832 = vst [vmem:[#allocation130_spill] sm:$0xff] %v7261_v39  ;;  %v7265_v47 = vadd.f32 %v11834_v26, %v11833_v52  ;;  %v7267_v53 = vld [vmem:[#allocation2 + $0xe2] sm:$0xff]  ;;  %v7273_v54 = vld [vmem:[#allocation2 + $0x10a] sm:$0xff]  ;;  %4918 = vmatprep.subr.mxu0 %v7279_v21 }
 0x231   :  { %11836 = vst [vmem:[#allocation131_spill] sm:$0xff] %v7267_v53  ;;  %11838 = vst [vmem:[#allocation136_spill] sm:$0xff] %v7271_v41  ;;  %v11841_v5 = vld [vmem:[#allocation146_spill] sm:$0xff]  ;;  %v11842_v8 = vld [vmem:[#allocation32_spill] sm:$0xff]  ;;  %4919 = vmatpush3.msra.mxu0 %v7279_v21 }
 0x232   :  { %11835 = vst [vmem:[#allocation23_spill] sm:$0xff] %v7265_v47  ;;  %11839 = vst [vmem:[#allocation25_spill] sm:$0xff] %v7273_v54  ;;  %v7283_v43 = vadd.f32 %v11842_v8, %v11841_v5  ;;  %v11844_v26 = vld [vmem:[#allocation147_spill] sm:$0xff]  ;;  %v11846_v59 = vld [vmem:[#allocation148_spill] sm:$0xff] }
 0x233   :  { %11840 = vst [vmem:[#allocation137_spill] sm:$0xff] %v7279_v21  ;;  %v7287_v52 = vadd.f32 %v7046_v27, %v11844_v26  ;;  %v7291_v47 = vadd.f32 %v7051_v28, %v11846_v59  ;;  %v11848_v39 = vld [vmem:[#allocation149_spill] sm:$0xff]  ;;  %v7297_v30 = vld [vmem:[#allocation2 + $0x112] sm:$0xff]  ;;  %v7303_v5 = vld [vmem:[#allocation2 + $0x13a] sm:$0xff] }
 0x234   :  { %11843 = vst [vmem:[#allocation27_spill] sm:$0xff] %v7283_v43  ;;  %v7295_v40 = vadd.f32 %v7056_v13, %v11848_v39  ;;  %11850 = vst [vmem:[#allocation29_spill] sm:$0xff] %v7297_v30  ;;  %v7299_v18 = vld [vmem:[#allocation2 + $0x122] sm:$0xff]  ;;  %v7301_v48 = vld [vmem:[#allocation2 + $0x12a] sm:$0xff] }
 0x235   :  { %11845 = vst [vmem:[#allocation138_spill] sm:$0xff] %v7287_v52  ;;  %11847 = vst [vmem:[#allocation26_spill] sm:$0xff] %v7291_v47  ;;  %v11854_v8 = vld [vmem:[#allocation120_spill] sm:$0xff]  ;;  %v11855_v27 = vld [vmem:[#allocation151_spill] sm:$0xff] }
 0x236   :  { %11849 = vst [vmem:[#allocation140_spill] sm:$0xff] %v7295_v40  ;;  %11851 = vst [vmem:[#allocation109_spill] sm:$0xff] %v7299_v18  ;;  %5023 = vmatprep.subr.mxu1 %v11854_v8  ;;  %v7308_v26 = vadd.f32 %v7061_v3, %v11855_v27  ;;  %v7310_v28 = vld [vmem:[#allocation2 + $0x142] sm:$0xff]  ;;  %v7312_v59 = vld [vmem:[#allocation2 + $0x152] sm:$0xff] }
 0x237   :  { %11852 = vst [vmem:[#allocation141_spill] sm:$0xff] %v7301_v48  ;;  %11853 = vst [vmem:[#allocation28_spill] sm:$0xff] %v7303_v5  ;;  %v7314_v13 = vld [vmem:[#allocation2 + $0x15a] sm:$0xff]  ;;  %v7316_v39 = vld [vmem:[#allocation2 + $0x16a] sm:$0xff]  ;;  %5039 = vmatpush3.msra.mxu1 %v11854_v8 }
 0x238   :  { %11856 = vst [vmem:[#allocation142_spill] sm:$0xff] %v7308_v26  ;;  %11857 = vst [vmem:[#allocation31_spill] sm:$0xff] %v7310_v28  ;;  %v11861_v40 = vld [vmem:[#allocation36_spill] sm:$0xff]  ;;  %v7328_v3 = vld [vmem:[#allocation2 + $0x172] sm:$0xff] }
 0x239   :  { %11858 = vst [vmem:[#allocation144_spill] sm:$0xff] %v7312_v59  ;;  %11859 = vst [vmem:[#allocation30_spill] sm:$0xff] %v7314_v13  ;;  %v7319_v47 = vmul.f32 %v11861_v40, %v1626_v51  ;;  %v7322_v52 = vmul.f32 %v11861_v40, %v1627_v4  ;;  %v7325_v43 = vmul.f32 %v11861_v40, %v1628_v6  ;;  %v7330_v27 = vld [vmem:[#allocation2 + $0x1ca] sm:$0xff]  ;;  %v7332_v26 = vld [vmem:[#allocation2 + $0x1d2] sm:$0xff] }
 0x23a   :  { %11860 = vst [vmem:[#allocation145_spill] sm:$0xff] %v7316_v39  ;;  %11864 = vst [vmem:[#allocation32_spill] sm:$0xff] %v7328_v3  ;;  %v7334_v38 = vld [vmem:[#allocation2 + $0x1e2] sm:$0xff]  ;;  %v7337_v33 = vmul.f32 %v11861_v40, %v1629_v63  ;;  %v7340_v51 = vmul.f32 %v11861_v40, %v1630_v49  ;;  %v7344_v4 = vmul.f32 %v11861_v40, %v7221_v61  ;;  %v7351_v8 = vld [vmem:[#allocation2 + $0x1ea] sm:$0xff] }
 0x23b   :  { %11862 = vst [vmem:[#allocation33_spill] sm:$0xff] %v7319_v47  ;;  %11863 = vst [vmem:[#allocation146_spill] sm:$0xff] %v7322_v52  ;;  %v7348_v6 = vmul.f32 %v11861_v40, %v7223_v12  ;;  %v7353_v52 = vld [vmem:[#allocation2 + $0x1fa] sm:$0xff]  ;;  %v7355_v47 = vld [vmem:[#allocation2 + $0x202] sm:$0xff]  ;;  %v7359_v63 = vmul.f32 %v11861_v40, %v7242_v29  ;;  %v7363_v49 = vmul.f32 %v11861_v40, %v7244_v20 }
 0x23c   :  { %11865 = vst [vmem:[#allocation147_spill] sm:$0xff] %v7330_v27  ;;  %11866 = vst [vmem:[#allocation148_spill] sm:$0xff] %v7332_v26  ;;  %v7367_v12 = vmul.f32 %v11861_v40, %v7246_v17  ;;  %v7371_v61 = vmul.f32 %v11861_v40, %v7248_v50  ;;  %v11871_v10 = vld [vmem:[#allocation132_spill] sm:$0xff]  ;;  %v7374_v42 = vld [vmem:[#allocation2 + $0x212] sm:$0xff]  ;;  %v7382_v20 = vmul.f32 %v11861_v40, %v7267_v53 }
 0x23d   :  { %11867 = vst [vmem:[#allocation149_spill] sm:$0xff] %v7334_v38  ;;  %11868 = vst [vmem:[#allocation120_spill] sm:$0xff] %v7351_v8  ;;  %5024 = vmatprep.subr.mxu1 %v11871_v10  ;;  %v7376_v16 = vld [vmem:[#allocation2 + $0x21a] sm:$0xff]  ;;  %v7378_v29 = vld [vmem:[#allocation2 + $0x22a] sm:$0xff]  ;;  %v7386_v17 = vmul.f32 %v11861_v40, %v7269_v24  ;;  %v7390_v50 = vmul.f32 %v11861_v40, %v7271_v41  ;;  %v7394_v11 = vmul.f32 %v11861_v40, %v7273_v54 }
 0x23e   :  { %11869 = vst [vmem:[#allocation151_spill] sm:$0xff] %v7353_v52  ;;  %11870 = vst [vmem:[#allocation153_spill] sm:$0xff] %v7355_v47  ;;  %v7397_v46 = vld [vmem:[#allocation2 + $0x232] sm:$0xff]  ;;  %v7399_v44 = vld [vmem:[#allocation2 + $0x242] sm:$0xff]  ;;  %v7405_v24 = vmul.f32 %v11861_v40, %v7297_v30  ;;  %v7409_v41 = vmul.f32 %v11861_v40, %v7299_v18  ;;  %v7413_v54 = vmul.f32 %v11861_v40, %v7301_v48  ;;  %5040 = vmatpush3.msra.mxu1 %v11871_v10 }
 0x23f   :  { %11872 = vst [vmem:[#allocation132_spill] sm:$0xff] %v7374_v42  ;;  %11873 = vst [vmem:[#allocation154_spill] sm:$0xff] %v7376_v16  ;;  %v7401_v53 = vld [vmem:[#allocation2 + $0x24a] sm:$0xff]  ;;  %v7417_v21 = vmul.f32 %v11861_v40, %v7303_v5  ;;  %v7420_v58 = vld [vmem:[#allocation2 + $0x25a] sm:$0xff]  ;;  %v7428_v18 = vmul.f32 %v11861_v40, %v7310_v28  ;;  %v7432_v48 = vmul.f32 %v11861_v40, %v7312_v59  ;;  %5025 = vmatprep.subr.mxu1 %v11884_v25 }
 0x240   :  { %11874 = vst [vmem:[#allocation155_spill] sm:$0xff] %v7378_v29  ;;  %11875 = vst [vmem:[#allocation156_spill] sm:$0xff] %v7397_v46  ;;  %v7422_v1 = vld [vmem:[#allocation2 + $0x262] sm:$0xff]  ;;  %v7424_v30 = vld [vmem:[#allocation2 + $0x272] sm:$0xff]  ;;  %v7436_v5 = vmul.f32 %v11861_v40, %v7314_v13  ;;  %v7440_v10 = vmul.f32 %v11861_v40, %v7316_v39  ;;  %v7451_v59 = vmul.f32 %v11861_v40, %v7328_v3  ;;  %5041 = vmatpush3.msra.mxu1 %v11884_v25 }
 0x241   :  { %11876 = vst [vmem:[#allocation157_spill] sm:$0xff] %v7399_v44  ;;  %11877 = vst [vmem:[#allocation158_spill] sm:$0xff] %v7401_v53  ;;  %v7443_v2 = vld [vmem:[#allocation2 + $0x27a] sm:$0xff]  ;;  %v7445_v15 = vld [vmem:[#allocation2 + $0x28a] sm:$0xff]  ;;  %v7455_v13 = vmul.f32 %v11861_v40, %v7330_v27  ;;  %v7459_v39 = vmul.f32 %v11861_v40, %v7332_v26  ;;  %v7474_v27 = vmul.f32 %v11861_v40, %v7351_v8 }
 0x242   :  { %11878 = vst [vmem:[#allocation159_spill] sm:$0xff] %v7420_v58  ;;  %11879 = vst [vmem:[#allocation160_spill] sm:$0xff] %v7422_v1  ;;  %v7447_v28 = vld [vmem:[#allocation2 + $0x292] sm:$0xff]  ;;  %v7470_v3 = vld [vmem:[#allocation2 + $0x2ba] sm:$0xff]  ;;  %v7478_v26 = vmul.f32 %v11861_v40, %v7353_v52  ;;  %v7486_v25 = vmul.f32 %v11861_v40, %v7374_v42  ;;  %v7495_v8 = vmul.f32 %v11861_v40, %v7376_v16 }
 0x243   :  { %11880 = vst [vmem:[#allocation161_spill] sm:$0xff] %v7424_v30  ;;  %11881 = vst [vmem:[#allocation162_spill] sm:$0xff] %v7432_v48  ;;  %v7468_v48 = vld [vmem:[#allocation2 + $0x2aa] sm:$0xff]  ;;  %v7499_v52 = vmul.f32 %v11861_v40, %v7378_v29  ;;  %v7507_v42 = vmul.f32 %v11861_v40, %v7399_v44  ;;  %v7515_v16 = vld [vmem:[#allocation2 + $0x2da] sm:$0xff]  ;;  %v1732_v44 = vmul.f32 %v11861_v40, %v7420_v58 }
 0x244   :  { %11882 = vst [vmem:[#allocation163_spill] sm:$0xff] %v7436_v5  ;;  %11883 = vst [vmem:[#allocation164_spill] sm:$0xff] %v7440_v10  ;;  %v7463_v10 = vmul.f32 %v11861_v40, %v7334_v38  ;;  %v7466_v5 = vld [vmem:[#allocation2 + $0x2a2] sm:$0xff]  ;;  %v7482_v38 = vmul.f32 %v11861_v40, %v7355_v47  ;;  %v7503_v47 = vmul.f32 %v11861_v40, %v7397_v46  ;;  %v7519_v29 = vld [vmem:[#allocation2 + $0x2f2] sm:$0xff] }
 0x245   :  { %11885 = vst [vmem:[#allocation143_spill] sm:$0xff] %v7443_v2  ;;  %11886 = vst [vmem:[#allocation165_spill] sm:$0xff] %v7445_v15  ;;  %v1731_v46 = vmul.f32 %v11861_v40, %v7401_v53  ;;  %v1737_v53 = vmul.f32 %v11861_v40, %v7447_v28  ;;  %v1738_v58 = vmul.f32 %v11861_v40, %v7466_v5 }
 0x246   :  { %11887 = vst [vmem:[#allocation166_spill] sm:$0xff] %v7447_v28  ;;  %11888 = vst [vmem:[#allocation167_spill] sm:$0xff] %v7455_v13  ;;  %v7491_v13 = vld [vmem:[#allocation2 + $0x2d2] sm:$0xff]  ;;  %v1743_v28 = vmul.f32 %v11861_v40, %v7515_v16 }
 0x247   :  { %11889 = vst [vmem:[#allocation168_spill] sm:$0xff] %v7459_v39  ;;  %11890 = vst [vmem:[#allocation169_spill] sm:$0xff] %v7463_v10  ;;  %v11896_v10 = vld [vmem:[#allocation150_spill] sm:$0xff]  ;;  %v7489_v39 = vld [vmem:[#allocation2 + $0x2c2] sm:$0xff] }
 0x248   :  { %11891 = vst [vmem:[#allocation170_spill] sm:$0xff] %v7466_v5  ;;  %11892 = vst [vmem:[#allocation171_spill] sm:$0xff] %v7468_v48  ;;  %5026 = vmatprep.subr.mxu1 %v11896_v10  ;;  %v11908_v5 = vld [vmem:[#allocation15_spill] sm:$0xff] }
 0x249   :  { %11893 = vst [vmem:[#allocation172_spill] sm:$0xff] %v7470_v3  ;;  %11894 = vst [vmem:[#allocation173_spill] sm:$0xff] %v7482_v38  ;;  %5042 = vmatpush3.msra.mxu1 %v11896_v10  ;;  %v1733_v10 = vmul.f32 %v11861_v40, %v7422_v1  ;;  %v1736_v38 = vmul.f32 %v11861_v40, %v7445_v15  ;;  %v1739_v1 = vmul.f32 %v11861_v40, %v7468_v48 }
 0x24a   :  { %11895 = vst [vmem:[#allocation174_spill] sm:$0xff] %v7486_v25  ;;  %11897 = vst [vmem:[#allocation150_spill] sm:$0xff] %v7489_v39  ;;  %v7513_v25 = vld [vmem:[%s11110_s7 + $0x8] sm:$0xff]  ;;  %v1742_v15 = vmul.f32 %v11861_v40, %v7491_v13  ;;  %v1745_v48 = vmul.f32 %v11861_v40, %v7519_v29 }
 0x24b   :  { %11898 = vst [vmem:[#allocation175_spill] sm:$0xff] %v7491_v13  ;;  %11899 = vst [vmem:[#allocation176_spill] sm:$0xff] %v7495_v8  ;;  %v7517_v8 = vld [vmem:[#allocation2 + $0x2ea] sm:$0xff]  ;;  %4920 = vmatprep.subr.mxu0 %v7513_v25  ;;  %v7561_v13 = vadd.f32 %v7337_v33, %v7074_v9  ;;  %v7582_v33 = vadd.f32 %v7363_v49, %v7100_v45  ;;  %v7586_v9 = vadd.f32 %v7367_v12, %v7105_v31  ;;  %v11926_v12 = vld [vmem:[#allocation47_spill] sm:$0xff] }
 0x24c   :  { %11900 = vst [vmem:[#allocation177_spill] sm:$0xff] %v7499_v52  ;;  %11901 = vst [vmem:[#allocation178_spill] sm:$0xff] %v7503_v47  ;;  %v11906_v47 = vld [vmem:[#allocation152_spill] sm:$0xff]  ;;  %v1735_v52 = vmul.f32 %v11861_v40, %v7443_v2  ;;  %v1741_v2 = vmul.f32 %v11861_v40, %v7489_v39  ;;  %v7565_v39 = vadd.f32 %v7340_v51, %v7078_v37  ;;  %4921 = vmatpush3.msra.mxu0 %v7513_v25  ;;  %v11911_v31 = vld [vmem:[#allocation17_spill] sm:$0xff] }
 0x24d   :  { %11902 = vst [vmem:[#allocation179_spill] sm:$0xff] %v7507_v42  ;;  %11903 = vst [vmem:[#allocation180_spill] sm:$0xff] %v7515_v16  ;;  %v1734_v42 = vmul.f32 %v11861_v40, %v7424_v30  ;;  %5027 = vmatprep.subr.mxu1 %v11906_v47  ;;  %v1740_v30 = vmul.f32 %v11861_v40, %v7470_v3  ;;  %v7556_v3 = vadd.f32 %v7325_v43, %v7070_v55  ;;  %v11934_v43 = vld [vmem:[#allocation50_spill] sm:$0xff] }
 0x24e   :  { %11904 = vst [vmem:[#allocation181_spill] sm:$0xff] %v7517_v8  ;;  %11905 = vst [vmem:[#allocation182_spill] sm:$0xff] %v7519_v29  ;;  %5043 = vmatpush3.msra.mxu1 %v11906_v47  ;;  %v1744_v47 = vmul.f32 %v11861_v40, %v7517_v8  ;;  %v7569_v8 = vadd.f32 %v7344_v4, %v7088_v35  ;;  %v7573_v40 = vadd.f32 %v7348_v6, %v7092_v14  ;;  %v3409_v4 = vld [vmem:[%s11110_s7] sm:$0xff] }
 0x24f   :  { %11907 = vst [vmem:[#allocation152_spill] sm:$0xff] %v7556_v3  ;;  %5028 = vmatprep.subr.mxu1 %v11908_v5  ;;  %v7578_v55 = vadd.f32 %v7359_v63, %v7096_v36  ;;  %v7590_v37 = vadd.f32 %v7371_v61, %v7109_v0  ;;  %v7595_v35 = vadd.f32 %v7382_v20, %v7113_v62  ;;  %v11939_v63 = vld [vmem:[#allocation101_spill] sm:$0xff] }
 0x250   :  { %5044 = vmatpush3.msra.mxu1 %v11908_v5  ;;  %v7599_v14 = vadd.f32 %v7386_v17, %v7117_v23  ;;  %v7603_v36 = vadd.f32 %v7390_v50, %v7122_v22  ;;  %v7607_v45 = vadd.f32 %v7394_v11, %v7126_v56  ;;  %v7612_v0 = vadd.f32 %v7405_v24, %v7130_v34  ;;  %v11917_v56 = vld [vmem:[#allocation162_spill] sm:$0xff]  ;;  %v11920_v11 = vld [vmem:[#allocation163_spill] sm:$0xff]  ;;  %v11923_v24 = vld [vmem:[#allocation164_spill] sm:$0xff] }
 0x251   :  { %5029 = vmatprep.subr.mxu1 %v11911_v31  ;;  %v7616_v20 = vadd.f32 %v7409_v41, %v7134_v32  ;;  %v7620_v62 = vadd.f32 %v7413_v54, %v7139_v19  ;;  %v7624_v23 = vadd.f32 %v7417_v21, %v7143_v7  ;;  %v7629_v22 = vadd.f32 %v7428_v18, %v7147_v57  ;;  %v11919_v32 = vld [vmem:[#allocation45_spill] sm:$0xff]  ;;  %v11922_v19 = vld [vmem:[#allocation46_spill] sm:$0xff]  ;;  %v11925_v7 = vld [vmem:[#allocation24_spill] sm:$0xff] }
 0x252   :  { %11909 = vst [vmem:[#allocation15_spill] sm:$0xff] %v7603_v36  ;;  %11910 = vst [vmem:[#allocation183_spill] sm:$0xff] %v7607_v45  ;;  %5045 = vmatpush3.msra.mxu1 %v11911_v31  ;;  %v7633_v34 = vadd.f32 %v11917_v56, %v7151_v60  ;;  %v7637_v41 = vadd.f32 %v11920_v11, %v11919_v32  ;;  %v7641_v61 = vadd.f32 %v11923_v24, %v11922_v19  ;;  %v11928_v18 = vld [vmem:[#allocation48_spill] sm:$0xff]  ;;  %v11929_v57 = vld [vmem:[#allocation167_spill] sm:$0xff] }
 0x253   :  { %11912 = vst [vmem:[#allocation17_spill] sm:$0xff] %v7612_v0  ;;  %11913 = vst [vmem:[#allocation184_spill] sm:$0xff] %v7616_v20  ;;  %5030 = vmatprep.subr.mxu1 %v11925_v7  ;;  %v7646_v17 = vadd.f32 %v7451_v59, %v11926_v12  ;;  %v7650_v50 = vadd.f32 %v11929_v57, %v11928_v18  ;;  %v11931_v60 = vld [vmem:[#allocation49_spill] sm:$0xff]  ;;  %v11932_v54 = vld [vmem:[#allocation168_spill] sm:$0xff]  ;;  %v7670_v49 = vadd.f32 %v7478_v26, %v11939_v63 }
 0x254   :  { %11914 = vst [vmem:[#allocation185_spill] sm:$0xff] %v7620_v62  ;;  %11915 = vst [vmem:[#allocation186_spill] sm:$0xff] %v7624_v23  ;;  %v7654_v21 = vadd.f32 %v11932_v54, %v11931_v60  ;;  %v11935_v5 = vld [vmem:[#allocation169_spill] sm:$0xff]  ;;  %5046 = vmatpush3.msra.mxu1 %v11925_v7  ;;  %v11937_v59 = vld [vmem:[#allocation51_spill] sm:$0xff]  ;;  %4922 = vmatprep.subr.mxu0 %v3409_v4 }
 0x255   :  { %11916 = vst [vmem:[#allocation187_spill] sm:$0xff] %v7629_v22  ;;  %11918 = vst [vmem:[#allocation162_spill] sm:$0xff] %v7633_v34  ;;  %v7658_v51 = vadd.f32 %v11935_v5, %v11934_v43  ;;  %v7666_v6 = vadd.f32 %v7474_v27, %v11937_v59  ;;  %v11941_v31 = vld [vmem:[#allocation102_spill] sm:$0xff]  ;;  %v11942_v56 = vld [vmem:[#allocation173_spill] sm:$0xff]  ;;  %4923 = vmatpush3.msra.mxu0 %v3409_v4 }
 0x256   :  { %11921 = vst [vmem:[#allocation45_spill] sm:$0xff] %v7637_v41  ;;  %11924 = vst [vmem:[#allocation163_spill] sm:$0xff] %v7641_v61  ;;  %v7674_v32 = vadd.f32 %v11942_v56, %v11941_v31  ;;  %v11944_v11 = vld [vmem:[#allocation96_spill] sm:$0xff]  ;;  %v11945_v19 = vld [vmem:[#allocation174_spill] sm:$0xff] }
 0x257   :  { %11927 = vst [vmem:[#allocation46_spill] sm:$0xff] %v7646_v17  ;;  %11930 = vst [vmem:[#allocation164_spill] sm:$0xff] %v7650_v50  ;;  %v7678_v24 = vadd.f32 %v11945_v19, %v11944_v11  ;;  %v11947_v7 = vld [vmem:[#allocation35_spill] sm:$0xff]  ;;  %v11948_v12 = vld [vmem:[#allocation105_spill] sm:$0xff] }
 0x258   :  { %11933 = vst [vmem:[#allocation24_spill] sm:$0xff] %v7654_v21  ;;  %11936 = vst [vmem:[#allocation47_spill] sm:$0xff] %v7658_v51  ;;  %5031 = vmatprep.subr.mxu1 %v11947_v7  ;;  %v11949_v18 = vld [vmem:[#allocation176_spill] sm:$0xff]  ;;  %v11951_v27 = vld [vmem:[#allocation106_spill] sm:$0xff] }
 0x259   :  { %11938 = vst [vmem:[#allocation48_spill] sm:$0xff] %v7666_v6  ;;  %11940 = vst [vmem:[#allocation167_spill] sm:$0xff] %v7670_v49  ;;  %v7683_v57 = vadd.f32 %v11949_v18, %v11948_v12  ;;  %v11952_v60 = vld [vmem:[#allocation177_spill] sm:$0xff]  ;;  %v11954_v26 = vld [vmem:[#allocation107_spill] sm:$0xff]  ;;  %5047 = vmatpush3.msra.mxu1 %v11947_v7 }
 0x25a   :  { %11943 = vst [vmem:[#allocation49_spill] sm:$0xff] %v7674_v32  ;;  %11946 = vst [vmem:[#allocation168_spill] sm:$0xff] %v7678_v24  ;;  %v7687_v54 = vadd.f32 %v11952_v60, %v11951_v27  ;;  %v11955_v43 = vld [vmem:[#allocation178_spill] sm:$0xff]  ;;  %v11957_v59 = vld [vmem:[#allocation108_spill] sm:$0xff] }
 0x25b   :  { %11950 = vst [vmem:[#allocation50_spill] sm:$0xff] %v7683_v57  ;;  %v7691_v5 = vadd.f32 %v11955_v43, %v11954_v26  ;;  %v11958_v63 = vld [vmem:[#allocation179_spill] sm:$0xff]  ;;  %v11960_v56 = vld [vmem:[#allocation116_spill] sm:$0xff]  ;;  %v11962_v19 = vld [vmem:[#allocation117_spill] sm:$0xff] }
 0x25c   :  { %11953 = vst [vmem:[#allocation169_spill] sm:$0xff] %v7687_v54  ;;  %v7695_v31 = vadd.f32 %v11958_v63, %v11957_v59  ;;  %v7699_v11 = vadd.f32 %v1731_v46, %v11960_v56  ;;  %v7702_v12 = vadd.f32 %v1732_v44, %v11962_v19  ;;  %v11964_v18 = vld [vmem:[#allocation16_spill] sm:$0xff]  ;;  %v11968_v26 = vld [vmem:[#allocation19_spill] sm:$0xff]  ;;  %v11970_v59 = vld [vmem:[#allocation125_spill] sm:$0xff] }
 0x25d   :  { %11956 = vst [vmem:[#allocation51_spill] sm:$0xff] %v7691_v5  ;;  %v7705_v3 = vadd.f32 %v1733_v10, %v11964_v18  ;;  %v11966_v27 = vld [vmem:[#allocation124_spill] sm:$0xff]  ;;  %v7711_v43 = vadd.f32 %v1735_v52, %v11968_v26  ;;  %v7714_v63 = vadd.f32 %v1736_v38, %v11970_v59  ;;  %v11972_v7 = vld [vmem:[#allocation129_spill] sm:$0xff]  ;;  %v11976_v44 = vld [vmem:[#allocation38_spill] sm:$0xff] }
 0x25e   :  { %11959 = vst [vmem:[#allocation101_spill] sm:$0xff] %v7695_v31  ;;  %11961 = vst [vmem:[#allocation102_spill] sm:$0xff] %v7699_v11  ;;  %v7708_v60 = vadd.f32 %v1734_v42, %v11966_v27  ;;  %v7717_v29 = vadd.f32 %v1737_v53, %v11972_v7  ;;  %v11974_v46 = vld [vmem:[#allocation20_spill] sm:$0xff]  ;;  %5032 = vmatprep.subr.mxu1 %v11976_v44  ;;  %v11977_v10 = vld [vmem:[#allocation130_spill] sm:$0xff] }
 0x25f   :  { %11963 = vst [vmem:[#allocation173_spill] sm:$0xff] %v7702_v12  ;;  %11965 = vst [vmem:[#allocation96_spill] sm:$0xff] %v7705_v3  ;;  %v7720_v56 = vadd.f32 %v1738_v58, %v11974_v46  ;;  %v7724_v19 = vadd.f32 %v1739_v1, %v11977_v10  ;;  %v11979_v42 = vld [vmem:[#allocation23_spill] sm:$0xff]  ;;  %v11983_v26 = vld [vmem:[#allocation138_spill] sm:$0xff]  ;;  %5048 = vmatpush3.msra.mxu1 %v11976_v44 }
 0x260   :  { %11967 = vst [vmem:[#allocation174_spill] sm:$0xff] %v7708_v60  ;;  %11969 = vst [vmem:[#allocation35_spill] sm:$0xff] %v7711_v43  ;;  %v7727_v18 = vadd.f32 %v1740_v30, %v11979_v42  ;;  %v11981_v27 = vld [vmem:[#allocation27_spill] sm:$0xff]  ;;  %v7733_v38 = vadd.f32 %v1742_v15, %v11983_v26  ;;  %v11985_v53 = vld [vmem:[#allocation26_spill] sm:$0xff] }
 0x261   :  { %11971 = vst [vmem:[#allocation105_spill] sm:$0xff] %v7714_v63  ;;  %11973 = vst [vmem:[#allocation176_spill] sm:$0xff] %v7717_v29  ;;  %v7730_v52 = vadd.f32 %v1741_v2, %v11981_v27  ;;  %v7736_v59 = vadd.f32 %v1743_v28, %v11985_v53  ;;  %v11987_v58 = vld [vmem:[#allocation140_spill] sm:$0xff]  ;;  %v11989_v46 = vld [vmem:[#allocation142_spill] sm:$0xff] }
 0x262   :  { %11975 = vst [vmem:[#allocation106_spill] sm:$0xff] %v7720_v56  ;;  %11978 = vst [vmem:[#allocation177_spill] sm:$0xff] %v7724_v19  ;;  %v7739_v7 = vadd.f32 %v1744_v47, %v11987_v58  ;;  %v7742_v16 = vadd.f32 %v1745_v48, %v11989_v46  ;;  %v11991_v1 = vld [vmem:[#allocation57_spill] sm:$0xff]  ;;  %v11992_v10 = vld [vmem:[#allocation39_spill] sm:$0xff] }
 0x263   :  { %11980 = vst [vmem:[#allocation107_spill] sm:$0xff] %v7727_v18  ;;  %11982 = vst [vmem:[#allocation178_spill] sm:$0xff] %v7730_v52  ;;  %v7746_v30 = vmul.f32 %v11992_v10, %v11991_v1  ;;  %v11994_v2 = vld [vmem:[#allocation58_spill] sm:$0xff]  ;;  %v11996_v42 = vld [vmem:[#allocation60_spill] sm:$0xff] }
 0x264   :  { %11984 = vst [vmem:[#allocation108_spill] sm:$0xff] %v7733_v38  ;;  %11986 = vst [vmem:[#allocation179_spill] sm:$0xff] %v7736_v59  ;;  %v7751_v15 = vmul.f32 %v11992_v10, %v11994_v2  ;;  %v1893_v28 = vmul.f32 %v11992_v10, %v11996_v42  ;;  %v11997_v27 = vld [vmem:[#allocation61_spill] sm:$0xff]  ;;  %v11998_v26 = vld [vmem:[#allocation62_spill] sm:$0xff] }
 0x265   :  { %11988 = vst [vmem:[#allocation116_spill] sm:$0xff] %v7739_v7  ;;  %11990 = vst [vmem:[#allocation117_spill] sm:$0xff] %v7742_v16  ;;  %v1894_v47 = vmul.f32 %v11992_v10, %v11997_v27  ;;  %v1895_v48 = vmul.f32 %v11992_v10, %v11998_v26  ;;  %v11999_v53 = vld [vmem:[#allocation137_spill] sm:$0xff]  ;;  %v12000_v58 = vld [vmem:[#allocation63_spill] sm:$0xff] }
 0x266   :  { %11993 = vst [vmem:[#allocation16_spill] sm:$0xff] %v7746_v30  ;;  %11995 = vst [vmem:[#allocation124_spill] sm:$0xff] %v7751_v15  ;;  %5033 = vmatprep.subr.mxu1 %v11999_v53  ;;  %v1896_v46 = vmul.f32 %v11992_v10, %v12000_v58  ;;  %v12001_v1 = vld [vmem:[#allocation66_spill] sm:$0xff]  ;;  %v12002_v30 = vld [vmem:[#allocation67_spill] sm:$0xff] }
 0x267   :  { %v1897_v44 = vmul.f32 %v11992_v10, %v12001_v1  ;;  %v1898_v2 = vmul.f32 %v11992_v10, %v12002_v30  ;;  %v12003_v15 = vld [vmem:[#allocation68_spill] sm:$0xff]  ;;  %5049 = vmatpush3.msra.mxu1 %v11999_v53  ;;  %v7771_v16 = vld [vmem:[#allocation2 + $0x188] sm:$0xff]  ;;  %v12007_v59 = vld [vmem:[#allocation74_spill] sm:$0xff] }
 0x268   :  { %v1899_v42 = vmul.f32 %v11992_v10, %v12003_v15  ;;  %v7769_v27 = vld [vmem:[#allocation2 + $0x180] sm:$0xff]  ;;  %12005 = vst [vmem:[#allocation125_spill] sm:$0xff] %v7771_v16  ;;  %v12006_v26 = vld [vmem:[#allocation69_spill] sm:$0xff]  ;;  %v1901_v58 = vmul.f32 %v11992_v10, %v12007_v59  ;;  %v12008_v38 = vld [vmem:[#allocation75_spill] sm:$0xff]  ;;  %5034 = vmatprep.subr.mxu1 %v7513_v25 }
 0x269   :  { %12004 = vst [vmem:[#allocation19_spill] sm:$0xff] %v7769_v27  ;;  %v1900_v7 = vmul.f32 %v11992_v10, %v12006_v26  ;;  %v1902_v1 = vmul.f32 %v11992_v10, %v12008_v38  ;;  %v12009_v52 = vld [vmem:[#allocation76_spill] sm:$0xff]  ;;  %v12010_v15 = vld [vmem:[#allocation77_spill] sm:$0xff]  ;;  %v12013_v29 = vld [vmem:[#allocation82_spill] sm:$0xff]  ;;  %5050 = vmatpush3.msra.mxu1 %v7513_v25 }
 0x26a   :  { %v1903_v30 = vmul.f32 %v11992_v10, %v12009_v52  ;;  %v1904_v53 = vmul.f32 %v11992_v10, %v12010_v15  ;;  %v12011_v18 = vld [vmem:[#allocation80_spill] sm:$0xff]  ;;  %v12012_v56 = vld [vmem:[#allocation81_spill] sm:$0xff]  ;;  %v1907_v59 = vmul.f32 %v11992_v10, %v12013_v29  ;;  %v12014_v38 = vld [vmem:[#allocation83_spill] sm:$0xff]  ;;  %5035 = vmatprep.subr.mxu1 %v3409_v4  ;;  %v1913_v29 = vmul.f32 %v11992_v10, %v7771_v16 }
 0x26b   :  { %v1905_v19 = vmul.f32 %v11992_v10, %v12011_v18  ;;  %v1906_v26 = vmul.f32 %v11992_v10, %v12012_v56  ;;  %v1908_v63 = vmul.f32 %v11992_v10, %v12014_v38  ;;  %v12015_v52 = vld [vmem:[#allocation86_spill] sm:$0xff]  ;;  %v12016_v60 = vld [vmem:[#allocation87_spill] sm:$0xff]  ;;  %v12017_v3 = vld [vmem:[#allocation88_spill] sm:$0xff]  ;;  %v1912_v56 = vmul.f32 %v11992_v10, %v7769_v27  ;;  %5051 = vmatpush3.msra.mxu1 %v3409_v4 }
 0x26c   :  { %v1909_v43 = vmul.f32 %v11992_v10, %v12015_v52  ;;  %v1910_v15 = vmul.f32 %v11992_v10, %v12016_v60  ;;  %v1911_v18 = vmul.f32 %v11992_v10, %v12017_v3  ;;  %v12018_v25 = vld [vmem:[#allocation89_spill] sm:$0xff]  ;;  %v12019_v38 = vld [vmem:[#allocation90_spill] sm:$0xff]  ;;  %v12020_v52 = vld [vmem:[#allocation91_spill] sm:$0xff] }
 0x26d   :  { %v1914_v12 = vmul.f32 %v11992_v10, %v12018_v25  ;;  %v1915_v11 = vmul.f32 %v11992_v10, %v12019_v38  ;;  %v1916_v60 = vmul.f32 %v11992_v10, %v12020_v52  ;;  %v12021_v31 = vld [vmem:[#allocation92_spill] sm:$0xff]  ;;  %v12022_v5 = vld [vmem:[#allocation93_spill] sm:$0xff]  ;;  %v12023_v27 = vld [vmem:[#allocation94_spill] sm:$0xff] }
 0x26e   :  { %v1917_v3 = vmul.f32 %v11992_v10, %v12021_v31  ;;  %v1918_v54 = vmul.f32 %v11992_v10, %v12022_v5  ;;  %v1919_v57 = vmul.f32 %v11992_v10, %v12023_v27  ;;  %v12024_v16 = vld [vmem:[#allocation95_spill] sm:$0xff]  ;;  %v12025_v25 = vld [vmem:[#allocation98_spill] sm:$0xff]  ;;  %v12027_v49 = vld [vmem:[#allocation100_spill] sm:$0xff] }
 0x26f   :  { %v1920_v24 = vmul.f32 %v11992_v10, %v12024_v16  ;;  %v1921_v32 = vmul.f32 %v11992_v10, %v12025_v25  ;;  %v12026_v38 = vld [vmem:[#allocation99_spill] sm:$0xff]  ;;  %v1923_v52 = vmul.f32 %v11992_v10, %v12027_v49  ;;  %v12029_v51 = vld [vmem:[#allocation104_spill] sm:$0xff]  ;;  %v12030_v21 = vld [vmem:[#allocation110_spill] sm:$0xff] }
 0x270   :  { %v1922_v4 = vmul.f32 %v11992_v10, %v12026_v38  ;;  %v12028_v6 = vld [vmem:[#allocation103_spill] sm:$0xff]  ;;  %v1925_v5 = vmul.f32 %v11992_v10, %v12029_v51  ;;  %v1926_v27 = vmul.f32 %v11992_v10, %v12030_v21  ;;  %v12032_v17 = vld [vmem:[#allocation112_spill] sm:$0xff]  ;;  %v12033_v61 = vld [vmem:[#allocation114_spill] sm:$0xff] }
 0x271   :  { %v1924_v31 = vmul.f32 %v11992_v10, %v12028_v6  ;;  %v12031_v50 = vld [vmem:[#allocation111_spill] sm:$0xff]  ;;  %v1928_v25 = vmul.f32 %v11992_v10, %v12032_v17  ;;  %v1929_v38 = vmul.f32 %v11992_v10, %v12033_v61  ;;  %v12035_v34 = vld [vmem:[#allocation121_spill] sm:$0xff]  ;;  %v12036_v22 = vld [vmem:[#allocation122_spill] sm:$0xff] }
 0x272   :  { %v1927_v16 = vmul.f32 %v11992_v10, %v12031_v50  ;;  %v12034_v41 = vld [vmem:[#allocation115_spill] sm:$0xff]  ;;  %v1931_v6 = vmul.f32 %v11992_v10, %v12035_v34  ;;  %v1932_v51 = vmul.f32 %v11992_v10, %v12036_v22  ;;  %v12039_v20 = vld [vmem:[#allocation128_spill] sm:$0xff]  ;;  %v12040_v61 = vld [vmem:[#allocation133_spill] sm:$0xff] }
 0x273   :  { %v1930_v49 = vmul.f32 %v11992_v10, %v12034_v41  ;;  %v12037_v23 = vld [vmem:[#allocation123_spill] sm:$0xff]  ;;  %v7847_v17 = vmul.f32 %v11992_v10, %v12039_v20  ;;  %v7851_v0 = vmul.f32 %v11992_v10, %v12040_v61  ;;  %v12042_v41 = vld [vmem:[#allocation134_spill] sm:$0xff]  ;;  %v5066_v61 = vld [vmem:[#allocation2 + $0x308] sm:$0xff] }
 0x274   :  { %v1933_v21 = vmul.f32 %v11992_v10, %v12037_v23  ;;  %v12038_v62 = vld [vmem:[#allocation127_spill] sm:$0xff]  ;;  %v7855_v34 = vmul.f32 %v11992_v10, %v12042_v41  ;;  %v7875_v41 = vadd.f32 %v1893_v28, %v7561_v13  ;;  %v7896_v13 = vadd.f32 %v1900_v7, %v7590_v37  ;;  %v12055_v37 = vld [vmem:[#allocation185_spill] sm:$0xff] }
 0x275   :  { %v1934_v50 = vmul.f32 %v11992_v10, %v12038_v62  ;;  %12041 = vst [vmem:[#allocation129_spill] sm:$0xff] %v7851_v0  ;;  %v12043_v45 = vld [vmem:[#allocation135_spill] sm:$0xff]  ;;  %v7865_v62 = vld [vmem:[#allocation2 + $0x300] sm:$0xff]  ;;  %v7872_v0 = vmul.f32 %v5066_v61, %v11992_v10  ;;  %v7893_v61 = vadd.f32 %v1899_v42, %v7586_v9  ;;  %v7917_v7 = vadd.f32 %v1907_v59, %v12055_v37  ;;  %v12061_v42 = vld [vmem:[#allocation162_spill] sm:$0xff] }
 0x276   :  { %v7859_v22 = vmul.f32 %v11992_v10, %v12043_v45  ;;  %v12045_v23 = vld [vmem:[#allocation139_spill] sm:$0xff]  ;;  %12047 = vst [vmem:[#allocation130_spill] sm:$0xff] %v7865_v62  ;;  %v7869_v20 = vmul.f32 %v7865_v62, %v11992_v10  ;;  %12048 = vst [vmem:[#allocation23_spill] sm:$0xff] %v7875_v41  ;;  %v7878_v45 = vadd.f32 %v1894_v47, %v7565_v39  ;;  %v12053_v9 = vld [vmem:[#allocation184_spill] sm:$0xff] }
 0x277   :  { %v7863_v36 = vmul.f32 %v11992_v10, %v12045_v23  ;;  %v7884_v23 = vadd.f32 %v1896_v46, %v7573_v40  ;;  %v7890_v62 = vadd.f32 %v1898_v2, %v7582_v33  ;;  %v7899_v39 = vadd.f32 %v1901_v58, %v7595_v35  ;;  %v12049_v40 = vld [vmem:[#allocation15_spill] sm:$0xff]  ;;  %v12051_v33 = vld [vmem:[#allocation17_spill] sm:$0xff]  ;;  %12056 = vst [vmem:[#allocation26_spill] sm:$0xff] %v7917_v7  ;;  %v12057_v35 = vld [vmem:[#allocation186_spill] sm:$0xff] }
 0x278   :  { %12044 = vst [vmem:[#allocation20_spill] sm:$0xff] %v7859_v22  ;;  %v7881_v22 = vadd.f32 %v1895_v48, %v7569_v8  ;;  %v7902_v8 = vadd.f32 %v1902_v1, %v7599_v14  ;;  %v7905_v28 = vadd.f32 %v1903_v30, %v12049_v40  ;;  %v7911_v48 = vadd.f32 %v1905_v19, %v12051_v33  ;;  %v12059_v14 = vld [vmem:[#allocation187_spill] sm:$0xff]  ;;  %v12063_v1 = vld [vmem:[#allocation45_spill] sm:$0xff]  ;;  %v12069_v59 = vld [vmem:[#allocation56_spill] sm:$0xff] }
 0x279   :  { %12046 = vst [vmem:[#allocation38_spill] sm:$0xff] %v7863_v36  ;;  %v7887_v36 = vadd.f32 %v1897_v44, %v7578_v55  ;;  %v12050_v55 = vld [vmem:[#allocation183_spill] sm:$0xff]  ;;  %v7914_v46 = vadd.f32 %v1906_v26, %v12053_v9  ;;  %v7920_v44 = vadd.f32 %v1908_v63, %v12057_v35  ;;  %v7923_v2 = vadd.f32 %v1909_v43, %v12059_v14  ;;  %v12067_v26 = vld [vmem:[#allocation46_spill] sm:$0xff]  ;;  %v12073_v43 = vld [vmem:[#allocation164_spill] sm:$0xff] }
 0x27a   :  { %v7908_v47 = vadd.f32 %v1904_v53, %v12050_v55  ;;  %12052 = vst [vmem:[#allocation27_spill] sm:$0xff] %v7911_v48  ;;  %v7926_v58 = vadd.f32 %v1910_v15, %v12061_v42  ;;  %v7929_v30 = vadd.f32 %v1911_v18, %v12063_v1  ;;  %v12065_v19 = vld [vmem:[#allocation163_spill] sm:$0xff]  ;;  %v7935_v40 = vadd.f32 %v1913_v29, %v12067_v26  ;;  %v12075_v15 = vld [vmem:[#allocation24_spill] sm:$0xff]  ;;  %v12087_v26 = vld [vmem:[#allocation50_spill] sm:$0xff] }
 0x27b   :  { %12054 = vst [vmem:[#allocation138_spill] sm:$0xff] %v7914_v46  ;;  %12058 = vst [vmem:[#allocation140_spill] sm:$0xff] %v7920_v44  ;;  %v7932_v53 = vadd.f32 %v1912_v56, %v12065_v19  ;;  %v7938_v55 = vadd.f32 %v1914_v12, %v12069_v59  ;;  %v12071_v63 = vld [vmem:[#allocation59_spill] sm:$0xff]  ;;  %v7944_v9 = vadd.f32 %v1916_v60, %v12073_v43  ;;  %v12079_v56 = vld [vmem:[#allocation48_spill] sm:$0xff] }
 0x27c   :  { %12060 = vst [vmem:[#allocation142_spill] sm:$0xff] %v7923_v2  ;;  %12062 = vst [vmem:[#allocation57_spill] sm:$0xff] %v7926_v58  ;;  %v7941_v33 = vadd.f32 %v1915_v11, %v12071_v63  ;;  %v7947_v37 = vadd.f32 %v1917_v3, %v12075_v15  ;;  %v12077_v18 = vld [vmem:[#allocation47_spill] sm:$0xff]  ;;  %v7953_v14 = vadd.f32 %v1919_v57, %v12079_v56  ;;  %v12083_v12 = vld [vmem:[#allocation49_spill] sm:$0xff] }
 0x27d   :  { %12064 = vst [vmem:[#allocation58_spill] sm:$0xff] %v7929_v30  ;;  %12066 = vst [vmem:[#allocation60_spill] sm:$0xff] %v7932_v53  ;;  %v7950_v35 = vadd.f32 %v1918_v54, %v12077_v18  ;;  %v12081_v29 = vld [vmem:[#allocation167_spill] sm:$0xff]  ;;  %v7959_v1 = vadd.f32 %v1921_v32, %v12083_v12  ;;  %v12085_v11 = vld [vmem:[#allocation168_spill] sm:$0xff]  ;;  %v7965_v59 = vadd.f32 %v1923_v52, %v12087_v26 }
 0x27e   :  { %12068 = vst [vmem:[#allocation61_spill] sm:$0xff] %v7935_v40  ;;  %12070 = vst [vmem:[#allocation62_spill] sm:$0xff] %v7938_v55  ;;  %v7956_v42 = vadd.f32 %v1920_v24, %v12081_v29  ;;  %v7962_v19 = vadd.f32 %v1922_v4, %v12085_v11  ;;  %v2020_v60 = vld [vmem:[#allocation2 + $0x91] sm:$0xff]  ;;  %v12089_v3 = vld [vmem:[#allocation169_spill] sm:$0xff] }
 0x27f   :  { %12072 = vst [vmem:[#allocation137_spill] sm:$0xff] %v7941_v33  ;;  %12074 = vst [vmem:[#allocation63_spill] sm:$0xff] %v7944_v9  ;;  %v7968_v63 = vadd.f32 %v1924_v31, %v12089_v3  ;;  %v12091_v54 = vld [vmem:[#allocation51_spill] sm:$0xff]  ;;  %v12093_v57 = vld [vmem:[#allocation101_spill] sm:$0xff] }
 0x280   :  { %12076 = vst [vmem:[#allocation66_spill] sm:$0xff] %v7947_v37  ;;  %12078 = vst [vmem:[#allocation67_spill] sm:$0xff] %v7950_v35  ;;  %v7971_v43 = vadd.f32 %v1925_v5, %v12091_v54  ;;  %v7974_v15 = vadd.f32 %v1926_v27, %v12093_v57  ;;  %v2021_v24 = vld [vmem:[#allocation2 + $0x99] sm:$0xff]  ;;  %v2022_v18 = vld [vmem:[#allocation2 + $0xa9] sm:$0xff] }
 0x281   :  { %12080 = vst [vmem:[#allocation68_spill] sm:$0xff] %v7953_v14  ;;  %12082 = vst [vmem:[#allocation69_spill] sm:$0xff] %v7956_v42  ;;  %v2023_v32 = vld [vmem:[#allocation2 + $0xb1] sm:$0xff]  ;;  %v2024_v56 = vld [vmem:[#allocation2 + $0xc1] sm:$0xff] }
 0x282   :  { %12084 = vst [vmem:[#allocation74_spill] sm:$0xff] %v7959_v1  ;;  %12086 = vst [vmem:[#allocation75_spill] sm:$0xff] %v7962_v19  ;;  %v12095_v29 = vld [vmem:[#allocation102_spill] sm:$0xff]  ;;  %v12097_v12 = vld [vmem:[#allocation173_spill] sm:$0xff] }
 0x283   :  { %12088 = vst [vmem:[#allocation76_spill] sm:$0xff] %v7965_v59  ;;  %12090 = vst [vmem:[#allocation77_spill] sm:$0xff] %v7968_v63  ;;  %v7977_v4 = vadd.f32 %v1927_v16, %v12095_v29  ;;  %v7980_v11 = vadd.f32 %v1928_v25, %v12097_v12  ;;  %v12099_v52 = vld [vmem:[#allocation96_spill] sm:$0xff]  ;;  %v12101_v31 = vld [vmem:[#allocation174_spill] sm:$0xff] }
 0x284   :  { %12092 = vst [vmem:[#allocation80_spill] sm:$0xff] %v7971_v43  ;;  %12094 = vst [vmem:[#allocation81_spill] sm:$0xff] %v7974_v15  ;;  %v7983_v26 = vadd.f32 %v1929_v38, %v12099_v52  ;;  %v7986_v3 = vadd.f32 %v1930_v49, %v12101_v31  ;;  %v2025_v5 = vld [vmem:[#allocation2 + $0xc9] sm:$0xff]  ;;  %v2026_v54 = vld [vmem:[#allocation2 + $0xd9] sm:$0xff] }
 0x285   :  { %12096 = vst [vmem:[#allocation82_spill] sm:$0xff] %v7977_v4  ;;  %12098 = vst [vmem:[#allocation83_spill] sm:$0xff] %v7980_v11  ;;  %v2027_v27 = vld [vmem:[#allocation2 + $0xe1] sm:$0xff]  ;;  %v2028_v57 = vld [vmem:[#allocation2 + $0xf1] sm:$0xff] }
 0x286   :  { %12100 = vst [vmem:[#allocation86_spill] sm:$0xff] %v7983_v26  ;;  %12102 = vst [vmem:[#allocation87_spill] sm:$0xff] %v7986_v3  ;;  %v12103_v41 = vld [vmem:[#allocation35_spill] sm:$0xff]  ;;  %v12105_v15 = vld [vmem:[#allocation105_spill] sm:$0xff] }
 0x287   :  { %v7989_v10 = vadd.f32 %v1931_v6, %v12103_v41  ;;  %v7992_v43 = vadd.f32 %v1932_v51, %v12105_v15  ;;  %v12107_v16 = vld [vmem:[#allocation176_spill] sm:$0xff]  ;;  %v12109_v25 = vld [vmem:[#allocation106_spill] sm:$0xff]  ;;  %v12111_v3 = vld [vmem:[#allocation177_spill] sm:$0xff] }
 0x288   :  { %v7995_v29 = vadd.f32 %v1933_v21, %v12107_v16  ;;  %v7998_v12 = vadd.f32 %v1934_v50, %v12109_v25  ;;  %v2029_v38 = vld [vmem:[#allocation2 + $0xf9] sm:$0xff]  ;;  %v2030_v52 = vld [vmem:[#allocation2 + $0x109] sm:$0xff]  ;;  %v2031_v49 = vld [vmem:[#allocation2 + $0x111] sm:$0xff]  ;;  %v8002_v26 = vadd.f32 %v7847_v17, %v12111_v3 }
 0x289   :  { %12104 = vst [vmem:[#allocation88_spill] sm:$0xff] %v7989_v10  ;;  %12106 = vst [vmem:[#allocation89_spill] sm:$0xff] %v7992_v43  ;;  %v2032_v31 = vld [vmem:[#allocation2 + $0x121] sm:$0xff]  ;;  %v12113_v11 = vld [vmem:[#allocation107_spill] sm:$0xff] }
 0x28a   :  { %12108 = vst [vmem:[#allocation90_spill] sm:$0xff] %v7995_v29  ;;  %12110 = vst [vmem:[#allocation91_spill] sm:$0xff] %v7998_v12  ;;  %v12114_v6 = vld [vmem:[#allocation129_spill] sm:$0xff]  ;;  %v12116_v51 = vld [vmem:[#allocation178_spill] sm:$0xff] }
 0x28b   :  { %12112 = vst [vmem:[#allocation92_spill] sm:$0xff] %v8002_v26  ;;  %v8006_v41 = vadd.f32 %v12114_v6, %v12113_v11  ;;  %v8010_v15 = vadd.f32 %v7855_v34, %v12116_v51  ;;  %v12118_v21 = vld [vmem:[#allocation108_spill] sm:$0xff]  ;;  %v2033_v25 = vld [vmem:[#allocation2 + $0x129] sm:$0xff]  ;;  %v2036_v43 = vld [vmem:[#allocation2 + $0x151] sm:$0xff] }
 0x28c   :  { %v12119_v16 = vld [vmem:[#allocation20_spill] sm:$0xff]  ;;  %v12121_v10 = vld [vmem:[#allocation179_spill] sm:$0xff]  ;;  %v12122_v4 = vld [vmem:[#allocation38_spill] sm:$0xff] }
 0x28d   :  { %12115 = vst [vmem:[#allocation93_spill] sm:$0xff] %v8006_v41  ;;  %12117 = vst [vmem:[#allocation94_spill] sm:$0xff] %v8010_v15  ;;  %v8014_v50 = vadd.f32 %v12119_v16, %v12118_v21  ;;  %v2034_v12 = vld [vmem:[#allocation2 + $0x139] sm:$0xff]  ;;  %v2035_v29 = vld [vmem:[#allocation2 + $0x141] sm:$0xff]  ;;  %v8018_v17 = vadd.f32 %v12122_v4, %v12121_v10 }
 0x28e   :  { %v12124_v3 = vld [vmem:[#allocation116_spill] sm:$0xff]  ;;  %v12126_v6 = vld [vmem:[#allocation117_spill] sm:$0xff]  ;;  %v2039_v21 = vld [vmem:[#allocation2 + $0x171] sm:$0xff] }
 0x28f   :  { %12120 = vst [vmem:[#allocation95_spill] sm:$0xff] %v8014_v50  ;;  %12123 = vst [vmem:[#allocation98_spill] sm:$0xff] %v8018_v17  ;;  %v8022_v11 = vadd.f32 %v7869_v20, %v12124_v3  ;;  %v8026_v34 = vadd.f32 %v7872_v0, %v12126_v6  ;;  %v2037_v51 = vld [vmem:[#allocation2 + $0x159] sm:$0xff]  ;;  %v2038_v15 = vld [vmem:[#allocation2 + $0x169] sm:$0xff] }
 0x290   :  { %v2040_v16 = vld [vmem:[#allocation2 + $0x181] sm:$0xff]  ;;  %v2041_v26 = vld [vmem:[#allocation2 + $0x189] sm:$0xff]  ;;  %v2043_v59 = vld [vmem:[#allocation2 + $0x1d1] sm:$0xff] }
 0x291   :  { %12125 = vst [vmem:[#allocation99_spill] sm:$0xff] %v8022_v11  ;;  %12127 = vst [vmem:[#allocation100_spill] sm:$0xff] %v8026_v34  ;;  %v12128_v50 = vld [vmem:[#allocation40_spill] sm:$0xff]  ;;  %v2042_v63 = vld [vmem:[#allocation2 + $0x1c9] sm:$0xff] }
 0x292   :  { %v8029_v41 = vmul.f32 %v12128_v50, %v2020_v60  ;;  %v8032_v10 = vmul.f32 %v12128_v50, %v2021_v24  ;;  %v8035_v20 = vmul.f32 %v12128_v50, %v2022_v18  ;;  %v8038_v4 = vmul.f32 %v12128_v50, %v2023_v32  ;;  %v2044_v3 = vld [vmem:[#allocation2 + $0x1e1] sm:$0xff]  ;;  %v2045_v6 = vld [vmem:[#allocation2 + $0x1e9] sm:$0xff]  ;;  %v2046_v34 = vld [vmem:[#allocation2 + $0x1f9] sm:$0xff] }
 0x293   :  { %v8041_v0 = vmul.f32 %v12128_v50, %v2024_v56  ;;  %v8044_v60 = vmul.f32 %v12128_v50, %v2025_v5  ;;  %v8050_v24 = vmul.f32 %v12128_v50, %v2027_v27  ;;  %v8053_v18 = vmul.f32 %v12128_v50, %v2028_v57  ;;  %v2047_v32 = vld [vmem:[#allocation2 + $0x201] sm:$0xff]  ;;  %v2049_v11 = vld [vmem:[#allocation2 + $0x219] sm:$0xff]  ;;  %v2050_v27 = vld [vmem:[#allocation2 + $0x229] sm:$0xff] }
 0x294   :  { %12129 = vst [vmem:[#allocation103_spill] sm:$0xff] %v8029_v41  ;;  %12130 = vst [vmem:[#allocation104_spill] sm:$0xff] %v8032_v10  ;;  %v8047_v41 = vmul.f32 %v12128_v50, %v2026_v54  ;;  %v2048_v10 = vld [vmem:[#allocation2 + $0x211] sm:$0xff]  ;;  %v8056_v56 = vmul.f32 %v12128_v50, %v2029_v38  ;;  %v8059_v17 = vmul.f32 %v12128_v50, %v2030_v52  ;;  %v2052_v1 = vld [vmem:[#allocation2 + $0x241] sm:$0xff] }
 0x295   :  { %v8062_v5 = vmul.f32 %v12128_v50, %v2031_v49  ;;  %v8065_v54 = vmul.f32 %v12128_v50, %v2032_v31  ;;  %v2051_v19 = vld [vmem:[#allocation2 + $0x231] sm:$0xff]  ;;  %v8068_v57 = vmul.f32 %v12128_v50, %v2033_v25  ;;  %v8071_v42 = vmul.f32 %v12128_v50, %v2034_v12  ;;  %v2053_v49 = vld [vmem:[#allocation2 + $0x249] sm:$0xff]  ;;  %v2054_v14 = vld [vmem:[#allocation2 + $0x259] sm:$0xff] }
 0x296   :  { %v8074_v38 = vmul.f32 %v12128_v50, %v2035_v29  ;;  %v8077_v52 = vmul.f32 %v12128_v50, %v2036_v43  ;;  %v2055_v35 = vld [vmem:[#allocation2 + $0x261] sm:$0xff]  ;;  %v2105_v31 = vmul.f32 %v12128_v50, %v2037_v51  ;;  %v2106_v37 = vmul.f32 %v12128_v50, %v2038_v15  ;;  %v2056_v33 = vld [vmem:[#allocation2 + $0x271] sm:$0xff]  ;;  %v2057_v12 = vld [vmem:[#allocation2 + $0x279] sm:$0xff] }
 0x297   :  { %12131 = vst [vmem:[#allocation110_spill] sm:$0xff] %v8065_v54  ;;  %12132 = vst [vmem:[#allocation111_spill] sm:$0xff] %v8068_v57  ;;  %v2107_v9 = vmul.f32 %v12128_v50, %v2039_v21  ;;  %v2108_v25 = vmul.f32 %v12128_v50, %v2040_v16  ;;  %v2058_v55 = vld [vmem:[#allocation2 + $0x289] sm:$0xff]  ;;  %v2109_v29 = vmul.f32 %v12128_v50, %v2041_v26  ;;  %v2059_v30 = vld [vmem:[#allocation2 + $0x291] sm:$0xff] }
 0x298   :  { %12133 = vst [vmem:[#allocation112_spill] sm:$0xff] %v8071_v42  ;;  %12134 = vst [vmem:[#allocation114_spill] sm:$0xff] %v8074_v38  ;;  %v2110_v40 = vmul.f32 %v12128_v50, %v2042_v63  ;;  %v2111_v43 = vmul.f32 %v12128_v50, %v2043_v59  ;;  %v2112_v53 = vmul.f32 %v12128_v50, %v2044_v3  ;;  %v2060_v58 = vld [vmem:[#allocation2 + $0x2a1] sm:$0xff]  ;;  %v2061_v51 = vld [vmem:[#allocation2 + $0x2a9] sm:$0xff] }
 0x299   :  { %12135 = vst [vmem:[#allocation115_spill] sm:$0xff] %v8077_v52  ;;  %v2113_v15 = vmul.f32 %v12128_v50, %v2045_v6  ;;  %v2114_v21 = vmul.f32 %v12128_v50, %v2046_v34  ;;  %v2115_v16 = vmul.f32 %v12128_v50, %v2047_v32  ;;  %v2116_v2 = vmul.f32 %v12128_v50, %v2048_v10  ;;  %v2062_v52 = vld [vmem:[#allocation2 + $0x2b9] sm:$0xff]  ;;  %v2063_v44 = vld [vmem:[#allocation2 + $0x2c1] sm:$0xff]  ;;  %v2064_v26 = vld [vmem:[#allocation2 + $0x2d1] sm:$0xff] }
 0x29a   :  { %v2117_v63 = vmul.f32 %v12128_v50, %v2049_v11  ;;  %v2118_v59 = vmul.f32 %v12128_v50, %v2050_v27  ;;  %v2119_v3 = vmul.f32 %v12128_v50, %v2051_v19  ;;  %v2120_v38 = vmul.f32 %v12128_v50, %v2052_v1  ;;  %v2065_v7 = vld [vmem:[#allocation2 + $0x2d9] sm:$0xff]  ;;  %v2066_v42 = vld [vmem:[#allocation2 + $0x2e9] sm:$0xff]  ;;  %v2067_v6 = vld [vmem:[#allocation2 + $0x2f1] sm:$0xff] }
 0x29b   :  { %v2121_v34 = vmul.f32 %v12128_v50, %v2053_v49  ;;  %v2122_v32 = vmul.f32 %v12128_v50, %v2054_v14  ;;  %v2123_v10 = vmul.f32 %v12128_v50, %v2055_v35  ;;  %v2124_v46 = vmul.f32 %v12128_v50, %v2056_v33  ;;  %v5067_v54 = vld [vmem:[#allocation2 + $0x301] sm:$0xff] }
 0x29c   :  { %v2125_v57 = vmul.f32 %v12128_v50, %v2057_v12  ;;  %v2126_v11 = vmul.f32 %v12128_v50, %v2058_v55  ;;  %v2127_v27 = vmul.f32 %v12128_v50, %v2059_v30  ;;  %v2128_v19 = vmul.f32 %v12128_v50, %v2060_v58  ;;  %v5068_v30 = vld [vmem:[#allocation2 + $0x309] sm:$0xff] }
 0x29d   :  { %v2129_v1 = vmul.f32 %v12128_v50, %v2061_v51  ;;  %v2130_v48 = vmul.f32 %v12128_v50, %v2062_v52  ;;  %v2131_v49 = vmul.f32 %v12128_v50, %v2063_v44  ;;  %v2132_v14 = vmul.f32 %v12128_v50, %v2064_v26 }
 0x29e   :  { %v2133_v35 = vmul.f32 %v12128_v50, %v2065_v7  ;;  %v2134_v33 = vmul.f32 %v12128_v50, %v2066_v42  ;;  %v2135_v12 = vmul.f32 %v12128_v50, %v2067_v6  ;;  %v2136_v55 = vmul.f32 %v5067_v54, %v12128_v50  ;;  %v12154_v6 = vld [vmem:[#allocation58_spill] sm:$0xff] }
 0x29f   :  { %v2137_v58 = vmul.f32 %v5068_v30, %v12128_v50  ;;  %v8114_v51 = vadd.f32 %v8035_v20, %v7878_v45  ;;  %v8118_v44 = vadd.f32 %v8038_v4, %v7881_v22  ;;  %v8122_v7 = vadd.f32 %v8041_v0, %v7884_v23  ;;  %v12139_v20 = vld [vmem:[#allocation27_spill] sm:$0xff]  ;;  %v12141_v0 = vld [vmem:[#allocation138_spill] sm:$0xff]  ;;  %v12231_v50 = vld [vmem:[#allocation109_spill] sm:$0xff] }
 0x2a0   :  { %v8126_v42 = vadd.f32 %v8044_v60, %v7887_v36  ;;  %v8130_v54 = vadd.f32 %v8047_v41, %v7890_v62  ;;  %v8134_v45 = vadd.f32 %v8050_v24, %v7893_v61  ;;  %v8138_v22 = vadd.f32 %v8053_v18, %v7896_v13  ;;  %v12138_v41 = vld [vmem:[#allocation110_spill] sm:$0xff]  ;;  %v12140_v4 = vld [vmem:[#allocation111_spill] sm:$0xff]  ;;  %v12142_v60 = vld [vmem:[#allocation112_spill] sm:$0xff] }
 0x2a1   :  { %12136 = vst [vmem:[#allocation121_spill] sm:$0xff] %v8114_v51  ;;  %12137 = vst [vmem:[#allocation122_spill] sm:$0xff] %v8118_v44  ;;  %v8142_v23 = vadd.f32 %v8056_v56, %v7899_v39  ;;  %v8146_v36 = vadd.f32 %v8059_v17, %v7902_v8  ;;  %v8150_v62 = vadd.f32 %v8062_v5, %v7905_v28  ;;  %v12144_v24 = vld [vmem:[#allocation26_spill] sm:$0xff]  ;;  %v12147_v17 = vld [vmem:[#allocation140_spill] sm:$0xff] }
 0x2a2   :  { %v8154_v61 = vadd.f32 %v12138_v41, %v7908_v47  ;;  %v8158_v13 = vadd.f32 %v12140_v4, %v12139_v20  ;;  %v8162_v39 = vadd.f32 %v12142_v60, %v12141_v0  ;;  %v12145_v18 = vld [vmem:[#allocation114_spill] sm:$0xff]  ;;  %v12148_v56 = vld [vmem:[#allocation115_spill] sm:$0xff]  ;;  %v12152_v47 = vld [vmem:[#allocation57_spill] sm:$0xff]  ;;  %v8179_v30 = vadd.f32 %v2107_v9, %v12154_v6 }
 0x2a3   :  { %v8166_v8 = vadd.f32 %v12145_v18, %v12144_v24  ;;  %v8170_v28 = vadd.f32 %v12148_v56, %v12147_v17  ;;  %v12150_v5 = vld [vmem:[#allocation142_spill] sm:$0xff]  ;;  %v8176_v26 = vadd.f32 %v2106_v37, %v12152_v47  ;;  %v12156_v41 = vld [vmem:[#allocation60_spill] sm:$0xff]  ;;  %v12158_v4 = vld [vmem:[#allocation61_spill] sm:$0xff] }
 0x2a4   :  { %12143 = vst [vmem:[#allocation123_spill] sm:$0xff] %v8162_v39  ;;  %v8173_v52 = vadd.f32 %v2105_v31, %v12150_v5  ;;  %12155 = vst [vmem:[#allocation135_spill] sm:$0xff] %v8179_v30  ;;  %v8182_v20 = vadd.f32 %v2108_v25, %v12156_v41  ;;  %v8185_v0 = vadd.f32 %v2109_v29, %v12158_v4  ;;  %v12160_v60 = vld [vmem:[#allocation62_spill] sm:$0xff]  ;;  %v12162_v18 = vld [vmem:[#allocation137_spill] sm:$0xff] }
 0x2a5   :  { %12146 = vst [vmem:[#allocation127_spill] sm:$0xff] %v8166_v8  ;;  %12149 = vst [vmem:[#allocation128_spill] sm:$0xff] %v8170_v28  ;;  %v8188_v24 = vadd.f32 %v2110_v40, %v12160_v60  ;;  %v8191_v17 = vadd.f32 %v2111_v43, %v12162_v18  ;;  %v12164_v31 = vld [vmem:[#allocation63_spill] sm:$0xff]  ;;  %v12166_v37 = vld [vmem:[#allocation66_spill] sm:$0xff] }
 0x2a6   :  { %12151 = vst [vmem:[#allocation133_spill] sm:$0xff] %v8173_v52  ;;  %12153 = vst [vmem:[#allocation134_spill] sm:$0xff] %v8176_v26  ;;  %v8194_v56 = vadd.f32 %v2112_v53, %v12164_v31  ;;  %v8197_v5 = vadd.f32 %v2113_v15, %v12166_v37  ;;  %v12168_v9 = vld [vmem:[#allocation67_spill] sm:$0xff]  ;;  %v12170_v25 = vld [vmem:[#allocation68_spill] sm:$0xff] }
 0x2a7   :  { %12157 = vst [vmem:[#allocation139_spill] sm:$0xff] %v8182_v20  ;;  %12159 = vst [vmem:[#allocation15_spill] sm:$0xff] %v8185_v0  ;;  %v8200_v47 = vadd.f32 %v2114_v21, %v12168_v9  ;;  %v8203_v6 = vadd.f32 %v2115_v16, %v12170_v25  ;;  %v12172_v29 = vld [vmem:[#allocation69_spill] sm:$0xff]  ;;  %v12174_v40 = vld [vmem:[#allocation74_spill] sm:$0xff] }
 0x2a8   :  { %12161 = vst [vmem:[#allocation183_spill] sm:$0xff] %v8188_v24  ;;  %12163 = vst [vmem:[#allocation17_spill] sm:$0xff] %v8191_v17  ;;  %v8206_v41 = vadd.f32 %v2116_v2, %v12172_v29  ;;  %v8209_v4 = vadd.f32 %v2117_v63, %v12174_v40  ;;  %v12176_v43 = vld [vmem:[#allocation75_spill] sm:$0xff]  ;;  %v12178_v53 = vld [vmem:[#allocation76_spill] sm:$0xff] }
 0x2a9   :  { %12165 = vst [vmem:[#allocation184_spill] sm:$0xff] %v8194_v56  ;;  %12167 = vst [vmem:[#allocation185_spill] sm:$0xff] %v8197_v5  ;;  %v8212_v60 = vadd.f32 %v2118_v59, %v12176_v43  ;;  %v8215_v18 = vadd.f32 %v2119_v3, %v12178_v53  ;;  %v12180_v15 = vld [vmem:[#allocation77_spill] sm:$0xff]  ;;  %v12182_v21 = vld [vmem:[#allocation80_spill] sm:$0xff] }
 0x2aa   :  { %12169 = vst [vmem:[#allocation186_spill] sm:$0xff] %v8200_v47  ;;  %12171 = vst [vmem:[#allocation187_spill] sm:$0xff] %v8203_v6  ;;  %v8218_v31 = vadd.f32 %v2120_v38, %v12180_v15  ;;  %v8221_v37 = vadd.f32 %v2121_v34, %v12182_v21  ;;  %v12184_v16 = vld [vmem:[#allocation81_spill] sm:$0xff]  ;;  %v12186_v2 = vld [vmem:[#allocation82_spill] sm:$0xff] }
 0x2ab   :  { %12173 = vst [vmem:[#allocation162_spill] sm:$0xff] %v8206_v41  ;;  %12175 = vst [vmem:[#allocation45_spill] sm:$0xff] %v8209_v4  ;;  %v8224_v9 = vadd.f32 %v2122_v32, %v12184_v16  ;;  %v8227_v25 = vadd.f32 %v2123_v10, %v12186_v2  ;;  %v12188_v63 = vld [vmem:[#allocation83_spill] sm:$0xff]  ;;  %v12190_v59 = vld [vmem:[#allocation86_spill] sm:$0xff] }
 0x2ac   :  { %12177 = vst [vmem:[#allocation163_spill] sm:$0xff] %v8212_v60  ;;  %12179 = vst [vmem:[#allocation46_spill] sm:$0xff] %v8215_v18  ;;  %v8230_v29 = vadd.f32 %v2124_v46, %v12188_v63  ;;  %v8233_v40 = vadd.f32 %v2125_v57, %v12190_v59  ;;  %v12192_v3 = vld [vmem:[#allocation87_spill] sm:$0xff]  ;;  %v12194_v38 = vld [vmem:[#allocation88_spill] sm:$0xff] }
 0x2ad   :  { %12181 = vst [vmem:[#allocation56_spill] sm:$0xff] %v8218_v31  ;;  %12183 = vst [vmem:[#allocation59_spill] sm:$0xff] %v8221_v37  ;;  %v8236_v43 = vadd.f32 %v2126_v11, %v12192_v3  ;;  %v8239_v53 = vadd.f32 %v2127_v27, %v12194_v38  ;;  %v12196_v34 = vld [vmem:[#allocation89_spill] sm:$0xff]  ;;  %v12198_v32 = vld [vmem:[#allocation90_spill] sm:$0xff] }
 0x2ae   :  { %12185 = vst [vmem:[#allocation164_spill] sm:$0xff] %v8224_v9  ;;  %12187 = vst [vmem:[#allocation24_spill] sm:$0xff] %v8227_v25  ;;  %v8242_v15 = vadd.f32 %v2128_v19, %v12196_v34  ;;  %v8245_v21 = vadd.f32 %v2129_v1, %v12198_v32  ;;  %v12200_v10 = vld [vmem:[#allocation91_spill] sm:$0xff]  ;;  %v12202_v46 = vld [vmem:[#allocation92_spill] sm:$0xff] }
 0x2af   :  { %12189 = vst [vmem:[#allocation47_spill] sm:$0xff] %v8230_v29  ;;  %12191 = vst [vmem:[#allocation48_spill] sm:$0xff] %v8233_v40  ;;  %v8248_v16 = vadd.f32 %v2130_v48, %v12200_v10  ;;  %v8251_v2 = vadd.f32 %v2131_v49, %v12202_v46  ;;  %v12204_v57 = vld [vmem:[#allocation93_spill] sm:$0xff]  ;;  %v12206_v11 = vld [vmem:[#allocation94_spill] sm:$0xff] }
 0x2b0   :  { %12193 = vst [vmem:[#allocation167_spill] sm:$0xff] %v8236_v43  ;;  %12195 = vst [vmem:[#allocation49_spill] sm:$0xff] %v8239_v53  ;;  %v8254_v63 = vadd.f32 %v2132_v14, %v12204_v57  ;;  %v8257_v59 = vadd.f32 %v2133_v35, %v12206_v11  ;;  %v12208_v27 = vld [vmem:[#allocation95_spill] sm:$0xff]  ;;  %v12210_v19 = vld [vmem:[#allocation98_spill] sm:$0xff] }
 0x2b1   :  { %12197 = vst [vmem:[#allocation168_spill] sm:$0xff] %v8242_v15  ;;  %12199 = vst [vmem:[#allocation50_spill] sm:$0xff] %v8245_v21  ;;  %v8260_v3 = vadd.f32 %v2134_v33, %v12208_v27  ;;  %v8263_v38 = vadd.f32 %v2135_v12, %v12210_v19  ;;  %v12212_v1 = vld [vmem:[#allocation99_spill] sm:$0xff]  ;;  %v12214_v48 = vld [vmem:[#allocation100_spill] sm:$0xff] }
 0x2b2   :  { %12201 = vst [vmem:[#allocation169_spill] sm:$0xff] %v8248_v16  ;;  %12203 = vst [vmem:[#allocation51_spill] sm:$0xff] %v8251_v2  ;;  %v8266_v34 = vadd.f32 %v2136_v55, %v12212_v1  ;;  %v8269_v32 = vadd.f32 %v2137_v58, %v12214_v48  ;;  %v12216_v49 = vld [vmem:[#allocation14_spill] sm:$0xff]  ;;  %v12223_v12 = vld [vmem:[#allocation97_spill] sm:$0xff] }
 0x2b3   :  { %12205 = vst [vmem:[#allocation101_spill] sm:$0xff] %v8254_v63  ;;  %12207 = vst [vmem:[#allocation102_spill] sm:$0xff] %v8257_v59  ;;  %v12217_v10 = vld [vmem:[#allocation42_spill] sm:$0xff]  ;;  %v12225_v58 = vld [vmem:[#allocation21_spill] sm:$0xff] }
 0x2b4   :  { %12209 = vst [vmem:[#allocation173_spill] sm:$0xff] %v8260_v3  ;;  %12211 = vst [vmem:[#allocation96_spill] sm:$0xff] %v8263_v38  ;;  %v8273_v46 = vmul.f32 %v12217_v10, %v12216_v49  ;;  %v12219_v14 = vld [vmem:[#allocation118_spill] sm:$0xff]  ;;  %v2288_v11 = vmul.f32 %v12217_v10, %v12223_v12  ;;  %v2290_v19 = vmul.f32 %v12217_v10, %v12225_v58  ;;  %v12226_v1 = vld [vmem:[#allocation131_spill] sm:$0xff] }
 0x2b5   :  { %12213 = vst [vmem:[#allocation174_spill] sm:$0xff] %v8266_v34  ;;  %12215 = vst [vmem:[#allocation35_spill] sm:$0xff] %v8269_v32  ;;  %v8277_v35 = vmul.f32 %v12217_v10, %v12219_v14  ;;  %v12221_v57 = vld [vmem:[#allocation18_spill] sm:$0xff]  ;;  %v2291_v48 = vmul.f32 %v12217_v10, %v12226_v1  ;;  %v2236_v49 = vld [vmem:[#allocation2 + $0x182] sm:$0xff]  ;;  %v2296_v58 = vmul.f32 %v12217_v10, %v12231_v50 }
 0x2b6   :  { %12218 = vst [vmem:[#allocation105_spill] sm:$0xff] %v8273_v46  ;;  %v8281_v33 = vmul.f32 %v12217_v10, %v12221_v57  ;;  %v12224_v55 = vld [vmem:[#allocation126_spill] sm:$0xff]  ;;  %v12228_v51 = vld [vmem:[#allocation136_spill] sm:$0xff]  ;;  %v12230_v46 = vld [vmem:[#allocation29_spill] sm:$0xff] }
 0x2b7   :  { %12220 = vst [vmem:[#allocation176_spill] sm:$0xff] %v8277_v35  ;;  %v2289_v27 = vmul.f32 %v12217_v10, %v12224_v55  ;;  %v2237_v44 = vld [vmem:[#allocation2 + $0x18a] sm:$0xff]  ;;  %v2293_v57 = vmul.f32 %v12217_v10, %v12228_v51  ;;  %v2295_v55 = vmul.f32 %v12217_v10, %v12230_v46  ;;  %v12233_v34 = vld [vmem:[#allocation28_spill] sm:$0xff]  ;;  %v12234_v3 = vld [vmem:[#allocation31_spill] sm:$0xff] }
 0x2b8   :  { %12222 = vst [vmem:[#allocation106_spill] sm:$0xff] %v8281_v33  ;;  %v12227_v14 = vld [vmem:[#allocation22_spill] sm:$0xff]  ;;  %v12229_v33 = vld [vmem:[#allocation25_spill] sm:$0xff]  ;;  %v2298_v38 = vmul.f32 %v12217_v10, %v12233_v34  ;;  %v12235_v59 = vld [vmem:[#allocation144_spill] sm:$0xff]  ;;  %v2305_v21 = vmul.f32 %v12217_v10, %v2237_v44 }
 0x2b9   :  { %v2292_v35 = vmul.f32 %v12217_v10, %v12227_v14  ;;  %v2294_v12 = vmul.f32 %v12217_v10, %v12229_v33  ;;  %v12232_v32 = vld [vmem:[#allocation141_spill] sm:$0xff]  ;;  %v2299_v14 = vmul.f32 %v12217_v10, %v12234_v3  ;;  %v2300_v51 = vmul.f32 %v12217_v10, %v12235_v59  ;;  %v12236_v63 = vld [vmem:[#allocation30_spill] sm:$0xff]  ;;  %v12238_v16 = vld [vmem:[#allocation32_spill] sm:$0xff] }
 0x2ba   :  { %v2297_v1 = vmul.f32 %v12217_v10, %v12232_v32  ;;  %v2301_v33 = vmul.f32 %v12217_v10, %v12236_v63  ;;  %v12237_v2 = vld [vmem:[#allocation145_spill] sm:$0xff]  ;;  %v2303_v50 = vmul.f32 %v12217_v10, %v12238_v16  ;;  %v2304_v32 = vmul.f32 %v12217_v10, %v2236_v49  ;;  %v12239_v34 = vld [vmem:[#allocation147_spill] sm:$0xff]  ;;  %v12240_v3 = vld [vmem:[#allocation148_spill] sm:$0xff] }
 0x2bb   :  { %v2302_v46 = vmul.f32 %v12217_v10, %v12237_v2  ;;  %v2306_v15 = vmul.f32 %v12217_v10, %v12239_v34  ;;  %v2307_v53 = vmul.f32 %v12217_v10, %v12240_v3  ;;  %v12241_v59 = vld [vmem:[#allocation149_spill] sm:$0xff]  ;;  %v12242_v63 = vld [vmem:[#allocation120_spill] sm:$0xff]  ;;  %v12243_v2 = vld [vmem:[#allocation151_spill] sm:$0xff] }
 0x2bc   :  { %v2308_v43 = vmul.f32 %v12217_v10, %v12241_v59  ;;  %v2309_v40 = vmul.f32 %v12217_v10, %v12242_v63  ;;  %v2310_v29 = vmul.f32 %v12217_v10, %v12243_v2  ;;  %v12244_v16 = vld [vmem:[#allocation153_spill] sm:$0xff]  ;;  %v12245_v25 = vld [vmem:[#allocation132_spill] sm:$0xff]  ;;  %v12246_v9 = vld [vmem:[#allocation154_spill] sm:$0xff] }
 0x2bd   :  { %v2311_v49 = vmul.f32 %v12217_v10, %v12244_v16  ;;  %v2312_v44 = vmul.f32 %v12217_v10, %v12245_v25  ;;  %v2313_v34 = vmul.f32 %v12217_v10, %v12246_v9  ;;  %v12247_v37 = vld [vmem:[#allocation155_spill] sm:$0xff]  ;;  %v12248_v31 = vld [vmem:[#allocation156_spill] sm:$0xff]  ;;  %v12249_v18 = vld [vmem:[#allocation157_spill] sm:$0xff] }
 0x2be   :  { %v2314_v3 = vmul.f32 %v12217_v10, %v12247_v37  ;;  %v2315_v59 = vmul.f32 %v12217_v10, %v12248_v31  ;;  %v2316_v63 = vmul.f32 %v12217_v10, %v12249_v18  ;;  %v12250_v60 = vld [vmem:[#allocation158_spill] sm:$0xff]  ;;  %v12251_v4 = vld [vmem:[#allocation159_spill] sm:$0xff]  ;;  %v12252_v41 = vld [vmem:[#allocation160_spill] sm:$0xff] }
 0x2bf   :  { %v2317_v2 = vmul.f32 %v12217_v10, %v12250_v60  ;;  %v2318_v16 = vmul.f32 %v12217_v10, %v12251_v4  ;;  %v2319_v25 = vmul.f32 %v12217_v10, %v12252_v41  ;;  %v12253_v6 = vld [vmem:[#allocation161_spill] sm:$0xff]  ;;  %v12254_v47 = vld [vmem:[#allocation143_spill] sm:$0xff]  ;;  %v12256_v56 = vld [vmem:[#allocation166_spill] sm:$0xff] }
 0x2c0   :  { %v2320_v9 = vmul.f32 %v12217_v10, %v12253_v6  ;;  %v2321_v37 = vmul.f32 %v12217_v10, %v12254_v47  ;;  %v12255_v5 = vld [vmem:[#allocation165_spill] sm:$0xff]  ;;  %v2323_v18 = vmul.f32 %v12217_v10, %v12256_v56  ;;  %v12257_v17 = vld [vmem:[#allocation170_spill] sm:$0xff]  ;;  %v12258_v24 = vld [vmem:[#allocation171_spill] sm:$0xff] }
 0x2c1   :  { %v2322_v31 = vmul.f32 %v12217_v10, %v12255_v5  ;;  %v2324_v60 = vmul.f32 %v12217_v10, %v12257_v17  ;;  %v2325_v4 = vmul.f32 %v12217_v10, %v12258_v24  ;;  %v12259_v0 = vld [vmem:[#allocation172_spill] sm:$0xff]  ;;  %v12260_v20 = vld [vmem:[#allocation150_spill] sm:$0xff]  ;;  %v12261_v30 = vld [vmem:[#allocation175_spill] sm:$0xff] }
 0x2c2   :  { %v2326_v41 = vmul.f32 %v12217_v10, %v12259_v0  ;;  %v2327_v6 = vmul.f32 %v12217_v10, %v12260_v20  ;;  %v2328_v47 = vmul.f32 %v12217_v10, %v12261_v30  ;;  %v12262_v26 = vld [vmem:[#allocation180_spill] sm:$0xff]  ;;  %v12263_v52 = vld [vmem:[#allocation181_spill] sm:$0xff]  ;;  %v12264_v28 = vld [vmem:[#allocation182_spill] sm:$0xff]  ;;  %v8372_v20 = vadd.f32 %v2288_v11, %v8122_v7 }
 0x2c3   :  { %v2329_v5 = vmul.f32 %v12217_v10, %v12262_v26  ;;  %v2330_v56 = vmul.f32 %v12217_v10, %v12263_v52  ;;  %v2331_v17 = vmul.f32 %v12217_v10, %v12264_v28  ;;  %v5069_v8 = vld [vmem:[#allocation2 + $0x302] sm:$0xff]  ;;  %v5070_v39 = vld [vmem:[#allocation2 + $0x30a] sm:$0xff]  ;;  %v8375_v30 = vadd.f32 %v2289_v27, %v8126_v42 }
 0x2c4   :  { %v2332_v24 = vmul.f32 %v5069_v8, %v12217_v10  ;;  %v2333_v0 = vmul.f32 %v5070_v39, %v12217_v10  ;;  %v8378_v26 = vadd.f32 %v2290_v19, %v8130_v54  ;;  %v8381_v52 = vadd.f32 %v2291_v48, %v8134_v45  ;;  %v12270_v45 = vld [vmem:[#allocation123_spill] sm:$0xff] }
 0x2c5   :  { %v8384_v28 = vadd.f32 %v2292_v35, %v8138_v22  ;;  %v8387_v8 = vadd.f32 %v2293_v57, %v8142_v23  ;;  %v8390_v39 = vadd.f32 %v2294_v12, %v8146_v36  ;;  %v8393_v7 = vadd.f32 %v2295_v55, %v8150_v62  ;;  %v12272_v22 = vld [vmem:[#allocation127_spill] sm:$0xff]  ;;  %v12274_v23 = vld [vmem:[#allocation128_spill] sm:$0xff]  ;;  %v12276_v36 = vld [vmem:[#allocation133_spill] sm:$0xff] }
 0x2c6   :  { %v8396_v42 = vadd.f32 %v2296_v58, %v8154_v61  ;;  %v8399_v54 = vadd.f32 %v2297_v1, %v8158_v13  ;;  %v8402_v11 = vadd.f32 %v2298_v38, %v12270_v45  ;;  %v8405_v35 = vadd.f32 %v2299_v14, %v12272_v22  ;;  %v12278_v62 = vld [vmem:[#allocation134_spill] sm:$0xff]  ;;  %v12280_v61 = vld [vmem:[#allocation135_spill] sm:$0xff]  ;;  %v12288_v14 = vld [vmem:[#allocation17_spill] sm:$0xff] }
 0x2c7   :  { %12265 = vst [vmem:[#allocation177_spill] sm:$0xff] %v8387_v8  ;;  %12266 = vst [vmem:[#allocation107_spill] sm:$0xff] %v8390_v39  ;;  %v8408_v27 = vadd.f32 %v2300_v51, %v12274_v23  ;;  %v8411_v19 = vadd.f32 %v2301_v33, %v12276_v36  ;;  %v8414_v48 = vadd.f32 %v2302_v46, %v12278_v62  ;;  %v12282_v13 = vld [vmem:[#allocation139_spill] sm:$0xff]  ;;  %v12290_v33 = vld [vmem:[#allocation184_spill] sm:$0xff] }
 0x2c8   :  { %12267 = vst [vmem:[#allocation129_spill] sm:$0xff] %v8393_v7  ;;  %12268 = vst [vmem:[#allocation178_spill] sm:$0xff] %v8396_v42  ;;  %v8417_v57 = vadd.f32 %v2303_v50, %v12280_v61  ;;  %v8420_v12 = vadd.f32 %v2304_v32, %v12282_v13  ;;  %v12284_v38 = vld [vmem:[#allocation15_spill] sm:$0xff]  ;;  %v8429_v51 = vadd.f32 %v2307_v53, %v12288_v14  ;;  %v12292_v46 = vld [vmem:[#allocation185_spill] sm:$0xff] }
 0x2c9   :  { %12269 = vst [vmem:[#allocation108_spill] sm:$0xff] %v8399_v54  ;;  %12271 = vst [vmem:[#allocation20_spill] sm:$0xff] %v8402_v11  ;;  %v8423_v55 = vadd.f32 %v2305_v21, %v12284_v38  ;;  %v12286_v58 = vld [vmem:[#allocation183_spill] sm:$0xff]  ;;  %v8432_v45 = vadd.f32 %v2308_v43, %v12290_v33  ;;  %v8435_v22 = vadd.f32 %v2309_v40, %v12292_v46  ;;  %v12294_v50 = vld [vmem:[#allocation186_spill] sm:$0xff] }
 0x2ca   :  { %12273 = vst [vmem:[#allocation179_spill] sm:$0xff] %v8405_v35  ;;  %12275 = vst [vmem:[#allocation38_spill] sm:$0xff] %v8408_v27  ;;  %v8426_v1 = vadd.f32 %v2306_v15, %v12286_v58  ;;  %v8438_v23 = vadd.f32 %v2310_v29, %v12294_v50  ;;  %v12296_v32 = vld [vmem:[#allocation187_spill] sm:$0xff]  ;;  %v12298_v21 = vld [vmem:[#allocation162_spill] sm:$0xff] }
 0x2cb   :  { %12277 = vst [vmem:[#allocation116_spill] sm:$0xff] %v8411_v19  ;;  %12279 = vst [vmem:[#allocation117_spill] sm:$0xff] %v8414_v48  ;;  %v8441_v36 = vadd.f32 %v2311_v49, %v12296_v32  ;;  %v8444_v62 = vadd.f32 %v2312_v44, %v12298_v21  ;;  %v12300_v15 = vld [vmem:[#allocation45_spill] sm:$0xff]  ;;  %v12302_v53 = vld [vmem:[#allocation163_spill] sm:$0xff] }
 0x2cc   :  { %12281 = vst [vmem:[#allocation110_spill] sm:$0xff] %v8417_v57  ;;  %12283 = vst [vmem:[#allocation27_spill] sm:$0xff] %v8420_v12  ;;  %v8447_v61 = vadd.f32 %v2313_v34, %v12300_v15  ;;  %v8450_v13 = vadd.f32 %v2314_v3, %v12302_v53  ;;  %v12304_v43 = vld [vmem:[#allocation46_spill] sm:$0xff]  ;;  %v12306_v40 = vld [vmem:[#allocation56_spill] sm:$0xff] }
 0x2cd   :  { %12285 = vst [vmem:[#allocation111_spill] sm:$0xff] %v8423_v55  ;;  %12287 = vst [vmem:[#allocation138_spill] sm:$0xff] %v8426_v1  ;;  %v8453_v38 = vadd.f32 %v2315_v59, %v12304_v43  ;;  %v8456_v58 = vadd.f32 %v2316_v63, %v12306_v40  ;;  %v12308_v29 = vld [vmem:[#allocation59_spill] sm:$0xff]  ;;  %v2415_v49 = vld [vmem:[#allocation2 + $0xc0] sm:$0xff] }
 0x2ce   :  { %12289 = vst [vmem:[#allocation112_spill] sm:$0xff] %v8429_v51  ;;  %12291 = vst [vmem:[#allocation26_spill] sm:$0xff] %v8432_v45  ;;  %v8459_v14 = vadd.f32 %v2317_v2, %v12308_v29  ;;  %v2416_v33 = vld [vmem:[#allocation2 + $0xc8] sm:$0xff]  ;;  %v2417_v46 = vld [vmem:[#allocation2 + $0xd8] sm:$0xff] }
 0x2cf   :  { %12293 = vst [vmem:[#allocation114_spill] sm:$0xff] %v8435_v22  ;;  %12295 = vst [vmem:[#allocation140_spill] sm:$0xff] %v8438_v23  ;;  %v2418_v44 = vld [vmem:[#allocation2 + $0xe0] sm:$0xff]  ;;  %v12314_v3 = vld [vmem:[#allocation47_spill] sm:$0xff] }
 0x2d0   :  { %12297 = vst [vmem:[#allocation115_spill] sm:$0xff] %v8441_v36  ;;  %12299 = vst [vmem:[#allocation142_spill] sm:$0xff] %v8444_v62  ;;  %v12310_v50 = vld [vmem:[#allocation164_spill] sm:$0xff]  ;;  %v8468_v15 = vadd.f32 %v2320_v9, %v12314_v3  ;;  %v2419_v63 = vld [vmem:[#allocation2 + $0xf0] sm:$0xff] }
 0x2d1   :  { %12301 = vst [vmem:[#allocation57_spill] sm:$0xff] %v8447_v61  ;;  %12303 = vst [vmem:[#allocation58_spill] sm:$0xff] %v8450_v13  ;;  %v8462_v32 = vadd.f32 %v2318_v16, %v12310_v50  ;;  %v12312_v34 = vld [vmem:[#allocation24_spill] sm:$0xff]  ;;  %v2420_v43 = vld [vmem:[#allocation2 + $0xf8] sm:$0xff] }
 0x2d2   :  { %12305 = vst [vmem:[#allocation60_spill] sm:$0xff] %v8453_v38  ;;  %12307 = vst [vmem:[#allocation61_spill] sm:$0xff] %v8456_v58  ;;  %v8465_v21 = vadd.f32 %v2319_v25, %v12312_v34  ;;  %v12316_v59 = vld [vmem:[#allocation48_spill] sm:$0xff]  ;;  %v2421_v2 = vld [vmem:[#allocation2 + $0x108] sm:$0xff] }
 0x2d3   :  { %12309 = vst [vmem:[#allocation62_spill] sm:$0xff] %v8459_v14  ;;  %12311 = vst [vmem:[#allocation137_spill] sm:$0xff] %v8462_v32  ;;  %v8471_v53 = vadd.f32 %v2321_v37, %v12316_v59  ;;  %v2422_v40 = vld [vmem:[#allocation2 + $0x110] sm:$0xff]  ;;  %v12318_v29 = vld [vmem:[#allocation167_spill] sm:$0xff] }
 0x2d4   :  { %12313 = vst [vmem:[#allocation63_spill] sm:$0xff] %v8465_v21  ;;  %12315 = vst [vmem:[#allocation66_spill] sm:$0xff] %v8468_v15  ;;  %v8474_v14 = vadd.f32 %v2322_v31, %v12318_v29  ;;  %v12320_v58 = vld [vmem:[#allocation49_spill] sm:$0xff]  ;;  %v12322_v16 = vld [vmem:[#allocation168_spill] sm:$0xff] }
 0x2d5   :  { %12317 = vst [vmem:[#allocation67_spill] sm:$0xff] %v8471_v53  ;;  %v8477_v38 = vadd.f32 %v2323_v18, %v12320_v58  ;;  %v8480_v50 = vadd.f32 %v2324_v60, %v12322_v16  ;;  %v12324_v25 = vld [vmem:[#allocation50_spill] sm:$0xff]  ;;  %v2423_v9 = vld [vmem:[#allocation2 + $0x120] sm:$0xff]  ;;  %v2424_v3 = vld [vmem:[#allocation2 + $0x128] sm:$0xff] }
 0x2d6   :  { %12319 = vst [vmem:[#allocation68_spill] sm:$0xff] %v8474_v14  ;;  %v8483_v34 = vadd.f32 %v2325_v4, %v12324_v25  ;;  %v2425_v37 = vld [vmem:[#allocation2 + $0x138] sm:$0xff]  ;;  %v12326_v59 = vld [vmem:[#allocation169_spill] sm:$0xff]  ;;  %v12332_v18 = vld [vmem:[#allocation102_spill] sm:$0xff] }
 0x2d7   :  { %12321 = vst [vmem:[#allocation69_spill] sm:$0xff] %v8477_v38  ;;  %12323 = vst [vmem:[#allocation74_spill] sm:$0xff] %v8480_v50  ;;  %v8486_v53 = vadd.f32 %v2326_v41, %v12326_v59  ;;  %v12328_v15 = vld [vmem:[#allocation51_spill] sm:$0xff]  ;;  %v12330_v31 = vld [vmem:[#allocation101_spill] sm:$0xff]  ;;  %v8495_v58 = vadd.f32 %v2329_v5, %v12332_v18 }
 0x2d8   :  { %12325 = vst [vmem:[#allocation75_spill] sm:$0xff] %v8483_v34  ;;  %v8489_v21 = vadd.f32 %v2327_v6, %v12328_v15  ;;  %v8492_v29 = vadd.f32 %v2328_v47, %v12330_v31  ;;  %v2426_v60 = vld [vmem:[#allocation2 + $0x140] sm:$0xff]  ;;  %v2427_v16 = vld [vmem:[#allocation2 + $0x150] sm:$0xff]  ;;  %v2428_v50 = vld [vmem:[#allocation2 + $0x158] sm:$0xff] }
 0x2d9   :  { %12327 = vst [vmem:[#allocation76_spill] sm:$0xff] %v8486_v53  ;;  %12333 = vst [vmem:[#allocation81_spill] sm:$0xff] %v8495_v58  ;;  %v12334_v4 = vld [vmem:[#allocation173_spill] sm:$0xff]  ;;  %v12336_v34 = vld [vmem:[#allocation96_spill] sm:$0xff] }
 0x2da   :  { %12329 = vst [vmem:[#allocation77_spill] sm:$0xff] %v8489_v21  ;;  %12331 = vst [vmem:[#allocation80_spill] sm:$0xff] %v8492_v29  ;;  %v8498_v25 = vadd.f32 %v2330_v56, %v12334_v4  ;;  %v8501_v38 = vadd.f32 %v2331_v17, %v12336_v34  ;;  %v12338_v41 = vld [vmem:[#allocation174_spill] sm:$0xff]  ;;  %v12340_v6 = vld [vmem:[#allocation35_spill] sm:$0xff] }
 0x2db   :  { %v8504_v59 = vadd.f32 %v2332_v24, %v12338_v41  ;;  %v8507_v15 = vadd.f32 %v2333_v0, %v12340_v6  ;;  %v2429_v47 = vld [vmem:[#allocation2 + $0x168] sm:$0xff]  ;;  %v2430_v31 = vld [vmem:[#allocation2 + $0x170] sm:$0xff]  ;;  %v2435_v29 = vld [vmem:[#allocation2 + $0x1e0] sm:$0xff] }
 0x2dc   :  { %12335 = vst [vmem:[#allocation82_spill] sm:$0xff] %v8498_v25  ;;  %12337 = vst [vmem:[#allocation83_spill] sm:$0xff] %v8501_v38  ;;  %v2436_v5 = vld [vmem:[#allocation2 + $0x1e8] sm:$0xff]  ;;  %v2437_v18 = vld [vmem:[#allocation2 + $0x1f8] sm:$0xff] }
 0x2dd   :  { %12339 = vst [vmem:[#allocation86_spill] sm:$0xff] %v8504_v59  ;;  %12341 = vst [vmem:[#allocation87_spill] sm:$0xff] %v8507_v15  ;;  %v2438_v58 = vld [vmem:[#allocation2 + $0x200] sm:$0xff]  ;;  %v2439_v0 = vld [vmem:[#allocation2 + $0x210] sm:$0xff] }
 0x2de   :  { %v12342_v21 = vld [vmem:[#allocation52_spill] sm:$0xff]  ;;  %v2440_v34 = vld [vmem:[#allocation2 + $0x218] sm:$0xff]  ;;  %v2441_v4 = vld [vmem:[#allocation2 + $0x228] sm:$0xff] }
 0x2df   :  { %v8510_v53 = vmul.f32 %v12342_v21, %v2415_v49  ;;  %v8513_v56 = vmul.f32 %v12342_v21, %v2416_v33  ;;  %v8516_v17 = vmul.f32 %v12342_v21, %v2417_v46  ;;  %v8519_v24 = vmul.f32 %v12342_v21, %v2418_v44  ;;  %v2442_v46 = vld [vmem:[#allocation2 + $0x230] sm:$0xff]  ;;  %v2443_v15 = vld [vmem:[#allocation2 + $0x240] sm:$0xff]  ;;  %v2444_v59 = vld [vmem:[#allocation2 + $0x248] sm:$0xff] }
 0x2e0   :  { %v8522_v41 = vmul.f32 %v12342_v21, %v2419_v63  ;;  %v8525_v6 = vmul.f32 %v12342_v21, %v2420_v43  ;;  %v8528_v49 = vmul.f32 %v12342_v21, %v2421_v2  ;;  %v8531_v33 = vmul.f32 %v12342_v21, %v2422_v40  ;;  %v2445_v2 = vld [vmem:[#allocation2 + $0x258] sm:$0xff]  ;;  %v2446_v25 = vld [vmem:[#allocation2 + $0x260] sm:$0xff]  ;;  %v2447_v14 = vld [vmem:[#allocation2 + $0x270] sm:$0xff] }
 0x2e1   :  { %v8534_v44 = vmul.f32 %v12342_v21, %v2423_v9  ;;  %v8537_v38 = vmul.f32 %v12342_v21, %v2424_v3  ;;  %v8540_v63 = vmul.f32 %v12342_v21, %v2425_v37  ;;  %v8543_v43 = vmul.f32 %v12342_v21, %v2426_v60  ;;  %v2448_v37 = vld [vmem:[#allocation2 + $0x278] sm:$0xff]  ;;  %v2449_v13 = vld [vmem:[#allocation2 + $0x288] sm:$0xff]  ;;  %v2450_v61 = vld [vmem:[#allocation2 + $0x290] sm:$0xff] }
 0x2e2   :  { %12343 = vst [vmem:[#allocation88_spill] sm:$0xff] %v8528_v49  ;;  %12344 = vst [vmem:[#allocation89_spill] sm:$0xff] %v8531_v33  ;;  %v8546_v40 = vmul.f32 %v12342_v21, %v2427_v16  ;;  %v8549_v32 = vmul.f32 %v12342_v21, %v2428_v50  ;;  %v8552_v9 = vmul.f32 %v12342_v21, %v2429_v47  ;;  %v12353_v60 = vld [vmem:[#allocation19_spill] sm:$0xff]  ;;  %v12355_v36 = vld [vmem:[#allocation125_spill] sm:$0xff] }
 0x2e3   :  { %12345 = vst [vmem:[#allocation90_spill] sm:$0xff] %v8534_v44  ;;  %12346 = vst [vmem:[#allocation91_spill] sm:$0xff] %v8537_v38  ;;  %v8555_v3 = vmul.f32 %v12342_v21, %v2430_v31  ;;  %v8559_v62 = vmul.f32 %v12342_v21, %v12353_v60  ;;  %v8563_v16 = vmul.f32 %v12342_v21, %v12355_v36  ;;  %v2451_v23 = vld [vmem:[#allocation2 + $0x2a0] sm:$0xff]  ;;  %v2452_v31 = vld [vmem:[#allocation2 + $0x2a8] sm:$0xff] }
 0x2e4   :  { %12347 = vst [vmem:[#allocation92_spill] sm:$0xff] %v8540_v63  ;;  %12348 = vst [vmem:[#allocation93_spill] sm:$0xff] %v8543_v43  ;;  %v8566_v50 = vmul.f32 %v12342_v21, %v2435_v29  ;;  %v8569_v47 = vmul.f32 %v12342_v21, %v2436_v5  ;;  %v8572_v22 = vmul.f32 %v12342_v21, %v2437_v18  ;;  %v8583_v51 = vld [vmem:[#allocation2 + $0x18] sm:$0xff]  ;;  %v1296_v29 = vld [vmem:[#allocation2 + $0x48] sm:$0xff] }
 0x2e5   :  { %12349 = vst [vmem:[#allocation94_spill] sm:$0xff] %v8546_v40  ;;  %12350 = vst [vmem:[#allocation95_spill] sm:$0xff] %v8549_v32  ;;  %v8575_v45 = vmul.f32 %v12342_v21, %v2438_v58  ;;  %v8578_v60 = vmul.f32 %v12342_v21, %v2439_v0  ;;  %v8581_v36 = vmul.f32 %v12342_v21, %v2440_v34  ;;  %v8597_v0 = vld [vmem:[#allocation2 + $0x20] sm:$0xff]  ;;  %v1423_v34 = vld [vmem:[#allocation2 + $0x9] sm:$0xff] }
 0x2e6   :  { %12351 = vst [vmem:[#allocation98_spill] sm:$0xff] %v8552_v9  ;;  %12352 = vst [vmem:[#allocation99_spill] sm:$0xff] %v8555_v3  ;;  %v8586_v5 = vmul.f32 %v12342_v21, %v2441_v4  ;;  %v8592_v18 = vmul.f32 %v12342_v21, %v2443_v15  ;;  %v8595_v58 = vmul.f32 %v12342_v21, %v2444_v59  ;;  %v8611_v15 = vld [vmem:[#allocation2 + $0x30] sm:$0xff]  ;;  %v8613_v59 = vld [vmem:[#allocation2 + $0x38] sm:$0xff] }
 0x2e7   :  { %12354 = vst [vmem:[#allocation100_spill] sm:$0xff] %v8559_v62  ;;  %12356 = vst [vmem:[#allocation14_spill] sm:$0xff] %v8563_v16  ;;  %v8606_v4 = vmul.f32 %v12342_v21, %v2447_v14  ;;  %v8627_v14 = vmul.f32 %v12342_v21, %v2452_v31  ;;  %v1619_v1 = vld [vmem:[#allocation2 + $0xa] sm:$0xff]  ;;  %v2456_v55 = vld [vmem:[#allocation2 + $0x2d8] sm:$0xff]  ;;  %v2471_v33 = vmul.f32 %v12342_v21, %v8611_v15 }
 0x2e8   :  { %12357 = vst [vmem:[#allocation42_spill] sm:$0xff] %v8566_v50  ;;  %12358 = vst [vmem:[#allocation118_spill] sm:$0xff] %v8569_v47  ;;  %v8589_v47 = vmul.f32 %v12342_v21, %v2442_v46  ;;  %v8609_v46 = vmul.f32 %v12342_v21, %v2448_v37  ;;  %v8629_v37 = vld [vmem:[#allocation2 + $0x21] sm:$0xff]  ;;  %v5072_v19 = vld [vmem:[#allocation2 + $0x49] sm:$0xff]  ;;  %v2472_v8 = vmul.f32 %v12342_v21, %v8613_v59 }
 0x2e9   :  { %12359 = vst [vmem:[#allocation18_spill] sm:$0xff] %v8572_v22  ;;  %12360 = vst [vmem:[#allocation97_spill] sm:$0xff] %v8575_v45  ;;  %v8603_v45 = vmul.f32 %v12342_v21, %v2446_v25  ;;  %v8624_v25 = vmul.f32 %v12342_v21, %v2451_v23  ;;  %v12376_v23 = vld [vmem:[#allocation13_spill] sm:$0xff]  ;;  %v8665_v27 = vld [vmem:[#allocation2 + $0x1a] sm:$0xff] }
 0x2ea   :  { %12361 = vst [vmem:[#allocation126_spill] sm:$0xff] %v8578_v60  ;;  %12362 = vst [vmem:[#allocation21_spill] sm:$0xff] %v8581_v36  ;;  %v1422_v60 = vld [vmem:[#allocation2 + $0x1] sm:$0xff]  ;;  %v8600_v36 = vmul.f32 %v12342_v21, %v2445_v2  ;;  %v8621_v2 = vmul.f32 %v12342_v21, %v2450_v61  ;;  %v1491_v31 = vmul.f32 %v12376_v23, %v1423_v34  ;;  %v8669_v35 = vld [vmem:[#allocation2 + $0x32] sm:$0xff] }
 0x2eb   :  { %12363 = vst [vmem:[#allocation131_spill] sm:$0xff] %v8586_v5  ;;  %12364 = vst [vmem:[#allocation22_spill] sm:$0xff] %v8589_v47  ;;  %v2455_v47 = vld [vmem:[#allocation2 + $0x2d0] sm:$0xff]  ;;  %v2457_v12 = vld [vmem:[#allocation2 + $0x2e8] sm:$0xff]  ;;  %v1493_v34 = vmul.f32 %v12376_v23, %v8629_v37 }
 0x2ec   :  { %12365 = vst [vmem:[#allocation136_spill] sm:$0xff] %v8592_v18  ;;  %12366 = vst [vmem:[#allocation25_spill] sm:$0xff] %v8595_v58  ;;  %v8615_v58 = vld [vmem:[#allocation2 + $0x19] sm:$0xff]  ;;  %v8618_v18 = vmul.f32 %v12342_v21, %v2449_v13  ;;  %v8662_v3 = vmul.f32 %v12342_v21, %v2455_v47  ;;  %v8667_v32 = vld [vmem:[#allocation2 + $0x22] sm:$0xff]  ;;  %v8677_v47 = vmul.f32 %v12342_v21, %v2457_v12 }
 0x2ed   :  { %12367 = vst [vmem:[#allocation29_spill] sm:$0xff] %v8600_v36  ;;  %12368 = vst [vmem:[#allocation109_spill] sm:$0xff] %v8603_v45  ;;  %v2453_v45 = vld [vmem:[#allocation2 + $0x2b8] sm:$0xff]  ;;  %v2454_v36 = vld [vmem:[#allocation2 + $0x2c0] sm:$0xff]  ;;  %v1492_v50 = vmul.f32 %v12376_v23, %v8615_v58 }
 0x2ee   :  { %12369 = vst [vmem:[#allocation141_spill] sm:$0xff] %v8606_v4  ;;  %12370 = vst [vmem:[#allocation28_spill] sm:$0xff] %v8609_v46  ;;  %v8631_v46 = vld [vmem:[#allocation2 + $0x31] sm:$0xff]  ;;  %v8633_v4 = vld [vmem:[#allocation2 + $0x39] sm:$0xff]  ;;  %v8656_v62 = vmul.f32 %v12342_v21, %v2453_v45  ;;  %v8659_v48 = vmul.f32 %v12342_v21, %v2454_v36 }
 0x2ef   :  { %12371 = vst [vmem:[#allocation31_spill] sm:$0xff] %v8618_v18  ;;  %12372 = vst [vmem:[#allocation144_spill] sm:$0xff] %v8621_v2  ;;  %v5071_v13 = vld [vmem:[#allocation2] sm:$0xff]  ;;  %v1494_v16 = vmul.f32 %v12376_v23, %v8631_v46  ;;  %v1495_v57 = vmul.f32 %v12376_v23, %v8633_v4  ;;  %v1625_v36 = vld [vmem:[#allocation2 + $0x52] sm:$0xff] }
 0x2f0   :  { %12373 = vst [vmem:[#allocation30_spill] sm:$0xff] %v8624_v25  ;;  %12374 = vst [vmem:[#allocation145_spill] sm:$0xff] %v8627_v14  ;;  %v12375_v18 = vld [vmem:[#allocation12_spill] sm:$0xff]  ;;  %v1490_v25 = vmul.f32 %v12376_v23, %v1422_v60  ;;  %v12386_v42 = vld [vmem:[#allocation119_spill] sm:$0xff] }
 0x2f1   :  { %v1358_v5 = vmul.f32 %v5071_v13, %v12375_v18  ;;  %v1360_v61 = vmul.f32 %v12375_v18, %v8583_v51  ;;  %v1361_v14 = vmul.f32 %v12375_v18, %v8597_v0  ;;  %v1362_v2 = vmul.f32 %v12375_v18, %v8611_v15  ;;  %v1618_v13 = vld [vmem:[#allocation2 + $0x2] sm:$0xff]  ;;  %12377 = vst [vmem:[#allocation32_spill] sm:$0xff] %v8656_v62  ;;  %v8681_v63 = vld [vmem:[#allocation2 + $0x3a] sm:$0xff] }
 0x2f2   :  { %v1363_v22 = vmul.f32 %v12375_v18, %v8613_v59  ;;  %v1364_v60 = vmul.f32 %v12375_v18, %v1296_v29  ;;  %12378 = vst [vmem:[#allocation147_spill] sm:$0xff] %v8659_v48  ;;  %12379 = vst [vmem:[#allocation148_spill] sm:$0xff] %v8662_v3  ;;  %v1496_v29 = vmul.f32 %v5072_v19, %v12376_v23  ;;  %v12380_v40 = vld [vmem:[#allocation36_spill] sm:$0xff]  ;;  %v8716_v38 = vld [vmem:[#allocation2 + $0x68] sm:$0xff] }
 0x2f3   :  { %v1554_v18 = vadd.f32 %v1490_v25, %v1358_v5  ;;  %v1555_v9 = vadd.f32 %v1491_v31, %v1358_v5  ;;  %v1686_v45 = vmul.f32 %v12380_v40, %v1618_v13  ;;  %v1687_v62 = vmul.f32 %v12380_v40, %v1619_v1  ;;  %12382 = vst [vmem:[#allocation120_spill] sm:$0xff] %v8677_v47  ;;  %v12383_v25 = vld [vmem:[#allocation84_spill] sm:$0xff]  ;;  %v12384_v5 = vld [vmem:[#allocation113_spill] sm:$0xff]  ;;  %v2458_v31 = vld [vmem:[#allocation2 + $0x2f0] sm:$0xff] }
 0x2f4   :  { %v8674_v48 = vmul.f32 %v12342_v21, %v2456_v55  ;;  %v1556_v19 = vadd.f32 %v1492_v50, %v1360_v61  ;;  %v1561_v23 = vadd.f32 %v12384_v5, %v12383_v25  ;;  %v1557_v3 = vadd.f32 %v1493_v34, %v1361_v14  ;;  %v8683_v13 = vld [vmem:[#allocation2 + $0x4a] sm:$0xff]  ;;  %v8713_v5 = vld [vmem:[#allocation2 + $0x60] sm:$0xff] }
 0x2f5   :  { %v1558_v11 = vadd.f32 %v1494_v16, %v1362_v2  ;;  %v1559_v43 = vadd.f32 %v1495_v57, %v1363_v22  ;;  %v1560_v54 = vadd.f32 %v1496_v29, %v1364_v60  ;;  %v12385_v1 = vld [vmem:[#allocation85_spill] sm:$0xff]  ;;  %v1688_v12 = vmul.f32 %v12380_v40, %v8665_v27  ;;  %v12387_v57 = vld [vmem:[#allocation39_spill] sm:$0xff]  ;;  %v12395_v39 = vld [vmem:[#allocation16_spill] sm:$0xff] }
 0x2f6   :  { %12381 = vst [vmem:[#allocation149_spill] sm:$0xff] %v8674_v48  ;;  %v1562_v55 = vadd.f32 %v12386_v42, %v12385_v1  ;;  %v1689_v50 = vmul.f32 %v12380_v40, %v8667_v32  ;;  %v1690_v61 = vmul.f32 %v12380_v40, %v8669_v35  ;;  %v1750_v14 = vadd.f32 %v1686_v45, %v1554_v18  ;;  %v12389_v18 = vld [vmem:[#allocation130_spill] sm:$0xff]  ;;  %v8709_v25 = vld [vmem:[#allocation2 + $0x48] sm:$0xff] }
 0x2f7   :  { %v1751_v16 = vadd.f32 %v1687_v62, %v1555_v9  ;;  %v1882_v22 = vmul.f32 %v12387_v57, %v8583_v51  ;;  %v1883_v2 = vmul.f32 %v12387_v57, %v8597_v0  ;;  %v8698_v60 = vmul.f32 %v12342_v21, %v2458_v31  ;;  %v8711_v0 = vld [vmem:[#allocation2 + $0x50] sm:$0xff]  ;;  %v12391_v47 = vld [vmem:[#allocation33_spill] sm:$0xff] }
 0x2f8   :  { %v1691_v42 = vmul.f32 %v12380_v40, %v8681_v63  ;;  %v1692_v34 = vmul.f32 %v12380_v40, %v8683_v13  ;;  %v1693_v29 = vmul.f32 %v12380_v40, %v1625_v36  ;;  %v8707_v62 = vmul.f32 %v12389_v18, %v12342_v21  ;;  %v12392_v40 = vld [vmem:[#allocation34_spill] sm:$0xff] }
 0x2f9   :  { %12388 = vst [vmem:[#allocation151_spill] sm:$0xff] %v8698_v60  ;;  %v1752_v9 = vadd.f32 %v1688_v12, %v1556_v19  ;;  %v1753_v51 = vadd.f32 %v1689_v50, %v1557_v3  ;;  %v1754_v45 = vadd.f32 %v1690_v61, %v1558_v11  ;;  %v1758_v48 = vadd.f32 %v12391_v47, %v1562_v55  ;;  %v12393_v36 = vld [vmem:[#allocation146_spill] sm:$0xff]  ;;  %v12394_v50 = vld [vmem:[#allocation40_spill] sm:$0xff] }
 0x2fa   :  { %12390 = vst [vmem:[#allocation153_spill] sm:$0xff] %v8707_v62  ;;  %v1755_v31 = vadd.f32 %v1691_v42, %v1559_v43  ;;  %v1756_v1 = vadd.f32 %v1692_v34, %v1560_v54  ;;  %v1757_v60 = vadd.f32 %v1693_v29, %v1561_v23  ;;  %v1759_v18 = vadd.f32 %v12393_v36, %v12392_v40  ;;  %v2014_v29 = vld [vmem:[#allocation2 + $0x49] sm:$0xff]  ;;  %v8737_v36 = vld [vmem:[#allocation2 + $0x51] sm:$0xff]  ;;  %v8739_v62 = vld [vmem:[#allocation2 + $0x61] sm:$0xff] }
 0x2fb   :  { %v1884_v3 = vmul.f32 %v12387_v57, %v8611_v15  ;;  %v1946_v11 = vadd.f32 %v1882_v22, %v1750_v14  ;;  %v1947_v19 = vadd.f32 %v1883_v2, %v1751_v16  ;;  %v1885_v12 = vmul.f32 %v12387_v57, %v8613_v59  ;;  %v5073_v16 = vld [vmem:[#allocation2 + $0x78] sm:$0xff]  ;;  %v8741_v7 = vld [vmem:[#allocation2 + $0x69] sm:$0xff] }
 0x2fc   :  { %v1886_v43 = vmul.f32 %v12387_v57, %v8709_v25  ;;  %v1887_v54 = vmul.f32 %v12387_v57, %v8711_v0  ;;  %v1888_v47 = vmul.f32 %v12387_v57, %v8713_v5  ;;  %v1889_v23 = vmul.f32 %v12387_v57, %v8716_v38  ;;  %v12399_v59 = vld [vmem:[#allocation23_spill] sm:$0xff] }
 0x2fd   :  { %v1948_v55 = vadd.f32 %v1884_v3, %v1752_v9  ;;  %v2078_v61 = vmul.f32 %v12394_v50, %v8615_v58  ;;  %v2079_v14 = vmul.f32 %v12394_v50, %v8629_v37  ;;  %v1890_v22 = vmul.f32 %v5073_v16, %v12387_v57 }
 0x2fe   :  { %v1949_v2 = vadd.f32 %v1885_v12, %v1753_v51  ;;  %v1950_v42 = vadd.f32 %v1886_v43, %v1754_v45  ;;  %v1951_v34 = vadd.f32 %v1887_v54, %v1755_v31  ;;  %v1952_v40 = vadd.f32 %v1888_v47, %v1756_v1  ;;  %v12396_v51 = vld [vmem:[#allocation152_spill] sm:$0xff] }
 0x2ff   :  { %v2080_v58 = vmul.f32 %v12394_v50, %v8631_v46  ;;  %v2142_v9 = vadd.f32 %v2078_v61, %v1946_v11  ;;  %v2143_v3 = vadd.f32 %v2079_v14, %v1947_v19  ;;  %v1953_v37 = vadd.f32 %v1889_v23, %v1757_v60  ;;  %v12397_v45 = vld [vmem:[#allocation124_spill] sm:$0xff] }
 0x300   :  { %v1954_v44 = vadd.f32 %v1890_v22, %v1758_v48  ;;  %v1955_v57 = vadd.f32 %v12395_v39, %v1759_v18  ;;  %v1956_v31 = vadd.f32 %v12397_v45, %v12396_v51  ;;  %v8748_v12 = vld [vmem:[#allocation2 + $0x79] sm:$0xff]  ;;  %v2019_v1 = vld [vmem:[#allocation2 + $0x81] sm:$0xff]  ;;  %v2081_v43 = vmul.f32 %v12394_v50, %v8633_v4 }
 0x301   :  { %v2144_v54 = vadd.f32 %v2080_v58, %v1948_v55  ;;  %v2274_v47 = vmul.f32 %v12217_v10, %v8665_v27  ;;  %v2275_v11 = vmul.f32 %v12217_v10, %v8667_v32  ;;  %v2082_v48 = vmul.f32 %v12394_v50, %v2014_v29  ;;  %v8768_v58 = vld [vmem:[#allocation2 + $0x52] sm:$0xff]  ;;  %v8770_v51 = vld [vmem:[#allocation2 + $0x62] sm:$0xff] }
 0x302   :  { %v2083_v39 = vmul.f32 %v12394_v50, %v8737_v36  ;;  %v2084_v60 = vmul.f32 %v12394_v50, %v8739_v62  ;;  %v2085_v18 = vmul.f32 %v12394_v50, %v8741_v7  ;;  %v2086_v19 = vmul.f32 %v12394_v50, %v8748_v12 }
 0x303   :  { %v2276_v27 = vmul.f32 %v12217_v10, %v8669_v35  ;;  %v2338_v23 = vadd.f32 %v2274_v47, %v2142_v9  ;;  %v2339_v55 = vadd.f32 %v2275_v11, %v2143_v3  ;;  %v2087_v32 = vmul.f32 %v12394_v50, %v2019_v1  ;;  %v12398_v47 = vld [vmem:[#allocation103_spill] sm:$0xff] }
 0x304   :  { %v2145_v61 = vadd.f32 %v2081_v43, %v1949_v2  ;;  %v2146_v14 = vadd.f32 %v2082_v48, %v1950_v42  ;;  %v2147_v16 = vadd.f32 %v2083_v39, %v1951_v34  ;;  %v2148_v22 = vadd.f32 %v2084_v60, %v1952_v40  ;;  %v8777_v2 = vld [vmem:[#allocation2 + $0x6a] sm:$0xff]  ;;  %v8779_v42 = vld [vmem:[#allocation2 + $0x7a] sm:$0xff]  ;;  %v8781_v34 = vld [vmem:[#allocation2 + $0x82] sm:$0xff] }
 0x305   :  { %v2340_v45 = vadd.f32 %v2276_v27, %v2144_v54  ;;  %v2149_v49 = vadd.f32 %v2085_v18, %v1953_v37  ;;  %v2150_v9 = vadd.f32 %v2086_v19, %v1954_v44  ;;  %v2151_v3 = vadd.f32 %v2087_v32, %v1955_v57  ;;  %v12400_v37 = vld [vmem:[#allocation104_spill] sm:$0xff]  ;;  %v12401_v39 = vld [vmem:[#allocation43_spill] sm:$0xff] }
 0x306   :  { %v2152_v50 = vadd.f32 %v12398_v47, %v1956_v31  ;;  %v2277_v40 = vmul.f32 %v12217_v10, %v8681_v63  ;;  %v2473_v15 = vmul.f32 %v12342_v21, %v8709_v25  ;;  %v2535_v1 = vadd.f32 %v2471_v33, %v2338_v23  ;;  %v5074_v32 = vld [vmem:[#allocation2 + $0x92] sm:$0xff] }
 0x307   :  { %v2536_v43 = vadd.f32 %v2472_v8, %v2339_v55  ;;  %v2153_v44 = vadd.f32 %v12400_v37, %v12399_v59  ;;  %v2278_v57 = vmul.f32 %v12217_v10, %v8683_v13  ;;  %v2279_v31 = vmul.f32 %v12217_v10, %v8768_v58 }
 0x308   :  { %v2280_v54 = vmul.f32 %v12217_v10, %v8770_v51  ;;  %v2341_v11 = vadd.f32 %v2277_v40, %v2145_v61  ;;  %v2537_v48 = vadd.f32 %v2473_v15, %v2340_v45  ;;  %v2667_v60 = vmul.f32 %v12401_v39, %v8631_v46  ;;  %v2409_v40 = vld [vmem:[#allocation2 + $0x78] sm:$0xff] }
 0x309   :  { %v2668_v8 = vmul.f32 %v12401_v39, %v8633_v4  ;;  %v2281_v33 = vmul.f32 %v12217_v10, %v8777_v2  ;;  %v2282_v25 = vmul.f32 %v12217_v10, %v8779_v42  ;;  %v2283_v18 = vmul.f32 %v12217_v10, %v8781_v34 }
 0x30a   :  { %v2342_v19 = vadd.f32 %v2278_v57, %v2146_v14  ;;  %v2474_v27 = vmul.f32 %v12342_v21, %v8711_v0  ;;  %v2669_v23 = vmul.f32 %v12401_v39, %v2014_v29  ;;  %v2731_v55 = vadd.f32 %v2667_v60, %v2535_v1  ;;  %v8814_v14 = vld [vmem:[%s11107_s4 + $0x8] ss:$0 sm:$0xff]  ;;  %v2410_v1 = vld [vmem:[#allocation2 + $0x80] sm:$0xff] }
 0x30b   :  { %v2732_v46 = vadd.f32 %v2668_v8, %v2536_v43  ;;  %v2284_v4 = vmul.f32 %v5074_v32, %v12217_v10  ;;  %v2343_v61 = vadd.f32 %v2279_v31, %v2147_v16  ;;  %v2344_v45 = vadd.f32 %v2280_v54, %v2148_v22 }
 0x30c   :  { %v2475_v47 = vmul.f32 %v12342_v21, %v8713_v5  ;;  %v2538_v15 = vadd.f32 %v2474_v27, %v2341_v11  ;;  %v2733_v59 = vadd.f32 %v2669_v23, %v2537_v48  ;;  %v2863_v0 = vmul.f32 %v8814_v14, %v8669_v35  ;;  %v2411_v11 = vld [vmem:[#allocation2 + $0x90] sm:$0xff] }
 0x30d   :  { %v2864_v29 = vmul.f32 %v8814_v14, %v8681_v63  ;;  %v2345_v10 = vadd.f32 %v2281_v33, %v2149_v49  ;;  %v2346_v16 = vadd.f32 %v2282_v25, %v2150_v9  ;;  %v2476_v22 = vmul.f32 %v12342_v21, %v8716_v38  ;;  %v12402_v63 = vld [vmem:[#allocation105_spill] sm:$0xff]  ;;  %v2412_v38 = vld [vmem:[#allocation2 + $0x98] sm:$0xff]  ;;  %v12404_v33 = vld [vmem:[#allocation176_spill] sm:$0xff] }
 0x30e   :  { %v2539_v5 = vadd.f32 %v2475_v47, %v2342_v19  ;;  %v2670_v43 = vmul.f32 %v12401_v39, %v8737_v36  ;;  %v2865_v37 = vmul.f32 %v8814_v14, %v8683_v13  ;;  %v8826_v57 = vadd.f32 %v2863_v0, %v2731_v55  ;;  %v12403_v13 = vld [vmem:[#allocation121_spill] sm:$0xff]  ;;  %v12405_v19 = vld [vmem:[#allocation122_spill] sm:$0xff] }
 0x30f   :  { %v8828_v31 = vadd.f32 %v2864_v29, %v2732_v46  ;;  %v2347_v35 = vadd.f32 %v2283_v18, %v2151_v3  ;;  %v2348_v54 = vadd.f32 %v2284_v4, %v2152_v50  ;;  %v2349_v49 = vadd.f32 %v12402_v63, %v2153_v44  ;;  %v12406_v27 = vld [vmem:[#allocation106_spill] sm:$0xff]  ;;  %v2606_v18 = vld [vmem:[#allocation2 + $0x81] sm:$0xff] }
 0x310   :  { %v2477_v9 = vmul.f32 %v12342_v21, %v2409_v40  ;;  %v2540_v48 = vadd.f32 %v2476_v22, %v2343_v61  ;;  %v2671_v60 = vmul.f32 %v12401_v39, %v8739_v62  ;;  %v2734_v36 = vadd.f32 %v2670_v43, %v2538_v15  ;;  %v2607_v40 = vld [vmem:[#allocation2 + $0x91] sm:$0xff] }
 0x311   :  { %v8834_v8 = vadd.f32 %v2865_v37, %v2733_v59  ;;  %v2350_v25 = vadd.f32 %v12404_v33, %v12403_v13  ;;  %v8840_v3 = vadd.f32 %v12406_v27, %v12405_v19  ;;  %v2478_v50 = vmul.f32 %v12342_v21, %v2410_v1 }
 0x312   :  { %v2541_v44 = vadd.f32 %v2477_v9, %v2344_v45  ;;  %v2672_v23 = vmul.f32 %v12401_v39, %v8741_v7  ;;  %v2735_v55 = vadd.f32 %v2671_v60, %v2539_v5  ;;  %v2866_v62 = vmul.f32 %v8814_v14, %v8768_v58  ;;  %v2413_v45 = vld [vmem:[#allocation2 + $0xa8] sm:$0xff]  ;;  %v2608_v5 = vld [vmem:[#allocation2 + $0x99] sm:$0xff] }
 0x313   :  { %v2991_v46 = vadd.f32 %v8828_v31, %v8826_v57  ;;  %v2479_v32 = vmul.f32 %v12342_v21, %v2411_v11  ;;  %v2480_v4 = vmul.f32 %v12342_v21, %v2412_v38  ;;  %v2542_v61 = vadd.f32 %v2478_v50, %v2345_v10  ;;  %v2609_v38 = vld [vmem:[#allocation2 + $0xa9] sm:$0xff]  ;;  %v2610_v50 = vld [vmem:[#allocation2 + $0xb1] sm:$0xff] }
 0x314   :  { %v2673_v47 = vmul.f32 %v12401_v39, %v8748_v12  ;;  %v2736_v15 = vadd.f32 %v2672_v23, %v2540_v48  ;;  %v2867_v7 = vmul.f32 %v8814_v14, %v8770_v51  ;;  %v8855_v59 = vadd.f32 %v2866_v62, %v2734_v36  ;;  %v2414_v12 = vld [vmem:[#allocation2 + $0xb0] sm:$0xff] }
 0x315   :  { %v2992_v58 = vadd.f32 %v2991_v46, %v8834_v8  ;;  %v2543_v0 = vadd.f32 %v2479_v32, %v2346_v16  ;;  %v2674_v29 = vmul.f32 %v12401_v39, %v2606_v18  ;;  %v3060_v22 = vmul.f32 %v8826_v57, %v8826_v57  ;;  %v2804_v46 = vld [vmem:[#allocation2 + $0x9a] sm:$0xff] }
 0x316   :  { %v3061_v10 = vmul.f32 %v8828_v31, %v8828_v31  ;;  %v2737_v1 = vadd.f32 %v2673_v47, %v2541_v44  ;;  %v2868_v43 = vmul.f32 %v8814_v14, %v8777_v2  ;;  %v8865_v51 = vadd.f32 %v2867_v7, %v2735_v55 }
 0x317   :  { %v2993_v37 = vadd.f32 %v2992_v58, %v8855_v59  ;;  %v2481_v16 = vmul.f32 %v12342_v21, %v2413_v45  ;;  %v2544_v63 = vadd.f32 %v2480_v4, %v2347_v35  ;;  %v2675_v9 = vmul.f32 %v12401_v39, %v2607_v40  ;;  %v2803_v35 = vld [vmem:[#allocation2 + $0x92] sm:$0xff] }
 0x318   :  { %v3062_v11 = vmul.f32 %v8834_v8, %v8834_v8  ;;  %v2738_v48 = vadd.f32 %v2674_v29, %v2542_v61  ;;  %v2869_v60 = vmul.f32 %v8814_v14, %v8779_v42  ;;  %v8874_v36 = vadd.f32 %v2868_v43, %v2736_v15  ;;  %v2805_v15 = vld [vmem:[#allocation2 + $0xaa] sm:$0xff] }
 0x319   :  { %v2994_v2 = vadd.f32 %v2993_v37, %v8865_v51  ;;  %v2482_v13 = vmul.f32 %v12342_v21, %v2414_v12  ;;  %v2545_v33 = vadd.f32 %v2481_v16, %v2348_v54  ;;  %v2676_v19 = vmul.f32 %v12401_v39, %v2608_v5  ;;  %v5076_v12 = vld [vmem:[#allocation2 + $0xc1] sm:$0xff] }
 0x31a   :  { %v3124_v27 = vadd.f32 %v3061_v10, %v3060_v22  ;;  %v2739_v44 = vadd.f32 %v2675_v9, %v2543_v0  ;;  %v2870_v18 = vmul.f32 %v8814_v14, %v8781_v34  ;;  %v8881_v23 = vadd.f32 %v2869_v60, %v2737_v1 }
 0x31b   :  { %v2995_v42 = vadd.f32 %v2994_v2, %v8874_v36  ;;  %v2546_v55 = vadd.f32 %v2482_v13, %v2349_v49  ;;  %v2677_v62 = vmul.f32 %v12401_v39, %v2609_v38  ;;  %v3063_v54 = vmul.f32 %v8855_v59, %v8855_v59 }
 0x31c   :  { %v3125_v32 = vadd.f32 %v3124_v27, %v3062_v11  ;;  %v2740_v4 = vadd.f32 %v2676_v19, %v2544_v63  ;;  %v2871_v61 = vmul.f32 %v8814_v14, %v2803_v35  ;;  %v8888_v47 = vadd.f32 %v2870_v18, %v2738_v48  ;;  %v5077_v11 = vld [vmem:[#allocation2 + $0xc9] sm:$0xff]  ;;  %v5078_v35 = vld [vmem:[#allocation2 + $0xd9] sm:$0xff] }
 0x31d   :  { %v2996_v45 = vadd.f32 %v2995_v42, %v8881_v23  ;;  %v2547_v34 = vadd.f32 %v8510_v53, %v2350_v25  ;;  %v2678_v40 = vmul.f32 %v12401_v39, %v2610_v50  ;;  %v3064_v49 = vmul.f32 %v8865_v51, %v8865_v51  ;;  %v2806_v25 = vld [vmem:[#allocation2 + $0xb2] sm:$0xff] }
 0x31e   :  { %v3126_v7 = vadd.f32 %v3125_v32, %v3063_v54  ;;  %v2741_v58 = vadd.f32 %v2677_v62, %v2545_v33  ;;  %v2872_v0 = vmul.f32 %v8814_v14, %v2804_v46  ;;  %v8896_v29 = vadd.f32 %v2871_v61, %v2739_v44  ;;  %v5079_v46 = vld [vmem:[#allocation2 + $0xe1] sm:$0xff] }
 0x31f   :  { %v2997_v22 = vadd.f32 %v2996_v45, %v8888_v47  ;;  %v2548_v10 = vadd.f32 %v8513_v56, %v8840_v3  ;;  %v2679_v53 = vmul.f32 %v5076_v12, %v12401_v39  ;;  %v3065_v5 = vmul.f32 %v8874_v36, %v8874_v36  ;;  %v2807_v3 = vld [vmem:[#allocation2 + $0xc2] sm:$0xff] }
 0x320   :  { %v3127_v1 = vadd.f32 %v3126_v7, %v3064_v49  ;;  %v2742_v43 = vadd.f32 %v2678_v40, %v2546_v55  ;;  %v2873_v37 = vmul.f32 %v8814_v14, %v2805_v15  ;;  %v8905_v16 = vadd.f32 %v2872_v0, %v2740_v4  ;;  %v5080_v15 = vld [vmem:[#allocation2 + $0xf1] sm:$0xff]  ;;  %v12407_v12 = vld [vmem:[#allocation88_spill] sm:$0xff] }
 0x321   :  { %v2998_v63 = vadd.f32 %v2997_v22, %v8896_v29  ;;  %v2549_v9 = vadd.f32 %v8516_v17, %v8372_v20  ;;  %v2680_v56 = vmul.f32 %v5077_v11, %v12401_v39  ;;  %v3066_v38 = vmul.f32 %v8881_v23, %v8881_v23  ;;  %v2808_v17 = vld [vmem:[#allocation2 + $0xca] sm:$0xff] }
 0x322   :  { %v3128_v48 = vadd.f32 %v3127_v1, %v3065_v5  ;;  %v2743_v60 = vadd.f32 %v2679_v53, %v2547_v34  ;;  %v2874_v2 = vmul.f32 %v8814_v14, %v2806_v25  ;;  %v8914_v13 = vadd.f32 %v2873_v37, %v2741_v58  ;;  %v5081_v25 = vld [vmem:[#allocation2 + $0xf9] sm:$0xff]  ;;  %v12408_v11 = vld [vmem:[#allocation177_spill] sm:$0xff] }
 0x323   :  { %v2999_v33 = vadd.f32 %v2998_v63, %v8905_v16  ;;  %v2550_v19 = vadd.f32 %v8519_v24, %v8375_v30  ;;  %v2681_v20 = vmul.f32 %v5078_v35, %v12401_v39  ;;  %v3067_v27 = vmul.f32 %v8888_v47, %v8888_v47  ;;  %v2809_v24 = vld [vmem:[#allocation2 + $0xda] sm:$0xff] }
 0x324   :  { %v3129_v50 = vadd.f32 %v3128_v48, %v3066_v38  ;;  %v2744_v44 = vadd.f32 %v2680_v56, %v2548_v10  ;;  %v2875_v18 = vmul.f32 %v8814_v14, %v2807_v3  ;;  %v8923_v42 = vadd.f32 %v2874_v2, %v2742_v43  ;;  %v12409_v56 = vld [vmem:[#allocation89_spill] sm:$0xff]  ;;  %v2812_v48 = vld [vmem:[#allocation2 + $0xfa] sm:$0xff] }
 0x325   :  { %v3000_v55 = vadd.f32 %v2999_v33, %v8914_v13  ;;  %v2551_v62 = vadd.f32 %v8522_v41, %v8378_v26  ;;  %v2682_v30 = vmul.f32 %v5079_v46, %v12401_v39  ;;  %v3068_v54 = vmul.f32 %v8896_v29, %v8896_v29  ;;  %v2810_v41 = vld [vmem:[#allocation2 + $0xe2] sm:$0xff] }
 0x326   :  { %v3130_v32 = vadd.f32 %v3129_v50, %v3067_v27  ;;  %v2745_v4 = vadd.f32 %v2681_v20, %v2549_v9  ;;  %v2876_v61 = vmul.f32 %v8814_v14, %v2808_v17  ;;  %v8932_v45 = vadd.f32 %v2875_v18, %v2743_v60  ;;  %v5082_v38 = vld [vmem:[#allocation2 + $0x109] sm:$0xff]  ;;  %v12410_v17 = vld [vmem:[#allocation107_spill] sm:$0xff] }
 0x327   :  { %v3001_v34 = vadd.f32 %v3000_v55, %v8923_v42  ;;  %v2552_v40 = vadd.f32 %v8525_v6, %v8381_v52  ;;  %v2683_v26 = vmul.f32 %v5080_v15, %v12401_v39  ;;  %v3069_v49 = vmul.f32 %v8905_v16, %v8905_v16  ;;  %v2811_v6 = vld [vmem:[#allocation2 + $0xf2] sm:$0xff]  ;;  %v2813_v55 = vld [vmem:[#allocation2 + $0x10a] sm:$0xff] }
 0x328   :  { %v3131_v7 = vadd.f32 %v3130_v32, %v3068_v54  ;;  %v2877_v58 = vmul.f32 %v8814_v14, %v2809_v24  ;;  %v2746_v0 = vadd.f32 %v2682_v30, %v2550_v19  ;;  %v8941_v22 = vadd.f32 %v2876_v61, %v2744_v44  ;;  %v12411_v27 = vld [vmem:[#allocation90_spill] sm:$0xff]  ;;  %v12413_v61 = vld [vmem:[#allocation91_spill] sm:$0xff] }
 0x329   :  { %v3002_v10 = vadd.f32 %v3001_v34, %v8932_v45  ;;  %v2553_v53 = vadd.f32 %v12407_v12, %v8384_v28  ;;  %v2684_v52 = vmul.f32 %v5081_v25, %v12401_v39  ;;  %v3070_v5 = vmul.f32 %v8914_v13, %v8914_v13  ;;  %v5083_v44 = vld [vmem:[#allocation2 + $0x111] sm:$0xff] }
 0x32a   :  { %v3132_v1 = vadd.f32 %v3131_v7, %v3069_v49  ;;  %v2747_v43 = vadd.f32 %v2683_v26, %v2551_v62  ;;  %v2878_v37 = vmul.f32 %v8814_v14, %v2810_v41  ;;  %v8950_v63 = vadd.f32 %v2877_v58, %v2745_v4  ;;  %v12412_v4 = vld [vmem:[#allocation129_spill] sm:$0xff]  ;;  %v2814_v26 = vld [vmem:[#allocation2 + $0x112] sm:$0xff] }
 0x32b   :  { %v3003_v9 = vadd.f32 %v3002_v10, %v8941_v22  ;;  %v2554_v3 = vadd.f32 %v12409_v56, %v12408_v11  ;;  %v2685_v28 = vmul.f32 %v5082_v38, %v12401_v39  ;;  %v3071_v60 = vmul.f32 %v8923_v42, %v8923_v42  ;;  %v12414_v12 = vld [vmem:[#allocation178_spill] sm:$0xff]  ;;  %v12417_v38 = vld [vmem:[#allocation93_spill] sm:$0xff] }
 0x32c   :  { %v3133_v2 = vadd.f32 %v3132_v1, %v3070_v5  ;;  %v2748_v33 = vadd.f32 %v2684_v52, %v2552_v40  ;;  %v2879_v19 = vmul.f32 %v8814_v14, %v2811_v6  ;;  %v8959_v35 = vadd.f32 %v2878_v37, %v2746_v0  ;;  %v5084_v40 = vld [vmem:[#allocation2 + $0x121] sm:$0xff]  ;;  %v5085_v52 = vld [vmem:[#allocation2 + $0x129] sm:$0xff] }
 0x32d   :  { %v3004_v20 = vadd.f32 %v3003_v9, %v8950_v63  ;;  %v2555_v50 = vadd.f32 %v12411_v27, %v12410_v17  ;;  %v2686_v18 = vmul.f32 %v5083_v44, %v12401_v39  ;;  %v3072_v62 = vmul.f32 %v8932_v45, %v8932_v45  ;;  %v2815_v5 = vld [vmem:[#allocation2 + $0x122] sm:$0xff] }
 0x32e   :  { %v3134_v46 = vadd.f32 %v3133_v2, %v3071_v60  ;;  %v2749_v30 = vadd.f32 %v2685_v28, %v2553_v53  ;;  %v2880_v24 = vmul.f32 %v8814_v14, %v2812_v48  ;;  %v8968_v54 = vadd.f32 %v2879_v19, %v2747_v43  ;;  %v12415_v53 = vld [vmem:[#allocation92_spill] sm:$0xff]  ;;  %v2816_v2 = vld [vmem:[#allocation2 + $0x12a] sm:$0xff] }
 0x32f   :  { %v3005_v32 = vadd.f32 %v3004_v20, %v8959_v35  ;;  %v2556_v34 = vadd.f32 %v12413_v61, %v12412_v4  ;;  %v2687_v15 = vmul.f32 %v5084_v40, %v12401_v39  ;;  %v3073_v41 = vmul.f32 %v8941_v22, %v8941_v22  ;;  %v5086_v48 = vld [vmem:[#allocation2 + $0x139] sm:$0xff] }
 0x330   :  { %v3135_v49 = vadd.f32 %v3134_v46, %v3072_v62  ;;  %v2750_v7 = vadd.f32 %v2686_v18, %v2554_v3  ;;  %v2881_v58 = vmul.f32 %v8814_v14, %v2813_v55  ;;  %v8977_v0 = vadd.f32 %v2880_v24, %v2748_v33  ;;  %v12416_v3 = vld [vmem:[#allocation108_spill] sm:$0xff]  ;;  %v12419_v18 = vld [vmem:[#allocation94_spill] sm:$0xff] }
 0x331   :  { %v3006_v10 = vadd.f32 %v3005_v32, %v8968_v54  ;;  %v2557_v25 = vadd.f32 %v12415_v53, %v12414_v12  ;;  %v2688_v6 = vmul.f32 %v5085_v52, %v12401_v39  ;;  %v3074_v1 = vmul.f32 %v8950_v63, %v8950_v63  ;;  %v12418_v44 = vld [vmem:[#allocation20_spill] sm:$0xff] }
 0x332   :  { %v3136_v43 = vadd.f32 %v3135_v49, %v3073_v41  ;;  %v2751_v37 = vadd.f32 %v2687_v15, %v2555_v50  ;;  %v2882_v9 = vmul.f32 %v8814_v14, %v2814_v26  ;;  %v8986_v11 = vadd.f32 %v2881_v58, %v2749_v30  ;;  %v5087_v62 = vld [vmem:[#allocation2 + $0x141] sm:$0xff]  ;;  %v12420_v15 = vld [vmem:[#allocation179_spill] sm:$0xff] }
 0x333   :  { %v3007_v56 = vadd.f32 %v3006_v10, %v8977_v0  ;;  %v2558_v28 = vadd.f32 %v12417_v38, %v12416_v3  ;;  %v2689_v60 = vmul.f32 %v5086_v48, %v12401_v39  ;;  %v3075_v33 = vmul.f32 %v8959_v35, %v8959_v35  ;;  %v2817_v30 = vld [vmem:[#allocation2 + $0x13a] sm:$0xff]  ;;  %v5088_v49 = vld [vmem:[#allocation2 + $0x151] sm:$0xff]  ;;  %v2818_v58 = vld [vmem:[#allocation2 + $0x142] sm:$0xff] }
 0x334   :  { %v3137_v19 = vadd.f32 %v3136_v43, %v3074_v1  ;;  %v2752_v20 = vadd.f32 %v2688_v6, %v2556_v34  ;;  %v2883_v17 = vmul.f32 %v8814_v14, %v2815_v5  ;;  %v8995_v27 = vadd.f32 %v2882_v9, %v2750_v7  ;;  %v12421_v26 = vld [vmem:[#allocation95_spill] sm:$0xff]  ;;  %v12422_v5 = vld [vmem:[#allocation38_spill] sm:$0xff] }
 0x335   :  { %v3008_v50 = vadd.f32 %v3007_v56, %v8986_v11  ;;  %v2559_v55 = vadd.f32 %v12419_v18, %v12418_v44  ;;  %v2690_v46 = vmul.f32 %v5087_v62, %v12401_v39  ;;  %v3076_v24 = vmul.f32 %v8968_v54, %v8968_v54  ;;  %v12423_v1 = vld [vmem:[#allocation98_spill] sm:$0xff]  ;;  %v2820_v44 = vld [vmem:[#allocation2 + $0x15a] sm:$0xff] }
 0x336   :  { %v3138_v32 = vadd.f32 %v3137_v19, %v3075_v33  ;;  %v2753_v4 = vadd.f32 %v2689_v60, %v2557_v25  ;;  %v2884_v61 = vmul.f32 %v8814_v14, %v2816_v2  ;;  %v9004_v34 = vadd.f32 %v2883_v17, %v2751_v37  ;;  %v5089_v37 = vld [vmem:[#allocation2 + $0x159] sm:$0xff]  ;;  %v5090_v17 = vld [vmem:[#allocation2 + $0x169] sm:$0xff] }
 0x337   :  { %v3009_v40 = vadd.f32 %v3008_v50, %v8995_v27  ;;  %v2560_v41 = vadd.f32 %v12421_v26, %v12420_v15  ;;  %v2691_v7 = vmul.f32 %v5088_v49, %v12401_v39  ;;  %v3077_v10 = vmul.f32 %v8977_v0, %v8977_v0  ;;  %v2819_v56 = vld [vmem:[#allocation2 + $0x152] sm:$0xff]  ;;  %v12424_v33 = vld [vmem:[#allocation116_spill] sm:$0xff]  ;;  %v2821_v26 = vld [vmem:[#allocation2 + $0x16a] sm:$0xff] }
 0x338   :  { %v3139_v12 = vadd.f32 %v3138_v32, %v3076_v24  ;;  %v2754_v53 = vadd.f32 %v2690_v46, %v2558_v28  ;;  %v2885_v25 = vmul.f32 %v8814_v14, %v2817_v30  ;;  %v9013_v52 = vadd.f32 %v2884_v61, %v2752_v20  ;;  %v12425_v19 = vld [vmem:[#allocation99_spill] sm:$0xff]  ;;  %v12426_v32 = vld [vmem:[#allocation117_spill] sm:$0xff] }
 0x339   :  { %v3010_v6 = vadd.f32 %v3009_v40, %v9004_v34  ;;  %v2561_v43 = vadd.f32 %v12423_v1, %v12422_v5  ;;  %v2692_v9 = vmul.f32 %v5089_v37, %v12401_v39  ;;  %v3078_v3 = vmul.f32 %v8986_v11, %v8986_v11  ;;  %v5091_v40 = vld [vmem:[#allocation2 + $0x171] sm:$0xff]  ;;  %v5092_v5 = vld [vmem:[#allocation2 + $0x181] sm:$0xff] }
 0x33a   :  { %v3140_v38 = vadd.f32 %v3139_v12, %v3077_v10  ;;  %v2755_v48 = vadd.f32 %v2691_v7, %v2559_v55  ;;  %v2886_v28 = vmul.f32 %v8814_v14, %v2818_v58  ;;  %v9022_v60 = vadd.f32 %v2885_v25, %v2753_v4  ;;  %v12427_v4 = vld [vmem:[#allocation100_spill] sm:$0xff]  ;;  %v12430_v25 = vld [vmem:[#allocation14_spill] sm:$0xff] }
 0x33b   :  { %v3011_v2 = vadd.f32 %v3010_v6, %v9013_v52  ;;  %v2562_v20 = vadd.f32 %v12425_v19, %v12424_v33  ;;  %v2693_v50 = vmul.f32 %v5090_v17, %v12401_v39  ;;  %v3079_v18 = vmul.f32 %v8995_v27, %v8995_v27  ;;  %v2822_v37 = vld [vmem:[#allocation2 + $0x172] sm:$0xff]  ;;  %v5093_v19 = vld [vmem:[#allocation2 + $0x189] sm:$0xff] }
 0x33c   :  { %v3141_v62 = vadd.f32 %v3140_v38, %v3078_v3  ;;  %v2756_v46 = vadd.f32 %v2692_v9, %v2560_v41  ;;  %v2887_v55 = vmul.f32 %v8814_v14, %v2819_v56  ;;  %v9031_v30 = vadd.f32 %v2886_v28, %v2754_v53  ;;  %v12429_v53 = vld [vmem:[#allocation110_spill] sm:$0xff]  ;;  %v12432_v28 = vld [vmem:[#allocation27_spill] sm:$0xff] }
 0x33d   :  { %v3012_v24 = vadd.f32 %v3011_v2, %v9022_v60  ;;  %v2563_v61 = vadd.f32 %v12427_v4, %v12426_v32  ;;  %v2694_v15 = vmul.f32 %v5091_v40, %v12401_v39  ;;  %v3080_v49 = vmul.f32 %v9004_v34, %v9004_v34  ;;  %v12433_v2 = vld [vmem:[#allocation53_spill] sm:$0xff]  ;;  %v12435_v32 = vld [vmem:[#allocation111_spill] sm:$0xff] }
 0x33e   :  { %v3142_v7 = vadd.f32 %v3141_v62, %v3079_v18  ;;  %v2757_v58 = vadd.f32 %v2693_v50, %v2561_v43  ;;  %v2888_v41 = vmul.f32 %v8814_v14, %v2820_v44  ;;  %v9040_v10 = vadd.f32 %v2887_v55, %v2755_v48  ;;  %v5094_v55 = vld [vmem:[#allocation2 + $0x308] sm:$0xff] }
 0x33f   :  { %v3013_v12 = vadd.f32 %v3012_v24, %v9031_v30  ;;  %v2564_v6 = vadd.f32 %v12430_v25, %v12429_v53  ;;  %v2695_v1 = vmul.f32 %v5092_v5, %v12401_v39  ;;  %v3081_v9 = vmul.f32 %v9013_v52, %v9013_v52  ;;  %v12437_v53 = vld [vmem:[#allocation138_spill] sm:$0xff] }
 0x340   :  { %12428 = vst [vmem:[#allocation132_spill] sm:$0xff] %v9040_v10  ;;  %v3143_v56 = vadd.f32 %v3142_v7, %v3080_v49  ;;  %v2758_v3 = vadd.f32 %v2694_v15, %v2562_v20  ;;  %v2889_v43 = vmul.f32 %v8814_v14, %v2821_v26  ;;  %v9049_v38 = vadd.f32 %v2888_v41, %v2756_v46  ;;  %v5095_v49 = vld [vmem:[#allocation2 + $0x182] sm:$0xff]  ;;  %v5096_v41 = vld [vmem:[#allocation2 + $0x318] sm:$0xff]  ;;  %v12438_v25 = vld [vmem:[#allocation42_spill] sm:$0xff] }
 0x341   :  { %v3014_v48 = vadd.f32 %v3013_v12, %v9040_v10  ;;  %v2565_v33 = vadd.f32 %v12433_v2, %v12432_v28  ;;  %v2696_v17 = vmul.f32 %v5093_v19, %v12401_v39  ;;  %v3082_v50 = vmul.f32 %v9022_v60, %v9022_v60  ;;  %v12441_v19 = vld [vmem:[#allocation112_spill] sm:$0xff] }
 0x342   :  { %12431 = vst [vmem:[#allocation154_spill] sm:$0xff] %v9049_v38  ;;  %v3144_v44 = vadd.f32 %v3143_v56, %v3081_v9  ;;  %v2759_v18 = vadd.f32 %v2695_v1, %v2563_v61  ;;  %v2890_v62 = vmul.f32 %v8814_v14, %v2822_v37  ;;  %v9058_v20 = vadd.f32 %v2889_v43, %v2757_v58  ;;  %v2826_v37 = vld [vmem:[#allocation2 + $0x1a2] sm:$0xff]  ;;  %v5097_v43 = vld [vmem:[#allocation2 + $0x18a] sm:$0xff] }
 0x343   :  { %v3015_v46 = vadd.f32 %v3014_v48, %v9049_v38  ;;  %v9062_v24 = vmul.f32 %v5094_v55, %v12342_v21  ;;  %v2566_v4 = vadd.f32 %v12433_v2, %v12435_v32  ;;  %v3083_v40 = vmul.f32 %v9031_v30, %v9031_v30  ;;  %v12443_v32 = vld [vmem:[#allocation54_spill] sm:$0xff] }
 0x344   :  { %12434 = vst [vmem:[#allocation155_spill] sm:$0xff] %v9058_v20  ;;  %v3145_v15 = vadd.f32 %v3144_v44, %v3082_v50  ;;  %v2760_v26 = vadd.f32 %v2696_v17, %v2564_v6  ;;  %v2891_v61 = vmul.f32 %v5095_v49, %v8814_v14  ;;  %v9069_v7 = vadd.f32 %v2890_v62, %v2758_v3  ;;  %v12439_v6 = vld [vmem:[#allocation44_spill] sm:$0xff]  ;;  %v12442_v17 = vld [vmem:[#allocation118_spill] sm:$0xff] }
 0x345   :  { %v3016_v58 = vadd.f32 %v3015_v46, %v9058_v20  ;;  %v9073_v12 = vmul.f32 %v5096_v41, %v12342_v21  ;;  %v2567_v5 = vadd.f32 %v12438_v25, %v12437_v53  ;;  %v3084_v1 = vmul.f32 %v9040_v10, %v9040_v10  ;;  %v5098_v44 = vld [vmem:[#allocation2 + $0x1e1] sm:$0xff]  ;;  %v12446_v41 = vld [vmem:[#allocation18_spill] sm:$0xff] }
 0x346   :  { %12436 = vst [vmem:[#allocation156_spill] sm:$0xff] %v9069_v7  ;;  %v3146_v9 = vadd.f32 %v3145_v15, %v3083_v40  ;;  %v2761_v56 = vadd.f32 %v12439_v6, %v2565_v33  ;;  %v2892_v3 = vmul.f32 %v5097_v43, %v8814_v14  ;;  %v9081_v48 = vadd.f32 %v2891_v61, %v2759_v18  ;;  %v5099_v49 = vld [vmem:[#allocation2 + $0x320] sm:$0xff]  ;;  %v12447_v43 = vld [vmem:[#allocation55_spill] sm:$0xff] }
 0x347   :  { %v3017_v28 = vadd.f32 %v3016_v58, %v9069_v7  ;;  %v2568_v50 = vadd.f32 %v12442_v17, %v12441_v19  ;;  %v2699_v62 = vmul.f32 %v5098_v44, %v12401_v39  ;;  %v3085_v46 = vmul.f32 %v9049_v38, %v9049_v38  ;;  %v12445_v58 = vld [vmem:[#allocation26_spill] sm:$0xff]  ;;  %v2827_v25 = vld [vmem:[#allocation2 + $0x1e2] sm:$0xff]  ;;  %v5101_v17 = vld [vmem:[#allocation2 + $0x1f9] sm:$0xff] }
 0x348   :  { %12440 = vst [vmem:[#allocation157_spill] sm:$0xff] %v9081_v48  ;;  %v3147_v55 = vadd.f32 %v3146_v9, %v3084_v1  ;;  %v2762_v40 = vadd.f32 %v12443_v32, %v2566_v4  ;;  %v9090_v33 = vadd.f32 %v2892_v3, %v2760_v26  ;;  %v2894_v15 = vmul.f32 %v8814_v14, %v2826_v37  ;;  %v5100_v9 = vld [vmem:[#allocation2 + $0x1e9] sm:$0xff] }
 0x349   :  { %v3018_v18 = vadd.f32 %v3017_v28, %v9081_v48  ;;  %v9095_v61 = vmul.f32 %v5099_v49, %v12342_v21  ;;  %v2569_v53 = vadd.f32 %v12446_v41, %v12445_v58  ;;  %v3086_v6 = vmul.f32 %v9058_v20, %v9058_v20  ;;  %v12449_v28 = vld [vmem:[#allocation114_spill] sm:$0xff]  ;;  %v12450_v21 = vld [vmem:[#allocation97_spill] sm:$0xff] }
 0x34a   :  { %12444 = vst [vmem:[#allocation158_spill] sm:$0xff] %v9090_v33  ;;  %v3148_v1 = vadd.f32 %v3147_v55, %v3085_v46  ;;  %v2700_v4 = vmul.f32 %v5100_v9, %v12401_v39  ;;  %v2763_v26 = vadd.f32 %v2699_v62, %v2567_v5  ;;  %v9103_v37 = vadd.f32 %v12447_v43, %v2761_v56  ;;  %v2828_v32 = vld [vmem:[#allocation2 + $0x1ea] sm:$0xff]  ;;  %v12452_v62 = vld [vmem:[#allocation140_spill] sm:$0xff] }
 0x34b   :  { %v3019_v3 = vadd.f32 %v3018_v18, %v9090_v33  ;;  %v2570_v19 = vadd.f32 %v12450_v21, %v12449_v28  ;;  %v2701_v44 = vmul.f32 %v5101_v17, %v12401_v39  ;;  %v3087_v49 = vmul.f32 %v9069_v7, %v9069_v7  ;;  %v12453_v18 = vld [vmem:[#allocation126_spill] sm:$0xff]  ;;  %v5102_v9 = vld [vmem:[#allocation2 + $0x201] sm:$0xff] }
 0x34c   :  { %12448 = vst [vmem:[#allocation159_spill] sm:$0xff] %v9103_v37  ;;  %v3149_v46 = vadd.f32 %v3148_v1, %v3086_v6  ;;  %v2764_v55 = vadd.f32 %v2700_v4, %v2568_v50  ;;  %v2895_v58 = vmul.f32 %v8814_v14, %v2827_v25  ;;  %v9112_v5 = vadd.f32 %v2894_v15, %v2762_v40  ;;  %v2829_v28 = vld [vmem:[#allocation2 + $0x1fa] sm:$0xff]  ;;  %v12456_v25 = vld [vmem:[#allocation21_spill] sm:$0xff]  ;;  %v5103_v4 = vld [vmem:[#allocation2 + $0x211] sm:$0xff] }
 0x34d   :  { %v3020_v56 = vadd.f32 %v3019_v3, %v9103_v37  ;;  %v2571_v41 = vadd.f32 %v12453_v18, %v12452_v62  ;;  %v2702_v43 = vmul.f32 %v5102_v9, %v12401_v39  ;;  %v3088_v21 = vmul.f32 %v9081_v48, %v9081_v48  ;;  %v12455_v15 = vld [vmem:[#allocation115_spill] sm:$0xff]  ;;  %v2830_v62 = vld [vmem:[#allocation2 + $0x202] sm:$0xff] }
 0x34e   :  { %12451 = vst [vmem:[#allocation160_spill] sm:$0xff] %v9112_v5  ;;  %v3150_v17 = vadd.f32 %v3149_v46, %v3087_v49  ;;  %v2765_v7 = vadd.f32 %v2701_v44, %v2569_v53  ;;  %v2896_v50 = vmul.f32 %v8814_v14, %v2828_v32  ;;  %v9121_v6 = vadd.f32 %v2895_v58, %v2763_v26  ;;  %v12458_v32 = vld [vmem:[#allocation142_spill] sm:$0xff]  ;;  %v12459_v49 = vld [vmem:[#allocation131_spill] sm:$0xff] }
 0x34f   :  { %v3021_v40 = vadd.f32 %v3020_v56, %v9112_v5  ;;  %v2572_v1 = vadd.f32 %v12456_v25, %v12455_v15  ;;  %v2703_v3 = vmul.f32 %v5103_v4, %v12401_v39  ;;  %v3089_v18 = vmul.f32 %v9090_v33, %v9090_v33  ;;  %v5104_v58 = vld [vmem:[#allocation2 + $0x219] sm:$0xff] }
 0x350   :  { %12454 = vst [vmem:[#allocation161_spill] sm:$0xff] %v9121_v6  ;;  %v3151_v9 = vadd.f32 %v3150_v17, %v3088_v21  ;;  %v2766_v48 = vadd.f32 %v2702_v43, %v2570_v19  ;;  %v2897_v53 = vmul.f32 %v8814_v14, %v2829_v28  ;;  %v9130_v44 = vadd.f32 %v2896_v50, %v2764_v55  ;;  %v2831_v15 = vld [vmem:[#allocation2 + $0x212] sm:$0xff]  ;;  %v12461_v28 = vld [vmem:[#allocation57_spill] sm:$0xff] }
 0x351   :  { %v3022_v26 = vadd.f32 %v3021_v40, %v9121_v6  ;;  %v2573_v46 = vadd.f32 %v12459_v49, %v12458_v32  ;;  %v2704_v56 = vmul.f32 %v5104_v58, %v12401_v39  ;;  %v3090_v25 = vmul.f32 %v9103_v37, %v9103_v37  ;;  %v12462_v21 = vld [vmem:[#allocation22_spill] sm:$0xff]  ;;  %v2832_v32 = vld [vmem:[#allocation2 + $0x21a] sm:$0xff] }
 0x352   :  { %12457 = vst [vmem:[#allocation143_spill] sm:$0xff] %v9130_v44  ;;  %v3152_v4 = vadd.f32 %v3151_v9, %v3089_v18  ;;  %v2767_v33 = vadd.f32 %v2703_v3, %v2571_v41  ;;  %v2898_v19 = vmul.f32 %v8814_v14, %v2830_v62  ;;  %v9139_v43 = vadd.f32 %v2897_v53, %v2765_v7  ;;  %v5105_v50 = vld [vmem:[#allocation2 + $0x229] sm:$0xff]  ;;  %v12465_v18 = vld [vmem:[#allocation136_spill] sm:$0xff]  ;;  %v5106_v53 = vld [vmem:[#allocation2 + $0x231] sm:$0xff] }
 0x353   :  { %v3023_v55 = vadd.f32 %v3022_v26, %v9130_v44  ;;  %v2574_v17 = vadd.f32 %v12462_v21, %v12461_v28  ;;  %v2705_v40 = vmul.f32 %v5105_v50, %v12401_v39  ;;  %v3091_v49 = vmul.f32 %v9112_v5, %v9112_v5  ;;  %v12464_v62 = vld [vmem:[#allocation58_spill] sm:$0xff] }
 0x354   :  { %12460 = vst [vmem:[#allocation165_spill] sm:$0xff] %v9139_v43  ;;  %v3153_v58 = vadd.f32 %v3152_v4, %v3090_v25  ;;  %v2768_v37 = vadd.f32 %v2704_v56, %v2572_v1  ;;  %v2899_v41 = vmul.f32 %v8814_v14, %v2831_v15  ;;  %v9148_v3 = vadd.f32 %v2898_v19, %v2766_v48  ;;  %v2833_v28 = vld [vmem:[#allocation2 + $0x22a] sm:$0xff]  ;;  %v12467_v15 = vld [vmem:[#allocation60_spill] sm:$0xff] }
 0x355   :  { %v3024_v7 = vadd.f32 %v3023_v55, %v9139_v43  ;;  %v2575_v9 = vadd.f32 %v12465_v18, %v12464_v62  ;;  %v2706_v26 = vmul.f32 %v5106_v53, %v12401_v39  ;;  %v3092_v21 = vmul.f32 %v9121_v6, %v9121_v6  ;;  %v12468_v25 = vld [vmem:[#allocation25_spill] sm:$0xff]  ;;  %v2834_v62 = vld [vmem:[#allocation2 + $0x232] sm:$0xff] }
 0x356   :  { %12463 = vst [vmem:[#allocation166_spill] sm:$0xff] %v9148_v3  ;;  %v3154_v50 = vadd.f32 %v3153_v58, %v3091_v49  ;;  %v2769_v5 = vadd.f32 %v2705_v40, %v2573_v46  ;;  %v2900_v1 = vmul.f32 %v8814_v14, %v2832_v32  ;;  %v9157_v56 = vadd.f32 %v2899_v41, %v2767_v33  ;;  %v5107_v19 = vld [vmem:[#allocation2 + $0x241] sm:$0xff]  ;;  %v5108_v41 = vld [vmem:[#allocation2 + $0x249] sm:$0xff] }
 0x357   :  { %v3025_v48 = vadd.f32 %v3024_v7, %v9148_v3  ;;  %v2576_v4 = vadd.f32 %v12468_v25, %v12467_v15  ;;  %v2707_v55 = vmul.f32 %v5107_v19, %v12401_v39  ;;  %v3093_v18 = vmul.f32 %v9130_v44, %v9130_v44  ;;  %v12470_v32 = vld [vmem:[#allocation61_spill] sm:$0xff] }
 0x358   :  { %12466 = vst [vmem:[#allocation170_spill] sm:$0xff] %v9157_v56  ;;  %v3155_v53 = vadd.f32 %v3154_v50, %v3092_v21  ;;  %v2770_v6 = vadd.f32 %v2706_v26, %v2574_v17  ;;  %v2901_v46 = vmul.f32 %v8814_v14, %v2833_v28  ;;  %v9166_v40 = vadd.f32 %v2900_v1, %v2768_v37  ;;  %v12471_v49 = vld [vmem:[#allocation29_spill] sm:$0xff]  ;;  %v12473_v28 = vld [vmem:[#allocation62_spill] sm:$0xff]  ;;  %v5109_v1 = vld [vmem:[#allocation2 + $0x259] sm:$0xff] }
 0x359   :  { %v3026_v33 = vadd.f32 %v3025_v48, %v9157_v56  ;;  %v2577_v58 = vadd.f32 %v12471_v49, %v12470_v32  ;;  %v2708_v7 = vmul.f32 %v5108_v41, %v12401_v39  ;;  %v2835_v15 = vld [vmem:[#allocation2 + $0x242] sm:$0xff]  ;;  %v3094_v25 = vmul.f32 %v9139_v43, %v9139_v43  ;;  %v2836_v32 = vld [vmem:[#allocation2 + $0x24a] sm:$0xff] }
 0x35a   :  { %12469 = vst [vmem:[#allocation171_spill] sm:$0xff] %v9166_v40  ;;  %v3156_v19 = vadd.f32 %v3155_v53, %v3093_v18  ;;  %v2771_v44 = vadd.f32 %v2707_v55, %v2575_v9  ;;  %v2902_v17 = vmul.f32 %v8814_v14, %v2834_v62  ;;  %v9175_v26 = vadd.f32 %v2901_v46, %v2769_v5  ;;  %v12474_v21 = vld [vmem:[#allocation109_spill] sm:$0xff] }
 0x35b   :  { %v3027_v37 = vadd.f32 %v3026_v33, %v9166_v40  ;;  %v2578_v50 = vadd.f32 %v12474_v21, %v12473_v28  ;;  %v2709_v48 = vmul.f32 %v5109_v1, %v12401_v39  ;;  %v3095_v49 = vmul.f32 %v9148_v3, %v9148_v3  ;;  %v12475_v62 = vld [vmem:[#allocation137_spill] sm:$0xff]  ;;  %v2837_v28 = vld [vmem:[#allocation2 + $0x25a] sm:$0xff] }
 0x35c   :  { %12472 = vst [vmem:[#allocation172_spill] sm:$0xff] %v9175_v26  ;;  %v3157_v41 = vadd.f32 %v3156_v19, %v3094_v25  ;;  %v2772_v43 = vadd.f32 %v2708_v7, %v2576_v4  ;;  %v2903_v9 = vmul.f32 %v8814_v14, %v2835_v15  ;;  %v9184_v55 = vadd.f32 %v2902_v17, %v2770_v6  ;;  %v12476_v18 = vld [vmem:[#allocation141_spill] sm:$0xff]  ;;  %v12477_v15 = vld [vmem:[#allocation63_spill] sm:$0xff]  ;;  %v12478_v25 = vld [vmem:[#allocation28_spill] sm:$0xff] }
 0x35d   :  { %v3028_v5 = vadd.f32 %v3027_v37, %v9175_v26  ;;  %v2579_v53 = vadd.f32 %v12476_v18, %v12475_v62  ;;  %v5110_v46 = vld [vmem:[#allocation2 + $0x261] sm:$0xff]  ;;  %v3096_v21 = vmul.f32 %v9157_v56, %v9157_v56  ;;  %v2773_v3 = vadd.f32 %v2709_v48, %v2577_v58  ;;  %v5111_v17 = vld [vmem:[#allocation2 + $0x271] sm:$0xff] }
 0x35e   :  { %v2710_v33 = vmul.f32 %v5110_v46, %v12401_v39  ;;  %v3158_v1 = vadd.f32 %v3157_v41, %v3095_v49  ;;  %v2904_v4 = vmul.f32 %v8814_v14, %v2836_v32  ;;  %v9193_v7 = vadd.f32 %v2903_v9, %v2771_v44  ;;  %v2838_v62 = vld [vmem:[#allocation2 + $0x262] sm:$0xff]  ;;  %v12479_v32 = vld [vmem:[#allocation66_spill] sm:$0xff]  ;;  %v12480_v49 = vld [vmem:[#allocation31_spill] sm:$0xff] }
 0x35f   :  { %v3029_v6 = vadd.f32 %v3028_v5, %v9184_v55  ;;  %v2580_v19 = vadd.f32 %v12478_v25, %v12477_v15  ;;  %v2711_v37 = vmul.f32 %v5111_v17, %v12401_v39  ;;  %v3097_v18 = vmul.f32 %v9166_v40, %v9166_v40  ;;  %v5112_v9 = vld [vmem:[#allocation2 + $0x279] sm:$0xff] }
 0x360   :  { %v3159_v46 = vadd.f32 %v3158_v1, %v3096_v21  ;;  %v2774_v56 = vadd.f32 %v2710_v33, %v2578_v50  ;;  %v2905_v58 = vmul.f32 %v8814_v14, %v2837_v28  ;;  %v9202_v48 = vadd.f32 %v2904_v4, %v2772_v43  ;;  %v2839_v15 = vld [vmem:[#allocation2 + $0x272] sm:$0xff]  ;;  %v12483_v21 = vld [vmem:[#allocation144_spill] sm:$0xff]  ;;  %v5113_v4 = vld [vmem:[#allocation2 + $0x289] sm:$0xff] }
 0x361   :  { %v3030_v44 = vadd.f32 %v3029_v6, %v9193_v7  ;;  %v2581_v41 = vadd.f32 %v12480_v49, %v12479_v32  ;;  %v2712_v5 = vmul.f32 %v5112_v9, %v12401_v39  ;;  %v3098_v25 = vmul.f32 %v9175_v26, %v9175_v26  ;;  %v12482_v28 = vld [vmem:[#allocation67_spill] sm:$0xff] }
 0x362   :  { %v3160_v17 = vadd.f32 %v3159_v46, %v3097_v18  ;;  %v2775_v40 = vadd.f32 %v2711_v37, %v2579_v53  ;;  %v2906_v50 = vmul.f32 %v8814_v14, %v2838_v62  ;;  %v9211_v33 = vadd.f32 %v2905_v58, %v2773_v3  ;;  %v2840_v32 = vld [vmem:[#allocation2 + $0x27a] sm:$0xff]  ;;  %v12486_v18 = vld [vmem:[#allocation30_spill] sm:$0xff] }
 0x363   :  { %v3031_v43 = vadd.f32 %v3030_v44, %v9202_v48  ;;  %v2582_v1 = vadd.f32 %v12483_v21, %v12482_v28  ;;  %v2713_v6 = vmul.f32 %v5113_v4, %v12401_v39  ;;  %v3099_v49 = vmul.f32 %v9184_v55, %v9184_v55  ;;  %v12485_v62 = vld [vmem:[#allocation68_spill] sm:$0xff]  ;;  %v5114_v58 = vld [vmem:[#allocation2 + $0x291] sm:$0xff] }
 0x364   :  { %12481 = vst [vmem:[#allocation150_spill] sm:$0xff] %v9211_v33  ;;  %v3161_v9 = vadd.f32 %v3160_v17, %v3098_v25  ;;  %v2776_v26 = vadd.f32 %v2712_v5, %v2580_v19  ;;  %v2907_v53 = vmul.f32 %v8814_v14, %v2839_v15  ;;  %v9220_v37 = vadd.f32 %v2906_v50, %v2774_v56  ;;  %v2841_v28 = vld [vmem:[#allocation2 + $0x28a] sm:$0xff]  ;;  %v5115_v50 = vld [vmem:[#allocation2 + $0x2a1] sm:$0xff] }
 0x365   :  { %v3032_v3 = vadd.f32 %v3031_v43, %v9211_v33  ;;  %v2583_v46 = vadd.f32 %v12486_v18, %v12485_v62  ;;  %v2714_v44 = vmul.f32 %v5114_v58, %v12401_v39  ;;  %v3100_v21 = vmul.f32 %v9193_v7, %v9193_v7  ;;  %v12488_v15 = vld [vmem:[#allocation69_spill] sm:$0xff]  ;;  %v2842_v62 = vld [vmem:[#allocation2 + $0x292] sm:$0xff] }
 0x366   :  { %12484 = vst [vmem:[#allocation175_spill] sm:$0xff] %v9220_v37  ;;  %v3162_v4 = vadd.f32 %v3161_v9, %v3099_v49  ;;  %v2777_v20 = vadd.f32 %v2713_v6, %v2581_v41  ;;  %v2908_v19 = vmul.f32 %v8814_v14, %v2840_v32  ;;  %v9229_v5 = vadd.f32 %v2907_v53, %v2775_v40  ;;  %v12489_v25 = vld [vmem:[#allocation145_spill] sm:$0xff]  ;;  %v12491_v32 = vld [vmem:[#allocation74_spill] sm:$0xff]  ;;  %v12492_v49 = vld [vmem:[#allocation32_spill] sm:$0xff] }
 0x367   :  { %v3033_v56 = vadd.f32 %v3032_v3, %v9220_v37  ;;  %v2584_v17 = vadd.f32 %v12489_v25, %v12488_v15  ;;  %v2715_v43 = vmul.f32 %v5115_v50, %v12401_v39  ;;  %v3101_v18 = vmul.f32 %v9202_v48, %v9202_v48  ;;  %v5116_v53 = vld [vmem:[#allocation2 + $0x2a9] sm:$0xff] }
 0x368   :  { %12487 = vst [vmem:[#allocation180_spill] sm:$0xff] %v9229_v5  ;;  %v3163_v58 = vadd.f32 %v3162_v4, %v3100_v21  ;;  %v2778_v38 = vadd.f32 %v2714_v44, %v2582_v1  ;;  %v2909_v41 = vmul.f32 %v8814_v14, %v2841_v28  ;;  %v9238_v6 = vadd.f32 %v2908_v19, %v2776_v26  ;;  %v2843_v15 = vld [vmem:[#allocation2 + $0x2a2] sm:$0xff]  ;;  %v12494_v28 = vld [vmem:[#allocation75_spill] sm:$0xff] }
 0x369   :  { %v3034_v40 = vadd.f32 %v3033_v56, %v9229_v5  ;;  %v2585_v9 = vadd.f32 %v12492_v49, %v12491_v32  ;;  %v2716_v3 = vmul.f32 %v5116_v53, %v12401_v39  ;;  %v3102_v25 = vmul.f32 %v9211_v33, %v9211_v33  ;;  %v12495_v21 = vld [vmem:[#allocation147_spill] sm:$0xff]  ;;  %v2844_v32 = vld [vmem:[#allocation2 + $0x2aa] sm:$0xff] }
 0x36a   :  { %12490 = vst [vmem:[#allocation181_spill] sm:$0xff] %v9238_v6  ;;  %v3164_v50 = vadd.f32 %v3163_v58, %v3101_v18  ;;  %v2779_v10 = vadd.f32 %v2715_v43, %v2583_v46  ;;  %v2910_v1 = vmul.f32 %v8814_v14, %v2842_v62  ;;  %v9247_v44 = vadd.f32 %v2909_v41, %v2777_v20  ;;  %v5117_v19 = vld [vmem:[#allocation2 + $0x2b9] sm:$0xff]  ;;  %v5118_v41 = vld [vmem:[#allocation2 + $0x2c1] sm:$0xff] }
 0x36b   :  { %v3035_v26 = vadd.f32 %v3034_v40, %v9238_v6  ;;  %v2586_v4 = vadd.f32 %v12495_v21, %v12494_v28  ;;  %v2717_v56 = vmul.f32 %v5117_v19, %v12401_v39  ;;  %v3103_v49 = vmul.f32 %v9220_v37, %v9220_v37  ;;  %v12497_v62 = vld [vmem:[#allocation76_spill] sm:$0xff] }
 0x36c   :  { %12493 = vst [vmem:[#allocation182_spill] sm:$0xff] %v9247_v44  ;;  %v3165_v53 = vadd.f32 %v3164_v50, %v3102_v25  ;;  %v2780_v33 = vadd.f32 %v2716_v3, %v2584_v17  ;;  %v2911_v46 = vmul.f32 %v8814_v14, %v2843_v15  ;;  %v9256_v43 = vadd.f32 %v2910_v1, %v2778_v38  ;;  %v12498_v18 = vld [vmem:[#allocation148_spill] sm:$0xff]  ;;  %v12499_v15 = vld [vmem:[#allocation77_spill] sm:$0xff]  ;;  %v5119_v1 = vld [vmem:[#allocation2 + $0x2d1] sm:$0xff] }
 0x36d   :  { %v3036_v20 = vadd.f32 %v3035_v26, %v9247_v44  ;;  %v2587_v58 = vadd.f32 %v12498_v18, %v12497_v62  ;;  %v2718_v40 = vmul.f32 %v5118_v41, %v12401_v39  ;;  %v2845_v28 = vld [vmem:[#allocation2 + $0x2ba] sm:$0xff]  ;;  %v3104_v21 = vmul.f32 %v9229_v5, %v9229_v5  ;;  %v12500_v25 = vld [vmem:[#allocation149_spill] sm:$0xff] }
 0x36e   :  { %12496 = vst [vmem:[#allocation123_spill] sm:$0xff] %v9256_v43  ;;  %v3166_v19 = vadd.f32 %v3165_v53, %v3103_v49  ;;  %v2781_v37 = vadd.f32 %v2717_v56, %v2585_v9  ;;  %v2912_v17 = vmul.f32 %v8814_v14, %v2844_v32  ;;  %v9265_v3 = vadd.f32 %v2911_v46, %v2779_v10  ;;  %v2846_v62 = vld [vmem:[#allocation2 + $0x2c2] sm:$0xff]  ;;  %v5120_v46 = vld [vmem:[#allocation2 + $0x2d9] sm:$0xff] }
 0x36f   :  { %v3037_v38 = vadd.f32 %v3036_v20, %v9256_v43  ;;  %v2588_v50 = vadd.f32 %v12500_v25, %v12499_v15  ;;  %v2719_v26 = vmul.f32 %v5119_v1, %v12401_v39  ;;  %v3105_v18 = vmul.f32 %v9238_v6, %v9238_v6  ;;  %v12501_v32 = vld [vmem:[#allocation80_spill] sm:$0xff]  ;;  %v2847_v15 = vld [vmem:[#allocation2 + $0x2d2] sm:$0xff] }
 0x370   :  { %v3167_v41 = vadd.f32 %v3166_v19, %v3104_v21  ;;  %v2782_v5 = vadd.f32 %v2718_v40, %v2586_v4  ;;  %v2913_v9 = vmul.f32 %v8814_v14, %v2845_v28  ;;  %v9274_v56 = vadd.f32 %v2912_v17, %v2780_v33  ;;  %v12502_v49 = vld [vmem:[#allocation120_spill] sm:$0xff]  ;;  %v12503_v28 = vld [vmem:[#allocation81_spill] sm:$0xff]  ;;  %v12504_v21 = vld [vmem:[#allocation151_spill] sm:$0xff] }
 0x371   :  { %v3038_v10 = vadd.f32 %v3037_v38, %v9265_v3  ;;  %v2589_v53 = vadd.f32 %v12502_v49, %v12501_v32  ;;  %v2720_v20 = vmul.f32 %v5120_v46, %v12401_v39  ;;  %v3106_v25 = vmul.f32 %v9247_v44, %v9247_v44  ;;  %v5121_v17 = vld [vmem:[#allocation2 + $0x2e9] sm:$0xff]  ;;  %v2848_v32 = vld [vmem:[#allocation2 + $0x2da] sm:$0xff] }
 0x372   :  { %v3168_v1 = vadd.f32 %v3167_v41, %v3105_v18  ;;  %v2783_v6 = vadd.f32 %v2719_v26, %v2587_v58  ;;  %v2914_v4 = vmul.f32 %v8814_v14, %v2846_v62  ;;  %v9283_v40 = vadd.f32 %v2913_v9, %v2781_v37  ;;  %v12506_v62 = vld [vmem:[#allocation82_spill] sm:$0xff]  ;;  %v12507_v18 = vld [vmem:[#allocation153_spill] sm:$0xff] }
 0x373   :  { %v3039_v33 = vadd.f32 %v3038_v10, %v9274_v56  ;;  %v2590_v19 = vadd.f32 %v12504_v21, %v12503_v28  ;;  %v2721_v38 = vmul.f32 %v5121_v17, %v12401_v39  ;;  %v3107_v49 = vmul.f32 %v9256_v43, %v9256_v43  ;;  %v5122_v9 = vld [vmem:[#allocation2 + $0x2f1] sm:$0xff] }
 0x374   :  { %v3169_v46 = vadd.f32 %v3168_v1, %v3106_v25  ;;  %v2784_v44 = vadd.f32 %v2720_v20, %v2588_v50  ;;  %v2915_v58 = vmul.f32 %v8814_v14, %v2847_v15  ;;  %v9292_v26 = vadd.f32 %v2914_v4, %v2782_v5  ;;  %v2849_v28 = vld [vmem:[#allocation2 + $0x2ea] sm:$0xff]  ;;  %v12509_v15 = vld [vmem:[#allocation83_spill] sm:$0xff]  ;;  %v5123_v1 = vld [vmem:[#allocation2 + $0x301] sm:$0xff] }
 0x375   :  { %v3040_v37 = vadd.f32 %v3039_v33, %v9283_v40  ;;  %v2591_v41 = vadd.f32 %v12507_v18, %v12506_v62  ;;  %v2722_v10 = vmul.f32 %v5122_v9, %v12401_v39  ;;  %v3108_v21 = vmul.f32 %v9265_v3, %v9265_v3  ;;  %v2850_v33 = vld [vmem:[#allocation2 + $0x2f2] sm:$0xff] }
 0x376   :  { %12505 = vst [vmem:[#allocation127_spill] sm:$0xff] %v9292_v26  ;;  %v3170_v17 = vadd.f32 %v3169_v46, %v3107_v49  ;;  %v2785_v43 = vadd.f32 %v2721_v38, %v2589_v53  ;;  %v2916_v50 = vmul.f32 %v8814_v14, %v2848_v32  ;;  %v9301_v20 = vadd.f32 %v2915_v58, %v2783_v6  ;;  %v12511_v32 = vld [vmem:[#allocation86_spill] sm:$0xff] }
 0x377   :  { %v3041_v5 = vadd.f32 %v3040_v37, %v9292_v26  ;;  %v2592_v25 = vadd.f32 %v9062_v24, %v12509_v15  ;;  %v2723_v4 = vmul.f32 %v5123_v1, %v12401_v39  ;;  %v3109_v62 = vmul.f32 %v9274_v56, %v9274_v56  ;;  %v5124_v46 = vld [vmem:[#allocation2 + $0x309] sm:$0xff] }
 0x378   :  { %12508 = vst [vmem:[#allocation128_spill] sm:$0xff] %v9301_v20  ;;  %v3171_v18 = vadd.f32 %v3170_v17, %v3108_v21  ;;  %v2786_v9 = vadd.f32 %v2722_v10, %v2590_v19  ;;  %v2917_v53 = vmul.f32 %v8814_v14, %v2849_v28  ;;  %v9310_v38 = vadd.f32 %v2916_v50, %v2784_v44  ;;  %v12513_v10 = vld [vmem:[#allocation87_spill] sm:$0xff] }
 0x379   :  { %v3042_v6 = vadd.f32 %v3041_v5, %v9301_v20  ;;  %v2593_v49 = vadd.f32 %v9073_v12, %v12511_v32  ;;  %v2724_v24 = vmul.f32 %v5124_v46, %v12401_v39  ;;  %v3110_v58 = vmul.f32 %v9283_v40, %v9283_v40  ;;  %v5125_v17 = vld [vmem:[#allocation2 + $0x319] sm:$0xff]  ;;  %v5126_v32 = vld [vmem:[#allocation2 + $0x302] sm:$0xff] }
 0x37a   :  { %12510 = vst [vmem:[#allocation133_spill] sm:$0xff] %v9310_v38  ;;  %v3172_v37 = vadd.f32 %v3171_v18, %v3109_v62  ;;  %v2787_v15 = vadd.f32 %v2723_v4, %v2591_v41  ;;  %v2918_v21 = vmul.f32 %v8814_v14, %v2850_v33  ;;  %v9319_v19 = vadd.f32 %v2917_v53, %v2785_v43  ;;  %v12514_v33 = vld [vmem:[#allocation71_spill] sm:$0xff]  ;;  %v12515_v62 = vld [vmem:[#allocation72_spill] sm:$0xff] }
 0x37b   :  { %v3043_v44 = vadd.f32 %v3042_v6, %v9310_v38  ;;  %v2594_v28 = vadd.f32 %v9095_v61, %v12513_v10  ;;  %v2725_v12 = vmul.f32 %v5125_v17, %v12401_v39  ;;  %v3111_v50 = vmul.f32 %v9292_v26, %v9292_v26  ;;  %v5127_v53 = vld [vmem:[#allocation2 + $0x321] sm:$0xff]  ;;  %v12518_v17 = vld [vmem:[#allocation78_spill] sm:$0xff] }
 0x37c   :  { %12512 = vst [vmem:[#allocation134_spill] sm:$0xff] %v9319_v19  ;;  %v3173_v5 = vadd.f32 %v3172_v37, %v3110_v58  ;;  %v2788_v1 = vadd.f32 %v2724_v24, %v2592_v25  ;;  %v2919_v41 = vmul.f32 %v5126_v32, %v8814_v14  ;;  %v9328_v4 = vadd.f32 %v2918_v21, %v2786_v9  ;;  %v5128_v58 = vld [vmem:[#allocation2 + $0x30a] sm:$0xff]  ;;  %v12517_v21 = vld [vmem:[#allocation64_spill] sm:$0xff] }
 0x37d   :  { %v3044_v43 = vadd.f32 %v3043_v44, %v9319_v19  ;;  %v2595_v18 = vadd.f32 %v12515_v62, %v12514_v33  ;;  %v2726_v61 = vmul.f32 %v5127_v53, %v12401_v39  ;;  %v3112_v6 = vmul.f32 %v9301_v20, %v9301_v20  ;;  %v12516_v37 = vld [vmem:[#allocation70_spill] sm:$0xff]  ;;  %v12519_v32 = vld [vmem:[#allocation73_spill] sm:$0xff] }
 0x37e   :  { %v3174_v46 = vadd.f32 %v3173_v5, %v3111_v50  ;;  %v2789_v10 = vadd.f32 %v2725_v12, %v2593_v49  ;;  %v2920_v25 = vmul.f32 %v5128_v58, %v8814_v14  ;;  %v9337_v24 = vadd.f32 %v2919_v41, %v2787_v15  ;;  %v2662_v20 = vld [vmem:[#allocation2 + $0x351] sm:$0xff]  ;;  %v5129_v49 = vld [vmem:[#allocation2 + $0x31a] sm:$0xff]  ;;  %v5130_v14 = vld [vmem:[%s11107_s4 + $0x8] ss:$0 sm:$0xff] }
 0x37f   :  { %v3045_v9 = vadd.f32 %v3044_v43, %v9328_v4  ;;  %v2401_v44 = vadd.f32 %v12517_v21, %v12516_v37  ;;  %v2596_v33 = vadd.f32 %v12519_v32, %v12518_v17  ;;  %v3113_v62 = vmul.f32 %v9310_v38, %v9310_v38  ;;  %v12520_v41 = vld [vmem:[#allocation79_spill] sm:$0xff]  ;;  %v2857_v21 = vld [vmem:[#allocation2 + $0x34a] sm:$0xff]  ;;  %v5132_v17 = vld [vmem:[#allocation2 + $0x322] sm:$0xff] }
 0x380   :  { %v3175_v53 = vadd.f32 %v3174_v46, %v3112_v6  ;;  %v2790_v50 = vadd.f32 %v2726_v61, %v2594_v28  ;;  %v2921_v15 = vmul.f32 %v5130_v14, %v5129_v49  ;;  %v9349_v12 = vadd.f32 %v2920_v25, %v2788_v1  ;;  %v5131_v58 = vld [vmem:[#allocation2 + $0x339] sm:$0xff]  ;;  %v12521_v61 = vld [vmem:[#allocation65_spill] sm:$0xff] }
 0x381   :  { %v3046_v5 = vadd.f32 %v3045_v9, %v9337_v24  ;;  %v2597_v43 = vadd.f32 %v12433_v2, %v12520_v41  ;;  %v2728_v37 = vmul.f32 %v5131_v58, %v12401_v39  ;;  %v3114_v6 = vmul.f32 %v9319_v19, %v9319_v19  ;;  %v5133_v9 = vld [vmem:[#allocation2 + $0x332] sm:$0xff] }
 0x382   :  { %v3176_v28 = vadd.f32 %v3175_v53, %v3113_v62  ;;  %v2791_v46 = vadd.f32 %v12521_v61, %v2595_v18  ;;  %v2922_v32 = vmul.f32 %v5132_v17, %v5130_v14  ;;  %v9358_v49 = vadd.f32 %v2921_v15, %v2789_v10  ;;  %v2858_v61 = vld [vmem:[#allocation2 + $0x352] sm:$0xff]  ;;  %v5134_v17 = vld [vmem:[#allocation2 + $0x33a] sm:$0xff] }
 0x383   :  { %v3047_v1 = vadd.f32 %v3046_v5, %v9349_v12  ;;  %v2730_v25 = vmul.f32 %v12401_v39, %v2662_v20  ;;  %v2923_v41 = vmul.f32 %v5133_v9, %v5130_v14  ;;  %v3115_v58 = vmul.f32 %v9328_v4, %v9328_v4  ;;  %v12522_v39 = vld [vmem:[#allocation41_spill] sm:$0xff] }
 0x384   :  { %v3177_v38 = vadd.f32 %v3176_v28, %v3114_v6  ;;  %v2598_v19 = vadd.f32 %v12433_v2, %v2401_v44  ;;  %v2792_v62 = vadd.f32 %v2728_v37, %v2596_v33  ;;  %v9365_v53 = vadd.f32 %v2922_v32, %v2790_v50 }
 0x385   :  { %v3048_v18 = vadd.f32 %v3047_v1, %v9358_v49  ;;  %v2925_v10 = vmul.f32 %v5130_v14, %v2857_v21  ;;  %v3116_v15 = vmul.f32 %v9337_v24, %v9337_v24  ;;  %v2793_v20 = vadd.f32 %v12522_v39, %v2597_v43 }
 0x386   :  { %v3178_v5 = vadd.f32 %v3177_v38, %v3115_v58  ;;  %v2924_v9 = vmul.f32 %v5134_v17, %v5130_v14  ;;  %v9371_v26 = vadd.f32 %v2923_v41, %v2791_v46  ;;  %v3117_v2 = vmul.f32 %v9349_v12, %v9349_v12 }
 0x387   :  { %v3049_v6 = vadd.f32 %v3048_v18, %v9365_v53  ;;  %v2794_v33 = vadd.f32 %v2730_v25, %v2598_v19  ;;  %v2926_v50 = vmul.f32 %v5130_v14, %v2858_v61  ;;  %v3118_v38 = vmul.f32 %v9358_v49, %v9358_v49 }
 0x388   :  { %v3179_v44 = vadd.f32 %v3178_v5, %v3116_v15  ;;  %v9376_v37 = vadd.f32 %v2924_v9, %v2792_v62  ;;  %v9381_v21 = vadd.f32 %v2925_v10, %v2793_v20  ;;  %v3119_v32 = vmul.f32 %v9365_v53, %v9365_v53 }
 0x389   :  { %v3050_v28 = vadd.f32 %v3049_v6, %v9371_v26  ;;  %v9386_v41 = vadd.f32 %v2926_v50, %v2794_v33  ;;  %v3120_v14 = vmul.f32 %v9371_v26, %v9371_v26 }
 0x38a   :  { %v3180_v43 = vadd.f32 %v3179_v44, %v3117_v2  ;;  %v3121_v62 = vmul.f32 %v9376_v37, %v9376_v37  ;;  %v3122_v10 = vmul.f32 %v9381_v21, %v9381_v21 }
 0x38b   :  { %v3051_v46 = vadd.f32 %v3050_v28, %v9376_v37  ;;  %v3123_v39 = vmul.f32 %v9386_v41, %v9386_v41 }
 0x38c   :  { %v3181_v1 = vadd.f32 %v3180_v43, %v3118_v38 }
 0x38d   :  { %v3052_v19 = vadd.f32 %v3051_v46, %v9381_v21 }
 0x38e   :  { %v3182_v25 = vadd.f32 %v3181_v1, %v3119_v32 }
 0x38f   :  { %v3053_v58 = vadd.f32 %v3052_v19, %v9386_v41 }
 0x390   :  { %v3183_v18 = vadd.f32 %v3182_v25, %v3120_v14 }
 0x391   :  { %v3054_v61 = vrot.slane %v3053_v58, 4 }
 0x392   :  { %v3184_v15 = vadd.f32 %v3183_v18, %v3121_v62  ;;  %v3198_v62 = vld [vmem:[%s11108_s5] sm:$0x1] }
 0x393   :  { %v3055_v5 = vadd.f32 %v3054_v61, %v3053_v58 }
 0x394   :  { %v3185_v20 = vadd.f32 %v3184_v15, %v3122_v10  ;;  %v3202_v10 = vld [vmem:[%s11109_s6] sm:$0x1] }
 0x395   :  { %v3056_v17 = vrot.slane %v3055_v5, 2 }
 0x396   :  { %v3186_v9 = vadd.f32 %v3185_v20, %v3123_v39 }
 0x397   :  { %v3057_v6 = vadd.f32 %v3056_v17, %v3055_v5  ;;  %v12523_v5 = vld [vmem:[#allocation37_spill] sm:$0xff] }
 0x398   :  { %v3187_v2 = vrot.slane %v3186_v9, 4 }
 0x399   :  { %v3058_v44 = vrot.slane %v3057_v6, 1 }
 0x39a   :  { %v3188_v33 = vadd.f32 %v3187_v2, %v3186_v9 }
 0x39b   :  { %v3059_v50 = vadd.f32 %v3058_v44, %v3057_v6 }
 0x39c   :  { %v3189_v28 = vrot.slane %v3188_v33, 2 }
 0x39d   :  { %v3193_v43 = vmul.f32 0.001953125, %v3059_v50 }
 0x39e   :  { %v3190_v38 = vadd.f32 %v3189_v28, %v3188_v33 }
 0x39f   :  { %v3195_v1 = vmul.f32 %v3193_v43, %v3193_v43 }
 0x3a0   :  { %v3191_v46 = vrot.slane %v3190_v38, 1 }
 0x3a2   :  { %v3192_v32 = vadd.f32 %v3191_v46, %v3190_v38 }
 0x3a4   :  { %v3194_v19 = vmul.f32 0.001953125, %v3192_v32 }
 0x3a6   :  { %v3196_v14 = vsub.f32 %v3194_v19, %v3195_v1 }
 0x3a8   :  { %v3197_v25 = vmax.f32 %v3196_v14, 0.0 }
 0x3aa   :  { %v3199_v58 = vadd.f32 1e-05, %v3197_v25 }
 0x3ac   :  { %5060 = vrsqrt.f32 %v3199_v58 }
 0x3b9   :  { %v5061_v18 = vpop.eup %5060 }
 0x3ba   :  { %v3201_v61 = vmul.f32 %v5061_v18, %v3198_v62 }
 0x3bc   :  { %v3203_v15 = vmul.f32 %v3201_v61, %v3193_v43  ;;  %v9405_v39 = vrot.slane %v3201_v61, %v12523_v5 }
 0x3be   :  { %v3204_v20 = vsub.f32 %v3202_v10, %v3203_v15  ;;  %v3211_v17 = vmul.f32 %v9405_v39, %v8826_v57  ;;  %v3217_v6 = vmul.f32 %v9405_v39, %v8881_v23  ;;  %v3212_v2 = vmul.f32 %v9405_v39, %v8828_v31 }
 0x3bf   :  { %v3218_v44 = vmul.f32 %v9405_v39, %v8888_v47  ;;  %v3213_v33 = vmul.f32 %v9405_v39, %v8834_v8  ;;  %v3219_v50 = vmul.f32 %v9405_v39, %v8896_v29  ;;  %v3214_v57 = vmul.f32 %v9405_v39, %v8855_v59 }
 0x3c0   :  { %v9410_v9 = vrot.slane %v3204_v20, %v12523_v5  ;;  %v3220_v28 = vmul.f32 %v9405_v39, %v8905_v16  ;;  %v3215_v29 = vmul.f32 %v9405_v39, %v8865_v51  ;;  %v3221_v59 = vmul.f32 %v9405_v39, %v8914_v13 }
 0x3c1   :  { %v3216_v51 = vmul.f32 %v9405_v39, %v8874_v36  ;;  %v3222_v13 = vmul.f32 %v9405_v39, %v8923_v42  ;;  %v3223_v61 = vmul.f32 %v9405_v39, %v8932_v45  ;;  %v3224_v36 = vmul.f32 %v9405_v39, %v8941_v22 }
 0x3c2   :  { %v3281_v23 = vadd.f32 %v9410_v9, %v3211_v17  ;;  %v3287_v38 = vadd.f32 %v9410_v9, %v3217_v6  ;;  %v3282_v31 = vadd.f32 %v9410_v9, %v3212_v2  ;;  %v3288_v47 = vadd.f32 %v9410_v9, %v3218_v44 }
 0x3c3   :  { %v3283_v43 = vadd.f32 %v9410_v9, %v3213_v33  ;;  %v3289_v8 = vadd.f32 %v9410_v9, %v3219_v50  ;;  %v3284_v19 = vadd.f32 %v9410_v9, %v3214_v57  ;;  %v3290_v14 = vadd.f32 %v9410_v9, %v3220_v28 }
 0x3c4   :  { %v3345_v46 = vmax.f32 %v3281_v23, 0.0  ;;  %v3351_v16 = vmax.f32 %v3287_v38, 0.0  ;;  %v3346_v32 = vmax.f32 %v3282_v31, 0.0  ;;  %v3352_v1 = vmax.f32 %v3288_v47, 0.0 }
 0x3c5   :  { %v3347_v25 = vmax.f32 %v3283_v43, 0.0  ;;  %v3353_v58 = vmax.f32 %v3289_v8, 0.0  ;;  %v3285_v62 = vadd.f32 %v9410_v9, %v3215_v29  ;;  %v3291_v18 = vadd.f32 %v9410_v9, %v3221_v59 }
 0x3c6   :  { %4924 = vmatprep.mubr.f32.mxu0 %v3345_v46  ;;  %4933 = vmatprep.mubr.f32.mxu1 %v3351_v16  ;;  %v3348_v10 = vmax.f32 %v3284_v19, 0.0  ;;  %v3354_v15 = vmax.f32 %v3290_v14, 0.0  ;;  %v3286_v20 = vadd.f32 %v9410_v9, %v3216_v51  ;;  %v3292_v17 = vadd.f32 %v9410_v9, %v3222_v13 }
 0x3c7   :  { %4925 = vmatmul.mubr.f32.vlgmr.msra.gmra.mxu0 %v3346_v32  ;;  %4934 = vmatmul.mubr.f32.vlgmr.msra.gmra.mxu1 %v3352_v1  ;;  %v3349_v6 = vmax.f32 %v3285_v62, 0.0  ;;  %v3355_v2 = vmax.f32 %v3291_v18, 0.0  ;;  %v3293_v44 = vadd.f32 %v9410_v9, %v3223_v61  ;;  %v3225_v42 = vmul.f32 %v9405_v39, %v8950_v63  ;;  %v12525_v61 = vld [vmem:[#allocation132_spill] sm:$0xff] }
 0x3c8   :  { %4927 = vmatprep.mubr.f32.mxu0 %v3347_v25  ;;  %4936 = vmatprep.mubr.f32.mxu1 %v3353_v58  ;;  %v3350_v45 = vmax.f32 %v3286_v20, 0.0  ;;  %v3356_v33 = vmax.f32 %v3292_v17, 0.0  ;;  %v3294_v50 = vadd.f32 %v9410_v9, %v3224_v36  ;;  %v3226_v23 = vmul.f32 %v9405_v39, %v8959_v35  ;;  %v12527_v20 = vld [vmem:[#allocation180_spill] sm:$0xff]  ;;  %v12529_v36 = vld [vmem:[#allocation155_spill] sm:$0xff] }
 0x3c9   :  { %v3357_v57 = vmax.f32 %v3293_v44, 0.0  ;;  %v3295_v28 = vadd.f32 %v9410_v9, %v3225_v42  ;;  %v3227_v22 = vmul.f32 %v9405_v39, %v8968_v54  ;;  %v3228_v43 = vmul.f32 %v9405_v39, %v8977_v0 }
 0x3ca   :  { %v3358_v38 = vmax.f32 %v3294_v50, 0.0  ;;  %v3296_v31 = vadd.f32 %v9410_v9, %v3226_v23  ;;  %v3229_v8 = vmul.f32 %v9405_v39, %v8986_v11  ;;  %v3230_v35 = vmul.f32 %v9405_v39, %v8995_v27  ;;  %v12530_v50 = vld [vmem:[#allocation181_spill] sm:$0xff] }
 0x3cb   :  { %4928 = vmatmul.mubr.f32.gmra.mxu0 %v3348_v10  ;;  %4937 = vmatmul.mubr.f32.gmra.mxu1 %v3354_v15  ;;  %v3359_v63 = vmax.f32 %v3295_v28, 0.0  ;;  %v3297_v47 = vadd.f32 %v9410_v9, %v3227_v22  ;;  %v3298_v54 = vadd.f32 %v9410_v9, %v3228_v43  ;;  %v3231_v59 = vmul.f32 %v9405_v39, %v9004_v34  ;;  %v12526_v15 = vld [vmem:[#allocation175_spill] sm:$0xff]  ;;  %v12531_v22 = vld [vmem:[#allocation156_spill] sm:$0xff] }
 0x3cc   :  { %4930 = vmatprep.mubr.f32.mxu0 %v3349_v6  ;;  %4939 = vmatprep.mubr.f32.mxu1 %v3355_v2  ;;  %v3360_v29 = vmax.f32 %v3296_v31, 0.0  ;;  %v3299_v16 = vadd.f32 %v9410_v9, %v3229_v8  ;;  %v3300_v32 = vadd.f32 %v9410_v9, %v3230_v35  ;;  %v3232_v11 = vmul.f32 %v9405_v39, %v9013_v52  ;;  %v12528_v6 = vld [vmem:[#allocation154_spill] sm:$0xff]  ;;  %v12533_v35 = vld [vmem:[#allocation123_spill] sm:$0xff] }
 0x3cd   :  { %v3361_v46 = vmax.f32 %v3297_v47, 0.0  ;;  %v3301_v0 = vadd.f32 %v9410_v9, %v3231_v59  ;;  %v3362_v1 = vmax.f32 %v3298_v54, 0.0  ;;  %v3233_v14 = vmul.f32 %v9405_v39, %v9022_v60  ;;  %v12524_v60 = vld [vmem:[#allocation150_spill] sm:$0xff] }
 0x3ce   :  { %v3363_v27 = vmax.f32 %v3299_v16, 0.0  ;;  %v3364_v19 = vmax.f32 %v3300_v32, 0.0  ;;  %v3302_v25 = vadd.f32 %v9410_v9, %v3232_v11  ;;  %v3234_v58 = vmul.f32 %v9405_v39, %v9031_v30  ;;  %v12532_v31 = vld [vmem:[#allocation182_spill] sm:$0xff]  ;;  %v12534_v32 = vld [vmem:[#allocation157_spill] sm:$0xff]  ;;  %v12535_v11 = vld [vmem:[#allocation127_spill] sm:$0xff] }
 0x3cf   :  { %4931 = vmatmul.mubr.f32.gmra.mxu0 %v3350_v45  ;;  %4940 = vmatmul.mubr.f32.gmra.mxu1 %v3356_v33  ;;  %v3365_v34 = vmax.f32 %v3301_v0, 0.0  ;;  %v3250_v62 = vmul.f32 %v9405_v39, %v9184_v55  ;;  %v3303_v18 = vadd.f32 %v9410_v9, %v3233_v14  ;;  %v3251_v52 = vmul.f32 %v9405_v39, %v9193_v7 }
 0x3d0   :  { %4942 = vmatprep.mubr.f32.mxu1 %v3357_v57  ;;  %v3252_v51 = vmul.f32 %v9405_v39, %v9202_v48  ;;  %v3253_v13 = vmul.f32 %v9405_v39, %v12524_v60  ;;  %v3235_v10 = vmul.f32 %v9405_v39, %v12525_v61  ;;  %v3254_v55 = vmul.f32 %v9405_v39, %v12526_v15 }
 0x3d1   :  { %v9492_v30 = vadd.f32 %v9410_v9, %v3250_v62  ;;  %v3255_v17 = vmul.f32 %v9405_v39, %v12527_v20  ;;  %v3236_v7 = vmul.f32 %v9405_v39, %v12528_v6  ;;  %v9501_v48 = vadd.f32 %v9410_v9, %v3251_v52 }
 0x3d2   :  { %v9504_v2 = vadd.f32 %v9410_v9, %v3252_v51  ;;  %v9507_v44 = vadd.f32 %v9410_v9, %v3253_v13  ;;  %v3237_v42 = vmul.f32 %v9405_v39, %v12529_v36  ;;  %v9512_v45 = vadd.f32 %v9410_v9, %v3254_v55  ;;  %v12538_v13 = vld [vmem:[#allocation134_spill] sm:$0xff] }
 0x3d3   :  { %4943 = vmatmul.mubr.f32.gmra.mxu1 %v3358_v38  ;;  %v9515_v33 = vadd.f32 %v9410_v9, %v3255_v17  ;;  %v3256_v57 = vmul.f32 %v9405_v39, %v12530_v50  ;;  %v3366_v28 = vmax.f32 %v3302_v25, 0.0  ;;  %v3304_v23 = vadd.f32 %v9410_v9, %v3234_v58 }
 0x3d4   :  { %4945 = vmatprep.mubr.f32.mxu1 %v3359_v63  ;;  %v3238_v38 = vmul.f32 %v9405_v39, %v12531_v22  ;;  %v3257_v63 = vmul.f32 %v9405_v39, %v12532_v31  ;;  %v3367_v47 = vmax.f32 %v3303_v18, 0.0  ;;  %v3305_v43 = vadd.f32 %v9410_v9, %v3235_v10  ;;  %v12537_v18 = vld [vmem:[#allocation133_spill] sm:$0xff]  ;;  %v12540_v31 = vld [vmem:[#allocation159_spill] sm:$0xff] }
 0x3d5   :  { %v9526_v8 = vadd.f32 %v9410_v9, %v3256_v57  ;;  %v3259_v59 = vmul.f32 %v9405_v39, %v9265_v3  ;;  %v3261_v16 = vmul.f32 %v9405_v39, %v9283_v40  ;;  %v3239_v0 = vmul.f32 %v9405_v39, %v12534_v32  ;;  %v12541_v32 = vld [vmem:[#allocation160_spill] sm:$0xff] }
 0x3d6   :  { %v9531_v54 = vadd.f32 %v9410_v9, %v3257_v63  ;;  %v3306_v3 = vadd.f32 %v9410_v9, %v3236_v7  ;;  %v3368_v25 = vmax.f32 %v3304_v23, 0.0  ;;  %v3264_v52 = vmul.f32 %v9405_v39, %v12537_v18 }
 0x3d7   :  { %4946 = vmatmul.mubr.f32.gmra.mxu1 %v3360_v29  ;;  %v3258_v29 = vmul.f32 %v9405_v39, %v12533_v35  ;;  %v3369_v51 = vmax.f32 %v3305_v43, 0.0  ;;  %v3307_v60 = vadd.f32 %v9410_v9, %v3237_v42  ;;  %v3265_v61 = vmul.f32 %v9405_v39, %v12538_v13 }
 0x3d8   :  { %4948 = vmatprep.mubr.f32.mxu1 %v3361_v46  ;;  %v3260_v46 = vmul.f32 %v9405_v39, %v9274_v56  ;;  %v9550_v56 = vadd.f32 %v9410_v9, %v3259_v59  ;;  %v3308_v10 = vadd.f32 %v9410_v9, %v3238_v38  ;;  %v3309_v15 = vadd.f32 %v9410_v9, %v3239_v0 }
 0x3d9   :  { %v9572_v55 = vadd.f32 %v9410_v9, %v3264_v52  ;;  %v3266_v20 = vmul.f32 %v9405_v39, %v9328_v4  ;;  %v9577_v17 = vadd.f32 %v9410_v9, %v3265_v61  ;;  %v3267_v6 = vmul.f32 %v9405_v39, %v9337_v24  ;;  %v12544_v52 = vld [vmem:[#allocation165_spill] sm:$0xff] }
 0x3da   :  { %v9553_v40 = vadd.f32 %v9410_v9, %v3260_v46  ;;  %v3268_v7 = vmul.f32 %v9405_v39, %v9349_v12  ;;  %v3269_v36 = vmul.f32 %v9405_v39, %v9358_v49  ;;  %v3370_v42 = vmax.f32 %v3306_v3, 0.0  ;;  %v12539_v49 = vld [vmem:[#allocation158_spill] sm:$0xff] }
 0x3db   :  { %4949 = vmatmul.mubr.f32.gmra.mxu1 %v3362_v1  ;;  %v9542_v1 = vadd.f32 %v9410_v9, %v3258_v29  ;;  %v9586_v50 = vadd.f32 %v9410_v9, %v3266_v20  ;;  %v3270_v4 = vmul.f32 %v9405_v39, %v9365_v53  ;;  %v3271_v57 = vmul.f32 %v9405_v39, %v9371_v26 }
 0x3dc   :  { %4951 = vmatprep.mubr.f32.mxu1 %v3363_v27  ;;  %v3262_v27 = vmul.f32 %v9405_v39, %v12535_v11  ;;  %v9593_v23 = vadd.f32 %v9410_v9, %v3267_v6  ;;  %v9596_v24 = vadd.f32 %v9410_v9, %v3268_v7  ;;  %v9599_v12 = vadd.f32 %v9410_v9, %v3269_v36  ;;  %v12542_v11 = vld [vmem:[#allocation161_spill] sm:$0xff]  ;;  %v12546_v6 = vld [vmem:[#allocation170_spill] sm:$0xff] }
 0x3dd   :  { %v3240_v22 = vmul.f32 %v9405_v39, %v12539_v49  ;;  %v9604_v38 = vadd.f32 %v9410_v9, %v3270_v4  ;;  %v9607_v53 = vadd.f32 %v9410_v9, %v3271_v57  ;;  %v3272_v26 = vmul.f32 %v9405_v39, %v9376_v37 }
 0x3de   :  { %v9559_v58 = vadd.f32 %v9410_v9, %v3262_v27  ;;  %v3241_v63 = vmul.f32 %v9405_v39, %v12540_v31  ;;  %v3372_v43 = vmax.f32 %v3308_v10, 0.0  ;;  %v3274_v59 = vmul.f32 %v9405_v39, %v9386_v41 }
 0x3df   :  { %4952 = vmatmul.mubr.f32.gmra.mxu1 %v3364_v19  ;;  %v12536_v19 = vld [vmem:[#allocation128_spill] sm:$0xff]  ;;  %v3310_v35 = vadd.f32 %v9410_v9, %v3240_v22  ;;  %v9617_v29 = vadd.f32 %v9410_v9, %v3272_v26  ;;  %v3373_v46 = vmax.f32 %v3309_v15, 0.0  ;;  %v3242_v0 = vmul.f32 %v9405_v39, %v12541_v32  ;;  %v12545_v15 = vld [vmem:[#allocation166_spill] sm:$0xff] }
 0x3e0   :  { %4954 = vmatprep.mubr.f32.mxu1 %v3365_v34  ;;  %v3263_v14 = vmul.f32 %v9405_v39, %v12536_v19  ;;  %v9556_v34 = vadd.f32 %v9410_v9, %v3261_v16  ;;  %v3311_v16 = vadd.f32 %v9410_v9, %v3241_v63  ;;  %v3243_v27 = vmul.f32 %v9405_v39, %v12542_v11  ;;  %v12548_v22 = vld [vmem:[#allocation172_spill] sm:$0xff] }
 0x3e1   :  { %v3374_v19 = vmax.f32 %v3310_v35, 0.0  ;;  %v3312_v41 = vadd.f32 %v9410_v9, %v3242_v0  ;;  %v3246_v20 = vmul.f32 %v9405_v39, %v12545_v15  ;;  %v3247_v7 = vmul.f32 %v9405_v39, %v12546_v6 }
 0x3e2   :  { %v9562_v62 = vadd.f32 %v9410_v9, %v3263_v14  ;;  %v3375_v14 = vmax.f32 %v3311_v16, 0.0  ;;  %v3313_v3 = vadd.f32 %v9410_v9, %v3243_v27  ;;  %v3249_v26 = vmul.f32 %v9405_v39, %v12548_v22 }
 0x3e3   :  { %4955 = vmatmul.mubr.f32.gmra.mxu1 %v3366_v28  ;;  %v3371_v28 = vmax.f32 %v3307_v60, 0.0  ;;  %v3376_v60 = vmax.f32 %v3312_v41, 0.0  ;;  %v3317_v57 = vadd.f32 %v9410_v9, %v3247_v7  ;;  %v3385_v16 = vmax.f32 %v9501_v48, 0.0 }
 0x3e4   :  { %4957 = vmatprep.mubr.f32.mxu1 %v3367_v47  ;;  %v3273_v47 = vmul.f32 %v9405_v39, %v9381_v21  ;;  %v9628_v21 = vadd.f32 %v9410_v9, %v3274_v59  ;;  %v3377_v61 = vmax.f32 %v3313_v3, 0.0  ;;  %v3387_v32 = vmax.f32 %v9507_v44, 0.0 }
 0x3e5   :  { %v3389_v0 = vmax.f32 %v9515_v33, 0.0  ;;  %v3390_v11 = vmax.f32 %v9526_v8, 0.0  ;;  %v3392_v48 = vmax.f32 %v9542_v1, 0.0  ;;  %v3394_v44 = vmax.f32 %v9553_v40, 0.0 }
 0x3e6   :  { %v9623_v37 = vadd.f32 %v9410_v9, %v3273_v47  ;;  %v3381_v47 = vmax.f32 %v3317_v57, 0.0  ;;  %v3396_v33 = vmax.f32 %v9559_v58, 0.0  ;;  %v3397_v8 = vmax.f32 %v9562_v62, 0.0 }
 0x3e7   :  { %4958 = vmatmul.mubr.f32.gmra.mxu1 %v3368_v25  ;;  %v12543_v25 = vld [vmem:[#allocation143_spill] sm:$0xff]  ;;  %v3399_v1 = vmax.f32 %v9577_v17, 0.0  ;;  %v3401_v40 = vmax.f32 %v9593_v23, 0.0  ;;  %v3403_v58 = vmax.f32 %v9599_v12, 0.0  ;;  %v3404_v62 = vmax.f32 %v9604_v38, 0.0 }
 0x3e8   :  { %4960 = vmatprep.mubr.f32.mxu1 %v3369_v51  ;;  %v3244_v18 = vmul.f32 %v9405_v39, %v12543_v25  ;;  %v3245_v51 = vmul.f32 %v9405_v39, %v12544_v52  ;;  %v3406_v17 = vmax.f32 %v9617_v29, 0.0  ;;  %v3408_v23 = vmax.f32 %v9628_v21, 0.0 }
 0x3ea   :  { %v3314_v13 = vadd.f32 %v9410_v9, %v3244_v18  ;;  %v3315_v10 = vadd.f32 %v9410_v9, %v3245_v51 }
 0x3eb   :  { %4961 = vmatmul.mubr.f32.gmra.mxu1 %v3370_v42  ;;  %v3316_v42 = vadd.f32 %v9410_v9, %v3246_v20 }
 0x3ec   :  { %4963 = vmatprep.mubr.f32.mxu1 %v3371_v28  ;;  %v3378_v36 = vmax.f32 %v3314_v13, 0.0  ;;  %v3379_v4 = vmax.f32 %v3315_v10, 0.0  ;;  %v12547_v28 = vld [vmem:[#allocation171_spill] sm:$0xff] }
 0x3ed   :  { %v3248_v49 = vmul.f32 %v9405_v39, %v12547_v28  ;;  %v3380_v31 = vmax.f32 %v3316_v42, 0.0  ;;  %v3386_v39 = vmax.f32 %v9504_v2, 0.0  ;;  %v3393_v2 = vmax.f32 %v9550_v56, 0.0 }
 0x3ee   :  { %v3400_v56 = vmax.f32 %v9586_v50, 0.0  ;;  %v3407_v50 = vmax.f32 %v9623_v37, 0.0 }
 0x3ef   :  { %4964 = vmatmul.mubr.f32.gmra.mxu1 %v3372_v43  ;;  %v3318_v63 = vadd.f32 %v9410_v9, %v3248_v49  ;;  %v3319_v43 = vadd.f32 %v9410_v9, %v3249_v26  ;;  %v3388_v9 = vmax.f32 %v9512_v45, 0.0  ;;  %v3395_v45 = vmax.f32 %v9556_v34, 0.0 }
 0x3f0   :  { %4966 = vmatprep.mubr.f32.mxu1 %v3373_v46  ;;  %v3384_v46 = vmax.f32 %v9492_v30, 0.0  ;;  %v3391_v30 = vmax.f32 %v9531_v54, 0.0  ;;  %v3398_v54 = vmax.f32 %v9572_v55, 0.0  ;;  %v3402_v34 = vmax.f32 %v9596_v24, 0.0 }
 0x3f1   :  { %v3382_v35 = vmax.f32 %v3318_v63, 0.0  ;;  %v3383_v59 = vmax.f32 %v3319_v43, 0.0  ;;  %v3405_v55 = vmax.f32 %v9607_v53, 0.0 }
 0x3f3   :  { %4967 = vmatmul.mubr.f32.gmra.mxu1 %v3374_v19 }
 0x3f4   :  { %4969 = vmatprep.mubr.f32.mxu1 %v3375_v14 }
 0x3f7   :  { %4970 = vmatmul.mubr.f32.gmra.mxu1 %v3376_v60 }
 0x3f8   :  { %4972 = vmatprep.mubr.f32.mxu1 %v3377_v61 }
 0x3fb   :  { %4973 = vmatmul.mubr.f32.gmra.mxu1 %v3378_v36 }
 0x3fc   :  { %4975 = vmatprep.mubr.f32.mxu1 %v3379_v4 }
 0x3ff   :  { %4976 = vmatmul.mubr.f32.gmra.mxu1 %v3380_v31 }
 0x400   :  { %4978 = vmatprep.mubr.f32.mxu1 %v3381_v47 }
 0x403   :  { %4979 = vmatmul.mubr.f32.gmra.mxu1 %v3382_v35 }
 0x404   :  { %4981 = vmatprep.mubr.f32.mxu1 %v3383_v59 }
 0x407   :  { %4982 = vmatmul.mubr.f32.gmra.mxu1 %v3384_v46 }
 0x408   :  { %4984 = vmatprep.mubr.f32.mxu1 %v3385_v16 }
 0x40b   :  { %4985 = vmatmul.mubr.f32.gmra.mxu1 %v3386_v39 }
 0x40c   :  { %4987 = vmatprep.mubr.f32.mxu1 %v3387_v32 }
 0x40f   :  { %4988 = vmatmul.mubr.f32.gmra.mxu1 %v3388_v9 }
 0x410   :  { %4990 = vmatprep.mubr.f32.mxu1 %v3389_v0 }
 0x413   :  { %4991 = vmatmul.mubr.f32.gmra.mxu1 %v3390_v11 }
 0x414   :  { %4993 = vmatprep.mubr.f32.mxu1 %v3391_v30 }
 0x417   :  { %4994 = vmatmul.mubr.f32.gmra.mxu1 %v3392_v48 }
 0x418   :  { %4996 = vmatprep.mubr.f32.mxu1 %v3393_v2 }
 0x41b   :  { %4997 = vmatmul.mubr.f32.gmra.mxu1 %v3394_v44 }
 0x41c   :  { %4999 = vmatprep.mubr.f32.mxu1 %v3395_v45 }
 0x41f   :  { %5000 = vmatmul.mubr.f32.gmra.mxu1 %v3396_v33 }
 0x420   :  { %5002 = vmatprep.mubr.f32.mxu1 %v3397_v8 }
 0x423   :  { %5003 = vmatmul.mubr.f32.gmra.mxu1 %v3398_v54 }
 0x424   :  { %5005 = vmatprep.mubr.f32.mxu1 %v3399_v1 }
 0x427   :  { %5006 = vmatmul.mubr.f32.gmra.mxu1 %v3400_v56 }
 0x428   :  { %5008 = vmatprep.mubr.f32.mxu1 %v3401_v40 }
 0x42b   :  { %5009 = vmatmul.mubr.f32.gmra.mxu1 %v3402_v34 }
 0x42c   :  { %5011 = vmatprep.mubr.f32.mxu1 %v3403_v58 }
 0x42f   :  { %5012 = vmatmul.mubr.f32.gmra.mxu1 %v3404_v62 }
 0x430   :  { %5014 = vmatprep.mubr.f32.mxu1 %v3405_v55 }
 0x433   :  { %5015 = vmatmul.mubr.f32.gmra.mxu1 %v3406_v17 }
 0x434   :  { %5017 = vmatprep.mubr.f32.mxu1 %v3407_v50 }
 0x437   :  { %5018 = vmatmul.mubr.f32.gmra.mxu1 %v3408_v23 }
 0x487   :  { %v9677_v24 = vpop.f32.mrf.mxu0  ;;  %v9679_v12 = vpop.f32.mrf.mxu1 }
 0x488   :  { %v3944_v53 = vmul.f32 %v9677_v24, %v9677_v24  ;;  %v3811_v41 = vsel %vm119_vm0, %v9677_v24, 0.0  ;;  %v3950_v32 = vmul.f32 %v9679_v12, %v9679_v12  ;;  %v3823_v2 = vsel %vm119_vm0, %v9679_v12, 0.0 }
 0x489   :  { %v9681_v27 = vpop.f32.mrf.mxu0  ;;  %v9683_v38 = vpop.f32.mrf.mxu1 }
 0x48a   :  { %v3810_v29 = vsel %vm119_vm0, %v9681_v27, 0.0  ;;  %v3943_v37 = vmul.f32 %v9681_v27, %v9681_v27  ;;  %v4008_v52 = vsel %vm119_vm0, %v3944_v53, 0.0  ;;  %v3949_v43 = vmul.f32 %v9683_v38, %v9683_v38 }
 0x48b   :  { %v9691_v19 = vpop.f32.mrf.mxu0  ;;  %v9693_v21 = vpop.f32.mrf.mxu1  ;;  %v3812_v3 = vadd.f32 %v3811_v41, %v3810_v29  ;;  %v3821_v9 = vsel %vm119_vm0, %v9683_v38, 0.0  ;;  %v4020_v1 = vsel %vm119_vm0, %v3950_v32, 0.0 }
 0x48c   :  { %v4007_v14 = vsel %vm119_vm0, %v3943_v37, 0.0  ;;  %v3946_v51 = vmul.f32 %v9691_v19, %v9691_v19  ;;  %v3815_v6 = vsel %vm119_vm0, %v9691_v19, 0.0  ;;  %v4018_v44 = vsel %vm119_vm0, %v3949_v43, 0.0 }
 0x48d   :  { %v9698_v25 = vpop.f32.mrf.mxu0  ;;  %v9700_v18 = vpop.f32.mrf.mxu1  ;;  %v4009_v61 = vadd.f32 %v4008_v52, %v4007_v14  ;;  %v3952_v56 = vmul.f32 %v9693_v21, %v9693_v21  ;;  %v3827_v55 = vsel %vm119_vm0, %v9693_v21, 0.0 }
 0x48e   :  { %v3813_v60 = vsel %vm119_vm0, %v9698_v25, 0.0  ;;  %v3945_v13 = vmul.f32 %v9698_v25, %v9698_v25  ;;  %v4012_v28 = vsel %vm119_vm0, %v3946_v51, 0.0  ;;  %v3951_v45 = vmul.f32 %v9700_v18, %v9700_v18 }
 0x48f   :  { %v3814_v10 = vadd.f32 %v3813_v60, %v3812_v3  ;;  %v9709_v15 = vpop.f32.mrf.mxu0  ;;  %v9711_v20 = vpop.f32.mrf.mxu1  ;;  %v3825_v40 = vsel %vm119_vm0, %v9700_v18, 0.0  ;;  %v4024_v37 = vsel %vm119_vm0, %v3952_v56, 0.0 }
 0x490   :  { %v4010_v7 = vsel %vm119_vm0, %v3945_v13, 0.0  ;;  %v3948_v49 = vmul.f32 %v9709_v15, %v9709_v15  ;;  %v3819_v35 = vsel %vm119_vm0, %v9709_v15, 0.0  ;;  %v4022_v17 = vsel %vm119_vm0, %v3951_v45, 0.0 }
 0x491   :  { %v4011_v36 = vadd.f32 %v4010_v7, %v4009_v61  ;;  %v9716_v42 = vpop.f32.mrf.mxu0  ;;  %v3816_v4 = vadd.f32 %v3815_v6, %v3814_v10  ;;  %v9718_v57 = vpop.f32.mrf.mxu1  ;;  %v3954_v41 = vmul.f32 %v9711_v20, %v9711_v20  ;;  %v3831_v60 = vsel %vm119_vm0, %v9711_v20, 0.0 }
 0x492   :  { %v3817_v22 = vsel %vm119_vm0, %v9716_v42, 0.0  ;;  %v3947_v26 = vmul.f32 %v9716_v42, %v9716_v42  ;;  %v4016_v0 = vsel %vm119_vm0, %v3948_v49, 0.0  ;;  %v3953_v50 = vmul.f32 %v9718_v57, %v9718_v57 }
 0x493   :  { %v3818_v31 = vadd.f32 %v3817_v22, %v3816_v4  ;;  %v4013_v63 = vadd.f32 %v4012_v28, %v4011_v36  ;;  %v9727_v47 = vpop.f32.mrf.mxu1  ;;  %v3829_v14 = vsel %vm119_vm0, %v9718_v57, 0.0  ;;  %v4028_v36 = vsel %vm119_vm0, %v3954_v41, 0.0 }
 0x494   :  { %v4014_v59 = vsel %vm119_vm0, %v3947_v26, 0.0  ;;  %v4026_v13 = vsel %vm119_vm0, %v3953_v50, 0.0  ;;  %v3956_v4 = vmul.f32 %v9727_v47, %v9727_v47 }
 0x495   :  { %v3820_v46 = vadd.f32 %v3819_v35, %v3818_v31  ;;  %v4015_v16 = vadd.f32 %v4014_v59, %v4013_v63  ;;  %v9734_v39 = vpop.f32.mrf.mxu1  ;;  %v3835_v31 = vsel %vm119_vm0, %v9727_v47, 0.0 }
 0x496   :  { %v3955_v61 = vmul.f32 %v9734_v39, %v9734_v39  ;;  %v3833_v28 = vsel %vm119_vm0, %v9734_v39, 0.0 }
 0x497   :  { %v3822_v11 = vadd.f32 %v3821_v9, %v3820_v46  ;;  %v4017_v30 = vadd.f32 %v4016_v0, %v4015_v16  ;;  %v9741_v48 = vpop.f32.mrf.mxu1  ;;  %v4032_v16 = vsel %vm119_vm0, %v3956_v4, 0.0 }
 0x498   :  { %v4030_v63 = vsel %vm119_vm0, %v3955_v61, 0.0  ;;  %v3958_v32 = vmul.f32 %v9741_v48, %v9741_v48 }
 0x499   :  { %v3824_v33 = vadd.f32 %v3823_v2, %v3822_v11  ;;  %v4019_v8 = vadd.f32 %v4018_v44, %v4017_v30  ;;  %v9748_v54 = vpop.f32.mrf.mxu1  ;;  %v3839_v2 = vsel %vm119_vm0, %v9741_v48, 0.0 }
 0x49a   :  { %v3957_v43 = vmul.f32 %v9748_v54, %v9748_v54  ;;  %v3837_v9 = vsel %vm119_vm0, %v9748_v54, 0.0  ;;  %v4036_v56 = vsel %vm119_vm0, %v3958_v32, 0.0 }
 0x49b   :  { %v4021_v34 = vadd.f32 %v4020_v1, %v4019_v8  ;;  %v3826_v58 = vadd.f32 %v3825_v40, %v3824_v33  ;;  %v9755_v62 = vpop.f32.mrf.mxu1 }
 0x49c   :  { %v4034_v44 = vsel %vm119_vm0, %v3957_v43, 0.0  ;;  %v3960_v40 = vmul.f32 %v9755_v62, %v9755_v62  ;;  %v3843_v50 = vsel %vm119_vm0, %v9755_v62, 0.0 }
 0x49d   :  { %v3828_v23 = vadd.f32 %v3827_v55, %v3826_v58  ;;  %v4023_v53 = vadd.f32 %v4022_v17, %v4021_v34  ;;  %v9762_v29 = vpop.f32.mrf.mxu1 }
 0x49e   :  { %v3959_v45 = vmul.f32 %v9762_v29, %v9762_v29  ;;  %v3841_v34 = vsel %vm119_vm0, %v9762_v29, 0.0 }
 0x49f   :  { %v3830_v3 = vadd.f32 %v3829_v14, %v3828_v23  ;;  %v4025_v52 = vadd.f32 %v4024_v37, %v4023_v53  ;;  %v9769_v51 = vpop.f32.mrf.mxu1 }
 0x4a0   :  { %v4038_v23 = vsel %vm119_vm0, %v3959_v45, 0.0 }
 0x4a1   :  { %v4027_v10 = vadd.f32 %v4026_v13, %v4025_v52  ;;  %v3832_v6 = vadd.f32 %v3831_v60, %v3830_v3  ;;  %v9776_v7 = vpop.f32.mrf.mxu1  ;;  %v4040_v3 = vsel %vm119_vm0, %v3960_v40, 0.0  ;;  %v3962_v52 = vmul.f32 %v9769_v51, %v9769_v51 }
 0x4a2   :  { %v3961_v53 = vmul.f32 %v9776_v7, %v9776_v7  ;;  %v3845_v60 = vsel %vm119_vm0, %v9776_v7, 0.0 }
 0x4a3   :  { %v3834_v49 = vadd.f32 %v3833_v28, %v3832_v6  ;;  %v4029_v22 = vadd.f32 %v4028_v36, %v4027_v10  ;;  %v9783_v26 = vpop.f32.mrf.mxu1  ;;  %v3847_v6 = vsel %vm119_vm0, %v9769_v51, 0.0 }
 0x4a4   :  { %v4042_v36 = vsel %vm119_vm0, %v3961_v53, 0.0  ;;  %v3851_v32 = vsel %vm119_vm0, %v9783_v26, 0.0 }
 0x4a5   :  { %v4031_v35 = vadd.f32 %v4030_v63, %v4029_v22  ;;  %v3836_v59 = vadd.f32 %v3835_v31, %v3834_v49  ;;  %v9790_v46 = vpop.f32.mrf.mxu1  ;;  %v4044_v31 = vsel %vm119_vm0, %v3962_v52, 0.0  ;;  %v3964_v63 = vmul.f32 %v9783_v26, %v9783_v26 }
 0x4a6   :  { %v3963_v4 = vmul.f32 %v9790_v46, %v9790_v46  ;;  %v3849_v43 = vsel %vm119_vm0, %v9790_v46, 0.0 }
 0x4a7   :  { %v3838_v0 = vadd.f32 %v3837_v9, %v3836_v59  ;;  %v4033_v11 = vadd.f32 %v4032_v16, %v4031_v35  ;;  %v9797_v30 = vpop.f32.mrf.mxu1  ;;  %v4048_v45 = vsel %vm119_vm0, %v3964_v63, 0.0 }
 0x4a8   :  { %v4046_v9 = vsel %vm119_vm0, %v3963_v4, 0.0 }
 0x4a9   :  { %v4035_v33 = vadd.f32 %v4034_v44, %v4033_v11  ;;  %v3840_v8 = vadd.f32 %v3839_v2, %v3838_v0  ;;  %v9804_v1 = vpop.f32.mrf.mxu1 }
 0x4aa   :  { %v3965_v0 = vmul.f32 %v9804_v1, %v9804_v1 }
 0x4ab   :  { %v3842_v58 = vadd.f32 %v3841_v34, %v3840_v8  ;;  %v4037_v55 = vadd.f32 %v4036_v56, %v4035_v33  ;;  %v9811_v17 = vpop.f32.mrf.mxu1  ;;  %v3966_v33 = vmul.f32 %v9797_v30, %v9797_v30  ;;  %v3853_v8 = vsel %vm119_vm0, %v9804_v1, 0.0 }
 0x4ad   :  { %v4039_v37 = vadd.f32 %v4038_v23, %v4037_v55  ;;  %v3844_v41 = vadd.f32 %v3843_v50, %v3842_v58  ;;  %v9818_v14 = vpop.f32.mrf.mxu1  ;;  %v3855_v58 = vsel %vm119_vm0, %v9797_v30, 0.0  ;;  %v4050_v55 = vsel %vm119_vm0, %v3965_v0, 0.0 }
 0x4ae   :  { %v3967_v50 = vmul.f32 %v9818_v14, %v9818_v14  ;;  %v3857_v52 = vsel %vm119_vm0, %v9818_v14, 0.0 }
 0x4af   :  { %v3846_v13 = vadd.f32 %v3845_v60, %v3844_v41  ;;  %v4041_v61 = vadd.f32 %v4040_v3, %v4039_v37  ;;  %v9825_v10 = vpop.f32.mrf.mxu1  ;;  %v4052_v41 = vsel %vm119_vm0, %v3966_v33, 0.0  ;;  %v3968_v3 = vmul.f32 %v9811_v17, %v9811_v17 }
 0x4b0   :  { %v3863_v0 = vsel %vm119_vm0, %v9825_v10, 0.0 }
 0x4b1   :  { %v4043_v28 = vadd.f32 %v4042_v36, %v4041_v61  ;;  %v3848_v49 = vadd.f32 %v3847_v6, %v3846_v13  ;;  %v9832_v22 = vpop.f32.mrf.mxu1  ;;  %v3859_v6 = vsel %vm119_vm0, %v9811_v17, 0.0  ;;  %v4054_v36 = vsel %vm119_vm0, %v3967_v50, 0.0 }
 0x4b2   :  { %v3969_v4 = vmul.f32 %v9832_v22, %v9832_v22  ;;  %v4056_v63 = vsel %vm119_vm0, %v3968_v3, 0.0 }
 0x4b3   :  { %v3850_v35 = vadd.f32 %v3849_v43, %v3848_v49  ;;  %v4045_v59 = vadd.f32 %v4044_v31, %v4043_v28  ;;  %v9839_v16 = vpop.f32.mrf.mxu1  ;;  %v3970_v43 = vmul.f32 %v9825_v10, %v9825_v10 }
 0x4b5   :  { %v4047_v11 = vadd.f32 %v4046_v9, %v4045_v59  ;;  %v3852_v2 = vadd.f32 %v3851_v32, %v3850_v35  ;;  %v9846_v44 = vpop.f32.mrf.mxu1  ;;  %v3861_v35 = vsel %vm119_vm0, %v9832_v22, 0.0 }
 0x4b7   :  { %v3854_v56 = vadd.f32 %v3853_v8, %v3852_v2  ;;  %v4049_v40 = vadd.f32 %v4048_v45, %v4047_v11  ;;  %v9853_v34 = vpop.f32.mrf.mxu1  ;;  %v4058_v11 = vsel %vm119_vm0, %v3969_v4, 0.0  ;;  %v3971_v2 = vmul.f32 %v9846_v44, %v9846_v44 }
 0x4b9   :  { %v4051_v23 = vadd.f32 %v4050_v55, %v4049_v40  ;;  %v3856_v53 = vadd.f32 %v3855_v58, %v3854_v56  ;;  %v9860_v37 = vpop.f32.mrf.mxu1  ;;  %v4060_v56 = vsel %vm119_vm0, %v3970_v43, 0.0  ;;  %v3972_v40 = vmul.f32 %v9839_v16, %v9839_v16 }
 0x4ba   :  { %v3865_v58 = vsel %vm119_vm0, %v9846_v44, 0.0  ;;  %v3973_v3 = vmul.f32 %v9860_v37, %v9860_v37  ;;  %v3869_v4 = vsel %vm119_vm0, %v9860_v37, 0.0  ;;  %v3871_v43 = vsel %vm119_vm0, %v9853_v34, 0.0 }
 0x4bb   :  { %v3858_v60 = vadd.f32 %v3857_v52, %v3856_v53  ;;  %v4053_v13 = vadd.f32 %v4052_v41, %v4051_v23  ;;  %v9867_v61 = vpop.f32.mrf.mxu1  ;;  %v3867_v53 = vsel %vm119_vm0, %v9839_v16, 0.0  ;;  %v4062_v41 = vsel %vm119_vm0, %v3971_v2, 0.0 }
 0x4bd   :  { %v4055_v28 = vadd.f32 %v4054_v36, %v4053_v13  ;;  %v3860_v49 = vadd.f32 %v3859_v6, %v3858_v60  ;;  %v9874_v31 = vpop.f32.mrf.mxu1  ;;  %v4064_v6 = vsel %vm119_vm0, %v3972_v40, 0.0  ;;  %v3974_v36 = vmul.f32 %v9853_v34, %v9853_v34 }
 0x4bf   :  { %v3862_v59 = vadd.f32 %v3861_v35, %v3860_v49  ;;  %v4057_v32 = vadd.f32 %v4056_v63, %v4055_v28  ;;  %v9881_v9 = vpop.f32.mrf.mxu1  ;;  %v4066_v35 = vsel %vm119_vm0, %v3973_v3, 0.0  ;;  %v4068_v2 = vsel %vm119_vm0, %v3974_v36, 0.0 }
 0x4c1   :  { %v4059_v45 = vadd.f32 %v4058_v11, %v4057_v32  ;;  %v3864_v33 = vadd.f32 %v3863_v0, %v3862_v59  ;;  %v9888_v8 = vpop.f32.mrf.mxu1  ;;  %v3975_v59 = vmul.f32 %v9874_v31, %v9874_v31 }
 0x4c2   :  { %v3877_v36 = vsel %vm119_vm0, %v9888_v8, 0.0 }
 0x4c3   :  { %v3866_v55 = vadd.f32 %v3865_v58, %v3864_v33  ;;  %v4061_v50 = vadd.f32 %v4060_v56, %v4059_v45  ;;  %v9895_v23 = vpop.f32.mrf.mxu1  ;;  %v3976_v45 = vmul.f32 %v9867_v61, %v9867_v61  ;;  %v3873_v33 = vsel %vm119_vm0, %v9874_v31, 0.0 }
 0x4c5   :  { %v4063_v52 = vadd.f32 %v4062_v41, %v4061_v50  ;;  %v3868_v60 = vadd.f32 %v3867_v53, %v3866_v55  ;;  %v9902_v13 = vpop.f32.mrf.mxu1  ;;  %v3875_v55 = vsel %vm119_vm0, %v9867_v61, 0.0  ;;  %v4070_v50 = vsel %vm119_vm0, %v3975_v59, 0.0 }
 0x4c6   :  { %v3977_v53 = vmul.f32 %v9888_v8, %v9888_v8  ;;  %v3979_v59 = vmul.f32 %v9902_v13, %v9902_v13 }
 0x4c7   :  { %v3870_v28 = vadd.f32 %v3869_v4, %v3868_v60  ;;  %v4065_v49 = vadd.f32 %v4064_v6, %v4063_v52  ;;  %v9909_v63 = vpop.f32.mrf.mxu1  ;;  %v4072_v60 = vsel %vm119_vm0, %v3976_v45, 0.0  ;;  %v3978_v6 = vmul.f32 %v9881_v9, %v9881_v9 }
 0x4c8   :  { %12549 = vst [vmem:[#allocation135_spill] sm:$0xff] %v9909_v63 }
 0x4c9   :  { %v4067_v32 = vadd.f32 %v4066_v35, %v4065_v49  ;;  %v3872_v0 = vadd.f32 %v3871_v43, %v3870_v28  ;;  %v9916_v11 = vpop.f32.mrf.mxu1  ;;  %v3879_v43 = vsel %vm119_vm0, %v9881_v9, 0.0  ;;  %v4074_v35 = vsel %vm119_vm0, %v3977_v53, 0.0 }
 0x4ca   :  { %12550 = vst [vmem:[#allocation139_spill] sm:$0xff] %v9916_v11  ;;  %v4076_v45 = vsel %vm119_vm0, %v3978_v6, 0.0  ;;  %v3883_v53 = vsel %vm119_vm0, %v9895_v23, 0.0 }
 0x4cb   :  { %v3874_v56 = vadd.f32 %v3873_v33, %v3872_v0  ;;  %v4069_v40 = vadd.f32 %v4068_v2, %v4067_v32  ;;  %v9923_v58 = vpop.f32.mrf.mxu1  ;;  %v3980_v33 = vmul.f32 %v9895_v23, %v9895_v23 }
 0x4cc   :  { %12551 = vst [vmem:[#allocation15_spill] sm:$0xff] %v9923_v58 }
 0x4cd   :  { %v4071_v41 = vadd.f32 %v4070_v50, %v4069_v40  ;;  %v3876_v3 = vadd.f32 %v3875_v55, %v3874_v56  ;;  %v9930_v52 = vpop.f32.mrf.mxu1  ;;  %v3881_v56 = vsel %vm119_vm0, %v9902_v13, 0.0 }
 0x4ce   :  { %12552 = vst [vmem:[#allocation183_spill] sm:$0xff] %v9930_v52 }
 0x4cf   :  { %v3878_v4 = vadd.f32 %v3877_v36, %v3876_v3  ;;  %v4073_v28 = vadd.f32 %v4072_v60, %v4071_v41  ;;  %v9937_v49 = vpop.f32.mrf.mxu1  ;;  %v4078_v41 = vsel %vm119_vm0, %v3979_v59, 0.0  ;;  %v3981_v3 = vmul.f32 %v9916_v11, %v9916_v11 }
 0x4d0   :  { %12553 = vst [vmem:[#allocation17_spill] sm:$0xff] %v9937_v49  ;;  %v3887_v59 = vsel %vm119_vm0, %v9909_v63, 0.0 }
 0x4d1   :  { %v4075_v32 = vadd.f32 %v4074_v35, %v4073_v28  ;;  %v3880_v0 = vadd.f32 %v3879_v43, %v3878_v4  ;;  %v9944_v2 = vpop.f32.mrf.mxu1  ;;  %v4080_v4 = vsel %vm119_vm0, %v3980_v33, 0.0  ;;  %v3982_v28 = vmul.f32 %v9909_v63, %v9909_v63 }
 0x4d2   :  { %12554 = vst [vmem:[#allocation184_spill] sm:$0xff] %v9944_v2  ;;  %v3885_v43 = vsel %vm119_vm0, %v9916_v11, 0.0 }
 0x4d3   :  { %v3882_v40 = vadd.f32 %v3881_v56, %v3880_v0  ;;  %v4077_v55 = vadd.f32 %v4076_v45, %v4075_v32  ;;  %v9951_v50 = vpop.f32.mrf.mxu1  ;;  %v4082_v45 = vsel %vm119_vm0, %v3981_v3, 0.0  ;;  %v3983_v56 = vmul.f32 %v9930_v52, %v9930_v52 }
 0x4d4   :  { %12555 = vst [vmem:[#allocation185_spill] sm:$0xff] %v9951_v50  ;;  %v3891_v3 = vsel %vm119_vm0, %v9923_v58, 0.0 }
 0x4d5   :  { %v4079_v60 = vadd.f32 %v4078_v41, %v4077_v55  ;;  %v3884_v6 = vadd.f32 %v3883_v53, %v3882_v40  ;;  %v9958_v36 = vpop.f32.mrf.mxu1  ;;  %v4084_v53 = vsel %vm119_vm0, %v3982_v28, 0.0  ;;  %v3984_v41 = vmul.f32 %v9923_v58, %v9923_v58 }
 0x4d6   :  { %12556 = vst [vmem:[#allocation186_spill] sm:$0xff] %v9958_v36 }
 0x4d7   :  { %v3886_v35 = vadd.f32 %v3885_v43, %v3884_v6  ;;  %v4081_v32 = vadd.f32 %v4080_v4, %v4079_v60  ;;  %v9965_v0 = vpop.f32.mrf.mxu1  ;;  %v3889_v60 = vsel %vm119_vm0, %v9930_v52, 0.0  ;;  %v4088_v63 = vsel %vm119_vm0, %v3984_v41, 0.0 }
 0x4d8   :  { %12557 = vst [vmem:[#allocation187_spill] sm:$0xff] %v9965_v0 }
 0x4d9   :  { %v4083_v40 = vadd.f32 %v4082_v45, %v4081_v32  ;;  %v3888_v33 = vadd.f32 %v3887_v59, %v3886_v35  ;;  %v9972_v55 = vpop.f32.mrf.mxu1  ;;  %v4086_v32 = vsel %vm119_vm0, %v3983_v56, 0.0  ;;  %v3985_v35 = vmul.f32 %v9944_v2, %v9944_v2 }
 0x4da   :  { %12558 = vst [vmem:[#allocation162_spill] sm:$0xff] %v9972_v55  ;;  %v3895_v56 = vsel %vm119_vm0, %v9937_v49, 0.0 }
 0x4db   :  { %v3890_v6 = vadd.f32 %v3889_v60, %v3888_v33  ;;  %v4085_v4 = vadd.f32 %v4084_v53, %v4083_v40  ;;  %v9979_v43 = vpop.f32.mrf.mxu1  ;;  %v3986_v33 = vmul.f32 %v9937_v49, %v9937_v49  ;;  %v3893_v40 = vsel %vm119_vm0, %v9944_v2, 0.0 }
 0x4dc   :  { %12559 = vst [vmem:[#allocation45_spill] sm:$0xff] %v9979_v43 }
 0x4dd   :  { %v4087_v59 = vadd.f32 %v4086_v32, %v4085_v4  ;;  %v3892_v28 = vadd.f32 %v3891_v3, %v3890_v6  ;;  %v9986_v45 = vpop.f32.mrf.mxu1  ;;  %v4090_v4 = vsel %vm119_vm0, %v3985_v35, 0.0  ;;  %v3987_v6 = vmul.f32 %v9958_v36, %v9958_v36 }
 0x4de   :  { %12560 = vst [vmem:[#allocation163_spill] sm:$0xff] %v9986_v45  ;;  %v4092_v52 = vsel %vm119_vm0, %v3986_v33, 0.0  ;;  %v3899_v35 = vsel %vm119_vm0, %v9951_v50, 0.0 }
 0x4df   :  { %v3894_v53 = vadd.f32 %v3893_v40, %v3892_v28  ;;  %v4089_v60 = vadd.f32 %v4088_v63, %v4087_v59  ;;  %v9993_v58 = vpop.f32.mrf.mxu1  ;;  %v3988_v28 = vmul.f32 %v9951_v50, %v9951_v50  ;;  %v3897_v63 = vsel %vm119_vm0, %v9958_v36, 0.0 }
 0x4e0   :  { %12561 = vst [vmem:[#allocation46_spill] sm:$0xff] %v9993_v58 }
 0x4e1   :  { %v4091_v3 = vadd.f32 %v4090_v4, %v4089_v60  ;;  %v3896_v41 = vadd.f32 %v3895_v56, %v3894_v53  ;;  %v10000_v32 = vpop.f32.mrf.mxu1  ;;  %v4094_v60 = vsel %vm119_vm0, %v3987_v6, 0.0  ;;  %v3989_v53 = vmul.f32 %v9972_v55, %v9972_v55 }
 0x4e2   :  { %12562 = vst [vmem:[#allocation56_spill] sm:$0xff] %v10000_v32  ;;  %v4096_v2 = vsel %vm119_vm0, %v3988_v28, 0.0  ;;  %v3903_v6 = vsel %vm119_vm0, %v9965_v0, 0.0 }
 0x4e3   :  { %v3898_v59 = vadd.f32 %v3897_v63, %v3896_v41  ;;  %v4093_v40 = vadd.f32 %v4092_v52, %v4091_v3  ;;  %v10007_v49 = vpop.f32.mrf.mxu1  ;;  %v3990_v41 = vmul.f32 %v9965_v0, %v9965_v0  ;;  %v3901_v52 = vsel %vm119_vm0, %v9972_v55, 0.0 }
 0x4e4   :  { %12563 = vst [vmem:[#allocation59_spill] sm:$0xff] %v10007_v49 }
 0x4e5   :  { %v4095_v56 = vadd.f32 %v4094_v60, %v4093_v40  ;;  %v3900_v33 = vadd.f32 %v3899_v35, %v3898_v59  ;;  %v10014_v4 = vpop.f32.mrf.mxu1  ;;  %v4098_v40 = vsel %vm119_vm0, %v3989_v53, 0.0  ;;  %v3991_v59 = vmul.f32 %v9986_v45, %v9986_v45 }
 0x4e6   :  { %12564 = vst [vmem:[#allocation164_spill] sm:$0xff] %v10014_v4  ;;  %v4100_v36 = vsel %vm119_vm0, %v3990_v41, 0.0  ;;  %v3907_v53 = vsel %vm119_vm0, %v9979_v43, 0.0 }
 0x4e7   :  { %v3902_v3 = vadd.f32 %v3901_v52, %v3900_v33  ;;  %v4097_v63 = vadd.f32 %v4096_v2, %v4095_v56  ;;  %v10021_v50 = vpop.f32.mrf.mxu1  ;;  %v3992_v33 = vmul.f32 %v9979_v43, %v9979_v43  ;;  %v3905_v2 = vsel %vm119_vm0, %v9986_v45, 0.0 }
 0x4e8   :  { %12565 = vst [vmem:[#allocation24_spill] sm:$0xff] %v10021_v50 }
 0x4e9   :  { %v4099_v35 = vadd.f32 %v4098_v40, %v4097_v63  ;;  %v3904_v28 = vadd.f32 %v3903_v6, %v3902_v3  ;;  %v10028_v60 = vpop.f32.mrf.mxu1  ;;  %v4102_v63 = vsel %vm119_vm0, %v3991_v59, 0.0  ;;  %v3993_v3 = vmul.f32 %v10000_v32, %v10000_v32 }
 0x4ea   :  { %12566 = vst [vmem:[#allocation47_spill] sm:$0xff] %v10028_v60  ;;  %v4104_v55 = vsel %vm119_vm0, %v3992_v33, 0.0  ;;  %v3911_v59 = vsel %vm119_vm0, %v9993_v58, 0.0 }
 0x4eb   :  { %v3906_v56 = vadd.f32 %v3905_v2, %v3904_v28  ;;  %v4101_v52 = vadd.f32 %v4100_v36, %v4099_v35  ;;  %v10035_v0 = vpop.f32.mrf.mxu1  ;;  %v3994_v28 = vmul.f32 %v9993_v58, %v9993_v58  ;;  %v3909_v36 = vsel %vm119_vm0, %v10000_v32, 0.0 }
 0x4ec   :  { %12567 = vst [vmem:[#allocation48_spill] sm:$0xff] %v10035_v0  ;;  %v3998_v32 = vmul.f32 %v10021_v50, %v10021_v50 }
 0x4ed   :  { %v4103_v6 = vadd.f32 %v4102_v63, %v4101_v52  ;;  %v3908_v41 = vadd.f32 %v3907_v53, %v3906_v56  ;;  %v10042_v40 = vpop.f32.mrf.mxu1  ;;  %v4106_v52 = vsel %vm119_vm0, %v3993_v3, 0.0  ;;  %v3995_v56 = vmul.f32 %v10014_v4, %v10014_v4 }
 0x4ee   :  { %12568 = vst [vmem:[#allocation167_spill] sm:$0xff] %v10042_v40  ;;  %v4108_v45 = vsel %vm119_vm0, %v3994_v28, 0.0  ;;  %v3915_v3 = vsel %vm119_vm0, %v10007_v49, 0.0 }
 0x4ef   :  { %v3910_v35 = vadd.f32 %v3909_v36, %v3908_v41  ;;  %v4105_v2 = vadd.f32 %v4104_v55, %v4103_v6  ;;  %v10049_v43 = vpop.f32.mrf.mxu1  ;;  %v3996_v41 = vmul.f32 %v10007_v49, %v10007_v49  ;;  %v3913_v55 = vsel %vm119_vm0, %v10014_v4, 0.0 }
 0x4f0   :  { %12569 = vst [vmem:[#allocation49_spill] sm:$0xff] %v10049_v43  ;;  %v4110_v58 = vsel %vm119_vm0, %v3995_v56, 0.0  ;;  %v3919_v56 = vsel %vm119_vm0, %v10021_v50, 0.0  ;;  %v4000_v49 = vmul.f32 %v10035_v0, %v10035_v0  ;;  %v4002_v50 = vmul.f32 %v10049_v43, %v10049_v43 }
 0x4f1   :  { %v4107_v53 = vadd.f32 %v4106_v52, %v4105_v2  ;;  %v3912_v33 = vadd.f32 %v3911_v59, %v3910_v35  ;;  %v10056_v63 = vpop.f32.mrf.mxu1  ;;  %v3997_v35 = vmul.f32 %v10028_v60, %v10028_v60  ;;  %v4112_v28 = vsel %vm119_vm0, %v3996_v41, 0.0 }
 0x4f2   :  { %12570 = vst [vmem:[#allocation168_spill] sm:$0xff] %v10056_v63  ;;  %v4116_v41 = vsel %vm119_vm0, %v3998_v32, 0.0  ;;  %v4120_v32 = vsel %vm119_vm0, %v4000_v49, 0.0  ;;  %v4124_v49 = vsel %vm119_vm0, %v4002_v50, 0.0 }
 0x4f3   :  { %v3914_v6 = vadd.f32 %v3913_v55, %v3912_v33  ;;  %v4109_v36 = vadd.f32 %v4108_v45, %v4107_v53  ;;  %v10068_v52 = vpop.f32.mrf.mxu1  ;;  %v3917_v45 = vsel %vm119_vm0, %v10028_v60, 0.0  ;;  %v4114_v55 = vsel %vm119_vm0, %v3997_v35, 0.0 }
 0x4f4   :  { %12571 = vst [vmem:[#allocation50_spill] sm:$0xff] %v10068_v52  ;;  %v3923_v35 = vsel %vm119_vm0, %v10035_v0, 0.0  ;;  %v4004_v0 = vmul.f32 %v10068_v52, %v10068_v52 }
 0x4f5   :  { %v4111_v2 = vadd.f32 %v4110_v58, %v4109_v36  ;;  %v3916_v59 = vadd.f32 %v3915_v3, %v3914_v6  ;;  %v3999_v58 = vmul.f32 %v10042_v40, %v10042_v40  ;;  %v10080_v3 = vpop.f32.mrf.mxu1 }
 0x4f6   :  { %12572 = vst [vmem:[#allocation169_spill] sm:$0xff] %v10080_v3 }
 0x4f7   :  { %v3918_v53 = vadd.f32 %v3917_v45, %v3916_v59  ;;  %v4113_v33 = vadd.f32 %v4112_v28, %v4111_v2  ;;  %v3921_v2 = vsel %vm119_vm0, %v10042_v40, 0.0  ;;  %v4118_v45 = vsel %vm119_vm0, %v3999_v58, 0.0 }
 0x4f8   :  { %v3927_v58 = vsel %vm119_vm0, %v10049_v43, 0.0 }
 0x4f9   :  { %v4115_v6 = vadd.f32 %v4114_v55, %v4113_v33  ;;  %v3920_v36 = vadd.f32 %v3919_v56, %v3918_v53  ;;  %v4001_v53 = vmul.f32 %v10056_v63, %v10056_v63  ;;  %v10092_v55 = vpop.f32.mrf.mxu1 }
 0x4fa   :  { %12573 = vst [vmem:[#allocation51_spill] sm:$0xff] %v10092_v55  ;;  %v4006_v50 = vmul.f32 %v10092_v55, %v10092_v55 }
 0x4fb   :  { %v3922_v59 = vadd.f32 %v3921_v2, %v3920_v36  ;;  %v4117_v28 = vadd.f32 %v4116_v41, %v4115_v6  ;;  %v3925_v6 = vsel %vm119_vm0, %v10056_v63, 0.0  ;;  %v4122_v2 = vsel %vm119_vm0, %v4001_v53, 0.0 }
 0x4fd   :  { %v4119_v33 = vadd.f32 %v4118_v45, %v4117_v28  ;;  %v3924_v56 = vadd.f32 %v3923_v35, %v3922_v59  ;;  %v4003_v59 = vmul.f32 %v10080_v3, %v10080_v3  ;;  %v3801_v45 = vpop.f32.mrf.mxu1 }
 0x4fe   :  { %v4005_v43 = vmul.f32 %v3801_v45, %v3801_v45 }
 0x4ff   :  { %v3926_v36 = vadd.f32 %v3925_v6, %v3924_v56  ;;  %v4121_v41 = vadd.f32 %v4120_v32, %v4119_v33  ;;  %v3929_v56 = vsel %vm119_vm0, %v10080_v3, 0.0  ;;  %v3931_v6 = vsel %vm119_vm0, %v10068_v52, 0.0 }
 0x500   :  { %v4126_v53 = vsel %vm119_vm0, %v4003_v59, 0.0  ;;  %v4132_v59 = vsel %vm119_vm0, %v4006_v50, 0.0  ;;  %v4145_v50 = vld [vmem:[%s11111_s8] sm:$0x1]  ;;  %s5269_s8 = smov [#allocation7]  }
 0x501   :  { %v4123_v28 = vadd.f32 %v4122_v2, %v4121_v41  ;;  %v3928_v35 = vadd.f32 %v3927_v58, %v3926_v36  ;;  %v4128_v36 = vsel %vm119_vm0, %v4004_v0, 0.0  ;;  %v3933_v58 = vsel %vm119_vm0, %v3801_v45, 0.0 }
 0x503   :  { %v3930_v33 = vadd.f32 %v3929_v56, %v3928_v35  ;;  %v4125_v32 = vadd.f32 %v4124_v49, %v4123_v28  ;;  %v3935_v28 = vsel %vm119_vm0, %v10092_v55, 0.0  ;;  %v4130_v35 = vsel %vm119_vm0, %v4005_v43, 0.0 }
 0x505   :  { %v4127_v63 = vadd.f32 %v4126_v53, %v4125_v32  ;;  %v3932_v41 = vadd.f32 %v3931_v6, %v3930_v33 }
 0x507   :  { %v3934_v2 = vadd.f32 %v3933_v58, %v3932_v41  ;;  %v4129_v40 = vadd.f32 %v4128_v36, %v4127_v63 }
 0x509   :  { %v3936_v49 = vadd.f32 %v3935_v28, %v3934_v2  ;;  %v4131_v56 = vadd.f32 %v4130_v35, %v4129_v40 }
 0x50b   :  { %v3937_v32 = vrot.slane %v3936_v49, 4  ;;  %v4133_v33 = vadd.f32 %v4132_v59, %v4131_v56 }
 0x50d   :  { %v3938_v6 = vadd.f32 %v3937_v32, %v3936_v49  ;;  %v4134_v0 = vrot.slane %v4133_v33, 4 }
 0x50f   :  { %v3939_v53 = vrot.slane %v3938_v6, 2  ;;  %v4135_v52 = vadd.f32 %v4134_v0, %v4133_v33 }
 0x511   :  { %v3940_v3 = vadd.f32 %v3939_v53, %v3938_v6  ;;  %v4136_v60 = vrot.slane %v4135_v52, 2  ;;  %v5135_v6 = vld [vmem:[#allocation3 + $0x1f0] sm:$0xff] }
 0x513   :  { %v3941_v4 = vrot.slane %v3940_v3, 1  ;;  %v4137_v41 = vadd.f32 %v4136_v60, %v4135_v52  ;;  %v4149_v60 = vld [vmem:[%s11112_s9] sm:$0x1]  ;;  %s10884_s9 = sshll.u32 %s5269_s8, 4  ;;  %s10945_s9 = int_to_ptr.vmem [resolvable:$true] %s10884_s9 }
 0x514   :  { %s5219_s30 = scalar_lea.vmem %s10945_s9, 8192  ;;  %p5224_p6 = scmp.lt.s32.totalorder %s10945_s9, %s10945_s9 }
 0x515   :  { %v3942_v63 = vadd.f32 %v3941_v4, %v3940_v3  ;;  %v4138_v36 = vrot.slane %v4137_v41, 1  ;;  %p5220_p5 = scmp.ne.s32.totalorder %s10945_s9, %s5219_s30  ;;  %p5225_p7 = scmp.lt.s32.totalorder %s5219_s30, %s5219_s30 }
 0x517   :  { %v4139_v58 = vadd.f32 %v4138_v36, %v4137_v41  ;;  %v4140_v55 = vmul.f32 0.001953125, %v3942_v63  ;;  %v12575_v63 = vld [vmem:[#allocation135_spill] sm:$0xff]  ;;  %p5226_p8 = por %p5225_p7, %p5224_p6 }
 0x518   :  { %v12576_v36 = vld [vmem:[#allocation183_spill] sm:$0xff] }
 0x519   :  { %v4141_v11 = vmul.f32 0.001953125, %v4139_v58  ;;  %v4142_v43 = vmul.f32 %v4140_v55, %v4140_v55  ;;  %v12577_v58 = vld [vmem:[#allocation15_spill] sm:$0xff]  ;;  %p5227_p9 = pnand %p5226_p8, %p5220_p5 }
 0x51b   :  { %v4143_v2 = vsub.f32 %v4141_v11, %v4142_v43  ;;  %v12578_v43 = vld [vmem:[#allocation184_spill] sm:$0xff] }
 0x51d   :  { %v4144_v40 = vmax.f32 %v4143_v2, 0.0  ;;  %v12579_v2 = vld [vmem:[#allocation17_spill] sm:$0xff] }
 0x51f   :  { %v4146_v28 = vadd.f32 1e-05, %v4144_v40 }
 0x521   :  { %5062 = vrsqrt.f32 %v4146_v28  ;;  %v12580_v28 = vld [vmem:[#allocation186_spill] sm:$0xff] }
 0x52e   :  { %v5063_v35 = vpop.eup %5062 }
 0x52f   :  { %v4148_v49 = vmul.f32 %v5063_v35, %v4145_v50  ;;  %v12581_v35 = vld [vmem:[#allocation185_spill] sm:$0xff] }
 0x531   :  { %v4150_v4 = vmul.f32 %v4148_v49, %v4140_v55  ;;  %v10127_v52 = vrot.slane %v4148_v49, %v12523_v5 }
 0x533   :  { %v4151_v3 = vsub.f32 %v4149_v60, %v4150_v4  ;;  %v4220_v11 = vmul.f32 %v10127_v52, %v3801_v45  ;;  %v10132_v56 = vmul.f32 %v10127_v52, %v9681_v27  ;;  %v10136_v59 = vmul.f32 %v9677_v24, %v10127_v52  ;;  %v12582_v60 = vld [vmem:[#allocation162_spill] sm:$0xff] }
 0x534   :  { %v10140_v32 = vmul.f32 %v10127_v52, %v9698_v25  ;;  %v10144_v55 = vmul.f32 %v9691_v19, %v10127_v52  ;;  %v10148_v33 = vmul.f32 %v10127_v52, %v9716_v42  ;;  %v10152_v27 = vmul.f32 %v9709_v15, %v10127_v52 }
 0x535   :  { %v10155_v45 = vrot.slane %v4151_v3, %v12523_v5  ;;  %v10159_v24 = vmul.f32 %v10127_v52, %v9683_v38  ;;  %v10163_v25 = vmul.f32 %v9679_v12, %v10127_v52  ;;  %v10167_v19 = vmul.f32 %v10127_v52, %v9700_v18  ;;  %v12583_v3 = vld [vmem:[#allocation187_spill] sm:$0xff] }
 0x536   :  { %v10171_v42 = vmul.f32 %v9693_v21, %v10127_v52  ;;  %v10175_v5 = vmul.f32 %v10127_v52, %v9718_v57  ;;  %v10179_v38 = vmul.f32 %v9711_v20, %v10127_v52  ;;  %v10183_v12 = vmul.f32 %v10127_v52, %v9734_v39 }
 0x537   :  { %v4290_v15 = vadd.f32 %v10155_v45, %v4220_v11  ;;  %v10188_v18 = vmul.f32 %v9727_v47, %v10127_v52  ;;  %v10192_v21 = vmul.f32 %v10127_v52, %v9748_v54  ;;  %v10196_v57 = vmul.f32 %v9741_v48, %v10127_v52 }
 0x538   :  { %v10200_v20 = vmul.f32 %v10127_v52, %v9762_v29  ;;  %v10204_v39 = vmul.f32 %v9755_v62, %v10127_v52  ;;  %v10208_v47 = vmul.f32 %v10127_v52, %v9776_v7  ;;  %v10212_v54 = vmul.f32 %v9769_v51, %v10127_v52 }
 0x539   :  { %v4354_v0 = vadd.f32 %v5135_v6, %v4290_v15  ;;  %v10216_v48 = vmul.f32 %v10127_v52, %v9790_v46  ;;  %v10220_v29 = vmul.f32 %v9783_v26, %v10127_v52  ;;  %v10224_v62 = vmul.f32 %v10127_v52, %v9804_v1  ;;  %v12584_v15 = vld [vmem:[#allocation163_spill] sm:$0xff] }
 0x53a   :  { %v10228_v7 = vmul.f32 %v9797_v30, %v10127_v52  ;;  %v10232_v51 = vmul.f32 %v10127_v52, %v9818_v14  ;;  %v10236_v46 = vmul.f32 %v9811_v17, %v10127_v52  ;;  %v10240_v26 = vmul.f32 %v10127_v52, %v9832_v22 }
 0x53b   :  { %v4418_v53 = vmax.f32 %v4354_v0, 0.0  ;;  %4546 = vst.msk [vmem:[#allocation7 + $0x1f0] sm:$0xff] %vm119_vm0, %v4354_v0  ;;  %v10245_v1 = vmul.f32 %v9825_v10, %v10127_v52  ;;  %v10249_v30 = vmul.f32 %v10127_v52, %v9846_v44  ;;  %v10253_v14 = vmul.f32 %v9839_v16, %v10127_v52  ;;  %v12585_v0 = vld [vmem:[#allocation45_spill] sm:$0xff] }
 0x53c   :  { %v10257_v17 = vmul.f32 %v10127_v52, %v9860_v37  ;;  %v10261_v22 = vmul.f32 %v9853_v34, %v10127_v52  ;;  %v10265_v10 = vmul.f32 %v10127_v52, %v9874_v31  ;;  %v10269_v44 = vmul.f32 %v9867_v61, %v10127_v52  ;;  %v12574_v61 = vld [vmem:[#allocation139_spill] sm:$0xff] }
 0x53d   :  { %4482 = vst.msk [vmem:[#allocation6 + $0x1f0] sm:$0xff] %vm119_vm0, %v4418_v53  ;;  %v10274_v16 = vmul.f32 %v10127_v52, %v9888_v8  ;;  %v10278_v37 = vmul.f32 %v9881_v9, %v10127_v52  ;;  %v10282_v34 = vmul.f32 %v10127_v52, %v9902_v13  ;;  %v10286_v31 = vmul.f32 %v9895_v23, %v10127_v52 }
 0x53e   :  { %v10290_v41 = vmul.f32 %v10127_v52, %v12574_v61  ;;  %v10294_v8 = vmul.f32 %v12575_v63, %v10127_v52  ;;  %v10298_v9 = vmul.f32 %v10127_v52, %v12576_v36  ;;  %v10302_v13 = vmul.f32 %v12577_v58, %v10127_v52  ;;  %v12586_v61 = vld [vmem:[#allocation56_spill] sm:$0xff]  ;;  %v12587_v36 = vld [vmem:[#allocation46_spill] sm:$0xff] }
 0x53f   :  { %v10306_v23 = vmul.f32 %v10127_v52, %v12578_v43  ;;  %v10310_v40 = vmul.f32 %v12579_v2, %v10127_v52  ;;  %v10314_v50 = vmul.f32 %v10127_v52, %v12580_v28  ;;  %v10318_v49 = vmul.f32 %v12581_v35, %v10127_v52  ;;  %v12589_v43 = vld [vmem:[#allocation164_spill] sm:$0xff]  ;;  %v12591_v28 = vld [vmem:[#allocation59_spill] sm:$0xff] }
 0x540   :  { %v10322_v4 = vmul.f32 %v10127_v52, %v12582_v60  ;;  %v10326_v11 = vmul.f32 %v12583_v3, %v10127_v52  ;;  %v10330_v6 = vmul.f32 %v10127_v52, %v12584_v15  ;;  %v10334_v53 = vmul.f32 %v12585_v0, %v10127_v52  ;;  %v12593_v60 = vld [vmem:[#allocation47_spill] sm:$0xff]  ;;  %v12595_v15 = vld [vmem:[#allocation24_spill] sm:$0xff] }
 0x541   :  { %v10338_v63 = vmul.f32 %v10127_v52, %v12586_v61  ;;  %v10342_v58 = vmul.f32 %v12587_v36, %v10127_v52  ;;  %v10346_v2 = vmul.f32 %v10127_v52, %v12589_v43  ;;  %v10350_v35 = vmul.f32 %v12591_v28, %v10127_v52  ;;  %v12597_v61 = vld [vmem:[#allocation167_spill] sm:$0xff] }
 0x542   :  { %v10354_v3 = vmul.f32 %v10127_v52, %v12593_v60  ;;  %v10358_v0 = vmul.f32 %v12595_v15, %v10127_v52  ;;  %v10362_v36 = vmul.f32 %v10127_v52, %v12597_v61 }
 0x543   :  { %12588 = vst [vmem:[#allocation101_spill] sm:$0xff] %v10342_v58  ;;  %12590 = vst [vmem:[#allocation102_spill] sm:$0xff] %v10346_v2  ;;  %v12599_v58 = vld [vmem:[#allocation48_spill] sm:$0xff] }
 0x544   :  { %12592 = vst [vmem:[#allocation173_spill] sm:$0xff] %v10350_v35  ;;  %12594 = vst [vmem:[#allocation96_spill] sm:$0xff] %v10354_v3  ;;  %v10366_v43 = vmul.f32 %v12599_v58, %v10127_v52  ;;  %v12600_v2 = vld [vmem:[#allocation168_spill] sm:$0xff]  ;;  %v12601_v35 = vld [vmem:[#allocation49_spill] sm:$0xff] }
 0x545   :  { %12596 = vst [vmem:[#allocation174_spill] sm:$0xff] %v10358_v0  ;;  %12598 = vst [vmem:[#allocation35_spill] sm:$0xff] %v10362_v36  ;;  %v10370_v28 = vmul.f32 %v10127_v52, %v12600_v2  ;;  %v10374_v60 = vmul.f32 %v12601_v35, %v10127_v52  ;;  %v12602_v3 = vld [vmem:[#allocation169_spill] sm:$0xff]  ;;  %v12603_v0 = vld [vmem:[#allocation50_spill] sm:$0xff]  ;;  %v10390_v2 = vadd.f32 %v10155_v45, %v10132_v56 }
 0x546   :  { %v10378_v15 = vmul.f32 %v10127_v52, %v12602_v3  ;;  %v10382_v61 = vmul.f32 %v12603_v0, %v10127_v52  ;;  %v12604_v36 = vld [vmem:[#allocation51_spill] sm:$0xff]  ;;  %v10394_v35 = vadd.f32 %v10155_v45, %v10136_v59  ;;  %v10398_v3 = vadd.f32 %v10155_v45, %v10140_v32 }
 0x547   :  { %v10386_v58 = vmul.f32 %v12604_v36, %v10127_v52  ;;  %v10402_v0 = vadd.f32 %v10155_v45, %v10144_v55  ;;  %v10406_v52 = vadd.f32 %v10155_v45, %v10148_v33  ;;  %v10410_v56 = vadd.f32 %v10155_v45, %v10152_v27 }
 0x548   :  { %v10414_v59 = vadd.f32 %v10155_v45, %v10159_v24  ;;  %v10418_v32 = vadd.f32 %v10155_v45, %v10163_v25  ;;  %v10422_v55 = vadd.f32 %v10155_v45, %v10167_v19  ;;  %v10426_v33 = vadd.f32 %v10155_v45, %v10171_v42 }
 0x549   :  { %v10430_v27 = vadd.f32 %v10155_v45, %v10175_v5  ;;  %v10434_v24 = vadd.f32 %v10155_v45, %v10179_v38  ;;  %v10438_v25 = vadd.f32 %v10155_v45, %v10183_v12  ;;  %v10442_v19 = vadd.f32 %v10155_v45, %v10188_v18 }
 0x54a   :  { %v10446_v42 = vadd.f32 %v10155_v45, %v10192_v21  ;;  %v10450_v5 = vadd.f32 %v10155_v45, %v10196_v57  ;;  %v10454_v38 = vadd.f32 %v10155_v45, %v10200_v20  ;;  %v10458_v12 = vadd.f32 %v10155_v45, %v10204_v39  ;;  %v12610_v36 = vld [vmem:[#allocation101_spill] sm:$0xff] }
 0x54b   :  { %v10462_v18 = vadd.f32 %v10155_v45, %v10208_v47  ;;  %v10466_v21 = vadd.f32 %v10155_v45, %v10212_v54  ;;  %v10470_v57 = vadd.f32 %v10155_v45, %v10216_v48  ;;  %v10474_v20 = vadd.f32 %v10155_v45, %v10220_v29 }
 0x54c   :  { %v10478_v39 = vadd.f32 %v10155_v45, %v10224_v62  ;;  %v10482_v47 = vadd.f32 %v10155_v45, %v10228_v7  ;;  %v10486_v54 = vadd.f32 %v10155_v45, %v10232_v51  ;;  %v10490_v48 = vadd.f32 %v10155_v45, %v10236_v46 }
 0x54d   :  { %v10494_v29 = vadd.f32 %v10155_v45, %v10240_v26  ;;  %v10498_v62 = vadd.f32 %v10155_v45, %v10245_v1  ;;  %v10502_v7 = vadd.f32 %v10155_v45, %v10249_v30  ;;  %v10506_v51 = vadd.f32 %v10155_v45, %v10253_v14 }
 0x54e   :  { %v10510_v46 = vadd.f32 %v10155_v45, %v10257_v17  ;;  %v10514_v26 = vadd.f32 %v10155_v45, %v10261_v22  ;;  %v10518_v1 = vadd.f32 %v10155_v45, %v10265_v10  ;;  %v10522_v30 = vadd.f32 %v10155_v45, %v10269_v44 }
 0x54f   :  { %v10526_v14 = vadd.f32 %v10155_v45, %v10274_v16  ;;  %v10530_v17 = vadd.f32 %v10155_v45, %v10278_v37  ;;  %v10534_v22 = vadd.f32 %v10155_v45, %v10282_v34  ;;  %v10538_v10 = vadd.f32 %v10155_v45, %v10286_v31 }
 0x550   :  { %v10542_v44 = vadd.f32 %v10155_v45, %v10290_v41  ;;  %v10546_v16 = vadd.f32 %v10155_v45, %v10294_v8  ;;  %v10550_v37 = vadd.f32 %v10155_v45, %v10298_v9  ;;  %v10554_v34 = vadd.f32 %v10155_v45, %v10302_v13 }
 0x551   :  { %v10558_v31 = vadd.f32 %v10155_v45, %v10306_v23  ;;  %v10562_v41 = vadd.f32 %v10155_v45, %v10310_v40  ;;  %v10566_v8 = vadd.f32 %v10155_v45, %v10314_v50  ;;  %v10570_v9 = vadd.f32 %v10155_v45, %v10318_v49 }
 0x552   :  { %v10574_v13 = vadd.f32 %v10155_v45, %v10322_v4  ;;  %v10578_v23 = vadd.f32 %v10155_v45, %v10326_v11  ;;  %v10582_v40 = vadd.f32 %v10155_v45, %v10330_v6  ;;  %v10586_v50 = vadd.f32 %v10155_v45, %v10334_v53 }
 0x553   :  { %v10590_v49 = vadd.f32 %v10155_v45, %v10338_v63  ;;  %v10594_v4 = vadd.f32 %v10155_v45, %v12610_v36 }
 0x554   :  { %12605 = vst [vmem:[#allocation52_spill] sm:$0xff] %v10574_v13  ;;  %12606 = vst [vmem:[#allocation19_spill] sm:$0xff] %v10578_v23  ;;  %v12611_v13 = vld [vmem:[#allocation102_spill] sm:$0xff]  ;;  %v12612_v23 = vld [vmem:[#allocation173_spill] sm:$0xff] }
 0x555   :  { %12607 = vst [vmem:[#allocation125_spill] sm:$0xff] %v10582_v40  ;;  %12608 = vst [vmem:[#allocation12_spill] sm:$0xff] %v10586_v50  ;;  %v10598_v11 = vadd.f32 %v10155_v45, %v12611_v13  ;;  %v10602_v6 = vadd.f32 %v10155_v45, %v12612_v23  ;;  %v12613_v40 = vld [vmem:[#allocation96_spill] sm:$0xff]  ;;  %v12614_v50 = vld [vmem:[#allocation174_spill] sm:$0xff]  ;;  %v10618_v13 = vadd.f32 %v10155_v45, %v10366_v43 }
 0x556   :  { %12609 = vst [vmem:[#allocation13_spill] sm:$0xff] %v10590_v49  ;;  %v10606_v53 = vadd.f32 %v10155_v45, %v12613_v40  ;;  %v10610_v63 = vadd.f32 %v10155_v45, %v12614_v50  ;;  %v12615_v49 = vld [vmem:[#allocation35_spill] sm:$0xff]  ;;  %v10622_v23 = vadd.f32 %v10155_v45, %v10370_v28  ;;  %v10626_v40 = vadd.f32 %v10155_v45, %v10374_v60 }
 0x557   :  { %v10614_v36 = vadd.f32 %v10155_v45, %v12615_v49  ;;  %12616 = vst [vmem:[#allocation36_spill] sm:$0xff] %v10618_v13  ;;  %v10630_v50 = vadd.f32 %v10155_v45, %v10378_v15  ;;  %v10634_v49 = vadd.f32 %v10155_v45, %v10382_v61  ;;  %v10638_v43 = vadd.f32 %v10155_v45, %v10386_v58  ;;  %v5136_v13 = vld [vmem:[#allocation3] sm:$0xff]  ;;  %v5141_v58 = vld [vmem:[#allocation3 + $0x28] sm:$0xff] }
 0x558   :  { %12617 = vst [vmem:[#allocation84_spill] sm:$0xff] %v10622_v23  ;;  %12618 = vst [vmem:[#allocation113_spill] sm:$0xff] %v10626_v40  ;;  %v10641_v28 = vadd.f32 %v5136_v13, %v10390_v2  ;;  %v5137_v23 = vld [vmem:[#allocation3 + $0x8] sm:$0xff]  ;;  %v5138_v40 = vld [vmem:[#allocation3 + $0x10] sm:$0xff]  ;;  %v10656_v2 = vadd.f32 %v5141_v58, %v10410_v56 }
 0x559   :  { %12619 = vst [vmem:[#allocation85_spill] sm:$0xff] %v10630_v50  ;;  %12620 = vst [vmem:[#allocation119_spill] sm:$0xff] %v10634_v49  ;;  %v10644_v60 = vadd.f32 %v5137_v23, %v10394_v35  ;;  %v10647_v15 = vadd.f32 %v5138_v40, %v10398_v3  ;;  %v5139_v50 = vld [vmem:[#allocation3 + $0x18] sm:$0xff]  ;;  %v5140_v49 = vld [vmem:[#allocation3 + $0x20] sm:$0xff] }
 0x55a   :  { %v10650_v61 = vadd.f32 %v5139_v50, %v10402_v0  ;;  %v10653_v45 = vadd.f32 %v5140_v49, %v10406_v52  ;;  %v5142_v13 = vld [vmem:[#allocation3 + $0x30] sm:$0xff]  ;;  %v5143_v23 = vld [vmem:[#allocation3 + $0x38] sm:$0xff]  ;;  %v5144_v40 = vld [vmem:[#allocation3 + $0x40] sm:$0xff]  ;;  %4484 = vst.msk [vmem:[#allocation7] sm:$0xff] %vm119_vm0, %v10641_v28 }
 0x55b   :  { %v10659_v35 = vadd.f32 %v5142_v13, %v10414_v59  ;;  %v10662_v3 = vadd.f32 %v5143_v23, %v10418_v32  ;;  %v10665_v0 = vadd.f32 %v5144_v40, %v10422_v55  ;;  %v5145_v50 = vld [vmem:[#allocation3 + $0x48] sm:$0xff]  ;;  %v5146_v49 = vld [vmem:[#allocation3 + $0x50] sm:$0xff]  ;;  %v5147_v58 = vld [vmem:[#allocation3 + $0x58] sm:$0xff]  ;;  %4485 = vst.msk [vmem:[#allocation7 + $0x8] sm:$0xff] %vm119_vm0, %v10644_v60 }
 0x55c   :  { %v10668_v52 = vadd.f32 %v5145_v50, %v10426_v33  ;;  %v10671_v56 = vadd.f32 %v5146_v49, %v10430_v27  ;;  %v10674_v59 = vadd.f32 %v5147_v58, %v10434_v24  ;;  %4486 = vst.msk [vmem:[#allocation7 + $0x10] sm:$0xff] %vm119_vm0, %v10647_v15  ;;  %4487 = vst.msk [vmem:[#allocation7 + $0x18] sm:$0xff] %vm119_vm0, %v10650_v61  ;;  %v5148_v32 = vld [vmem:[#allocation3 + $0x60] sm:$0xff]  ;;  %v5149_v33 = vld [vmem:[#allocation3 + $0x68] sm:$0xff] }
 0x55d   :  { %v10685_v55 = vadd.f32 %v5148_v32, %v10438_v25  ;;  %v10688_v27 = vadd.f32 %v5149_v33, %v10442_v19  ;;  %v5150_v24 = vld [vmem:[#allocation3 + $0x70] sm:$0xff]  ;;  %v5151_v23 = vld [vmem:[#allocation3 + $0x78] sm:$0xff]  ;;  %4488 = vst.msk [vmem:[#allocation7 + $0x20] sm:$0xff] %vm119_vm0, %v10653_v45  ;;  %4489 = vst.msk [vmem:[#allocation7 + $0x28] sm:$0xff] %vm119_vm0, %v10656_v2 }
 0x55e   :  { %v10691_v13 = vadd.f32 %v5150_v24, %v10446_v42  ;;  %v10694_v40 = vadd.f32 %v5151_v23, %v10450_v5  ;;  %4490 = vst.msk [vmem:[#allocation7 + $0x30] sm:$0xff] %vm119_vm0, %v10659_v35  ;;  %4491 = vst.msk [vmem:[#allocation7 + $0x38] sm:$0xff] %vm119_vm0, %v10662_v3  ;;  %v5152_v25 = vld [vmem:[#allocation3 + $0x80] sm:$0xff]  ;;  %v5153_v42 = vld [vmem:[#allocation3 + $0x88] sm:$0xff] }
 0x55f   :  { %v10705_v19 = vadd.f32 %v5152_v25, %v10454_v38  ;;  %v10708_v5 = vadd.f32 %v5153_v42, %v10458_v12  ;;  %v5154_v50 = vld [vmem:[#allocation3 + $0x90] sm:$0xff]  ;;  %v5155_v58 = vld [vmem:[#allocation3 + $0x98] sm:$0xff]  ;;  %4492 = vst.msk [vmem:[#allocation7 + $0x40] sm:$0xff] %vm119_vm0, %v10665_v0  ;;  %4493 = vst.msk [vmem:[#allocation7 + $0x48] sm:$0xff] %vm119_vm0, %v10668_v52 }
 0x560   :  { %v10711_v49 = vadd.f32 %v5154_v50, %v10462_v18  ;;  %v10714_v32 = vadd.f32 %v5155_v58, %v10466_v21  ;;  %4494 = vst.msk [vmem:[#allocation7 + $0x50] sm:$0xff] %vm119_vm0, %v10671_v56  ;;  %4495 = vst.msk [vmem:[#allocation7 + $0x58] sm:$0xff] %vm119_vm0, %v10674_v59  ;;  %v5156_v38 = vld [vmem:[#allocation3 + $0xa0] sm:$0xff]  ;;  %v5157_v18 = vld [vmem:[#allocation3 + $0xa8] sm:$0xff] }
 0x561   :  { %v10725_v12 = vadd.f32 %v5156_v38, %v10470_v57  ;;  %v10728_v21 = vadd.f32 %v5157_v18, %v10474_v20  ;;  %v5158_v33 = vld [vmem:[#allocation3 + $0xb0] sm:$0xff]  ;;  %v5159_v23 = vld [vmem:[#allocation3 + $0xb8] sm:$0xff]  ;;  %4496 = vst.msk [vmem:[#allocation7 + $0x60] sm:$0xff] %vm119_vm0, %v10685_v55  ;;  %4497 = vst.msk [vmem:[#allocation7 + $0x68] sm:$0xff] %vm119_vm0, %v10688_v27 }
 0x562   :  { %v10731_v24 = vadd.f32 %v5158_v33, %v10478_v39  ;;  %v10734_v25 = vadd.f32 %v5159_v23, %v10482_v47  ;;  %4498 = vst.msk [vmem:[#allocation7 + $0x70] sm:$0xff] %vm119_vm0, %v10691_v13  ;;  %4499 = vst.msk [vmem:[#allocation7 + $0x78] sm:$0xff] %vm119_vm0, %v10694_v40  ;;  %v5160_v57 = vld [vmem:[#allocation3 + $0xc0] sm:$0xff]  ;;  %v5161_v39 = vld [vmem:[#allocation3 + $0xc8] sm:$0xff] }
 0x563   :  { %v10745_v20 = vadd.f32 %v5160_v57, %v10486_v54  ;;  %v10748_v47 = vadd.f32 %v5161_v39, %v10490_v48  ;;  %v5162_v42 = vld [vmem:[#allocation3 + $0xd0] sm:$0xff]  ;;  %v5163_v58 = vld [vmem:[#allocation3 + $0xd8] sm:$0xff]  ;;  %4500 = vst.msk [vmem:[#allocation7 + $0x80] sm:$0xff] %vm119_vm0, %v10705_v19  ;;  %4501 = vst.msk [vmem:[#allocation7 + $0x88] sm:$0xff] %vm119_vm0, %v10708_v5 }
 0x564   :  { %v10751_v50 = vadd.f32 %v5162_v42, %v10494_v29  ;;  %v10754_v38 = vadd.f32 %v5163_v58, %v10498_v62  ;;  %4502 = vst.msk [vmem:[#allocation7 + $0x90] sm:$0xff] %vm119_vm0, %v10711_v49  ;;  %4503 = vst.msk [vmem:[#allocation7 + $0x98] sm:$0xff] %vm119_vm0, %v10714_v32  ;;  %v5164_v54 = vld [vmem:[#allocation3 + $0xe0] sm:$0xff]  ;;  %v5165_v29 = vld [vmem:[#allocation3 + $0xe8] sm:$0xff] }
 0x565   :  { %v10765_v48 = vadd.f32 %v5164_v54, %v10502_v7  ;;  %v10768_v62 = vadd.f32 %v5165_v29, %v10506_v51  ;;  %v5166_v18 = vld [vmem:[#allocation3 + $0xf0] sm:$0xff]  ;;  %v5167_v23 = vld [vmem:[#allocation3 + $0xf8] sm:$0xff]  ;;  %4504 = vst.msk [vmem:[#allocation7 + $0xa0] sm:$0xff] %vm119_vm0, %v10725_v12  ;;  %4505 = vst.msk [vmem:[#allocation7 + $0xa8] sm:$0xff] %vm119_vm0, %v10728_v21 }
 0x566   :  { %v10771_v33 = vadd.f32 %v5166_v18, %v10510_v46  ;;  %v10774_v57 = vadd.f32 %v5167_v23, %v10514_v26  ;;  %4506 = vst.msk [vmem:[#allocation7 + $0xb0] sm:$0xff] %vm119_vm0, %v10731_v24  ;;  %4507 = vst.msk [vmem:[#allocation7 + $0xb8] sm:$0xff] %vm119_vm0, %v10734_v25  ;;  %v5168_v7 = vld [vmem:[#allocation3 + $0x100] sm:$0xff]  ;;  %v5169_v46 = vld [vmem:[#allocation3 + $0x108] sm:$0xff] }
 0x567   :  { %v10785_v51 = vadd.f32 %v5168_v7, %v10518_v1  ;;  %v10788_v26 = vadd.f32 %v5169_v46, %v10522_v30  ;;  %v5170_v39 = vld [vmem:[#allocation3 + $0x110] sm:$0xff]  ;;  %v5171_v58 = vld [vmem:[#allocation3 + $0x118] sm:$0xff]  ;;  %4508 = vst.msk [vmem:[#allocation7 + $0xc0] sm:$0xff] %vm119_vm0, %v10745_v20  ;;  %4509 = vst.msk [vmem:[#allocation7 + $0xc8] sm:$0xff] %vm119_vm0, %v10748_v47 }
 0x568   :  { %v10791_v42 = vadd.f32 %v5170_v39, %v10526_v14  ;;  %v10794_v54 = vadd.f32 %v5171_v58, %v10530_v17  ;;  %4510 = vst.msk [vmem:[#allocation7 + $0xd0] sm:$0xff] %vm119_vm0, %v10751_v50  ;;  %4511 = vst.msk [vmem:[#allocation7 + $0xd8] sm:$0xff] %vm119_vm0, %v10754_v38  ;;  %v5172_v1 = vld [vmem:[#allocation3 + $0x120] sm:$0xff]  ;;  %v5173_v14 = vld [vmem:[#allocation3 + $0x128] sm:$0xff] }
 0x569   :  { %v10805_v30 = vadd.f32 %v5172_v1, %v10534_v22  ;;  %v10808_v17 = vadd.f32 %v5173_v14, %v10538_v10  ;;  %v5174_v29 = vld [vmem:[#allocation3 + $0x130] sm:$0xff]  ;;  %v5175_v23 = vld [vmem:[#allocation3 + $0x138] sm:$0xff]  ;;  %4512 = vst.msk [vmem:[#allocation7 + $0xe0] sm:$0xff] %vm119_vm0, %v10765_v48  ;;  %4513 = vst.msk [vmem:[#allocation7 + $0xe8] sm:$0xff] %vm119_vm0, %v10768_v62 }
 0x56a   :  { %v10811_v18 = vadd.f32 %v5174_v29, %v10542_v44  ;;  %v10814_v7 = vadd.f32 %v5175_v23, %v10546_v16  ;;  %4514 = vst.msk [vmem:[#allocation7 + $0xf0] sm:$0xff] %vm119_vm0, %v10771_v33  ;;  %4515 = vst.msk [vmem:[#allocation7 + $0xf8] sm:$0xff] %vm119_vm0, %v10774_v57  ;;  %v5176_v22 = vld [vmem:[#allocation3 + $0x140] sm:$0xff]  ;;  %v5177_v44 = vld [vmem:[#allocation3 + $0x148] sm:$0xff] }
 0x56b   :  { %12621 = vst [vmem:[#allocation39_spill] sm:$0xff] %v10805_v30  ;;  %12622 = vst [vmem:[#allocation130_spill] sm:$0xff] %v10808_v17  ;;  %v10825_v10 = vadd.f32 %v5176_v22, %v10550_v37  ;;  %v10828_v16 = vadd.f32 %v5177_v44, %v10554_v34  ;;  %v5178_v46 = vld [vmem:[#allocation3 + $0x150] sm:$0xff]  ;;  %v5179_v58 = vld [vmem:[#allocation3 + $0x158] sm:$0xff] }
 0x56c   :  { %v10831_v39 = vadd.f32 %v5178_v46, %v10558_v31  ;;  %v10834_v1 = vadd.f32 %v5179_v58, %v10562_v41  ;;  %4516 = vst.msk [vmem:[#allocation7 + $0x100] sm:$0xff] %vm119_vm0, %v10785_v51  ;;  %4517 = vst.msk [vmem:[#allocation7 + $0x108] sm:$0xff] %vm119_vm0, %v10788_v26  ;;  %v5180_v37 = vld [vmem:[#allocation3 + $0x160] sm:$0xff]  ;;  %v5181_v31 = vld [vmem:[#allocation3 + $0x168] sm:$0xff] }
 0x56d   :  { %4518 = vst.msk [vmem:[#allocation7 + $0x110] sm:$0xff] %vm119_vm0, %v10791_v42  ;;  %4519 = vst.msk [vmem:[#allocation7 + $0x118] sm:$0xff] %vm119_vm0, %v10794_v54  ;;  %v10845_v34 = vadd.f32 %v5180_v37, %v10566_v8  ;;  %v10848_v41 = vadd.f32 %v5181_v31, %v10570_v9  ;;  %v5182_v14 = vld [vmem:[#allocation3 + $0x170] sm:$0xff]  ;;  %v12626_v29 = vld [vmem:[#allocation52_spill] sm:$0xff] }
 0x56e   :  { %12623 = vst [vmem:[#allocation33_spill] sm:$0xff] %v10834_v1  ;;  %v10851_v23 = vadd.f32 %v5182_v14, %v12626_v29  ;;  %v5183_v22 = vld [vmem:[#allocation3 + $0x178] sm:$0xff]  ;;  %4520 = vst.msk [vmem:[#allocation7 + $0x120] sm:$0xff] %vm119_vm0, %v10805_v30  ;;  %v5184_v8 = vld [vmem:[#allocation3 + $0x180] sm:$0xff] }
 0x56f   :  { %12624 = vst [vmem:[#allocation34_spill] sm:$0xff] %v10845_v34  ;;  %12625 = vst [vmem:[#allocation146_spill] sm:$0xff] %v10848_v41  ;;  %v12627_v44 = vld [vmem:[#allocation19_spill] sm:$0xff]  ;;  %v12628_v9 = vld [vmem:[#allocation125_spill] sm:$0xff] }
 0x570   :  { %v10854_v46 = vadd.f32 %v5183_v22, %v12627_v44  ;;  %4521 = vst.msk [vmem:[#allocation7 + $0x128] sm:$0xff] %vm119_vm0, %v10808_v17  ;;  %4522 = vst.msk [vmem:[#allocation7 + $0x130] sm:$0xff] %vm119_vm0, %v10811_v18  ;;  %v10865_v58 = vadd.f32 %v5184_v8, %v12628_v9  ;;  %v5185_v37 = vld [vmem:[#allocation3 + $0x188] sm:$0xff]  ;;  %v12629_v31 = vld [vmem:[#allocation12_spill] sm:$0xff] }
 0x571   :  { %4523 = vst.msk [vmem:[#allocation7 + $0x138] sm:$0xff] %vm119_vm0, %v10814_v7  ;;  %v10868_v14 = vadd.f32 %v5185_v37, %v12629_v31  ;;  %v5186_v29 = vld [vmem:[#allocation3 + $0x190] sm:$0xff]  ;;  %v12631_v22 = vld [vmem:[#allocation13_spill] sm:$0xff]  ;;  %v5187_v30 = vld [vmem:[#allocation3 + $0x198] sm:$0xff] }
 0x572   :  { %v10871_v44 = vadd.f32 %v5186_v29, %v12631_v22  ;;  %v10874_v17 = vadd.f32 %v5187_v30, %v10594_v4  ;;  %4524 = vst.msk [vmem:[#allocation7 + $0x140] sm:$0xff] %vm119_vm0, %v10825_v10  ;;  %4525 = vst.msk [vmem:[#allocation7 + $0x148] sm:$0xff] %vm119_vm0, %v10828_v16  ;;  %v5188_v8 = vld [vmem:[#allocation3 + $0x1a0] sm:$0xff]  ;;  %v5189_v4 = vld [vmem:[#allocation3 + $0x1a8] sm:$0xff] }
 0x573   :  { %12630 = vst [vmem:[#allocation40_spill] sm:$0xff] %v10868_v14  ;;  %4526 = vst.msk [vmem:[#allocation7 + $0x150] sm:$0xff] %vm119_vm0, %v10831_v39  ;;  %v10887_v9 = vadd.f32 %v5188_v8, %v10598_v11  ;;  %v10890_v30 = vadd.f32 %v5189_v4, %v10602_v6  ;;  %v5190_v37 = vld [vmem:[#allocation3 + $0x1b0] sm:$0xff]  ;;  %v5191_v29 = vld [vmem:[#allocation3 + $0x1b8] sm:$0xff] }
 0x574   :  { %4527 = vst.msk [vmem:[#allocation7 + $0x158] sm:$0xff] %vm119_vm0, %v10834_v1  ;;  %v10893_v31 = vadd.f32 %v5190_v37, %v10606_v53  ;;  %v10896_v22 = vadd.f32 %v5191_v29, %v10610_v63  ;;  %4528 = vst.msk [vmem:[#allocation7 + $0x160] sm:$0xff] %vm119_vm0, %v10845_v34  ;;  %v5192_v11 = vld [vmem:[#allocation3 + $0x1c0] sm:$0xff]  ;;  %v5193_v53 = vld [vmem:[#allocation3 + $0x1c8] sm:$0xff] }
 0x575   :  { %4529 = vst.msk [vmem:[#allocation7 + $0x168] sm:$0xff] %vm119_vm0, %v10848_v41  ;;  %4530 = vst.msk [vmem:[#allocation7 + $0x170] sm:$0xff] %vm119_vm0, %v10851_v23  ;;  %v10907_v6 = vadd.f32 %v5192_v11, %v10614_v36  ;;  %v12632_v8 = vld [vmem:[#allocation36_spill] sm:$0xff]  ;;  %v5194_v4 = vld [vmem:[#allocation3 + $0x1d0] sm:$0xff] }
 0x576   :  { %4531 = vst.msk [vmem:[#allocation7 + $0x178] sm:$0xff] %vm119_vm0, %v10854_v46  ;;  %v10910_v63 = vadd.f32 %v5193_v53, %v12632_v8  ;;  %v12633_v37 = vld [vmem:[#allocation84_spill] sm:$0xff]  ;;  %v5195_v34 = vld [vmem:[#allocation3 + $0x1d8] sm:$0xff]  ;;  %v12634_v41 = vld [vmem:[#allocation113_spill] sm:$0xff] }
 0x577   :  { %v10913_v29 = vadd.f32 %v5194_v4, %v12633_v37  ;;  %v10916_v1 = vadd.f32 %v5195_v34, %v12634_v41  ;;  %4532 = vst.msk [vmem:[#allocation7 + $0x180] sm:$0xff] %vm119_vm0, %v10865_v58  ;;  %4533 = vst.msk [vmem:[#allocation7 + $0x188] sm:$0xff] %vm119_vm0, %v10868_v14  ;;  %v5196_v36 = vld [vmem:[#allocation3 + $0x1e0] sm:$0xff]  ;;  %v12635_v11 = vld [vmem:[#allocation85_spill] sm:$0xff]  ;;  %v4356_v14 = vmax.f32 %v10641_v28, 0.0  ;;  %v4359_v28 = vmax.f32 %v10650_v61, 0.0 }
 0x578   :  { %4534 = vst.msk [vmem:[#allocation7 + $0x190] sm:$0xff] %vm119_vm0, %v10871_v44  ;;  %4535 = vst.msk [vmem:[#allocation7 + $0x198] sm:$0xff] %vm119_vm0, %v10874_v17  ;;  %v10927_v53 = vadd.f32 %v5196_v36, %v12635_v11  ;;  %v5197_v8 = vld [vmem:[#allocation3 + $0x1e8] sm:$0xff]  ;;  %v12636_v34 = vld [vmem:[#allocation119_spill] sm:$0xff]  ;;  %v4357_v36 = vmax.f32 %v10644_v60, 0.0  ;;  %v4360_v11 = vmax.f32 %v10653_v45, 0.0 }
 0x579   :  { %v10930_v41 = vadd.f32 %v5197_v8, %v12636_v34  ;;  %v5198_v4 = vld [vmem:[#allocation3 + $0x1f8] sm:$0xff]  ;;  %4536 = vst.msk [vmem:[#allocation7 + $0x1a0] sm:$0xff] %vm119_vm0, %v10887_v9  ;;  %4537 = vst.msk [vmem:[#allocation7 + $0x1a8] sm:$0xff] %vm119_vm0, %v10890_v30  ;;  %v4361_v60 = vmax.f32 %v10656_v2, 0.0  ;;  %v4363_v61 = vmax.f32 %v10662_v3, 0.0  ;;  %v4364_v45 = vmax.f32 %v10665_v0, 0.0 }
 0x57a   :  { %v10933_v37 = vadd.f32 %v5198_v4, %v10638_v43  ;;  %4538 = vst.msk [vmem:[#allocation7 + $0x1b0] sm:$0xff] %vm119_vm0, %v10893_v31  ;;  %4539 = vst.msk [vmem:[#allocation7 + $0x1b8] sm:$0xff] %vm119_vm0, %v10896_v22  ;;  %v4358_v43 = vmax.f32 %v10647_v15, 0.0  ;;  %v4362_v15 = vmax.f32 %v10659_v35, 0.0  ;;  %v4365_v2 = vmax.f32 %v10668_v52, 0.0 }
 0x57b   :  { %4540 = vst.msk [vmem:[#allocation7 + $0x1c0] sm:$0xff] %vm119_vm0, %v10907_v6  ;;  %4541 = vst.msk [vmem:[#allocation7 + $0x1c8] sm:$0xff] %vm119_vm0, %v10910_v63  ;;  %v4366_v35 = vmax.f32 %v10671_v56, 0.0  ;;  %v4367_v3 = vmax.f32 %v10674_v59, 0.0  ;;  %v4368_v8 = vmax.f32 %v10685_v55, 0.0 }
 0x57c   :  { %4542 = vst.msk [vmem:[#allocation7 + $0x1d0] sm:$0xff] %vm119_vm0, %v10913_v29  ;;  %4543 = vst.msk [vmem:[#allocation7 + $0x1d8] sm:$0xff] %vm119_vm0, %v10916_v1 }
 0x57d   :  { %4420 = vst.msk [vmem:[#allocation6] sm:$0xff] %vm119_vm0, %v4356_v14  ;;  %4544 = vst.msk [vmem:[#allocation7 + $0x1e0] sm:$0xff] %vm119_vm0, %v10927_v53 }
 0x57e   :  { %4545 = vst.msk [vmem:[#allocation7 + $0x1e8] sm:$0xff] %vm119_vm0, %v10930_v41  ;;  %4547 = vst.msk [vmem:[#allocation7 + $0x1f8] sm:$0xff] %vm119_vm0, %v10933_v37 }
 0x57f   :  { %4421 = vst.msk [vmem:[#allocation6 + $0x8] sm:$0xff] %vm119_vm0, %v4357_v36  ;;  %4422 = vst.msk [vmem:[#allocation6 + $0x10] sm:$0xff] %vm119_vm0, %v4358_v43 }
 0x580   :  { %4423 = vst.msk [vmem:[#allocation6 + $0x18] sm:$0xff] %vm119_vm0, %v4359_v28  ;;  %4424 = vst.msk [vmem:[#allocation6 + $0x20] sm:$0xff] %vm119_vm0, %v4360_v11 }
 0x581   :  { %5230 = shalt.err (!%p5227_p9)
}
 0x582   :  { %4571 = dma.vmem_to_hbm [thread:$0]  %s10945_s9, 8192, %s11114_s11, [#allocation8], %s5266_s20, %s5266_s20, %s5267_s21   ;;  %v4369_v0 = vmax.f32 %v10688_v27, 0.0  ;;  %v4370_v52 = vmax.f32 %v10691_v13, 0.0  ;;  %v4371_v56 = vmax.f32 %v10694_v40, 0.0  ;;  %v4372_v59 = vmax.f32 %v10705_v19, 0.0 }
 0x583   :  { %4425 = vst.msk [vmem:[#allocation6 + $0x28] sm:$0xff] %vm119_vm0, %v4361_v60  ;;  %4426 = vst.msk [vmem:[#allocation6 + $0x30] sm:$0xff] %vm119_vm0, %v4362_v15  ;;  %v4373_v55 = vmax.f32 %v10708_v5, 0.0  ;;  %v4374_v14 = vmax.f32 %v10711_v49, 0.0  ;;  %v4375_v27 = vmax.f32 %v10714_v32, 0.0  ;;  %v4376_v13 = vmax.f32 %v10725_v12, 0.0 }
 0x584   :  { %4427 = vst.msk [vmem:[#allocation6 + $0x38] sm:$0xff] %vm119_vm0, %v4363_v61  ;;  %4428 = vst.msk [vmem:[#allocation6 + $0x40] sm:$0xff] %vm119_vm0, %v4364_v45  ;;  %v4377_v40 = vmax.f32 %v10728_v21, 0.0  ;;  %v4378_v19 = vmax.f32 %v10731_v24, 0.0  ;;  %v4379_v5 = vmax.f32 %v10734_v25, 0.0  ;;  %v4380_v49 = vmax.f32 %v10745_v20, 0.0 }
 0x585   :  { %4429 = vst.msk [vmem:[#allocation6 + $0x48] sm:$0xff] %vm119_vm0, %v4365_v2  ;;  %4430 = vst.msk [vmem:[#allocation6 + $0x50] sm:$0xff] %vm119_vm0, %v4366_v35  ;;  %v4381_v32 = vmax.f32 %v10748_v47, 0.0  ;;  %v4382_v12 = vmax.f32 %v10751_v50, 0.0  ;;  %v4383_v21 = vmax.f32 %v10754_v38, 0.0  ;;  %v4384_v24 = vmax.f32 %v10765_v48, 0.0 }
 0x586   :  { %4431 = vst.msk [vmem:[#allocation6 + $0x58] sm:$0xff] %vm119_vm0, %v4367_v3  ;;  %4432 = vst.msk [vmem:[#allocation6 + $0x60] sm:$0xff] %vm119_vm0, %v4368_v8  ;;  %v4385_v25 = vmax.f32 %v10768_v62, 0.0  ;;  %v4386_v20 = vmax.f32 %v10771_v33, 0.0  ;;  %v4387_v47 = vmax.f32 %v10774_v57, 0.0  ;;  %v4388_v50 = vmax.f32 %v10785_v51, 0.0 }
 0x587   :  { %4433 = vst.msk [vmem:[#allocation6 + $0x68] sm:$0xff] %vm119_vm0, %v4369_v0  ;;  %4434 = vst.msk [vmem:[#allocation6 + $0x70] sm:$0xff] %vm119_vm0, %v4370_v52  ;;  %v4389_v38 = vmax.f32 %v10788_v26, 0.0  ;;  %v4390_v48 = vmax.f32 %v10791_v42, 0.0  ;;  %v4391_v62 = vmax.f32 %v10794_v54, 0.0  ;;  %v12637_v34 = vld [vmem:[#allocation39_spill] sm:$0xff] }
 0x588   :  { %4435 = vst.msk [vmem:[#allocation6 + $0x78] sm:$0xff] %vm119_vm0, %v4371_v56  ;;  %4436 = vst.msk [vmem:[#allocation6 + $0x80] sm:$0xff] %vm119_vm0, %v4372_v59  ;;  %v4392_v33 = vmax.f32 %v12637_v34, 0.0  ;;  %v12638_v57 = vld [vmem:[#allocation130_spill] sm:$0xff]  ;;  %v4394_v4 = vmax.f32 %v10811_v18, 0.0  ;;  %v4395_v26 = vmax.f32 %v10814_v7, 0.0 }
 0x589   :  { %4437 = vst.msk [vmem:[#allocation6 + $0x88] sm:$0xff] %vm119_vm0, %v4373_v55  ;;  %4438 = vst.msk [vmem:[#allocation6 + $0x90] sm:$0xff] %vm119_vm0, %v4374_v14  ;;  %v4393_v51 = vmax.f32 %v12638_v57, 0.0  ;;  %v4396_v42 = vmax.f32 %v10825_v10, 0.0  ;;  %v4397_v54 = vmax.f32 %v10828_v16, 0.0  ;;  %v4398_v36 = vmax.f32 %v10831_v39, 0.0 }
 0x58a   :  { %4439 = vst.msk [vmem:[#allocation6 + $0x98] sm:$0xff] %vm119_vm0, %v4375_v27  ;;  %4440 = vst.msk [vmem:[#allocation6 + $0xa0] sm:$0xff] %vm119_vm0, %v4376_v13  ;;  %v12639_v43 = vld [vmem:[#allocation33_spill] sm:$0xff]  ;;  %v12640_v11 = vld [vmem:[#allocation34_spill] sm:$0xff]  ;;  %v4402_v60 = vmax.f32 %v10851_v23, 0.0  ;;  %v4403_v16 = vmax.f32 %v10854_v46, 0.0 }
 0x58b   :  { %4441 = vst.msk [vmem:[#allocation6 + $0xa8] sm:$0xff] %vm119_vm0, %v4377_v40  ;;  %4442 = vst.msk [vmem:[#allocation6 + $0xb0] sm:$0xff] %vm119_vm0, %v4378_v19  ;;  %v4399_v28 = vmax.f32 %v12639_v43, 0.0  ;;  %v4400_v18 = vmax.f32 %v12640_v11, 0.0  ;;  %v12641_v7 = vld [vmem:[#allocation146_spill] sm:$0xff]  ;;  %v4404_v39 = vmax.f32 %v10865_v58, 0.0 }
 0x58c   :  { %4443 = vst.msk [vmem:[#allocation6 + $0xb8] sm:$0xff] %vm119_vm0, %v4379_v5  ;;  %4444 = vst.msk [vmem:[#allocation6 + $0xc0] sm:$0xff] %vm119_vm0, %v4380_v49  ;;  %v4401_v10 = vmax.f32 %v12641_v7, 0.0  ;;  %v12642_v15 = vld [vmem:[#allocation40_spill] sm:$0xff]  ;;  %v4406_v45 = vmax.f32 %v10871_v44, 0.0  ;;  %v4407_v2 = vmax.f32 %v10874_v17, 0.0 }
 0x58d   :  { %4445 = vst.msk [vmem:[#allocation6 + $0xc8] sm:$0xff] %vm119_vm0, %v4381_v32  ;;  %4446 = vst.msk [vmem:[#allocation6 + $0xd0] sm:$0xff] %vm119_vm0, %v4382_v12  ;;  %v4405_v61 = vmax.f32 %v12642_v15, 0.0  ;;  %v4408_v23 = vmax.f32 %v10887_v9, 0.0  ;;  %s5270_s11 = smov [#allocation6]   ;;  %v4409_v46 = vmax.f32 %v10890_v30, 0.0 }
 0x58e   :  { %4447 = vst.msk [vmem:[#allocation6 + $0xd8] sm:$0xff] %vm119_vm0, %v4383_v21  ;;  %4448 = vst.msk [vmem:[#allocation6 + $0xe0] sm:$0xff] %vm119_vm0, %v4384_v24  ;;  %s4553_s14 = sshll.u32 %s5270_s11, 4  ;;  %v4410_v58 = vmax.f32 %v10893_v31, 0.0  ;;  %v4411_v44 = vmax.f32 %v10896_v22, 0.0  ;;  %v4412_v17 = vmax.f32 %v10907_v6, 0.0  ;;  %s4554_s14 = int_to_ptr.vmem [resolvable:$true] %s4553_s14 }
 0x58f   :  { %4449 = vst.msk [vmem:[#allocation6 + $0xe8] sm:$0xff] %vm119_vm0, %v4385_v25  ;;  %4450 = vst.msk [vmem:[#allocation6 + $0xf0] sm:$0xff] %vm119_vm0, %v4386_v20  ;;  %v4413_v9 = vmax.f32 %v10910_v63, 0.0  ;;  %v4414_v35 = vmax.f32 %v10913_v29, 0.0  ;;  %v4415_v30 = vmax.f32 %v10916_v1, 0.0  ;;  %v4416_v31 = vmax.f32 %v10927_v53, 0.0  ;;  %p5244_p11 = scmp.lt.s32.totalorder %s4554_s14, %s4554_s14 }
 0x590   :  { %4451 = vst.msk [vmem:[#allocation6 + $0xf8] sm:$0xff] %vm119_vm0, %v4387_v47  ;;  %4452 = vst.msk [vmem:[#allocation6 + $0x100] sm:$0xff] %vm119_vm0, %v4388_v50  ;;  %v4417_v22 = vmax.f32 %v10930_v41, 0.0  ;;  %v4419_v6 = vmax.f32 %v10933_v37, 0.0  ;;  %s5239_s15 = scalar_lea.vmem %s4554_s14, 8192 }
 0x591   :  { %4453 = vst.msk [vmem:[#allocation6 + $0x108] sm:$0xff] %vm119_vm0, %v4389_v38  ;;  %4454 = vst.msk [vmem:[#allocation6 + $0x110] sm:$0xff] %vm119_vm0, %v4390_v48  ;;  %p5240_p10 = scmp.ne.s32.totalorder %s4554_s14, %s5239_s15  ;;  %p5245_p12 = scmp.lt.s32.totalorder %s5239_s15, %s5239_s15 }
 0x592   :  { %4455 = vst.msk [vmem:[#allocation6 + $0x118] sm:$0xff] %vm119_vm0, %v4391_v62  ;;  %4456 = vst.msk [vmem:[#allocation6 + $0x120] sm:$0xff] %vm119_vm0, %v4392_v33 }
 0x593   :  { %4457 = vst.msk [vmem:[#allocation6 + $0x128] sm:$0xff] %vm119_vm0, %v4393_v51  ;;  %4458 = vst.msk [vmem:[#allocation6 + $0x130] sm:$0xff] %vm119_vm0, %v4394_v4  ;;  %p5246_p13 = por %p5245_p12, %p5244_p11 }
 0x594   :  { %4459 = vst.msk [vmem:[#allocation6 + $0x138] sm:$0xff] %vm119_vm0, %v4395_v26  ;;  %4460 = vst.msk [vmem:[#allocation6 + $0x140] sm:$0xff] %vm119_vm0, %v4396_v42 }
 0x595   :  { %4461 = vst.msk [vmem:[#allocation6 + $0x148] sm:$0xff] %vm119_vm0, %v4397_v54  ;;  %4462 = vst.msk [vmem:[#allocation6 + $0x150] sm:$0xff] %vm119_vm0, %v4398_v36  ;;  %p5247_p0 = pnand %p5246_p13, %p5240_p10 }
 0x596   :  { %4463 = vst.msk [vmem:[#allocation6 + $0x158] sm:$0xff] %vm119_vm0, %v4399_v28  ;;  %4464 = vst.msk [vmem:[#allocation6 + $0x160] sm:$0xff] %vm119_vm0, %v4400_v18 }
 0x597   :  { %4465 = vst.msk [vmem:[#allocation6 + $0x168] sm:$0xff] %vm119_vm0, %v4401_v10  ;;  %4466 = vst.msk [vmem:[#allocation6 + $0x170] sm:$0xff] %vm119_vm0, %v4402_v60 }
 0x598   :  { %4467 = vst.msk [vmem:[#allocation6 + $0x178] sm:$0xff] %vm119_vm0, %v4403_v16  ;;  %4468 = vst.msk [vmem:[#allocation6 + $0x180] sm:$0xff] %vm119_vm0, %v4404_v39 }
 0x599   :  { %4469 = vst.msk [vmem:[#allocation6 + $0x188] sm:$0xff] %vm119_vm0, %v4405_v61  ;;  %4470 = vst.msk [vmem:[#allocation6 + $0x190] sm:$0xff] %vm119_vm0, %v4406_v45 }
 0x59a   :  { %4471 = vst.msk [vmem:[#allocation6 + $0x198] sm:$0xff] %vm119_vm0, %v4407_v2  ;;  %4472 = vst.msk [vmem:[#allocation6 + $0x1a0] sm:$0xff] %vm119_vm0, %v4408_v23 }
 0x59b   :  { %4473 = vst.msk [vmem:[#allocation6 + $0x1a8] sm:$0xff] %vm119_vm0, %v4409_v46  ;;  %4474 = vst.msk [vmem:[#allocation6 + $0x1b0] sm:$0xff] %vm119_vm0, %v4410_v58 }
 0x59c   :  { %4475 = vst.msk [vmem:[#allocation6 + $0x1b8] sm:$0xff] %vm119_vm0, %v4411_v44  ;;  %4476 = vst.msk [vmem:[#allocation6 + $0x1c0] sm:$0xff] %vm119_vm0, %v4412_v17 }
 0x59d   :  { %4477 = vst.msk [vmem:[#allocation6 + $0x1c8] sm:$0xff] %vm119_vm0, %v4413_v9  ;;  %4478 = vst.msk [vmem:[#allocation6 + $0x1d0] sm:$0xff] %vm119_vm0, %v4414_v35 }
 0x59e   :  { %4479 = vst.msk [vmem:[#allocation6 + $0x1d8] sm:$0xff] %vm119_vm0, %v4415_v30  ;;  %4480 = vst.msk [vmem:[#allocation6 + $0x1e0] sm:$0xff] %vm119_vm0, %v4416_v31 }
 0x59f   :  { %4481 = vst.msk [vmem:[#allocation6 + $0x1e8] sm:$0xff] %vm119_vm0, %v4417_v22  ;;  %4483 = vst.msk [vmem:[#allocation6 + $0x1f8] sm:$0xff] %vm119_vm0, %v4419_v6 }
 0x5a0   :  { %5250 = shalt.err (!%p5247_p0)
}
 0x5a1   :  { %4559 = dma.vmem_to_hbm [thread:$0]  %s4554_s14, 8192, %s11113_s10, [#allocation5], %s5266_s20, %s5266_s20, %s5267_s21  }
 0x5a2   :  { %5261 = dma.done.wait [#allocation5], 8192  }
 0x5a3   :  { %5262 = vsyncadd [#allocation5], 4294959104 }
 0x5a4   :  { %5263 = dma.done.wait [#allocation8], 8192  }
 0x5a5   :  { %5264 = vsyncadd [#allocation8], 4294959104 }
 0x5a6   :  { %4578 = vsyncpa [#allocation4], 1 }
 0x5a7   :  { %4579 = vsyncpa [#allocation5], 1 }
 0x5a8   :  { %4580 = vsyncpa [#allocation8], 1 }

</bundles_post_ra>
